<compile_context>
chip_gen: v6e
topology: v6e:2x2x1
jax: 0.10.0
libtpu: 0.0.40
codegen_flags: <defaults>
</compile_context>

<pallas_src>
import jax
import jax.numpy as jnp
from jax.experimental import pallas as pl
from jax.experimental.pallas import tpu as pltpu


NEG_SLOPE = 0.01
BN_EPS = 1e-5
LANE = 128   # TPU lane width; channel dims are padded to a multiple of this.


def _stacked_conv_kernel(x_ref, w_ref, scale_ref, shift_ref, o_ref,
                         act_ref, acc_ref):
    """All conv blocks for ONE batch element; activation stays resident in VMEM.

    x_ref:     (1, H, W, C)   bf16  channel-padded input (NHWC), C = Cpad
    w_ref:     (L, 9, C, C)   bf16  per-layer weights, tap index = kh*3 + kw
    scale_ref: (L, 1, C)      f32   gamma / sqrt(var + eps)        (0 in pad lanes)
    shift_ref: (L, 1, C)      f32   beta - mean*scale + bias*scale (0 in pad lanes)
    o_ref:     (1, H, W, C)   f32   output (NHWC, channel-padded)
    act_ref:   (H+2, W+2, C)  bf16  spatially padded activation scratch
    acc_ref:   (H*W, C)       f32   conv accumulator
    """
    _, H, W, C = x_ref.shape
    L = w_ref.shape[0]

    # (Re)zero only the 1-pixel halo border; the interior is fully overwritten
    # below.  Done every grid step so each TensorCore's private scratch is
    # initialized no matter which batch indices it runs (megacore-safe), and it
    # is tiny compared with a full-scratch clear.
    zrow = jnp.zeros((1, W + 2, C), act_ref.dtype)
    act_ref[0:1, :, :] = zrow
    act_ref[H + 1:H + 2, :, :] = zrow
    zcol = jnp.zeros((H, 1, C), act_ref.dtype)
    act_ref[1:H + 1, 0:1, :] = zcol
    act_ref[1:H + 1, W + 1:W + 2, :] = zcol

    # Current activation lives in the interior of the padded scratch (bf16).
    act_ref[1:H + 1, 1:W + 1, :] = x_ref[0]

    for l in range(L):                       # static, small (num_convs)
        # 3x3 conv = nine accumulating MXU matmuls over shifted windows of the
        # padded activation -- no im2col packing pass, no (H*W, 9*C) scratch.
        # K = C (>=128) per matmul, M = H*W, N = C (lane-dense).
        # TODO(synk): on v6e/v7x, group taps to K >= 256 once a zero-copy
        #             grouping (weight-folded shift / pltpu.roll) is in place.
        for tap in range(9):
            kh, kw = divmod(tap, 3)
            lhs = act_ref[kh:kh + H, kw:kw + W, :].reshape(H * W, C)
            contrib = jnp.dot(lhs, w_ref[l, tap],
                              preferred_element_type=jnp.float32)
            if tap == 0:
                acc_ref[...] = contrib
            else:
                acc_ref[...] += contrib

        # Fused conv-bias + BatchNorm(eval) affine + LeakyReLU, in f32 (VPU).
        y = acc_ref[...] * scale_ref[l] + shift_ref[l]
        y = jnp.where(y >= 0.0, y, NEG_SLOPE * y)

        if l + 1 < L:
            # Next layer's input: cast to bf16 (the MXU operand dtype) and
            # write back into the interior.  Padded channels are exactly zero
            # (their weight columns and scale/shift are zero), so both the
            # halo and the padded-channel invariants hold across layers.
            act_ref[1:H + 1, 1:W + 1, :] = (
                y.reshape(H, W, C).astype(act_ref.dtype))
        else:
            o_ref[0] = y.reshape(H, W, C).astype(o_ref.dtype)


@jax.jit
def stacked_conv_layers_forward(x_nchw, params):
    """Forward pass of StackedConvLayers (eval). Input/output are NCHW."""
    N, Cin0, H, W = x_nchw.shape
    L = len(params)
    Cout = params[0]["w"].shape[-1]
    # Lane-dense channel padding: one shared Cpad so every layer's matmul has
    # the same (K, N) = (Cpad, Cpad) shape and every store is full-lane.
    Cpad = ((max(Cin0, Cout) + LANE - 1) // LANE) * LANE

    # NCHW -> NHWC, zero-pad channels to Cpad, cast bf16 (MXU operand dtype).
    x = jnp.transpose(x_nchw, (0, 2, 3, 1))
    x = jnp.pad(x, ((0, 0), (0, 0), (0, 0), (0, Cpad - Cin0)))
    x = x.astype(jnp.bfloat16)

    # Per-layer weights -> (L, 9, Cpad, Cpad) (tap = kh*3 + kw); conv bias +
    # BN(eval) folded into one per-channel affine, zero in padded lanes.
    ws, scales, shifts = [], [], []
    for p in params:
        w = p["w"]                                     # (3, 3, Cin_l, Cout) HWIO
        cin_l = w.shape[2]
        w = jnp.pad(w, ((0, 0), (0, 0), (0, Cpad - cin_l), (0, Cpad - Cout)))
        ws.append(w.reshape(9, Cpad, Cpad))
        scale = p["gamma"] * jax.lax.rsqrt(p["var"] + BN_EPS)
        shift = p["beta"] - p["mean"] * scale + p["b"] * scale
        scales.append(jnp.pad(scale, (0, Cpad - Cout)).reshape(1, Cpad))
        shifts.append(jnp.pad(shift, (0, Cpad - Cout)).reshape(1, Cpad))
    w_all = jnp.stack(ws).astype(jnp.bfloat16)          # (L, 9, Cpad, Cpad)
    scale_all = jnp.stack(scales).astype(jnp.float32)   # (L, 1, Cpad)
    shift_all = jnp.stack(shifts).astype(jnp.float32)   # (L, 1, Cpad)

    out_nhwc = pl.pallas_call(
        _stacked_conv_kernel,
        out_shape=jax.ShapeDtypeStruct((N, H, W, Cpad), jnp.float32),
        grid_spec=pltpu.PrefetchScalarGridSpec(
            num_scalar_prefetch=0,
            grid=(N,),                 # batch axis: shards across TCs on v7x
            in_specs=[
                pl.BlockSpec((1, H, W, Cpad), lambda n: (n, 0, 0, 0)),
                pl.BlockSpec((L, 9, Cpad, Cpad), lambda n: (0, 0, 0, 0)),
                pl.BlockSpec((L, 1, Cpad), lambda n: (0, 0, 0)),
                pl.BlockSpec((L, 1, Cpad), lambda n: (0, 0, 0)),
            ],
            out_specs=pl.BlockSpec((1, H, W, Cpad), lambda n: (n, 0, 0, 0)),
            scratch_shapes=[
                pltpu.VMEM((H + 2, W + 2, Cpad), jnp.bfloat16),  # padded act
                pltpu.VMEM((H * W, Cpad), jnp.float32),          # f32 conv acc
            ],
        ),
        compiler_params=pltpu.CompilerParams(
            dimension_semantics=("parallel",)),
    )(x, w_all, scale_all, shift_all)

    # Drop channel padding, NHWC -> NCHW (PyTorch convention).
    return jnp.transpose(out_nhwc[..., :Cout], (0, 3, 1, 2))


def init_stacked_conv_params(key, input_channels, output_channels, num_convs):
    """Deterministic parameter init mirroring the module's __init__ shapes."""
    params = []
    cin = input_channels
    for i in range(num_convs):
        k = jax.random.fold_in(key, i)
        k_w, k_b, k_g, k_be, k_m, k_v = jax.random.split(k, 6)
        w = jax.random.normal(k_w, (3, 3, cin, output_channels),
                              dtype=jnp.float32) * 0.1
        b = jax.random.normal(k_b, (output_channels,), dtype=jnp.float32) * 0.1
        gamma = 1.0 + 0.1 * jax.random.normal(k_g, (output_channels,),
                                              dtype=jnp.float32)
        beta = 0.1 * jax.random.normal(k_be, (output_channels,),
                                       dtype=jnp.float32)
        running_mean = 0.1 * jax.random.normal(k_m, (output_channels,),
                                               dtype=jnp.float32)
        running_var = 1.0 + 0.1 * jax.random.uniform(k_v, (output_channels,),
                                                     dtype=jnp.float32)
        params.append(dict(w=w, b=b, gamma=gamma, beta=beta,
                           mean=running_mean, var=running_var))
        cin = output_channels
    return params


def _reference_forward(x_nchw, params):
    """Pure-JAX f32 reference (Conv2d + BN(eval) + LeakyReLU), for validation."""
    x = jnp.transpose(x_nchw, (0, 2, 3, 1)).astype(jnp.float32)
    for p in params:
        y = jax.lax.conv_general_dilated(
            x, p["w"], window_strides=(1, 1), padding=((1, 1), (1, 1)),
            dimension_numbers=("NHWC", "HWIO", "NHWC"))
        y = y + p["b"]
        y = (y - p["mean"]) / jnp.sqrt(p["var"] + BN_EPS) * p["gamma"] + p["beta"]
        x = jnp.where(y >= 0.0, y, NEG_SLOPE * y)
    return jnp.transpose(x, (0, 3, 1, 2))


if __name__ == "__main__":
    key = jax.random.PRNGKey(0)
    k_x, k_p = jax.random.split(key)

    # Small shapes consistent with the module: batch=2, Cin=4 -> Cout=8,
    # 16x16 spatial, num_convs=2.
    N, Cin, H, W = 2, 4, 16, 16
    Cout = 8
    num_convs = 2

    x = jax.random.normal(k_x, (N, Cin, H, W), dtype=jnp.float32)
    params = init_stacked_conv_params(k_p, Cin, Cout, num_convs)

    out = stacked_conv_layers_forward(x, params)
    out = jax.block_until_ready(out)

    assert out.shape == (N, Cout, H, W), out.shape
    assert bool(jnp.all(jnp.isfinite(out)))

    # Correctness vs. a pure-JAX f32 reference (loose tol for bf16 MXU operands).
    ref = _reference_forward(x, params)
    max_err = float(jnp.max(jnp.abs(out - ref)))
    assert max_err < 5e-2, f"max abs err vs reference: {max_err}"

    print("KERNEL_OK")
</pallas_src>

<mosaic_0001>
module attributes {stable_mosaic.version = 11 : i64} {
  func.func @_stacked_conv_kernel(%arg0: i32, %arg1: memref<1x16x16x128xbf16, #tpu.memory_space<vmem>>, %arg2: memref<2x9x128x128xbf16, #tpu.memory_space<vmem>>, %arg3: memref<2x1x128xf32, #tpu.memory_space<vmem>>, %arg4: memref<2x1x128xf32, #tpu.memory_space<vmem>>, %arg5: memref<1x16x16x128xf32, #tpu.memory_space<vmem>>, %arg6: memref<18x18x128xbf16, #tpu.memory_space<vmem>>, %arg7: memref<256x128xf32, #tpu.memory_space<vmem>>) attributes {dimension_semantics = [#tpu.dimension_semantics<parallel>], iteration_bounds = array<i64: 2>, scalar_prefetch = 0 : i64, scratch_operands = 2 : i64, tpu.core_type = #tpu.core_type<tc>, window_params = [{transform_indices = @transform_0, window_bounds = array<i64: 1, 16, 16, 128>}, {pipeline_mode = #tpu.pipeline_mode<synchronous>, transform_indices = @transform_1, window_bounds = array<i64: 2, 9, 128, 128>}, {pipeline_mode = #tpu.pipeline_mode<synchronous>, transform_indices = @transform_2, window_bounds = array<i64: 2, 1, 128>}, {pipeline_mode = #tpu.pipeline_mode<synchronous>, transform_indices = @transform_3, window_bounds = array<i64: 2, 1, 128>}, {transform_indices = @transform_4, window_bounds = array<i64: 1, 16, 16, 128>}]} {
    %cst = arith.constant 0.000000e+00 : bf16
    %0 = vector.broadcast %cst : bf16 to vector<1x18x128xbf16>
    %c0 = arith.constant 0 : index
    %c0_0 = arith.constant 0 : index
    %c0_1 = arith.constant 0 : index
    %1 = vector.load %arg6[%c0, %c0_0, %c0_1] : memref<18x18x128xbf16, #tpu.memory_space<vmem>>, vector<1x18x128xbf16>
    tpu.vector_store %arg6[%c0, %c0_0, %c0_1], %0 {strides = array<i32>} : memref<18x18x128xbf16, #tpu.memory_space<vmem>>, vector<1x18x128xbf16>,
    %c17 = arith.constant 17 : index
    %c0_2 = arith.constant 0 : index
    %c0_3 = arith.constant 0 : index
    %2 = vector.load %arg6[%c17, %c0_2, %c0_3] : memref<18x18x128xbf16, #tpu.memory_space<vmem>>, vector<1x18x128xbf16>
    tpu.vector_store %arg6[%c17, %c0_2, %c0_3], %0 {strides = array<i32>} : memref<18x18x128xbf16, #tpu.memory_space<vmem>>, vector<1x18x128xbf16>,
    %cst_4 = arith.constant 0.000000e+00 : bf16
    %3 = vector.broadcast %cst_4 : bf16 to vector<16x1x128xbf16>
    %c1 = arith.constant 1 : index
    %c0_5 = arith.constant 0 : index
    %c0_6 = arith.constant 0 : index
    %4 = vector.load %arg6[%c1, %c0_5, %c0_6] : memref<18x18x128xbf16, #tpu.memory_space<vmem>>, vector<16x1x128xbf16>
    tpu.vector_store %arg6[%c1, %c0_5, %c0_6], %3 {strides = array<i32>} : memref<18x18x128xbf16, #tpu.memory_space<vmem>>, vector<16x1x128xbf16>,
    %c1_7 = arith.constant 1 : index
    %c17_8 = arith.constant 17 : index
    %c0_9 = arith.constant 0 : index
    %5 = vector.load %arg6[%c1_7, %c17_8, %c0_9] : memref<18x18x128xbf16, #tpu.memory_space<vmem>>, vector<16x1x128xbf16>
    tpu.vector_store %arg6[%c1_7, %c17_8, %c0_9], %3 {strides = array<i32>} : memref<18x18x128xbf16, #tpu.memory_space<vmem>>, vector<16x1x128xbf16>,
    %c0_10 = arith.constant 0 : index
    %c0_11 = arith.constant 0 : index
    %c0_12 = arith.constant 0 : index
    %c0_13 = arith.constant 0 : index
    %6 = vector.load %arg1[%c0_10, %c0_11, %c0_12, %c0_13] : memref<1x16x16x128xbf16, #tpu.memory_space<vmem>>, vector<1x16x16x128xbf16>
    %7 = vector.shape_cast %6 : vector<1x16x16x128xbf16> to vector<16x16x128xbf16>
    %c1_14 = arith.constant 1 : index
    %c1_15 = arith.constant 1 : index
    %c0_16 = arith.constant 0 : index
    %8 = vector.load %arg6[%c1_14, %c1_15, %c0_16] : memref<18x18x128xbf16, #tpu.memory_space<vmem>>, vector<16x16x128xbf16>
    tpu.vector_store %arg6[%c1_14, %c1_15, %c0_16], %7 {strides = array<i32>} : memref<18x18x128xbf16, #tpu.memory_space<vmem>>, vector<16x16x128xbf16>,
    %c0_17 = arith.constant 0 : index
    %c0_18 = arith.constant 0 : index
    %c0_19 = arith.constant 0 : index
    %9 = vector.load %arg6[%c0_17, %c0_18, %c0_19] : memref<18x18x128xbf16, #tpu.memory_space<vmem>>, vector<16x16x128xbf16>
    %10 = vector.shape_cast %9 : vector<16x16x128xbf16> to vector<256x128xbf16>
    %c0_20 = arith.constant 0 : index
    %c0_21 = arith.constant 0 : index
    %c0_22 = arith.constant 0 : index
    %c0_23 = arith.constant 0 : index
    %11 = vector.load %arg2[%c0_20, %c0_21, %c0_22, %c0_23] : memref<2x9x128x128xbf16, #tpu.memory_space<vmem>>, vector<1x1x128x128xbf16>
    %12 = vector.shape_cast %11 : vector<1x1x128x128xbf16> to vector<128x128xbf16>
    %cst_24 = arith.constant dense<0.000000e+00> : vector<256x128xf32>
    %13 = tpu.matmul %10, %12, %cst_24 {dimension_numbers = #tpu.dot_dimension_numbers<[1], [0], [0], [1], [0, 0, 1, 1], [], []>} : vector<256x128xbf16>, vector<128x128xbf16>, vector<256x128xf32> -> vector<256x128xf32>
    %c0_25 = arith.constant 0 : index
    %c0_26 = arith.constant 0 : index
    %14 = vector.load %arg7[%c0_25, %c0_26] : memref<256x128xf32, #tpu.memory_space<vmem>>, vector<256x128xf32>
    tpu.vector_store %arg7[%c0_25, %c0_26], %13 {strides = array<i32>} : memref<256x128xf32, #tpu.memory_space<vmem>>, vector<256x128xf32>,
    %c0_27 = arith.constant 0 : index
    %c1_28 = arith.constant 1 : index
    %c0_29 = arith.constant 0 : index
    %15 = vector.load %arg6[%c0_27, %c1_28, %c0_29] : memref<18x18x128xbf16, #tpu.memory_space<vmem>>, vector<16x16x128xbf16>
    %16 = vector.shape_cast %15 : vector<16x16x128xbf16> to vector<256x128xbf16>
    %c0_30 = arith.constant 0 : index
    %c1_31 = arith.constant 1 : index
    %c0_32 = arith.constant 0 : index
    %c0_33 = arith.constant 0 : index
    %17 = vector.load %arg2[%c0_30, %c1_31, %c0_32, %c0_33] : memref<2x9x128x128xbf16, #tpu.memory_space<vmem>>, vector<1x1x128x128xbf16>
    %18 = vector.shape_cast %17 : vector<1x1x128x128xbf16> to vector<128x128xbf16>
    %cst_34 = arith.constant dense<0.000000e+00> : vector<256x128xf32>
    %19 = tpu.matmul %16, %18, %cst_34 {dimension_numbers = #tpu.dot_dimension_numbers<[1], [0], [0], [1], [0, 0, 1, 1], [], []>} : vector<256x128xbf16>, vector<128x128xbf16>, vector<256x128xf32> -> vector<256x128xf32>
    %c0_35 = arith.constant 0 : index
    %c0_36 = arith.constant 0 : index
    %20 = vector.load %arg7[%c0_35, %c0_36] : memref<256x128xf32, #tpu.memory_space<vmem>>, vector<256x128xf32>
    %21 = arith.addf %20, %19 : vector<256x128xf32>
    %c0_37 = arith.constant 0 : index
    %c0_38 = arith.constant 0 : index
    %22 = vector.load %arg7[%c0_37, %c0_38] : memref<256x128xf32, #tpu.memory_space<vmem>>, vector<256x128xf32>
    tpu.vector_store %arg7[%c0_37, %c0_38], %21 {strides = array<i32>} : memref<256x128xf32, #tpu.memory_space<vmem>>, vector<256x128xf32>,
    %c0_39 = arith.constant 0 : index
    %c2 = arith.constant 2 : index
    %c0_40 = arith.constant 0 : index
    %23 = vector.load %arg6[%c0_39, %c2, %c0_40] : memref<18x18x128xbf16, #tpu.memory_space<vmem>>, vector<16x16x128xbf16>
    %24 = vector.shape_cast %23 : vector<16x16x128xbf16> to vector<256x128xbf16>
    %c0_41 = arith.constant 0 : index
    %c2_42 = arith.constant 2 : index
    %c0_43 = arith.constant 0 : index
    %c0_44 = arith.constant 0 : index
    %25 = vector.load %arg2[%c0_41, %c2_42, %c0_43, %c0_44] : memref<2x9x128x128xbf16, #tpu.memory_space<vmem>>, vector<1x1x128x128xbf16>
    %26 = vector.shape_cast %25 : vector<1x1x128x128xbf16> to vector<128x128xbf16>
    %cst_45 = arith.constant dense<0.000000e+00> : vector<256x128xf32>
    %27 = tpu.matmul %24, %26, %cst_45 {dimension_numbers = #tpu.dot_dimension_numbers<[1], [0], [0], [1], [0, 0, 1, 1], [], []>} : vector<256x128xbf16>, vector<128x128xbf16>, vector<256x128xf32> -> vector<256x128xf32>
    %c0_46 = arith.constant 0 : index
    %c0_47 = arith.constant 0 : index
    %28 = vector.load %arg7[%c0_46, %c0_47] : memref<256x128xf32, #tpu.memory_space<vmem>>, vector<256x128xf32>
    %29 = arith.addf %28, %27 : vector<256x128xf32>
    %c0_48 = arith.constant 0 : index
    %c0_49 = arith.constant 0 : index
    %30 = vector.load %arg7[%c0_48, %c0_49] : memref<256x128xf32, #tpu.memory_space<vmem>>, vector<256x128xf32>
    tpu.vector_store %arg7[%c0_48, %c0_49], %29 {strides = array<i32>} : memref<256x128xf32, #tpu.memory_space<vmem>>, vector<256x128xf32>,
    %c1_50 = arith.constant 1 : index
    %c0_51 = arith.constant 0 : index
    %c0_52 = arith.constant 0 : index
    %31 = vector.load %arg6[%c1_50, %c0_51, %c0_52] : memref<18x18x128xbf16, #tpu.memory_space<vmem>>, vector<16x16x128xbf16>
    %32 = vector.shape_cast %31 : vector<16x16x128xbf16> to vector<256x128xbf16>
    %c0_53 = arith.constant 0 : index
    %c3 = arith.constant 3 : index
    %c0_54 = arith.constant 0 : index
    %c0_55 = arith.constant 0 : index
    %33 = vector.load %arg2[%c0_53, %c3, %c0_54, %c0_55] : memref<2x9x128x128xbf16, #tpu.memory_space<vmem>>, vector<1x1x128x128xbf16>
    %34 = vector.shape_cast %33 : vector<1x1x128x128xbf16> to vector<128x128xbf16>
    %cst_56 = arith.constant dense<0.000000e+00> : vector<256x128xf32>
    %35 = tpu.matmul %32, %34, %cst_56 {dimension_numbers = #tpu.dot_dimension_numbers<[1], [0], [0], [1], [0, 0, 1, 1], [], []>} : vector<256x128xbf16>, vector<128x128xbf16>, vector<256x128xf32> -> vector<256x128xf32>
    %c0_57 = arith.constant 0 : index
    %c0_58 = arith.constant 0 : index
    %36 = vector.load %arg7[%c0_57, %c0_58] : memref<256x128xf32, #tpu.memory_space<vmem>>, vector<256x128xf32>
    %37 = arith.addf %36, %35 : vector<256x128xf32>
    %c0_59 = arith.constant 0 : index
    %c0_60 = arith.constant 0 : index
    %38 = vector.load %arg7[%c0_59, %c0_60] : memref<256x128xf32, #tpu.memory_space<vmem>>, vector<256x128xf32>
    tpu.vector_store %arg7[%c0_59, %c0_60], %37 {strides = array<i32>} : memref<256x128xf32, #tpu.memory_space<vmem>>, vector<256x128xf32>,
    %c1_61 = arith.constant 1 : index
    %c1_62 = arith.constant 1 : index
    %c0_63 = arith.constant 0 : index
    %39 = vector.load %arg6[%c1_61, %c1_62, %c0_63] : memref<18x18x128xbf16, #tpu.memory_space<vmem>>, vector<16x16x128xbf16>
    %40 = vector.shape_cast %39 : vector<16x16x128xbf16> to vector<256x128xbf16>
    %c0_64 = arith.constant 0 : index
    %c4 = arith.constant 4 : index
    %c0_65 = arith.constant 0 : index
    %c0_66 = arith.constant 0 : index
    %41 = vector.load %arg2[%c0_64, %c4, %c0_65, %c0_66] : memref<2x9x128x128xbf16, #tpu.memory_space<vmem>>, vector<1x1x128x128xbf16>
    %42 = vector.shape_cast %41 : vector<1x1x128x128xbf16> to vector<128x128xbf16>
    %cst_67 = arith.constant dense<0.000000e+00> : vector<256x128xf32>
    %43 = tpu.matmul %40, %42, %cst_67 {dimension_numbers = #tpu.dot_dimension_numbers<[1], [0], [0], [1], [0, 0, 1, 1], [], []>} : vector<256x128xbf16>, vector<128x128xbf16>, vector<256x128xf32> -> vector<256x128xf32>
    %c0_68 = arith.constant 0 : index
    %c0_69 = arith.constant 0 : index
    %44 = vector.load %arg7[%c0_68, %c0_69] : memref<256x128xf32, #tpu.memory_space<vmem>>, vector<256x128xf32>
    %45 = arith.addf %44, %43 : vector<256x128xf32>
    %c0_70 = arith.constant 0 : index
    %c0_71 = arith.constant 0 : index
    %46 = vector.load %arg7[%c0_70, %c0_71] : memref<256x128xf32, #tpu.memory_space<vmem>>, vector<256x128xf32>
    tpu.vector_store %arg7[%c0_70, %c0_71], %45 {strides = array<i32>} : memref<256x128xf32, #tpu.memory_space<vmem>>, vector<256x128xf32>,
    %c1_72 = arith.constant 1 : index
    %c2_73 = arith.constant 2 : index
    %c0_74 = arith.constant 0 : index
    %47 = vector.load %arg6[%c1_72, %c2_73, %c0_74] : memref<18x18x128xbf16, #tpu.memory_space<vmem>>, vector<16x16x128xbf16>
    %48 = vector.shape_cast %47 : vector<16x16x128xbf16> to vector<256x128xbf16>
    %c0_75 = arith.constant 0 : index
    %c5 = arith.constant 5 : index
    %c0_76 = arith.constant 0 : index
    %c0_77 = arith.constant 0 : index
    %49 = vector.load %arg2[%c0_75, %c5, %c0_76, %c0_77] : memref<2x9x128x128xbf16, #tpu.memory_space<vmem>>, vector<1x1x128x128xbf16>
    %50 = vector.shape_cast %49 : vector<1x1x128x128xbf16> to vector<128x128xbf16>
    %cst_78 = arith.constant dense<0.000000e+00> : vector<256x128xf32>
    %51 = tpu.matmul %48, %50, %cst_78 {dimension_numbers = #tpu.dot_dimension_numbers<[1], [0], [0], [1], [0, 0, 1, 1], [], []>} : vector<256x128xbf16>, vector<128x128xbf16>, vector<256x128xf32> -> vector<256x128xf32>
    %c0_79 = arith.constant 0 : index
    %c0_80 = arith.constant 0 : index
    %52 = vector.load %arg7[%c0_79, %c0_80] : memref<256x128xf32, #tpu.memory_space<vmem>>, vector<256x128xf32>
    %53 = arith.addf %52, %51 : vector<256x128xf32>
    %c0_81 = arith.constant 0 : index
    %c0_82 = arith.constant 0 : index
    %54 = vector.load %arg7[%c0_81, %c0_82] : memref<256x128xf32, #tpu.memory_space<vmem>>, vector<256x128xf32>
    tpu.vector_store %arg7[%c0_81, %c0_82], %53 {strides = array<i32>} : memref<256x128xf32, #tpu.memory_space<vmem>>, vector<256x128xf32>,
    %c2_83 = arith.constant 2 : index
    %c0_84 = arith.constant 0 : index
    %c0_85 = arith.constant 0 : index
    %55 = vector.load %arg6[%c2_83, %c0_84, %c0_85] : memref<18x18x128xbf16, #tpu.memory_space<vmem>>, vector<16x16x128xbf16>
    %56 = vector.shape_cast %55 : vector<16x16x128xbf16> to vector<256x128xbf16>
    %c0_86 = arith.constant 0 : index
    %c6 = arith.constant 6 : index
    %c0_87 = arith.constant 0 : index
    %c0_88 = arith.constant 0 : index
    %57 = vector.load %arg2[%c0_86, %c6, %c0_87, %c0_88] : memref<2x9x128x128xbf16, #tpu.memory_space<vmem>>, vector<1x1x128x128xbf16>
    %58 = vector.shape_cast %57 : vector<1x1x128x128xbf16> to vector<128x128xbf16>
    %cst_89 = arith.constant dense<0.000000e+00> : vector<256x128xf32>
    %59 = tpu.matmul %56, %58, %cst_89 {dimension_numbers = #tpu.dot_dimension_numbers<[1], [0], [0], [1], [0, 0, 1, 1], [], []>} : vector<256x128xbf16>, vector<128x128xbf16>, vector<256x128xf32> -> vector<256x128xf32>
    %c0_90 = arith.constant 0 : index
    %c0_91 = arith.constant 0 : index
    %60 = vector.load %arg7[%c0_90, %c0_91] : memref<256x128xf32, #tpu.memory_space<vmem>>, vector<256x128xf32>
    %61 = arith.addf %60, %59 : vector<256x128xf32>
    %c0_92 = arith.constant 0 : index
    %c0_93 = arith.constant 0 : index
    %62 = vector.load %arg7[%c0_92, %c0_93] : memref<256x128xf32, #tpu.memory_space<vmem>>, vector<256x128xf32>
    tpu.vector_store %arg7[%c0_92, %c0_93], %61 {strides = array<i32>} : memref<256x128xf32, #tpu.memory_space<vmem>>, vector<256x128xf32>,
    %c2_94 = arith.constant 2 : index
    %c1_95 = arith.constant 1 : index
    %c0_96 = arith.constant 0 : index
    %63 = vector.load %arg6[%c2_94, %c1_95, %c0_96] : memref<18x18x128xbf16, #tpu.memory_space<vmem>>, vector<16x16x128xbf16>
    %64 = vector.shape_cast %63 : vector<16x16x128xbf16> to vector<256x128xbf16>
    %c0_97 = arith.constant 0 : index
    %c7 = arith.constant 7 : index
    %c0_98 = arith.constant 0 : index
    %c0_99 = arith.constant 0 : index
    %65 = vector.load %arg2[%c0_97, %c7, %c0_98, %c0_99] : memref<2x9x128x128xbf16, #tpu.memory_space<vmem>>, vector<1x1x128x128xbf16>
    %66 = vector.shape_cast %65 : vector<1x1x128x128xbf16> to vector<128x128xbf16>
    %cst_100 = arith.constant dense<0.000000e+00> : vector<256x128xf32>
    %67 = tpu.matmul %64, %66, %cst_100 {dimension_numbers = #tpu.dot_dimension_numbers<[1], [0], [0], [1], [0, 0, 1, 1], [], []>} : vector<256x128xbf16>, vector<128x128xbf16>, vector<256x128xf32> -> vector<256x128xf32>
    %c0_101 = arith.constant 0 : index
    %c0_102 = arith.constant 0 : index
    %68 = vector.load %arg7[%c0_101, %c0_102] : memref<256x128xf32, #tpu.memory_space<vmem>>, vector<256x128xf32>
    %69 = arith.addf %68, %67 : vector<256x128xf32>
    %c0_103 = arith.constant 0 : index
    %c0_104 = arith.constant 0 : index
    %70 = vector.load %arg7[%c0_103, %c0_104] : memref<256x128xf32, #tpu.memory_space<vmem>>, vector<256x128xf32>
    tpu.vector_store %arg7[%c0_103, %c0_104], %69 {strides = array<i32>} : memref<256x128xf32, #tpu.memory_space<vmem>>, vector<256x128xf32>,
    %c2_105 = arith.constant 2 : index
    %c2_106 = arith.constant 2 : index
    %c0_107 = arith.constant 0 : index
    %71 = vector.load %arg6[%c2_105, %c2_106, %c0_107] : memref<18x18x128xbf16, #tpu.memory_space<vmem>>, vector<16x16x128xbf16>
    %72 = vector.shape_cast %71 : vector<16x16x128xbf16> to vector<256x128xbf16>
    %c0_108 = arith.constant 0 : index
    %c8 = arith.constant 8 : index
    %c0_109 = arith.constant 0 : index
    %c0_110 = arith.constant 0 : index
    %73 = vector.load %arg2[%c0_108, %c8, %c0_109, %c0_110] : memref<2x9x128x128xbf16, #tpu.memory_space<vmem>>, vector<1x1x128x128xbf16>
    %74 = vector.shape_cast %73 : vector<1x1x128x128xbf16> to vector<128x128xbf16>
    %cst_111 = arith.constant dense<0.000000e+00> : vector<256x128xf32>
    %75 = tpu.matmul %72, %74, %cst_111 {dimension_numbers = #tpu.dot_dimension_numbers<[1], [0], [0], [1], [0, 0, 1, 1], [], []>} : vector<256x128xbf16>, vector<128x128xbf16>, vector<256x128xf32> -> vector<256x128xf32>
    %c0_112 = arith.constant 0 : index
    %c0_113 = arith.constant 0 : index
    %76 = vector.load %arg7[%c0_112, %c0_113] : memref<256x128xf32, #tpu.memory_space<vmem>>, vector<256x128xf32>
    %77 = arith.addf %76, %75 : vector<256x128xf32>
    %c0_114 = arith.constant 0 : index
    %c0_115 = arith.constant 0 : index
    %78 = vector.load %arg7[%c0_114, %c0_115] : memref<256x128xf32, #tpu.memory_space<vmem>>, vector<256x128xf32>
    tpu.vector_store %arg7[%c0_114, %c0_115], %77 {strides = array<i32>} : memref<256x128xf32, #tpu.memory_space<vmem>>, vector<256x128xf32>,
    %c0_116 = arith.constant 0 : index
    %c0_117 = arith.constant 0 : index
    %79 = vector.load %arg7[%c0_116, %c0_117] : memref<256x128xf32, #tpu.memory_space<vmem>>, vector<256x128xf32>
    %c0_118 = arith.constant 0 : index
    %c0_119 = arith.constant 0 : index
    %c0_120 = arith.constant 0 : index
    %80 = vector.load %arg3[%c0_118, %c0_119, %c0_120] : memref<2x1x128xf32, #tpu.memory_space<vmem>>, vector<1x1x128xf32>
    %81 = vector.shape_cast %80 : vector<1x1x128xf32> to vector<1x128xf32>
    %82 = vector.broadcast %81 : vector<1x128xf32> to vector<256x128xf32>
    %83 = arith.mulf %79, %82 : vector<256x128xf32>
    %c0_121 = arith.constant 0 : index
    %c0_122 = arith.constant 0 : index
    %c0_123 = arith.constant 0 : index
    %84 = vector.load %arg4[%c0_121, %c0_122, %c0_123] : memref<2x1x128xf32, #tpu.memory_space<vmem>>, vector<1x1x128xf32>
    %85 = vector.shape_cast %84 : vector<1x1x128xf32> to vector<1x128xf32>
    %86 = vector.broadcast %85 : vector<1x128xf32> to vector<256x128xf32>
    %87 = arith.addf %83, %86 : vector<256x128xf32>
    %cst_124 = arith.constant 0.000000e+00 : f32
    %88 = vector.broadcast %cst_124 : f32 to vector<256x128xf32>
    %89 = arith.cmpf oge, %87, %88 : vector<256x128xf32>
    %cst_125 = arith.constant 0.00999999977 : f32
    %90 = vector.broadcast %cst_125 : f32 to vector<256x128xf32>
    %91 = arith.mulf %90, %87 : vector<256x128xf32>
    %92 = arith.select %89, %87, %91 : vector<256x128xi1>, vector<256x128xf32>
    %93 = vector.shape_cast %92 : vector<256x128xf32> to vector<16x16x128xf32>
    %94 = arith.truncf %93 : vector<16x16x128xf32> to vector<16x16x128xbf16>
    %c1_126 = arith.constant 1 : index
    %c1_127 = arith.constant 1 : index
    %c0_128 = arith.constant 0 : index
    %95 = vector.load %arg6[%c1_126, %c1_127, %c0_128] : memref<18x18x128xbf16, #tpu.memory_space<vmem>>, vector<16x16x128xbf16>
    tpu.vector_store %arg6[%c1_126, %c1_127, %c0_128], %94 {strides = array<i32>} : memref<18x18x128xbf16, #tpu.memory_space<vmem>>, vector<16x16x128xbf16>,
    %c0_129 = arith.constant 0 : index
    %c0_130 = arith.constant 0 : index
    %c0_131 = arith.constant 0 : index
    %96 = vector.load %arg6[%c0_129, %c0_130, %c0_131] : memref<18x18x128xbf16, #tpu.memory_space<vmem>>, vector<16x16x128xbf16>
    %97 = vector.shape_cast %96 : vector<16x16x128xbf16> to vector<256x128xbf16>
    %c1_132 = arith.constant 1 : index
    %c0_133 = arith.constant 0 : index
    %c0_134 = arith.constant 0 : index
    %c0_135 = arith.constant 0 : index
    %98 = vector.load %arg2[%c1_132, %c0_133, %c0_134, %c0_135] : memref<2x9x128x128xbf16, #tpu.memory_space<vmem>>, vector<1x1x128x128xbf16>
    %99 = vector.shape_cast %98 : vector<1x1x128x128xbf16> to vector<128x128xbf16>
    %cst_136 = arith.constant dense<0.000000e+00> : vector<256x128xf32>
    %100 = tpu.matmul %97, %99, %cst_136 {dimension_numbers = #tpu.dot_dimension_numbers<[1], [0], [0], [1], [0, 0, 1, 1], [], []>} : vector<256x128xbf16>, vector<128x128xbf16>, vector<256x128xf32> -> vector<256x128xf32>
    %c0_137 = arith.constant 0 : index
    %c0_138 = arith.constant 0 : index
    %101 = vector.load %arg7[%c0_137, %c0_138] : memref<256x128xf32, #tpu.memory_space<vmem>>, vector<256x128xf32>
    tpu.vector_store %arg7[%c0_137, %c0_138], %100 {strides = array<i32>} : memref<256x128xf32, #tpu.memory_space<vmem>>, vector<256x128xf32>,
    %c0_139 = arith.constant 0 : index
    %c1_140 = arith.constant 1 : index
    %c0_141 = arith.constant 0 : index
    %102 = vector.load %arg6[%c0_139, %c1_140, %c0_141] : memref<18x18x128xbf16, #tpu.memory_space<vmem>>, vector<16x16x128xbf16>
    %103 = vector.shape_cast %102 : vector<16x16x128xbf16> to vector<256x128xbf16>
    %c1_142 = arith.constant 1 : index
    %c1_143 = arith.constant 1 : index
    %c0_144 = arith.constant 0 : index
    %c0_145 = arith.constant 0 : index
    %104 = vector.load %arg2[%c1_142, %c1_143, %c0_144, %c0_145] : memref<2x9x128x128xbf16, #tpu.memory_space<vmem>>, vector<1x1x128x128xbf16>
    %105 = vector.shape_cast %104 : vector<1x1x128x128xbf16> to vector<128x128xbf16>
    %cst_146 = arith.constant dense<0.000000e+00> : vector<256x128xf32>
    %106 = tpu.matmul %103, %105, %cst_146 {dimension_numbers = #tpu.dot_dimension_numbers<[1], [0], [0], [1], [0, 0, 1, 1], [], []>} : vector<256x128xbf16>, vector<128x128xbf16>, vector<256x128xf32> -> vector<256x128xf32>
    %c0_147 = arith.constant 0 : index
    %c0_148 = arith.constant 0 : index
    %107 = vector.load %arg7[%c0_147, %c0_148] : memref<256x128xf32, #tpu.memory_space<vmem>>, vector<256x128xf32>
    %108 = arith.addf %107, %106 : vector<256x128xf32>
    %c0_149 = arith.constant 0 : index
    %c0_150 = arith.constant 0 : index
    %109 = vector.load %arg7[%c0_149, %c0_150] : memref<256x128xf32, #tpu.memory_space<vmem>>, vector<256x128xf32>
    tpu.vector_store %arg7[%c0_149, %c0_150], %108 {strides = array<i32>} : memref<256x128xf32, #tpu.memory_space<vmem>>, vector<256x128xf32>,
    %c0_151 = arith.constant 0 : index
    %c2_152 = arith.constant 2 : index
    %c0_153 = arith.constant 0 : index
    %110 = vector.load %arg6[%c0_151, %c2_152, %c0_153] : memref<18x18x128xbf16, #tpu.memory_space<vmem>>, vector<16x16x128xbf16>
    %111 = vector.shape_cast %110 : vector<16x16x128xbf16> to vector<256x128xbf16>
    %c1_154 = arith.constant 1 : index
    %c2_155 = arith.constant 2 : index
    %c0_156 = arith.constant 0 : index
    %c0_157 = arith.constant 0 : index
    %112 = vector.load %arg2[%c1_154, %c2_155, %c0_156, %c0_157] : memref<2x9x128x128xbf16, #tpu.memory_space<vmem>>, vector<1x1x128x128xbf16>
    %113 = vector.shape_cast %112 : vector<1x1x128x128xbf16> to vector<128x128xbf16>
    %cst_158 = arith.constant dense<0.000000e+00> : vector<256x128xf32>
    %114 = tpu.matmul %111, %113, %cst_158 {dimension_numbers = #tpu.dot_dimension_numbers<[1], [0], [0], [1], [0, 0, 1, 1], [], []>} : vector<256x128xbf16>, vector<128x128xbf16>, vector<256x128xf32> -> vector<256x128xf32>
    %c0_159 = arith.constant 0 : index
    %c0_160 = arith.constant 0 : index
    %115 = vector.load %arg7[%c0_159, %c0_160] : memref<256x128xf32, #tpu.memory_space<vmem>>, vector<256x128xf32>
    %116 = arith.addf %115, %114 : vector<256x128xf32>
    %c0_161 = arith.constant 0 : index
    %c0_162 = arith.constant 0 : index
    %117 = vector.load %arg7[%c0_161, %c0_162] : memref<256x128xf32, #tpu.memory_space<vmem>>, vector<256x128xf32>
    tpu.vector_store %arg7[%c0_161, %c0_162], %116 {strides = array<i32>} : memref<256x128xf32, #tpu.memory_space<vmem>>, vector<256x128xf32>,
    %c1_163 = arith.constant 1 : index
    %c0_164 = arith.constant 0 : index
    %c0_165 = arith.constant 0 : index
    %118 = vector.load %arg6[%c1_163, %c0_164, %c0_165] : memref<18x18x128xbf16, #tpu.memory_space<vmem>>, vector<16x16x128xbf16>
    %119 = vector.shape_cast %118 : vector<16x16x128xbf16> to vector<256x128xbf16>
    %c1_166 = arith.constant 1 : index
    %c3_167 = arith.constant 3 : index
    %c0_168 = arith.constant 0 : index
    %c0_169 = arith.constant 0 : index
    %120 = vector.load %arg2[%c1_166, %c3_167, %c0_168, %c0_169] : memref<2x9x128x128xbf16, #tpu.memory_space<vmem>>, vector<1x1x128x128xbf16>
    %121 = vector.shape_cast %120 : vector<1x1x128x128xbf16> to vector<128x128xbf16>
    %cst_170 = arith.constant dense<0.000000e+00> : vector<256x128xf32>
    %122 = tpu.matmul %119, %121, %cst_170 {dimension_numbers = #tpu.dot_dimension_numbers<[1], [0], [0], [1], [0, 0, 1, 1], [], []>} : vector<256x128xbf16>, vector<128x128xbf16>, vector<256x128xf32> -> vector<256x128xf32>
    %c0_171 = arith.constant 0 : index
    %c0_172 = arith.constant 0 : index
    %123 = vector.load %arg7[%c0_171, %c0_172] : memref<256x128xf32, #tpu.memory_space<vmem>>, vector<256x128xf32>
    %124 = arith.addf %123, %122 : vector<256x128xf32>
    %c0_173 = arith.constant 0 : index
    %c0_174 = arith.constant 0 : index
    %125 = vector.load %arg7[%c0_173, %c0_174] : memref<256x128xf32, #tpu.memory_space<vmem>>, vector<256x128xf32>
    tpu.vector_store %arg7[%c0_173, %c0_174], %124 {strides = array<i32>} : memref<256x128xf32, #tpu.memory_space<vmem>>, vector<256x128xf32>,
    %c1_175 = arith.constant 1 : index
    %c1_176 = arith.constant 1 : index
    %c0_177 = arith.constant 0 : index
    %126 = vector.load %arg6[%c1_175, %c1_176, %c0_177] : memref<18x18x128xbf16, #tpu.memory_space<vmem>>, vector<16x16x128xbf16>
    %127 = vector.shape_cast %126 : vector<16x16x128xbf16> to vector<256x128xbf16>
    %c1_178 = arith.constant 1 : index
    %c4_179 = arith.constant 4 : index
    %c0_180 = arith.constant 0 : index
    %c0_181 = arith.constant 0 : index
    %128 = vector.load %arg2[%c1_178, %c4_179, %c0_180, %c0_181] : memref<2x9x128x128xbf16, #tpu.memory_space<vmem>>, vector<1x1x128x128xbf16>
    %129 = vector.shape_cast %128 : vector<1x1x128x128xbf16> to vector<128x128xbf16>
    %cst_182 = arith.constant dense<0.000000e+00> : vector<256x128xf32>
    %130 = tpu.matmul %127, %129, %cst_182 {dimension_numbers = #tpu.dot_dimension_numbers<[1], [0], [0], [1], [0, 0, 1, 1], [], []>} : vector<256x128xbf16>, vector<128x128xbf16>, vector<256x128xf32> -> vector<256x128xf32>
    %c0_183 = arith.constant 0 : index
    %c0_184 = arith.constant 0 : index
    %131 = vector.load %arg7[%c0_183, %c0_184] : memref<256x128xf32, #tpu.memory_space<vmem>>, vector<256x128xf32>
    %132 = arith.addf %131, %130 : vector<256x128xf32>
    %c0_185 = arith.constant 0 : index
    %c0_186 = arith.constant 0 : index
    %133 = vector.load %arg7[%c0_185, %c0_186] : memref<256x128xf32, #tpu.memory_space<vmem>>, vector<256x128xf32>
    tpu.vector_store %arg7[%c0_185, %c0_186], %132 {strides = array<i32>} : memref<256x128xf32, #tpu.memory_space<vmem>>, vector<256x128xf32>,
    %c1_187 = arith.constant 1 : index
    %c2_188 = arith.constant 2 : index
    %c0_189 = arith.constant 0 : index
    %134 = vector.load %arg6[%c1_187, %c2_188, %c0_189] : memref<18x18x128xbf16, #tpu.memory_space<vmem>>, vector<16x16x128xbf16>
    %135 = vector.shape_cast %134 : vector<16x16x128xbf16> to vector<256x128xbf16>
    %c1_190 = arith.constant 1 : index
    %c5_191 = arith.constant 5 : index
    %c0_192 = arith.constant 0 : index
    %c0_193 = arith.constant 0 : index
    %136 = vector.load %arg2[%c1_190, %c5_191, %c0_192, %c0_193] : memref<2x9x128x128xbf16, #tpu.memory_space<vmem>>, vector<1x1x128x128xbf16>
    %137 = vector.shape_cast %136 : vector<1x1x128x128xbf16> to vector<128x128xbf16>
    %cst_194 = arith.constant dense<0.000000e+00> : vector<256x128xf32>
    %138 = tpu.matmul %135, %137, %cst_194 {dimension_numbers = #tpu.dot_dimension_numbers<[1], [0], [0], [1], [0, 0, 1, 1], [], []>} : vector<256x128xbf16>, vector<128x128xbf16>, vector<256x128xf32> -> vector<256x128xf32>
    %c0_195 = arith.constant 0 : index
    %c0_196 = arith.constant 0 : index
    %139 = vector.load %arg7[%c0_195, %c0_196] : memref<256x128xf32, #tpu.memory_space<vmem>>, vector<256x128xf32>
    %140 = arith.addf %139, %138 : vector<256x128xf32>
    %c0_197 = arith.constant 0 : index
    %c0_198 = arith.constant 0 : index
    %141 = vector.load %arg7[%c0_197, %c0_198] : memref<256x128xf32, #tpu.memory_space<vmem>>, vector<256x128xf32>
    tpu.vector_store %arg7[%c0_197, %c0_198], %140 {strides = array<i32>} : memref<256x128xf32, #tpu.memory_space<vmem>>, vector<256x128xf32>,
    %c2_199 = arith.constant 2 : index
    %c0_200 = arith.constant 0 : index
    %c0_201 = arith.constant 0 : index
    %142 = vector.load %arg6[%c2_199, %c0_200, %c0_201] : memref<18x18x128xbf16, #tpu.memory_space<vmem>>, vector<16x16x128xbf16>
    %143 = vector.shape_cast %142 : vector<16x16x128xbf16> to vector<256x128xbf16>
    %c1_202 = arith.constant 1 : index
    %c6_203 = arith.constant 6 : index
    %c0_204 = arith.constant 0 : index
    %c0_205 = arith.constant 0 : index
    %144 = vector.load %arg2[%c1_202, %c6_203, %c0_204, %c0_205] : memref<2x9x128x128xbf16, #tpu.memory_space<vmem>>, vector<1x1x128x128xbf16>
    %145 = vector.shape_cast %144 : vector<1x1x128x128xbf16> to vector<128x128xbf16>
    %cst_206 = arith.constant dense<0.000000e+00> : vector<256x128xf32>
    %146 = tpu.matmul %143, %145, %cst_206 {dimension_numbers = #tpu.dot_dimension_numbers<[1], [0], [0], [1], [0, 0, 1, 1], [], []>} : vector<256x128xbf16>, vector<128x128xbf16>, vector<256x128xf32> -> vector<256x128xf32>
    %c0_207 = arith.constant 0 : index
    %c0_208 = arith.constant 0 : index
    %147 = vector.load %arg7[%c0_207, %c0_208] : memref<256x128xf32, #tpu.memory_space<vmem>>, vector<256x128xf32>
    %148 = arith.addf %147, %146 : vector<256x128xf32>
    %c0_209 = arith.constant 0 : index
    %c0_210 = arith.constant 0 : index
    %149 = vector.load %arg7[%c0_209, %c0_210] : memref<256x128xf32, #tpu.memory_space<vmem>>, vector<256x128xf32>
    tpu.vector_store %arg7[%c0_209, %c0_210], %148 {strides = array<i32>} : memref<256x128xf32, #tpu.memory_space<vmem>>, vector<256x128xf32>,
    %c2_211 = arith.constant 2 : index
    %c1_212 = arith.constant 1 : index
    %c0_213 = arith.constant 0 : index
    %150 = vector.load %arg6[%c2_211, %c1_212, %c0_213] : memref<18x18x128xbf16, #tpu.memory_space<vmem>>, vector<16x16x128xbf16>
    %151 = vector.shape_cast %150 : vector<16x16x128xbf16> to vector<256x128xbf16>
    %c1_214 = arith.constant 1 : index
    %c7_215 = arith.constant 7 : index
    %c0_216 = arith.constant 0 : index
    %c0_217 = arith.constant 0 : index
    %152 = vector.load %arg2[%c1_214, %c7_215, %c0_216, %c0_217] : memref<2x9x128x128xbf16, #tpu.memory_space<vmem>>, vector<1x1x128x128xbf16>
    %153 = vector.shape_cast %152 : vector<1x1x128x128xbf16> to vector<128x128xbf16>
    %cst_218 = arith.constant dense<0.000000e+00> : vector<256x128xf32>
    %154 = tpu.matmul %151, %153, %cst_218 {dimension_numbers = #tpu.dot_dimension_numbers<[1], [0], [0], [1], [0, 0, 1, 1], [], []>} : vector<256x128xbf16>, vector<128x128xbf16>, vector<256x128xf32> -> vector<256x128xf32>
    %c0_219 = arith.constant 0 : index
    %c0_220 = arith.constant 0 : index
    %155 = vector.load %arg7[%c0_219, %c0_220] : memref<256x128xf32, #tpu.memory_space<vmem>>, vector<256x128xf32>
    %156 = arith.addf %155, %154 : vector<256x128xf32>
    %c0_221 = arith.constant 0 : index
    %c0_222 = arith.constant 0 : index
    %157 = vector.load %arg7[%c0_221, %c0_222] : memref<256x128xf32, #tpu.memory_space<vmem>>, vector<256x128xf32>
    tpu.vector_store %arg7[%c0_221, %c0_222], %156 {strides = array<i32>} : memref<256x128xf32, #tpu.memory_space<vmem>>, vector<256x128xf32>,
    %c2_223 = arith.constant 2 : index
    %c2_224 = arith.constant 2 : index
    %c0_225 = arith.constant 0 : index
    %158 = vector.load %arg6[%c2_223, %c2_224, %c0_225] : memref<18x18x128xbf16, #tpu.memory_space<vmem>>, vector<16x16x128xbf16>
    %159 = vector.shape_cast %158 : vector<16x16x128xbf16> to vector<256x128xbf16>
    %c1_226 = arith.constant 1 : index
    %c8_227 = arith.constant 8 : index
    %c0_228 = arith.constant 0 : index
    %c0_229 = arith.constant 0 : index
    %160 = vector.load %arg2[%c1_226, %c8_227, %c0_228, %c0_229] : memref<2x9x128x128xbf16, #tpu.memory_space<vmem>>, vector<1x1x128x128xbf16>
    %161 = vector.shape_cast %160 : vector<1x1x128x128xbf16> to vector<128x128xbf16>
    %cst_230 = arith.constant dense<0.000000e+00> : vector<256x128xf32>
    %162 = tpu.matmul %159, %161, %cst_230 {dimension_numbers = #tpu.dot_dimension_numbers<[1], [0], [0], [1], [0, 0, 1, 1], [], []>} : vector<256x128xbf16>, vector<128x128xbf16>, vector<256x128xf32> -> vector<256x128xf32>
    %c0_231 = arith.constant 0 : index
    %c0_232 = arith.constant 0 : index
    %163 = vector.load %arg7[%c0_231, %c0_232] : memref<256x128xf32, #tpu.memory_space<vmem>>, vector<256x128xf32>
    %164 = arith.addf %163, %162 : vector<256x128xf32>
    %c0_233 = arith.constant 0 : index
    %c0_234 = arith.constant 0 : index
    %165 = vector.load %arg7[%c0_233, %c0_234] : memref<256x128xf32, #tpu.memory_space<vmem>>, vector<256x128xf32>
    tpu.vector_store %arg7[%c0_233, %c0_234], %164 {strides = array<i32>} : memref<256x128xf32, #tpu.memory_space<vmem>>, vector<256x128xf32>,
    %c0_235 = arith.constant 0 : index
    %c0_236 = arith.constant 0 : index
    %166 = vector.load %arg7[%c0_235, %c0_236] : memref<256x128xf32, #tpu.memory_space<vmem>>, vector<256x128xf32>
    %c1_237 = arith.constant 1 : index
    %c0_238 = arith.constant 0 : index
    %c0_239 = arith.constant 0 : index
    %167 = vector.load %arg3[%c1_237, %c0_238, %c0_239] : memref<2x1x128xf32, #tpu.memory_space<vmem>>, vector<1x1x128xf32>
    %168 = vector.shape_cast %167 : vector<1x1x128xf32> to vector<1x128xf32>
    %169 = vector.broadcast %168 : vector<1x128xf32> to vector<256x128xf32>
    %170 = arith.mulf %166, %169 : vector<256x128xf32>
    %c1_240 = arith.constant 1 : index
    %c0_241 = arith.constant 0 : index
    %c0_242 = arith.constant 0 : index
    %171 = vector.load %arg4[%c1_240, %c0_241, %c0_242] : memref<2x1x128xf32, #tpu.memory_space<vmem>>, vector<1x1x128xf32>
    %172 = vector.shape_cast %171 : vector<1x1x128xf32> to vector<1x128xf32>
    %173 = vector.broadcast %172 : vector<1x128xf32> to vector<256x128xf32>
    %174 = arith.addf %170, %173 : vector<256x128xf32>
    %cst_243 = arith.constant 0.000000e+00 : f32
    %175 = vector.broadcast %cst_243 : f32 to vector<256x128xf32>
    %176 = arith.cmpf oge, %174, %175 : vector<256x128xf32>
    %cst_244 = arith.constant 0.00999999977 : f32
    %177 = vector.broadcast %cst_244 : f32 to vector<256x128xf32>
    %178 = arith.mulf %177, %174 : vector<256x128xf32>
    %179 = arith.select %176, %174, %178 : vector<256x128xi1>, vector<256x128xf32>
    %180 = vector.shape_cast %179 : vector<256x128xf32> to vector<16x16x128xf32>
    %c0_245 = arith.constant 0 : index
    %c0_246 = arith.constant 0 : index
    %c0_247 = arith.constant 0 : index
    %c0_248 = arith.constant 0 : index
    %181 = vector.load %arg5[%c0_245, %c0_246, %c0_247, %c0_248] : memref<1x16x16x128xf32, #tpu.memory_space<vmem>>, vector<1x16x16x128xf32>
    %182 = vector.shape_cast %181 : vector<1x16x16x128xf32> to vector<16x16x128xf32>
    %183 = vector.shape_cast %180 : vector<16x16x128xf32> to vector<1x16x16x128xf32>
    tpu.vector_store %arg5[%c0_245, %c0_246, %c0_247, %c0_248], %183 {strides = array<i32>} : memref<1x16x16x128xf32, #tpu.memory_space<vmem>>, vector<1x16x16x128xf32>,
    return
  }
  func.func @transform_0(%arg0: i32) -> (i32, i32, i32, i32) {
    %c0_i32 = arith.constant 0 : i32
    %c0_i32_0 = arith.constant 0 : i32
    %c0_i32_1 = arith.constant 0 : i32
    %c0_i32_2 = arith.constant 0 : i32
    return %arg0, %c0_i32, %c0_i32_0, %c0_i32_1 : i32, i32, i32, i32
  }
  func.func @transform_1(%arg0: i32) -> (i32, i32, i32, i32) {
    %c0_i32 = arith.constant 0 : i32
    %c0_i32_0 = arith.constant 0 : i32
    %c0_i32_1 = arith.constant 0 : i32
    %c0_i32_2 = arith.constant 0 : i32
    %c0_i32_3 = arith.constant 0 : i32
    return %c0_i32, %c0_i32_0, %c0_i32_1, %c0_i32_2 : i32, i32, i32, i32
  }
  func.func @transform_2(%arg0: i32) -> (i32, i32, i32) {
    %c0_i32 = arith.constant 0 : i32
    %c0_i32_0 = arith.constant 0 : i32
    %c0_i32_1 = arith.constant 0 : i32
    %c0_i32_2 = arith.constant 0 : i32
    return %c0_i32, %c0_i32_0, %c0_i32_1 : i32, i32, i32
  }
  func.func @transform_3(%arg0: i32) -> (i32, i32, i32) {
    %c0_i32 = arith.constant 0 : i32
    %c0_i32_0 = arith.constant 0 : i32
    %c0_i32_1 = arith.constant 0 : i32
    %c0_i32_2 = arith.constant 0 : i32
    return %c0_i32, %c0_i32_0, %c0_i32_1 : i32, i32, i32
  }
  func.func @transform_4(%arg0: i32) -> (i32, i32, i32, i32) {
    %c0_i32 = arith.constant 0 : i32
    %c0_i32_0 = arith.constant 0 : i32
    %c0_i32_1 = arith.constant 0 : i32
    %c0_i32_2 = arith.constant 0 : i32
    return %arg0, %c0_i32, %c0_i32_0, %c0_i32_1 : i32, i32, i32, i32
  }
}

</mosaic_0001>

<bundles_post_ra>
// kernel: stacked_conv_layers_forward.1
= control target key start
LH: loop header
LB: loop body
LE: loop exit
PB: predicated region body
PF: predicated region fallthrough
CT: control target
= control target key end

     0   :  { %s15321_s15 = smov 0   ;;  %s19331_s0 = inlined_call_operand.vmem [shape: bf16[2,16,16,128], index: 0, kind: input, shape index: {}]   ;;  %s19332_s1 = inlined_call_operand.vmem [shape: bf16[2,9,128,128], index: 1, kind: input, shape index: {}]   ;;  %s19333_s2 = inlined_call_operand.vmem [shape: f32[2,1,128], index: 2, kind: input, shape index: {}]   ;;  %s19334_s3 = inlined_call_operand.vmem [shape: f32[2,1,128], index: 3, kind: input, shape index: {}]   ;;  %s19335_s4 = inlined_call_operand.vmem [shape: f32[2,16,16,128], index: 4, kind: output, shape index: {}]  }
   0x1 LB: > { %s12855_s16 = sadd.s32 4294967295, %s15293_s15   ;;  %p12859_p0 = scmp.ge.s32.totalorder %s15293_s15, 1  ;;  %s15293_s15 = sphi %s15321_s15, %s14_s15  }
   0x2   : > { %p162_p1 = scmp.lt.s32.totalorder %s15293_s15, 3 }
   0x4   : > { %p163_p2 = pnand %p12859_p0, %p162_p1 }
   0x6   : > { %166 = sbr.rel (%p163_p2) target bundleno = 1230 (0x4ce), region = 36 }
   0xb   : > { %v15043_v0 = vld [vmem:[%s19332_s1 + $0x38] sm:$0xff]   ;;  %v15295_v2 = vmov 0   ;;  %v15045_v3 = vld [vmem:[%s19332_s1 + $0x30] sm:$0xff]   ;;  %v15047_v5 = vld [vmem:[%s19332_s1 + $0x28] sm:$0xff]   ;;  %p188_p3 = scmp.lt.s32.totalorder %s12855_s16, 1  ;;  %vm207_vm0 = vcmask 1040384  }
   0xc   : > { %v15044_v1 = vld [vmem:[%s19332_s1 + $0x78] sm:$0xff]   ;;  %199 = vst [vmem:[#allocation2] sm:$0xf] %v15295_v2  ;;  %200 = vst [vmem:[#allocation2 + $0x4] sm:$0xf] %v15295_v2  ;;  %14170 = vmatprep.subr.bf16.mxu0 %v15043_v0  ;;  %v15046_v4 = vld [vmem:[%s19332_s1 + $0x70] sm:$0xff]  }
   0xd   : > { %201 = vst [vmem:[#allocation2 + $0x8] sm:$0x1] %v15295_v2  ;;  %203 = vst [vmem:[#allocation2 + $0xcc] sm:$0xf] %v15295_v2  ;;  %14218 = vmatprep.subr.bf16.mxu1 %v15044_v1  ;;  %14171 = vmatpush3.bf16.msra.mxu0 %v15043_v0  ;;  %v15048_v6 = vld [vmem:[%s19332_s1 + $0x68] sm:$0xff]   ;;  %v15049_v7 = vld [vmem:[%s19332_s1 + $0x20] sm:$0xff]  }
   0xe   : > { %204 = vst [vmem:[#allocation2 + $0xd0] sm:$0xf] %v15295_v2  ;;  %205 = vst [vmem:[#allocation2 + $0xd4] sm:$0x1] %v15295_v2  ;;  %14219 = vmatpush3.bf16.msra.mxu1 %v15044_v1  ;;  %14172 = vmatprep.subr.bf16.mxu0 %v15045_v3  ;;  %v15050_v8 = vld [vmem:[%s19332_s1 + $0x60] sm:$0xff]   ;;  %s19666_s16 = smov (!%p188_p3, %s12855_s16), 1 }
   0xf   : > { %14220 = vmatprep.subr.bf16.mxu1 %v15046_v4  ;;  %v15051_v9 = vld [vmem:[%s19332_s1 + $0x18] sm:$0xff]   ;;  %v15053_v11 = vld [vmem:[%s19332_s1 + $0x10] sm:$0xff]   ;;  %s13704_s17 = sshll.u32 %s19666_s16, 7  ;;  %vm662_vm1 = vcmask 1043456   ;;  %v15055_v17 = vld [vmem:[%s19332_s1 + $0x8] sm:$0xff]   ;;  %v19348_v26 = vmov 0 }
  0x10   : > { %v15052_v10 = vld [vmem:[%s19332_s1 + $0x58] sm:$0xff]   ;;  %v15054_v12 = vld [vmem:[%s19332_s1 + $0x50] sm:$0xff]   ;;  %vm1209_vm2 = vsmask.f32 3328  ;;  %vm1210_vm3 = vsmask.f32 7440  ;;  %s15378_s22 = scalar_lea.vmem %s19331_s0, %s13704_s17 }
  0x11   : > { %14173 = vmatpush3.bf16.msra.mxu0 %v15045_v3  ;;  %v15056_v20 = vld [vmem:[%s19332_s1 + $0x48] sm:$0xff]   ;;  %vm208_vm4 = vsmask.f32 256  ;;  %vm258_vm6 = vsmask.f32 7938  ;;  %v15395_v33 = vld [vmem:[%s19332_s1] sm:$0xff]   ;;  %vm15406_vm9 = vmor %vm1209_vm2, %vm1210_vm3 }
  0x12   : > { %14221 = vmatpush3.bf16.msra.mxu1 %v15046_v4  ;;  %14174 = vmatprep.subr.bf16.mxu0 %v15047_v5  ;;  %vm15385_vm5 = vmand %vm207_vm0, %vm208_vm4  ;;  %v210_v27 = vld [vmem:[#allocation2 + $0xc] sm:$0x1]  ;;  %v308_v32 = vld [vmem:[%s15378_s22] sm:$0xf]  ;;  %vm340_vm7 = vsmask.f32 4368 }
  0x13   : > { %14222 = vmatprep.subr.bf16.mxu1 %v15048_v6  ;;  %v15059_v13 = vld [vmem:[#allocation2] sm:$0xff]   ;;  %v19349_v26 = vsel %vm15385_vm5, 4294967295, %v19348_v26  ;;  %v211_v31 = vsel %vm15385_vm5, 0, %v210_v27  ;;  %v343_v36 = vshrl.u32 %v308_v32, 16  ;;  %v346_v37 = vshll.u32 %v308_v32, 16  ;;  %vm15400_vm8 = vmand %vm207_vm0, %vm258_vm6  ;;  %v15440_v3 = vld [vmem:[%s19332_s1 + $0xb8] sm:$0xff]  }
  0x14   : > { %v1161_v14 = vld [vmem:[#allocation2] sm:$0xf]  ;;  %v1162_v15 = vld [vmem:[#allocation2 + $0x4] sm:$0xf]  ;;  %v1163_v16 = vld [vmem:[#allocation2 + $0x8] sm:$0x1]  ;;  %14186 = vmatprep.mubr.bf16.mxu0 %v15059_v13 }
  0x15   : > { %14175 = vmatpush3.bf16.msra.mxu0 %v15047_v5  ;;  %v1213_v18 = vshrl.u32 %v1161_v14, 16  ;;  %v1216_v19 = vshll.u32 %v1161_v14, 16  ;;  %v1222_v21 = vshll.u32 %v1162_v15, 16  ;;  %v1226_v22 = vshrl.u32 %v1162_v15, 16  ;;  %19350 = vst [vmem:[#allocation4_spill] sm:$0xff] %v19349_v26  ;;  %v15058_v44 = vld [vmem:[%s19332_s1 + $0x40] sm:$0xff]   ;;  %vm15420_vm10 = vmor %vm208_vm4, %vm340_vm7 }
  0x16   : > { %14223 = vmatpush3.bf16.msra.mxu1 %v15048_v6  ;;  %14176 = vmatprep.subr.bf16.mxu0 %v15049_v7  ;;  %v1232_v23 = vshll.u32 %v1163_v16, 16  ;;  %212 = vst [vmem:[#allocation2 + $0xc] sm:$0x1] %v211_v31  ;;  %v309_v35 = vld [vmem:[%s15378_s22 + $0x4] sm:$0xf]  ;;  %v19353_v39 = vmov 0  ;;  %vm15431_vm11 = vmand %vm662_vm1, %vm258_vm6 }
  0x17   : > { %14224 = vmatprep.subr.bf16.mxu1 %v15050_v8  ;;  %v1215_v24 = vrot.slane %v1213_v18, 4  ;;  %v1218_v25 = vrot.slane %v1216_v19, 5  ;;  %v1224_v28 = vrot.slane %v1222_v21, 5  ;;  %v1228_v29 = vrot.slane %v1226_v22, 4  ;;  %v260_v43 = vld [vmem:[#allocation2 + $0x14] sm:$0x1] }
  0x18   : > { %v1234_v30 = vrot.slane %v1232_v23, 5  ;;  %v19354_v39 = vsel %vm15406_vm9, 4294967295, %v19353_v39  ;;  %v351_v41 = vshrl.u32 %v309_v35, 16  ;;  %v354_v42 = vshll.u32 %v309_v35, 16  ;;  %v213_v50 = vld [vmem:[#allocation2 + $0x18] sm:$0x1] }
  0x19   : > { %14177 = vmatpush3.bf16.msra.mxu0 %v15049_v7  ;;  %v1219_v34 = vor.u32 %v1218_v25, %v1215_v24  ;;  %19355 = vst [vmem:[#allocation5_spill] sm:$0xff] %v19354_v39  ;;  %v1229_v40 = vor.u32 %v1228_v29, %v1224_v28  ;;  %v345_v46 = vrot.slane %v343_v36, 7  ;;  %v261_v47 = vsel %vm15400_vm8, 0, %v260_v43  ;;  %v310_v51 = vld [vmem:[%s15378_s22 + $0x8] sm:$0xf]  ;;  %v15455_v22 = vld [vmem:[%s19332_s1 + $0xf8] sm:$0xff]  }
  0x1a   : > { %14225 = vmatpush3.bf16.msra.mxu1 %v15050_v8  ;;  %14178 = vmatprep.subr.bf16.mxu0 %v15051_v9  ;;  %v353_v49 = vrot.slane %v351_v41, 7  ;;  %262 = vst [vmem:[#allocation2 + $0x14] sm:$0x1] %v261_v47  ;;  %v19356_v53 = vmov 0  ;;  %v214_v56 = vsel %vm15385_vm5, 0, %v213_v50  ;;  %v19359_v62 = vmov 0 }
  0x1b   : > { %14226 = vmatprep.subr.bf16.mxu1 %v15052_v10  ;;  %v1220_v45 = vrot.slane %v1219_v34, 4  ;;  %v1230_v48 = vrot.slane %v1229_v40, 4  ;;  %v19357_v53 = vsel %vm15420_vm10, 4294967295, %v19356_v53  ;;  %v348_v54 = vor.u32 %v346_v37, %v345_v46  ;;  %v311_v57 = vld [vmem:[%s15378_s22 + $0xc] sm:$0xf]  ;;  %s13705_s13 = sshll.u32 %s19666_s16, 8 }
  0x1c   : > { %19358 = vst [vmem:[#allocation6_spill] sm:$0xff] %v19357_v53  ;;  %v349_v55 = vrot.slane %v345_v46, 4  ;;  %v263_v58 = vld [vmem:[#allocation2 + $0x20] sm:$0x1]  ;;  %v356_v60 = vor.u32 %v354_v42, %v353_v49  ;;  %v358_v61 = vrot.slane %v353_v49, 4  ;;  %v19360_v62 = vsel %vm15431_vm11, 4294967295, %v19359_v62  ;;  %s19112_s17 = scalar_lea.vmem %s19335_s4, %s13705_s13 }
  0x1d   : > { %14179 = vmatpush3.bf16.msra.mxu0 %v15051_v9  ;;  %v1225_v52 = vsel %vm15406_vm9, %v1220_v45, %v1224_v28  ;;  %v1235_v59 = vsel %vm15406_vm9, %v1230_v48, %v1234_v30  ;;  %19361 = vst [vmem:[#allocation7_spill] sm:$0xff] %v19360_v62  ;;  %215 = vst [vmem:[#allocation2 + $0x18] sm:$0x1] %v214_v56  ;;  %v360_v63 = vshrl.u32 %v310_v51, 16  ;;  %v216_v0 = vld [vmem:[#allocation2 + $0x24] sm:$0x1] }
  0x1e   : > { %14227 = vmatpush3.bf16.msra.mxu1 %v15052_v10  ;;  %14180 = vmatprep.subr.bf16.mxu0 %v15053_v11  ;;  %v312_v1 = vld [vmem:[%s15378_s22 + $0x10] sm:$0xf]  ;;  %v12904_v2 = vcombine.low %v1225_v52, %v1235_v59  ;;  %v363_v4 = vshll.u32 %v310_v51, 16  ;;  %v368_v5 = vshrl.u32 %v311_v57, 16  ;;  %v371_v6 = vshll.u32 %v311_v57, 16 }
  0x1f   : > { %14228 = vmatprep.subr.bf16.mxu1 %v15054_v12  ;;  %v313_v7 = vld [vmem:[%s15378_s22 + $0x14] sm:$0xf]  ;;  %v357_v8 = vsel %vm15420_vm10, %v349_v55, %v356_v60  ;;  %v664_v9 = vld [vmem:[#allocation2 + $0xc] sm:$0xf]  ;;  %v362_v10 = vrot.slane %v360_v63, 7  ;;  %v377_v15 = vshrl.u32 %v312_v1, 16 }
  0x20   : > { %14234 = vmatprep.mubr.bf16.mxu1 %v12904_v2  ;;  %v665_v13 = vsel %vm15431_vm11, %v348_v54, %v664_v9  ;;  %667 = vst [vmem:[#allocation2 + $0x10] sm:$0xf] %v357_v8  ;;  %v370_v14 = vrot.slane %v368_v5, 7  ;;  %v380_v16 = vshll.u32 %v312_v1, 16  ;;  %v388_v21 = vshll.u32 %v313_v7, 16  ;;  %v15064_v46 = vld [vmem:[%s19332_s1 + $0xb0] sm:$0xff]  }
  0x21   : > { %14181 = vmatpush3.bf16.msra.mxu0 %v15053_v11  ;;  %v264_v11 = vsel %vm15400_vm8, 0, %v263_v58  ;;  %666 = vst [vmem:[#allocation2 + $0xc] sm:$0xf] %v665_v13  ;;  %v365_v18 = vor.u32 %v363_v4, %v362_v10  ;;  %v366_v19 = vrot.slane %v362_v10, 4  ;;  %v668_v23 = vld [vmem:[#allocation2 + $0x14] sm:$0x1] }
  0x22   : > { %14229 = vmatpush3.bf16.msra.mxu1 %v15054_v12  ;;  %14182 = vmatprep.subr.bf16.mxu0 %v15055_v17  ;;  %v217_v12 = vsel %vm15385_vm5, 0, %v216_v0  ;;  %265 = vst [vmem:[#allocation2 + $0x20] sm:$0x1] %v264_v11  ;;  %v373_v24 = vor.u32 %v371_v6, %v370_v14  ;;  %v379_v25 = vrot.slane %v377_v15, 7  ;;  %v669_v28 = vsel %vm15385_vm5, %v358_v61, %v668_v23  ;;  %v219_v31 = vld [vmem:[#allocation2 + $0x30] sm:$0x1] }
  0x23   : > { %14230 = vmatprep.subr.bf16.mxu1 %v15056_v20  ;;  %218 = vst [vmem:[#allocation2 + $0x24] sm:$0x1] %v217_v12  ;;  %v375_v29 = vrot.slane %v370_v14, 4  ;;  %670 = vst [vmem:[#allocation2 + $0x14] sm:$0x1] %v669_v28  ;;  %v220_v36 = vsel %vm15385_vm5, 0, %v219_v31 }
  0x24   : > { %v374_v32 = vsel %vm15420_vm10, %v366_v19, %v373_v24  ;;  %v382_v34 = vor.u32 %v380_v16, %v379_v25  ;;  %v383_v35 = vrot.slane %v379_v25, 4  ;;  %v314_v37 = vld [vmem:[%s15378_s22 + $0x18] sm:$0xf]  ;;  %221 = vst [vmem:[#allocation2 + $0x30] sm:$0x1] %v220_v36  ;;  %v15067_v13 = vld [vmem:[%s19332_s1 + $0xa8] sm:$0xff]  }
  0x25   : > { %14183 = vmatpush3.bf16.msra.mxu0 %v15055_v17  ;;  %v266_v17 = vld [vmem:[#allocation2 + $0x2c] sm:$0x1]  ;;  %674 = vst [vmem:[#allocation2 + $0x1c] sm:$0xf] %v374_v32  ;;  %v315_v43 = vld [vmem:[%s15378_s22 + $0x1c] sm:$0xf] }
  0x26   : > { %14231 = vmatpush3.bf16.msra.mxu1 %v15056_v20  ;;  %14184 = vmatprep.subr.bf16.mxu0 %v15395_v33  ;;  %v385_v20 = vshrl.u32 %v313_v7, 16  ;;  %v267_v27 = vsel %vm15400_vm8, 0, %v266_v17  ;;  %v269_v45 = vld [vmem:[#allocation2 + $0x38] sm:$0x1]  ;;  %v397_v47 = vshll.u32 %v314_v37, 16  ;;  %v402_v48 = vshrl.u32 %v315_v43, 16 }
  0x27   : > { %14232 = vmatprep.subr.bf16.mxu1 %v15058_v44  ;;  %268 = vst [vmem:[#allocation2 + $0x2c] sm:$0x1] %v267_v27  ;;  %v405_v49 = vshll.u32 %v315_v43, 16  ;;  %v270_v50 = vsel %vm15400_vm8, 0, %v269_v45  ;;  %v222_v51 = vld [vmem:[#allocation2 + $0x3c] sm:$0x1] }
  0x28   : > { %v387_v30 = vrot.slane %v385_v20, 7  ;;  %v1165_v52 = vld [vmem:[#allocation2 + $0x10] sm:$0xf]  ;;  %271 = vst [vmem:[#allocation2 + $0x38] sm:$0x1] %v270_v50  ;;  %v15482_v6 = vrot.slane %v402_v48, 7 }
  0x29   : > { %14185 = vmatpush3.bf16.msra.mxu0 %v15395_v33  ;;  %v671_v33 = vld [vmem:[#allocation2 + $0x18] sm:$0xf]  ;;  %v675_v54 = vld [vmem:[#allocation2 + $0x20] sm:$0x1]  ;;  %v15060_v56 = vld [vmem:[#allocation2 + $0xc] sm:$0xff]   ;;  %v1246_v58 = vshll.u32 %v1165_v52, 16 }
  0x2a   : > { %14233 = vmatpush3.bf16.msra.mxu1 %v15058_v44  ;;  %14266 = vmatprep.subr.bf16.mxu0 %v15440_v3  ;;  %v672_v40 = vsel %vm15431_vm11, %v365_v18, %v671_v33  ;;  %v390_v41 = vor.u32 %v388_v21, %v387_v30  ;;  %v392_v42 = vrot.slane %v387_v30, 4  ;;  %v394_v44 = vshrl.u32 %v314_v37, 16  ;;  %v1164_v57 = vld [vmem:[#allocation2 + $0xc] sm:$0xf]  ;;  %v678_v0 = vld [vmem:[#allocation2 + $0x24] sm:$0xf] }
  0x2b   : > { %14314 = vmatprep.subr.bf16.mxu1 %v15455_v22  ;;  %673 = vst [vmem:[#allocation2 + $0x18] sm:$0xf] %v672_v40  ;;  %v676_v59 = vsel %vm15385_vm5, %v375_v29, %v675_v54  ;;  %v1237_v60 = vshrl.u32 %v1164_v57, 16  ;;  %v1240_v61 = vshll.u32 %v1164_v57, 16  ;;  %v1250_v63 = vshrl.u32 %v1165_v52, 16  ;;  %v15075_v48 = vld [vmem:[%s19332_s1 + $0xf0] sm:$0xff]  }
  0x2c   : > { %v391_v55 = vsel %vm15420_vm10, %v383_v35, %v390_v41  ;;  %677 = vst [vmem:[#allocation2 + $0x20] sm:$0x1] %v676_v59  ;;  %v396_v1 = vrot.slane %v394_v44, 7  ;;  %14187 = vmatmul.mubr.bf16.vlgmr.msra.gmra.mxu0 %v15060_v56  ;;  %v1248_v2 = vrot.slane %v1246_v58, 5  ;;  %v679_v4 = vsel %vm15431_vm11, %v382_v34, %v678_v0  ;;  %v1166_v8 = vld [vmem:[#allocation2 + $0x14] sm:$0x1] }
  0x2d   : > { %681 = vst [vmem:[#allocation2 + $0x28] sm:$0xf] %v391_v55  ;;  %v223_v7 = vsel %vm15385_vm5, 0, %v222_v51  ;;  %v1239_v9 = vrot.slane %v1237_v60, 4  ;;  %v1242_v10 = vrot.slane %v1240_v61, 5  ;;  %v1252_v11 = vrot.slane %v1250_v63, 4  ;;  %14267 = vmatpush3.bf16.msra.mxu0 %v15440_v3 }
  0x2e   : > { %v682_v5 = vld [vmem:[#allocation2 + $0x2c] sm:$0x1]  ;;  %680 = vst [vmem:[#allocation2 + $0x24] sm:$0xf] %v679_v4  ;;  %224 = vst [vmem:[#allocation2 + $0x3c] sm:$0x1] %v223_v7  ;;  %14268 = vmatprep.subr.bf16.mxu0 %v15064_v46  ;;  %v407_v17 = vor.u32 %v405_v49, %v15482_v6  ;;  %v399_v23 = vor.u32 %v397_v47, %v396_v1 }
  0x2f   : > { %v683_v12 = vsel %vm15385_vm5, %v392_v42, %v682_v5  ;;  %v1256_v14 = vshll.u32 %v1166_v8, 16  ;;  %v1168_v15 = vld [vmem:[#allocation2 + $0x1c] sm:$0xf]  ;;  %v400_v16 = vrot.slane %v396_v1, 4  ;;  %v1243_v18 = vor.u32 %v1242_v10, %v1239_v9  ;;  %v685_v29 = vld [vmem:[#allocation2 + $0x30] sm:$0xf] }
  0x30   : > { %684 = vst [vmem:[#allocation2 + $0x2c] sm:$0x1] %v683_v12  ;;  %v1253_v19 = vor.u32 %v1252_v11, %v1248_v2  ;;  %v1270_v21 = vshll.u32 %v1168_v15, 16  ;;  %v1274_v28 = vshrl.u32 %v1168_v15, 16  ;;  %v15070_v34 = vld [vmem:[%s19332_s1 + $0xa0] sm:$0xff]   ;;  %v409_v41 = vrot.slane %v15482_v6, 4 }
  0x31   : > { %v1258_v24 = vrot.slane %v1256_v14, 5  ;;  %v1244_v30 = vrot.slane %v1243_v18, 4  ;;  %14269 = vmatpush3.bf16.msra.mxu0 %v15064_v46  ;;  %v408_v33 = vsel %vm15420_vm10, %v400_v16, %v407_v17  ;;  %v686_v46 = vsel %vm15431_vm11, %v399_v23, %v685_v29  ;;  %v689_v47 = vld [vmem:[#allocation2 + $0x38] sm:$0x1]  ;;  %v316_v4 = vld [vmem:[%s15378_s22 + $0x20] sm:$0xf] }
  0x32   : > { %v15062_v20 = vld [vmem:[#allocation2 + $0x18] sm:$0xff]   ;;  %v1254_v31 = vrot.slane %v1253_v19, 4  ;;  %v1272_v32 = vrot.slane %v1270_v21, 5  ;;  %v1276_v40 = vrot.slane %v1274_v28, 4  ;;  %688 = vst [vmem:[#allocation2 + $0x34] sm:$0xf] %v408_v33  ;;  %14270 = vmatprep.subr.bf16.mxu0 %v15067_v13  ;;  %v690_v8 = vsel %vm15385_vm5, %v409_v41, %v689_v47 }
  0x33   : > { %v1167_v3 = vld [vmem:[#allocation2 + $0x18] sm:$0xf]  ;;  %14190 = vmatprep.mubr.bf16.mxu0 %v15062_v20  ;;  %v1169_v35 = vld [vmem:[#allocation2 + $0x20] sm:$0x1]  ;;  %v1249_v42 = vsel %vm15406_vm9, %v1244_v30, %v1248_v2  ;;  %687 = vst [vmem:[#allocation2 + $0x30] sm:$0xf] %v686_v46 }
  0x34   : > { %v1261_v25 = vshrl.u32 %v1167_v3, 16  ;;  %v1264_v27 = vshll.u32 %v1167_v3, 16  ;;  %v1259_v43 = vsel %vm15406_vm9, %v1254_v31, %v1258_v24  ;;  %v1280_v44 = vshll.u32 %v1169_v35, 16  ;;  %v1171_v45 = vld [vmem:[#allocation2 + $0x28] sm:$0xf]  ;;  %v15073_v56 = vld [vmem:[%s19332_s1 + $0x98] sm:$0xff]  }
  0x35   : > { %v12905_v49 = vcombine.low %v1249_v42, %v1259_v43  ;;  %v1277_v51 = vor.u32 %v1276_v40, %v1272_v32  ;;  %v15063_v52 = vld [vmem:[#allocation2 + $0x24] sm:$0xff]   ;;  %v1294_v55 = vshll.u32 %v1171_v45, 16  ;;  %v1298_v61 = vshrl.u32 %v1171_v45, 16  ;;  %14271 = vmatpush3.bf16.msra.mxu0 %v15067_v13  ;;  %691 = vst [vmem:[#allocation2 + $0x38] sm:$0x1] %v690_v8  ;;  %v15078_v20 = vld [vmem:[%s19332_s1 + $0x90] sm:$0xff]  }
  0x36   : > { %v1263_v36 = vrot.slane %v1261_v25, 4  ;;  %v1266_v37 = vrot.slane %v1264_v27, 5  ;;  %v1170_v54 = vld [vmem:[#allocation2 + $0x24] sm:$0xf]  ;;  %v1282_v57 = vrot.slane %v1280_v44, 5  ;;  %14191 = vmatmul.mubr.bf16.gmra.mxu0 %v15063_v52  ;;  %14272 = vmatprep.subr.bf16.mxu0 %v15070_v34  ;;  %v411_v13 = vshrl.u32 %v316_v4, 16 }
  0x37   : > { %v1172_v58 = vld [vmem:[#allocation2 + $0x2c] sm:$0x1]  ;;  %v1285_v59 = vshrl.u32 %v1170_v54, 16  ;;  %v1288_v60 = vshll.u32 %v1170_v54, 16  ;;  %14235 = vmatmul.mubr.bf16.vlgmr.msra.gmra.mxu1 %v12905_v49  ;;  %v1278_v0 = vrot.slane %v1277_v51, 4  ;;  %v1296_v1 = vrot.slane %v1294_v55, 5 }
  0x38   : > { %v1267_v50 = vor.u32 %v1266_v37, %v1263_v36  ;;  %v1304_v2 = vshll.u32 %v1172_v58, 16  ;;  %v1300_v7 = vrot.slane %v1298_v61, 4  ;;  %v15515_v9 = vld [vmem:[%s15378_s22 + $0x24] sm:$0xf]  ;;  %14315 = vmatpush3.bf16.msra.mxu1 %v15455_v22  ;;  %v15079_v14 = vld [vmem:[%s19332_s1 + $0xe8] sm:$0xff]   ;;  %v414_v19 = vshll.u32 %v316_v4, 16 }
  0x39   : > { %v1287_v5 = vrot.slane %v1285_v59, 4  ;;  %v1290_v6 = vrot.slane %v1288_v60, 5  ;;  %v1283_v11 = vsel %vm15406_vm9, %v1278_v0, %v1282_v57  ;;  %14316 = vmatprep.subr.bf16.mxu1 %v15075_v48  ;;  %v1174_v18 = vld [vmem:[#allocation2 + $0x34] sm:$0xf]  ;;  %v692_v22 = vld [vmem:[#allocation2 + $0x3c] sm:$0xf]  ;;  %14273 = vmatpush3.bf16.msra.mxu0 %v15070_v34 }
  0x3a   : > { %v1268_v63 = vrot.slane %v1267_v50, 4  ;;  %v1306_v12 = vrot.slane %v1304_v2, 5  ;;  %v1301_v17 = vor.u32 %v1300_v7, %v1296_v1  ;;  %v1318_v3 = vshll.u32 %v1174_v18, 16  ;;  %v272_v25 = vld [vmem:[#allocation2 + $0x44] sm:$0x1]  ;;  %14274 = vmatprep.subr.bf16.mxu0 %v15073_v56  ;;  %v15065_v29 = vld [vmem:[#allocation2 + $0x30] sm:$0xff]  }
  0x3b   : > { %v1291_v16 = vor.u32 %v1290_v6, %v1287_v5  ;;  %v1322_v21 = vshrl.u32 %v1174_v18, 16  ;;  %v413_v23 = vrot.slane %v411_v13, 7  ;;  %v419_v24 = vshrl.u32 %v15515_v9, 16  ;;  %v1173_v31 = vld [vmem:[#allocation2 + $0x30] sm:$0xf]  ;;  %v15080_v36 = vld [vmem:[%s19332_s1 + $0xe0] sm:$0xff]   ;;  %14194 = vmatprep.mubr.bf16.mxu0 %v15065_v29 }
  0x3c   : > { %v1273_v10 = vsel %vm15406_vm9, %v1268_v63, %v1272_v32  ;;  %v1302_v28 = vrot.slane %v1301_v17, 4  ;;  %v422_v30 = vshll.u32 %v15515_v9, 16  ;;  %14317 = vmatpush3.bf16.msra.mxu1 %v15075_v48  ;;  %v15530_v32 = vrot.slane %v1318_v3, 5  ;;  %v225_v43 = vld [vmem:[#allocation2 + $0x48] sm:$0x1]  ;;  %v15084_v63 = vld [vmem:[%s19332_s1 + $0xd8] sm:$0xff]  }
  0x3d   : > { %v12906_v15 = vcombine.low %v1273_v10, %v1283_v11  ;;  %v1292_v27 = vrot.slane %v1291_v16, 4  ;;  %v1324_v33 = vrot.slane %v1322_v21, 4  ;;  %v416_v34 = vor.u32 %v414_v19, %v413_v23  ;;  %14318 = vmatprep.subr.bf16.mxu1 %v15079_v14  ;;  %14275 = vmatpush3.bf16.msra.mxu0 %v15073_v56  ;;  %v318_v48 = vld [vmem:[%s15378_s22 + $0x28] sm:$0xf]  ;;  %v319_v49 = vld [vmem:[%s15378_s22 + $0x2c] sm:$0xf] }
  0x3e   : > { %v417_v35 = vrot.slane %v413_v23, 4  ;;  %v1307_v40 = vsel %vm15406_vm9, %v1302_v28, %v1306_v12  ;;  %v1309_v41 = vshrl.u32 %v1173_v31, 16  ;;  %v1312_v42 = vshll.u32 %v1173_v31, 16  ;;  %14276 = vmatprep.subr.bf16.mxu0 %v15078_v20  ;;  %v15083_v50 = vld [vmem:[%s19332_s1 + $0x88] sm:$0xff]   ;;  %v1175_v51 = vld [vmem:[#allocation2 + $0x38] sm:$0x1] }
  0x3f   : > { %14238 = vmatprep.mubr.bf16.mxu1 %v12906_v15  ;;  %v1297_v37 = vsel %vm15406_vm9, %v1292_v27, %v1296_v1  ;;  %v1325_v45 = vor.u32 %v1324_v33, %v15530_v32  ;;  %v15540_v46 = vrot.slane %v419_v24, 7  ;;  %v693_v47 = vsel %vm15431_vm11, %v416_v34, %v692_v22  ;;  %v275_v61 = vld [vmem:[#allocation2 + $0x50] sm:$0x1]  ;;  %v228_v5 = vld [vmem:[#allocation2 + $0x54] sm:$0x1]  ;;  %v15088_v11 = vld [vmem:[%s19332_s1 + $0x80] sm:$0xff]  }
  0x40   : > { %v12907_v44 = vcombine.low %v1297_v37, %v1307_v40  ;;  %v1311_v52 = vrot.slane %v1309_v41, 4  ;;  %v1314_v54 = vrot.slane %v1312_v42, 5  ;;  %694 = vst [vmem:[#allocation2 + $0x3c] sm:$0xf] %v693_v47  ;;  %v273_v55 = vsel %vm15400_vm8, 0, %v272_v25  ;;  %14319 = vmatpush3.bf16.msra.mxu1 %v15079_v14  ;;  %v15091_v27 = vld [vmem:[%s19332_s1 + $0x138] sm:$0xff]  }
  0x41   : > { %v226_v56 = vsel %vm15385_vm5, 0, %v225_v43  ;;  %v1326_v57 = vrot.slane %v1325_v45, 4  ;;  %v1328_v58 = vshll.u32 %v1175_v51, 16  ;;  %v424_v59 = vor.u32 %v422_v30, %v15540_v46  ;;  %274 = vst [vmem:[#allocation2 + $0x44] sm:$0x1] %v273_v55  ;;  %14320 = vmatprep.subr.bf16.mxu1 %v15080_v36  ;;  %14277 = vmatpush3.bf16.msra.mxu0 %v15078_v20  ;;  %v15085_v20 = vld [vmem:[%s19332_s1 + $0xd0] sm:$0xff]  }
  0x42   : > { %14239 = vmatmul.mubr.bf16.gmra.mxu1 %v12907_v44  ;;  %v426_v60 = vrot.slane %v15540_v46, 4  ;;  %227 = vst [vmem:[#allocation2 + $0x48] sm:$0x1] %v226_v56  ;;  %v1315_v0 = vor.u32 %v1314_v54, %v1311_v52  ;;  %v428_v1 = vshrl.u32 %v318_v48, 16  ;;  %v431_v2 = vshll.u32 %v318_v48, 16  ;;  %14278 = vmatprep.subr.bf16.mxu0 %v15083_v50  ;;  %v15089_v44 = vld [vmem:[%s19332_s1 + $0xc8] sm:$0xff]  }
  0x43   : > { %v436_v4 = vshrl.u32 %v319_v49, 16  ;;  %v1330_v6 = vrot.slane %v1328_v58, 5  ;;  %v425_v7 = vsel %vm15420_vm10, %v417_v35, %v424_v59  ;;  %v439_v8 = vshll.u32 %v319_v49, 16  ;;  %v320_v10 = vld [vmem:[%s15378_s22 + $0x30] sm:$0xf]  ;;  %v15090_v55 = vld [vmem:[%s19332_s1 + $0xc0] sm:$0xff]  }
  0x44   : > { %v276_v9 = vsel %vm15400_vm8, 0, %v275_v61  ;;  %v1316_v12 = vrot.slane %v1315_v0, 4  ;;  %695 = vst [vmem:[#allocation2 + $0x40] sm:$0xf] %v425_v7  ;;  %v430_v13 = vrot.slane %v428_v1, 7  ;;  %v229_v15 = vsel %vm15385_vm5, 0, %v228_v5  ;;  %14321 = vmatpush3.bf16.msra.mxu1 %v15080_v36 }
  0x45   : > { %v15566_v14 = vrot.slane %v436_v4, 7  ;;  %277 = vst [vmem:[#allocation2 + $0x50] sm:$0x1] %v276_v9  ;;  %v321_v16 = vld [vmem:[%s15378_s22 + $0x34] sm:$0xf]  ;;  %v1331_v17 = vsel %vm15406_vm9, %v1326_v57, %v1330_v6  ;;  %v445_v18 = vshrl.u32 %v320_v10, 16  ;;  %14322 = vmatprep.subr.bf16.mxu1 %v15084_v63  ;;  %14279 = vmatpush3.bf16.msra.mxu0 %v15083_v50 }
  0x46   : > { %230 = vst [vmem:[#allocation2 + $0x54] sm:$0x1] %v229_v15  ;;  %v448_v19 = vshll.u32 %v320_v10, 16  ;;  %v453_v22 = vshrl.u32 %v321_v16, 16  ;;  %v1321_v3 = vsel %vm15406_vm9, %v1316_v12, %v15530_v32  ;;  %v433_v21 = vor.u32 %v431_v2, %v430_v13  ;;  %v278_v25 = vld [vmem:[#allocation2 + $0x5c] sm:$0x1]  ;;  %14280 = vmatprep.subr.bf16.mxu0 %v15088_v11 }
  0x47   : > { %v434_v23 = vrot.slane %v430_v13, 4  ;;  %v441_v24 = vor.u32 %v439_v8, %v15566_v14  ;;  %v12908_v28 = vcombine.low %v1321_v3, %v1331_v17  ;;  %v1176_v29 = vld [vmem:[#allocation2 + $0x3c] sm:$0xf]  ;;  %v443_v30 = vrot.slane %v15566_v14, 4  ;;  %v231_v43 = vld [vmem:[#allocation2 + $0x60] sm:$0x1] }
  0x48   : > { %v447_v31 = vrot.slane %v445_v18, 7  ;;  %v696_v33 = vld [vmem:[#allocation2 + $0x44] sm:$0x1]  ;;  %v1333_v34 = vshrl.u32 %v1176_v29, 16  ;;  %v1336_v35 = vshll.u32 %v1176_v29, 16  ;;  %14323 = vmatpush3.bf16.msra.mxu1 %v15084_v63  ;;  %v15593_v47 = vrot.slane %v453_v22, 7 }
  0x49   : > { %v442_v32 = vsel %vm15420_vm10, %v434_v23, %v441_v24  ;;  %v699_v36 = vld [vmem:[#allocation2 + $0x48] sm:$0xf]  ;;  %14242 = vmatprep.mubr.bf16.mxu1 %v12908_v28  ;;  %v697_v37 = vsel %vm15385_vm5, %v426_v60, %v696_v33  ;;  %14324 = vmatprep.subr.bf16.mxu1 %v15085_v20  ;;  %v456_v48 = vshll.u32 %v321_v16, 16  ;;  %v15596_v49 = vld [vmem:[%s15378_s22 + $0x38] sm:$0xf]  ;;  %v279_v54 = vsel %vm15400_vm8, 0, %v278_v25 }
  0x4a   : > { %v700_v40 = vsel %vm15431_vm11, %v433_v21, %v699_v36  ;;  %702 = vst [vmem:[#allocation2 + $0x4c] sm:$0xf] %v442_v32  ;;  %v450_v41 = vor.u32 %v448_v19, %v447_v31  ;;  %v451_v42 = vrot.slane %v447_v31, 4  ;;  %698 = vst [vmem:[#allocation2 + $0x44] sm:$0x1] %v697_v37  ;;  %v1335_v45 = vrot.slane %v1333_v34, 4  ;;  %14281 = vmatpush3.bf16.msra.mxu0 %v15088_v11 }
  0x4b   : > { %v1338_v46 = vrot.slane %v1336_v35, 5  ;;  %701 = vst [vmem:[#allocation2 + $0x48] sm:$0xf] %v700_v40  ;;  %v15599_v50 = vld [vmem:[%s15378_s22 + $0x3c] sm:$0xf]  ;;  %14362 = vmatprep.subr.bf16.mxu0 %v15091_v27  ;;  %v458_v60 = vor.u32 %v456_v48, %v15593_v47  ;;  %v460_v0 = vrot.slane %v15593_v47, 4 }
  0x4c   : > { %v15066_v51 = vld [vmem:[#allocation2 + $0x3c] sm:$0xff]   ;;  %v703_v59 = vld [vmem:[#allocation2 + $0x50] sm:$0x1]  ;;  %280 = vst [vmem:[#allocation2 + $0x5c] sm:$0x1] %v279_v54  ;;  %14325 = vmatpush3.bf16.msra.mxu1 %v15085_v20  ;;  %v232_v2 = vsel %vm15385_vm5, 0, %v231_v43 }
  0x4d   : > { %v1177_v52 = vld [vmem:[#allocation2 + $0x40] sm:$0xf]  ;;  %v1339_v56 = vor.u32 %v1338_v46, %v1335_v45  ;;  %v706_v61 = vld [vmem:[#allocation2 + $0x54] sm:$0xf]  ;;  %14195 = vmatmul.mubr.bf16.gmra.mxu0 %v15066_v51  ;;  %v704_v63 = vsel %vm15385_vm5, %v443_v30, %v703_v59  ;;  %v281_v4 = vld [vmem:[#allocation2 + $0x68] sm:$0x1]  ;;  %14326 = vmatprep.subr.bf16.mxu1 %v15089_v44  ;;  %v459_v9 = vsel %vm15420_vm10, %v451_v42, %v458_v60 }
  0x4e   : > { %v1342_v57 = vshll.u32 %v1177_v52, 16  ;;  %v1346_v58 = vshrl.u32 %v1177_v52, 16  ;;  %v707_v1 = vsel %vm15431_vm11, %v450_v41, %v706_v61  ;;  %v234_v5 = vld [vmem:[#allocation2 + $0x6c] sm:$0x1]  ;;  %705 = vst [vmem:[#allocation2 + $0x50] sm:$0x1] %v704_v63 }
  0x4f   : > { %v1340_v6 = vrot.slane %v1339_v56, 4  ;;  %708 = vst [vmem:[#allocation2 + $0x54] sm:$0xf] %v707_v1  ;;  %233 = vst [vmem:[#allocation2 + $0x60] sm:$0x1] %v232_v2  ;;  %v462_v10 = vshrl.u32 %v15596_v49, 16 }
  0x50   : > { %v1344_v7 = vrot.slane %v1342_v57, 5  ;;  %v1348_v8 = vrot.slane %v1346_v58, 4  ;;  %709 = vst [vmem:[#allocation2 + $0x58] sm:$0xf] %v459_v9  ;;  %v465_v11 = vshll.u32 %v15596_v49, 16  ;;  %v470_v12 = vshrl.u32 %v15599_v50, 16  ;;  %14327 = vmatpush3.bf16.msra.mxu1 %v15089_v44 }
  0x51   : > { %v473_v13 = vshll.u32 %v15599_v50, 16  ;;  %v1180_v15 = vld [vmem:[#allocation2 + $0x4c] sm:$0xf]  ;;  %v282_v16 = vsel %vm15400_vm8, 0, %v281_v4  ;;  %v235_v17 = vsel %vm15385_vm5, 0, %v234_v5  ;;  %14328 = vmatprep.subr.bf16.mxu1 %v15090_v55  ;;  %v464_v24 = vrot.slane %v462_v10, 7 }
  0x52   : > { %v1349_v14 = vor.u32 %v1348_v8, %v1344_v7  ;;  %v1178_v18 = vld [vmem:[#allocation2 + $0x44] sm:$0x1]  ;;  %v15068_v19 = vld [vmem:[#allocation2 + $0x48] sm:$0xff]   ;;  %v1366_v22 = vshll.u32 %v1180_v15, 16  ;;  %283 = vst [vmem:[#allocation2 + $0x68] sm:$0x1] %v282_v16  ;;  %v1345_v31 = vsel %vm15406_vm9, %v1340_v6, %v1344_v7 }
  0x53   : > { %236 = vst [vmem:[#allocation2 + $0x6c] sm:$0x1] %v235_v17  ;;  %v1352_v3 = vshll.u32 %v1178_v18, 16  ;;  %v1179_v21 = vld [vmem:[#allocation2 + $0x48] sm:$0xf]  ;;  %v1370_v23 = vshrl.u32 %v1180_v15, 16  ;;  %14198 = vmatprep.mubr.bf16.mxu0 %v15068_v19  ;;  %v467_v40 = vor.u32 %v465_v11, %v464_v24 }
  0x54   : > { %v1350_v20 = vrot.slane %v1349_v14, 4  ;;  %v1357_v25 = vshrl.u32 %v1179_v21, 16  ;;  %v1360_v27 = vshll.u32 %v1179_v21, 16  ;;  %v1368_v28 = vrot.slane %v1366_v22, 5  ;;  %v710_v29 = vld [vmem:[#allocation2 + $0x5c] sm:$0x1]  ;;  %14329 = vmatpush3.bf16.msra.mxu1 %v15090_v55 }
  0x55   : > { %v472_v30 = vrot.slane %v470_v12, 7  ;;  %v1354_v33 = vrot.slane %v1352_v3, 5  ;;  %v1372_v34 = vrot.slane %v1370_v23, 4  ;;  %v711_v35 = vsel %vm15385_vm5, %v460_v0, %v710_v29  ;;  %v1181_v32 = vld [vmem:[#allocation2 + $0x50] sm:$0x1] }
  0x56   : > { %v1359_v36 = vrot.slane %v1357_v25, 4  ;;  %v1362_v37 = vrot.slane %v1360_v27, 5  ;;  %712 = vst [vmem:[#allocation2 + $0x5c] sm:$0x1] %v711_v35  ;;  %v1376_v43 = vshll.u32 %v1181_v32, 16  ;;  %v468_v0 = vrot.slane %v464_v24, 4 }
  0x57   : > { %v1355_v41 = vsel %vm15406_vm9, %v1350_v20, %v1354_v33  ;;  %v1373_v42 = vor.u32 %v1372_v34, %v1368_v28  ;;  %v15069_v44 = vld [vmem:[#allocation2 + $0x54] sm:$0xff]   ;;  %v475_v46 = vor.u32 %v473_v13, %v472_v30  ;;  %v324_v52 = vld [vmem:[%s15378_s22 + $0x40] sm:$0xf]  ;;  %v325_v59 = vld [vmem:[%s15378_s22 + $0x44] sm:$0xf]  ;;  %v477_v7 = vrot.slane %v472_v30, 4 }
  0x58   : > { %v1182_v45 = vld [vmem:[#allocation2 + $0x54] sm:$0xf]  ;;  %v12909_v47 = vcombine.low %v1345_v31, %v1355_v41  ;;  %v1363_v48 = vor.u32 %v1362_v37, %v1359_v36  ;;  %v1183_v49 = vld [vmem:[#allocation2 + $0x58] sm:$0xf]  ;;  %v1378_v55 = vrot.slane %v1376_v43, 5  ;;  %14199 = vmatmul.mubr.bf16.gmra.mxu0 %v15069_v44  ;;  %v479_v16 = vshrl.u32 %v324_v52, 16 }
  0x59   : > { %v1381_v50 = vshrl.u32 %v1182_v45, 16  ;;  %v1384_v51 = vshll.u32 %v1182_v45, 16  ;;  %v1374_v54 = vrot.slane %v1373_v42, 4  ;;  %v1390_v56 = vshll.u32 %v1183_v49, 16  ;;  %v713_v58 = vld [vmem:[#allocation2 + $0x60] sm:$0xf] }
  0x5a   : > { %v1394_v57 = vshrl.u32 %v1183_v49, 16  ;;  %14243 = vmatmul.mubr.bf16.gmra.mxu1 %v12909_v47  ;;  %v1364_v60 = vrot.slane %v1363_v48, 4  ;;  %v717_v1 = vld [vmem:[#allocation2 + $0x68] sm:$0x1]  ;;  %v284_v2 = vld [vmem:[#allocation2 + $0x74] sm:$0x1]  ;;  %v476_v10 = vsel %vm15420_vm10, %v468_v0, %v475_v46  ;;  %v714_v11 = vsel %vm15431_vm11, %v467_v40, %v713_v58 }
  0x5b   : > { %v1383_v61 = vrot.slane %v1381_v50, 4  ;;  %v1386_v63 = vrot.slane %v1384_v51, 5  ;;  %v1379_v4 = vsel %vm15406_vm9, %v1374_v54, %v1378_v55  ;;  %v1392_v5 = vrot.slane %v1390_v56, 5  ;;  %715 = vst [vmem:[#allocation2 + $0x60] sm:$0xf] %v714_v11 }
  0x5c   : > { %v1396_v6 = vrot.slane %v1394_v57, 4  ;;  %v1369_v8 = vsel %vm15406_vm9, %v1364_v60, %v1368_v28  ;;  %716 = vst [vmem:[#allocation2 + $0x64] sm:$0xf] %v476_v10  ;;  %v718_v15 = vsel %vm15385_vm5, %v477_v7, %v717_v1  ;;  %v482_v19 = vshll.u32 %v324_v52, 16  ;;  %v720_v20 = vld [vmem:[#allocation2 + $0x6c] sm:$0xf] }
  0x5d   : > { %v1387_v9 = vor.u32 %v1386_v63, %v1383_v61  ;;  %v12910_v12 = vcombine.low %v1369_v8, %v1379_v4  ;;  %v1184_v13 = vld [vmem:[#allocation2 + $0x5c] sm:$0x1]  ;;  %719 = vst [vmem:[#allocation2 + $0x68] sm:$0x1] %v718_v15  ;;  %v487_v22 = vshrl.u32 %v325_v59, 16  ;;  %v481_v23 = vrot.slane %v479_v16, 7 }
  0x5e   : > { %v1397_v14 = vor.u32 %v1396_v6, %v1392_v5  ;;  %v1400_v18 = vshll.u32 %v1184_v13, 16  ;;  %v237_v3 = vld [vmem:[#allocation2 + $0x78] sm:$0x1]  ;;  %v490_v24 = vshll.u32 %v325_v59, 16  ;;  %v285_v25 = vsel %vm15400_vm8, 0, %v284_v2 }
  0x5f   : > { %v1388_v17 = vrot.slane %v1387_v9, 4  ;;  %14246 = vmatprep.mubr.bf16.mxu1 %v12910_v12  ;;  %v326_v27 = vld [vmem:[%s15378_s22 + $0x48] sm:$0xf]  ;;  %v489_v30 = vrot.slane %v487_v22, 7  ;;  %286 = vst [vmem:[#allocation2 + $0x74] sm:$0x1] %v285_v25  ;;  %v484_v34 = vor.u32 %v482_v19, %v481_v23 }
  0x60   : > { %v1398_v21 = vrot.slane %v1397_v14, 4  ;;  %v1402_v29 = vrot.slane %v1400_v18, 5  ;;  %v238_v31 = vsel %vm15385_vm5, 0, %v237_v3  ;;  %v327_v33 = vld [vmem:[%s15378_s22 + $0x4c] sm:$0xf]  ;;  %v485_v35 = vrot.slane %v481_v23, 4 }
  0x61   : > { %v1393_v28 = vsel %vm15406_vm9, %v1388_v17, %v1392_v5  ;;  %239 = vst [vmem:[#allocation2 + $0x78] sm:$0x1] %v238_v31  ;;  %v496_v32 = vshrl.u32 %v326_v27, 16  ;;  %v499_v36 = vshll.u32 %v326_v27, 16  ;;  %v492_v40 = vor.u32 %v490_v24, %v489_v30  ;;  %v287_v55 = vld [vmem:[#allocation2 + $0x80] sm:$0x1] }
  0x62   : > { %v1403_v37 = vsel %vm15406_vm9, %v1398_v21, %v1402_v29  ;;  %v494_v41 = vrot.slane %v489_v30, 4  ;;  %v504_v42 = vshrl.u32 %v327_v33, 16  ;;  %v721_v44 = vsel %vm15431_vm11, %v484_v34, %v720_v20  ;;  %v1185_v50 = vld [vmem:[#allocation2 + $0x60] sm:$0xf]  ;;  %v240_v56 = vld [vmem:[#allocation2 + $0x84] sm:$0x1] }
  0x63   : > { %v12911_v43 = vcombine.low %v1393_v28, %v1403_v37  ;;  %v498_v45 = vrot.slane %v496_v32, 7  ;;  %v507_v46 = vshll.u32 %v327_v33, 16  ;;  %v15071_v47 = vld [vmem:[#allocation2 + $0x60] sm:$0xff]   ;;  %v493_v48 = vsel %vm15420_vm10, %v485_v35, %v492_v40  ;;  %722 = vst [vmem:[#allocation2 + $0x6c] sm:$0xf] %v721_v44 }
  0x64   : > { %v15656_v49 = vrot.slane %v504_v42, 7  ;;  %v1186_v51 = vld [vmem:[#allocation2 + $0x64] sm:$0xf]  ;;  %v1187_v52 = vld [vmem:[#allocation2 + $0x68] sm:$0x1]  ;;  %14202 = vmatprep.mubr.bf16.mxu0 %v15071_v47  ;;  %v1405_v57 = vshrl.u32 %v1185_v50, 16 }
  0x65   : > { %14247 = vmatmul.mubr.bf16.gmra.mxu1 %v12911_v43  ;;  %723 = vst [vmem:[#allocation2 + $0x70] sm:$0xf] %v493_v48  ;;  %v501_v54 = vor.u32 %v499_v36, %v498_v45  ;;  %v1408_v58 = vshll.u32 %v1185_v50, 16  ;;  %v1414_v59 = vshll.u32 %v1186_v51, 16  ;;  %v1418_v60 = vshrl.u32 %v1186_v51, 16 }
  0x66   : > { %v1424_v61 = vshll.u32 %v1187_v52, 16  ;;  %v724_v63 = vld [vmem:[#allocation2 + $0x74] sm:$0x1]  ;;  %v502_v0 = vrot.slane %v498_v45, 4  ;;  %v509_v1 = vor.u32 %v507_v46, %v15656_v49  ;;  %v328_v2 = vld [vmem:[%s15378_s22 + $0x50] sm:$0xf] }
  0x67   : > { %v1407_v4 = vrot.slane %v1405_v57, 4  ;;  %v1410_v5 = vrot.slane %v1408_v58, 5  ;;  %v1416_v6 = vrot.slane %v1414_v59, 5  ;;  %v1420_v7 = vrot.slane %v1418_v60, 4  ;;  %v329_v9 = vld [vmem:[%s15378_s22 + $0x54] sm:$0xf] }
  0x68   : > { %v727_v8 = vld [vmem:[#allocation2 + $0x78] sm:$0xf]  ;;  %v1426_v10 = vrot.slane %v1424_v61, 5  ;;  %v725_v11 = vsel %vm15385_vm5, %v494_v41, %v724_v63  ;;  %v510_v12 = vsel %vm15420_vm10, %v502_v0, %v509_v1  ;;  %v288_v16 = vsel %vm15400_vm8, 0, %v287_v55  ;;  %v290_v20 = vld [vmem:[#allocation2 + $0x8c] sm:$0x1] }
  0x69   : > { %v728_v13 = vsel %vm15431_vm11, %v501_v54, %v727_v8  ;;  %v1411_v14 = vor.u32 %v1410_v5, %v1407_v4  ;;  %v1421_v15 = vor.u32 %v1420_v7, %v1416_v6  ;;  %726 = vst [vmem:[#allocation2 + $0x74] sm:$0x1] %v725_v11  ;;  %730 = vst [vmem:[#allocation2 + $0x7c] sm:$0xf] %v510_v12  ;;  %v241_v17 = vsel %vm15385_vm5, 0, %v240_v56 }
  0x6a   : > { %729 = vst [vmem:[#allocation2 + $0x78] sm:$0xf] %v728_v13  ;;  %v1188_v18 = vld [vmem:[#allocation2 + $0x6c] sm:$0xf]  ;;  %289 = vst [vmem:[#allocation2 + $0x80] sm:$0x1] %v288_v16 }
  0x6b   : > { %242 = vst [vmem:[#allocation2 + $0x84] sm:$0x1] %v241_v17  ;;  %v513_v19 = vshrl.u32 %v328_v2, 16  ;;  %v516_v22 = vshll.u32 %v328_v2, 16  ;;  %v1412_v3 = vrot.slane %v1411_v14, 4  ;;  %v1422_v21 = vrot.slane %v1421_v15, 4 }
  0x6c   : > { %v15072_v23 = vld [vmem:[#allocation2 + $0x6c] sm:$0xff]   ;;  %v1429_v24 = vshrl.u32 %v1188_v18, 16  ;;  %v1432_v27 = vshll.u32 %v1188_v18, 16  ;;  %v521_v29 = vshrl.u32 %v329_v9, 16  ;;  %v524_v30 = vshll.u32 %v329_v9, 16 }
  0x6d   : > { %v1189_v25 = vld [vmem:[#allocation2 + $0x70] sm:$0xf]  ;;  %v515_v28 = vrot.slane %v513_v19, 7  ;;  %v1417_v31 = vsel %vm15406_vm9, %v1412_v3, %v1416_v6  ;;  %v1427_v33 = vsel %vm15406_vm9, %v1422_v21, %v1426_v10  ;;  %14203 = vmatmul.mubr.bf16.gmra.mxu0 %v15072_v23  ;;  %v511_v40 = vrot.slane %v15656_v49, 4  ;;  %v330_v49 = vld [vmem:[%s15378_s22 + $0x58] sm:$0xf] }
  0x6e   : > { %v1431_v34 = vrot.slane %v1429_v24, 4  ;;  %v1438_v35 = vshll.u32 %v1189_v25, 16  ;;  %v12912_v32 = vcombine.low %v1417_v31, %v1427_v33  ;;  %v1434_v36 = vrot.slane %v1432_v27, 5  ;;  %v243_v45 = vld [vmem:[#allocation2 + $0x90] sm:$0x1] }
  0x6f   : > { %v1442_v37 = vshrl.u32 %v1189_v25, 16  ;;  %v519_v42 = vrot.slane %v515_v28, 4  ;;  %v523_v43 = vrot.slane %v521_v29, 7  ;;  %v291_v44 = vsel %vm15400_vm8, 0, %v290_v20  ;;  %v331_v10 = vld [vmem:[%s15378_s22 + $0x5c] sm:$0xf] }
  0x70   : > { %v1440_v41 = vrot.slane %v1438_v35, 5  ;;  %14250 = vmatprep.mubr.bf16.mxu1 %v12912_v32  ;;  %v1190_v46 = vld [vmem:[#allocation2 + $0x74] sm:$0x1]  ;;  %v1435_v47 = vor.u32 %v1434_v36, %v1431_v34  ;;  %292 = vst [vmem:[#allocation2 + $0x8c] sm:$0x1] %v291_v44  ;;  %v518_v54 = vor.u32 %v516_v22, %v515_v28  ;;  %v244_v63 = vsel %vm15385_vm5, 0, %v243_v45 }
  0x71   : > { %v1444_v48 = vrot.slane %v1442_v37, 4  ;;  %v15076_v50 = vld [vmem:[#allocation2 + $0x78] sm:$0xff]   ;;  %v1448_v51 = vshll.u32 %v1190_v46, 16  ;;  %v731_v52 = vld [vmem:[#allocation2 + $0x80] sm:$0x1]  ;;  %v526_v55 = vor.u32 %v524_v30, %v523_v43  ;;  %v528_v56 = vrot.slane %v523_v43, 4 }
  0x72   : > { %v1436_v57 = vrot.slane %v1435_v47, 4  ;;  %14206 = vmatprep.mubr.bf16.mxu0 %v15076_v50  ;;  %v732_v59 = vsel %vm15385_vm5, %v511_v40, %v731_v52  ;;  %v1191_v60 = vld [vmem:[#allocation2 + $0x78] sm:$0xf]  ;;  %v1192_v61 = vld [vmem:[#allocation2 + $0x7c] sm:$0xf]  ;;  %v530_v19 = vshrl.u32 %v330_v49, 16 }
  0x73   : > { %v1445_v58 = vor.u32 %v1444_v48, %v1440_v41  ;;  %v1450_v0 = vrot.slane %v1448_v51, 5  ;;  %733 = vst [vmem:[#allocation2 + $0x80] sm:$0x1] %v732_v59  ;;  %v1453_v1 = vshrl.u32 %v1191_v60, 16  ;;  %v1456_v2 = vshll.u32 %v1191_v60, 16 }
  0x74   : > { %v1462_v4 = vshll.u32 %v1192_v61, 16  ;;  %v734_v5 = vld [vmem:[#allocation2 + $0x84] sm:$0xf]  ;;  %245 = vst [vmem:[#allocation2 + $0x90] sm:$0x1] %v244_v63  ;;  %v1441_v6 = vsel %vm15406_vm9, %v1436_v57, %v1440_v41  ;;  %v1466_v8 = vshrl.u32 %v1192_v61, 16  ;;  %v527_v9 = vsel %vm15420_vm10, %v519_v42, %v526_v55 }
  0x75   : > { %v1446_v7 = vrot.slane %v1445_v58, 4  ;;  %v293_v11 = vld [vmem:[#allocation2 + $0x98] sm:$0x1]  ;;  %v1455_v12 = vrot.slane %v1453_v1, 4  ;;  %v1458_v13 = vrot.slane %v1456_v2, 5  ;;  %v735_v15 = vsel %vm15431_vm11, %v518_v54, %v734_v5 }
  0x76   : > { %v1464_v14 = vrot.slane %v1462_v4, 5  ;;  %737 = vst [vmem:[#allocation2 + $0x88] sm:$0xf] %v527_v9  ;;  %v246_v16 = vld [vmem:[#allocation2 + $0x9c] sm:$0x1]  ;;  %v1468_v18 = vrot.slane %v1466_v8, 4 }
  0x77   : > { %v1451_v17 = vsel %vm15406_vm9, %v1446_v7, %v1450_v0  ;;  %736 = vst [vmem:[#allocation2 + $0x84] sm:$0xf] %v735_v15  ;;  %v533_v22 = vshll.u32 %v330_v49, 16  ;;  %v332_v20 = vld [vmem:[%s15378_s22 + $0x60] sm:$0xf]  ;;  %v1459_v21 = vor.u32 %v1458_v13, %v1455_v12  ;;  %v538_v24 = vshrl.u32 %v331_v10, 16 }
  0x78   : > { %v12913_v3 = vcombine.low %v1441_v6, %v1451_v17  ;;  %v738_v23 = vld [vmem:[#allocation2 + $0x8c] sm:$0x1]  ;;  %v541_v25 = vshll.u32 %v331_v10, 16  ;;  %v1469_v27 = vor.u32 %v1468_v18, %v1464_v14  ;;  %v532_v29 = vrot.slane %v530_v19, 7  ;;  %v333_v42 = vld [vmem:[%s15378_s22 + $0x64] sm:$0xf] }
  0x79   : > { %v739_v28 = vsel %vm15385_vm5, %v528_v56, %v738_v23  ;;  %v294_v30 = vsel %vm15400_vm8, 0, %v293_v11  ;;  %v1460_v31 = vrot.slane %v1459_v21, 4  ;;  %v540_v33 = vrot.slane %v538_v24, 7  ;;  %v296_v60 = vld [vmem:[#allocation2 + $0xa4] sm:$0x1]  ;;  %v15712_v10 = vld [vmem:[%s19332_s1 + $0x178] sm:$0xff]  }
  0x7a   : > { %14251 = vmatmul.mubr.bf16.gmra.mxu1 %v12913_v3  ;;  %740 = vst [vmem:[#allocation2 + $0x8c] sm:$0x1] %v739_v28  ;;  %295 = vst [vmem:[#allocation2 + $0x98] sm:$0x1] %v294_v30  ;;  %v247_v34 = vsel %vm15385_vm5, 0, %v246_v16  ;;  %v547_v35 = vshrl.u32 %v332_v20, 16  ;;  %v535_v37 = vor.u32 %v533_v22, %v532_v29  ;;  %14410 = vmatprep.subr.bf16.mxu1 %v15712_v10 }
  0x7b   : > { %v1193_v32 = vld [vmem:[#allocation2 + $0x80] sm:$0x1]  ;;  %v1470_v36 = vrot.slane %v1469_v27, 4  ;;  %v536_v40 = vrot.slane %v532_v29, 4  ;;  %v741_v41 = vld [vmem:[#allocation2 + $0x90] sm:$0xf]  ;;  %v543_v44 = vor.u32 %v541_v25, %v540_v33  ;;  %v1465_v51 = vsel %vm15406_vm9, %v1460_v31, %v1464_v14 }
  0x7c   : > { %248 = vst [vmem:[#allocation2 + $0x9c] sm:$0x1] %v247_v34  ;;  %v1472_v43 = vshll.u32 %v1193_v32, 16  ;;  %v545_v45 = vrot.slane %v540_v33, 4  ;;  %v742_v47 = vsel %vm15431_vm11, %v535_v37, %v741_v41  ;;  %v549_v48 = vrot.slane %v547_v35, 7 }
  0x7d   : > { %v1195_v46 = vld [vmem:[#allocation2 + $0x88] sm:$0xf]  ;;  %v550_v50 = vshll.u32 %v332_v20, 16  ;;  %v544_v56 = vsel %vm15420_vm10, %v536_v40, %v543_v44  ;;  %743 = vst [vmem:[#allocation2 + $0x90] sm:$0xf] %v742_v47  ;;  %v555_v1 = vshrl.u32 %v333_v42, 16 }
  0x7e   : > { %v1474_v52 = vrot.slane %v1472_v43, 5  ;;  %v15077_v54 = vld [vmem:[#allocation2 + $0x84] sm:$0xff]   ;;  %v1486_v58 = vshll.u32 %v1195_v46, 16  ;;  %v1490_v59 = vshrl.u32 %v1195_v46, 16  ;;  %744 = vst [vmem:[#allocation2 + $0x94] sm:$0xf] %v544_v56 }
  0x7f   : > { %v1194_v55 = vld [vmem:[#allocation2 + $0x84] sm:$0xf]  ;;  %14207 = vmatmul.mubr.bf16.gmra.mxu0 %v15077_v54  ;;  %v552_v63 = vor.u32 %v550_v50, %v549_v48  ;;  %v553_v0 = vrot.slane %v549_v48, 4  ;;  %v249_v2 = vld [vmem:[#allocation2 + $0xa8] sm:$0x1]  ;;  %v557_v14 = vrot.slane %v555_v1, 7 }
  0x80   : > { %v1477_v49 = vshrl.u32 %v1194_v55, 16  ;;  %v1480_v57 = vshll.u32 %v1194_v55, 16  ;;  %v1475_v61 = vsel %vm15406_vm9, %v1470_v36, %v1474_v52  ;;  %v334_v4 = vld [vmem:[%s15378_s22 + $0x68] sm:$0xf]  ;;  %v1488_v9 = vrot.slane %v1486_v58, 5 }
  0x81   : > { %v12914_v5 = vcombine.low %v1465_v51, %v1475_v61  ;;  %v1196_v6 = vld [vmem:[#allocation2 + $0x8c] sm:$0x1]  ;;  %v1492_v11 = vrot.slane %v1490_v59, 4  ;;  %v745_v13 = vld [vmem:[#allocation2 + $0x98] sm:$0x1]  ;;  %v558_v15 = vshll.u32 %v333_v42, 16 }
  0x82   : > { %v1479_v7 = vrot.slane %v1477_v49, 4  ;;  %v1482_v8 = vrot.slane %v1480_v57, 5  ;;  %v1496_v12 = vshll.u32 %v1196_v6, 16  ;;  %v746_v17 = vsel %vm15385_vm5, %v545_v45, %v745_v13  ;;  %v335_v28 = vld [vmem:[%s15378_s22 + $0x6c] sm:$0xf] }
  0x83   : > { %14254 = vmatprep.mubr.bf16.mxu1 %v12914_v5  ;;  %v748_v18 = vld [vmem:[#allocation2 + $0x9c] sm:$0xf]  ;;  %v297_v19 = vsel %vm15400_vm8, 0, %v296_v60  ;;  %v250_v22 = vsel %vm15385_vm5, 0, %v249_v2  ;;  %v1493_v20 = vor.u32 %v1492_v11, %v1488_v9  ;;  %747 = vst [vmem:[#allocation2 + $0x98] sm:$0x1] %v746_v17  ;;  %v560_v21 = vor.u32 %v558_v15, %v557_v14 }
  0x84   : > { %v1483_v16 = vor.u32 %v1482_v8, %v1479_v7  ;;  %v1498_v3 = vrot.slane %v1496_v12, 5  ;;  %v562_v23 = vrot.slane %v557_v14, 4  ;;  %298 = vst [vmem:[#allocation2 + $0xa4] sm:$0x1] %v297_v19  ;;  %251 = vst [vmem:[#allocation2 + $0xa8] sm:$0x1] %v250_v22  ;;  %v749_v27 = vsel %vm15431_vm11, %v552_v63, %v748_v18 }
  0x85   : > { %v1197_v25 = vld [vmem:[#allocation2 + $0x90] sm:$0xf]  ;;  %v564_v29 = vshrl.u32 %v334_v4, 16  ;;  %v1494_v30 = vrot.slane %v1493_v20, 4  ;;  %v1198_v33 = vld [vmem:[#allocation2 + $0x94] sm:$0xf]  ;;  %v561_v34 = vsel %vm15420_vm10, %v553_v0, %v560_v21 }
  0x86   : > { %v1484_v24 = vrot.slane %v1483_v16, 4  ;;  %v15081_v31 = vld [vmem:[#allocation2 + $0x90] sm:$0xff]   ;;  %750 = vst [vmem:[#allocation2 + $0x9c] sm:$0xf] %v749_v27  ;;  %v1501_v32 = vshrl.u32 %v1197_v25, 16  ;;  %v1504_v36 = vshll.u32 %v1197_v25, 16 }
  0x87   : > { %v1510_v37 = vshll.u32 %v1198_v33, 16  ;;  %751 = vst [vmem:[#allocation2 + $0xa0] sm:$0xf] %v561_v34  ;;  %v299_v40 = vld [vmem:[#allocation2 + $0xb0] sm:$0x1]  ;;  %v1499_v41 = vsel %vm15406_vm9, %v1494_v30, %v1498_v3  ;;  %14210 = vmatprep.mubr.bf16.mxu0 %v15081_v31  ;;  %v1514_v42 = vshrl.u32 %v1198_v33, 16 }
  0x88   : > { %v1489_v35 = vsel %vm15406_vm9, %v1484_v24, %v1488_v9  ;;  %v566_v43 = vrot.slane %v564_v29, 7  ;;  %v567_v44 = vshll.u32 %v334_v4, 16  ;;  %v252_v45 = vld [vmem:[#allocation2 + $0xb4] sm:$0x1]  ;;  %v1503_v47 = vrot.slane %v1501_v32, 4 }
  0x89   : > { %v12915_v46 = vcombine.low %v1489_v35, %v1499_v41  ;;  %v1506_v48 = vrot.slane %v1504_v36, 5  ;;  %v1512_v50 = vrot.slane %v1510_v37, 5  ;;  %v1516_v51 = vrot.slane %v1514_v42, 4  ;;  %v336_v56 = vld [vmem:[%s15378_s22 + $0x70] sm:$0xf] }
  0x8a   : > { %v569_v52 = vor.u32 %v567_v44, %v566_v43  ;;  %v570_v54 = vrot.slane %v566_v43, 4  ;;  %v572_v55 = vshrl.u32 %v335_v28, 16  ;;  %v1199_v49 = vld [vmem:[#allocation2 + $0x98] sm:$0x1]  ;;  %v575_v59 = vshll.u32 %v335_v28, 16 }
  0x8b   : > { %14255 = vmatmul.mubr.bf16.gmra.mxu1 %v12915_v46  ;;  %v1507_v57 = vor.u32 %v1506_v48, %v1503_v47  ;;  %v752_v58 = vld [vmem:[#allocation2 + $0xa4] sm:$0x1]  ;;  %v300_v60 = vsel %vm15400_vm8, 0, %v299_v40  ;;  %v1517_v61 = vor.u32 %v1516_v51, %v1512_v50  ;;  %v1520_v63 = vshll.u32 %v1199_v49, 16  ;;  %v755_v2 = vld [vmem:[#allocation2 + $0xa8] sm:$0xf] }
  0x8c   : > { %v753_v0 = vsel %vm15385_vm5, %v562_v23, %v752_v58  ;;  %v574_v1 = vrot.slane %v572_v55, 7  ;;  %301 = vst [vmem:[#allocation2 + $0xb0] sm:$0x1] %v300_v60  ;;  %v756_v6 = vsel %vm15431_vm11, %v569_v52, %v755_v2  ;;  %v253_v7 = vsel %vm15385_vm5, 0, %v252_v45  ;;  %v337_v8 = vld [vmem:[%s15378_s22 + $0x74] sm:$0xf] }
  0x8d   : > { %v1508_v4 = vrot.slane %v1507_v57, 4  ;;  %754 = vst [vmem:[#allocation2 + $0xa4] sm:$0x1] %v753_v0  ;;  %v1200_v5 = vld [vmem:[#allocation2 + $0x9c] sm:$0xf]  ;;  %v1518_v9 = vrot.slane %v1517_v61, 4 }
  0x8e   : > { %v1522_v11 = vrot.slane %v1520_v63, 5  ;;  %v15082_v12 = vld [vmem:[#allocation2 + $0x9c] sm:$0xff]   ;;  %v1525_v13 = vshrl.u32 %v1200_v5, 16  ;;  %v577_v14 = vor.u32 %v575_v59, %v574_v1  ;;  %757 = vst [vmem:[#allocation2 + $0xa8] sm:$0xf] %v756_v6  ;;  %v1528_v18 = vshll.u32 %v1200_v5, 16 }
  0x8f   : > { %254 = vst [vmem:[#allocation2 + $0xb4] sm:$0x1] %v253_v7  ;;  %v302_v15 = vld [vmem:[#allocation2 + $0xbc] sm:$0x1]  ;;  %v1513_v16 = vsel %vm15406_vm9, %v1508_v4, %v1512_v50  ;;  %v1201_v17 = vld [vmem:[#allocation2 + $0xa0] sm:$0xf]  ;;  %14211 = vmatmul.mubr.bf16.gmra.mxu0 %v15082_v12 }
  0x90   : > { %v579_v19 = vrot.slane %v574_v1, 4  ;;  %v581_v22 = vshrl.u32 %v336_v56, 16  ;;  %v1523_v20 = vsel %vm15406_vm9, %v1518_v9, %v1522_v11  ;;  %v1527_v3 = vrot.slane %v1525_v13, 4  ;;  %v1982_v55 = vld [vmem:[#allocation2] sm:$0xe] }
  0x91   : > { %v1534_v21 = vshll.u32 %v1201_v17, 16  ;;  %v1538_v23 = vshrl.u32 %v1201_v17, 16  ;;  %v12916_v24 = vcombine.low %v1513_v16, %v1523_v20  ;;  %v1530_v25 = vrot.slane %v1528_v18, 5  ;;  %v1983_v59 = vld [vmem:[#allocation2 + $0x4] sm:$0xf] }
  0x92   : > { %v578_v27 = vsel %vm15420_vm10, %v570_v54, %v577_v14  ;;  %v583_v28 = vrot.slane %v581_v22, 7  ;;  %v584_v31 = vshll.u32 %v336_v56, 16  ;;  %v589_v33 = vshrl.u32 %v337_v8, 16  ;;  %v1984_v60 = vld [vmem:[#allocation2 + $0x8] sm:$0x1] }
  0x93   : > { %v1536_v29 = vrot.slane %v1534_v21, 5  ;;  %v1540_v30 = vrot.slane %v1538_v23, 4  ;;  %758 = vst [vmem:[#allocation2 + $0xac] sm:$0xf] %v578_v27  ;;  %14258 = vmatprep.mubr.bf16.mxu1 %v12916_v24  ;;  %v1531_v34 = vor.u32 %v1530_v25, %v1527_v3  ;;  %v759_v35 = vld [vmem:[#allocation2 + $0xb0] sm:$0x1] }
  0x94   : > { %v587_v32 = vrot.slane %v583_v28, 4  ;;  %v592_v36 = vshll.u32 %v337_v8, 16  ;;  %v303_v37 = vsel %vm15400_vm8, 0, %v302_v15  ;;  %v1202_v40 = vld [vmem:[#allocation2 + $0xa4] sm:$0x1]  ;;  %v760_v42 = vsel %vm15385_vm5, %v579_v19, %v759_v35 }
  0x95   : > { %v1541_v41 = vor.u32 %v1540_v30, %v1536_v29  ;;  %v586_v43 = vor.u32 %v584_v31, %v583_v28  ;;  %v591_v44 = vrot.slane %v589_v33, 7  ;;  %304 = vst [vmem:[#allocation2 + $0xbc] sm:$0x1] %v303_v37  ;;  %v1532_v45 = vrot.slane %v1531_v34, 4  ;;  %761 = vst [vmem:[#allocation2 + $0xb0] sm:$0x1] %v760_v42 }
  0x96   : > { %v1544_v46 = vshll.u32 %v1202_v40, 16  ;;  %v1203_v47 = vld [vmem:[#allocation2 + $0xa8] sm:$0xf]  ;;  %v762_v54 = vld [vmem:[#allocation2 + $0xb4] sm:$0xf]  ;;  %vm2078_vm12 = vcmask 1042432  }
  0x97   : > { %v1542_v48 = vrot.slane %v1541_v41, 4  ;;  %v1549_v50 = vshrl.u32 %v1203_v47, 16  ;;  %v1552_v51 = vshll.u32 %v1203_v47, 16  ;;  %v594_v52 = vor.u32 %v592_v36, %v591_v44  ;;  %v1986_v1 = vld [vmem:[#allocation2 + $0x10] sm:$0xf] }
  0x98   : > { %v1537_v56 = vsel %vm15406_vm9, %v1532_v45, %v1536_v29  ;;  %v1546_v49 = vrot.slane %v1544_v46, 5  ;;  %v596_v57 = vrot.slane %v591_v44, 4  ;;  %v763_v58 = vsel %vm15431_vm11, %v586_v43, %v762_v54  ;;  %v1985_v6 = vld [vmem:[#allocation2 + $0xc] sm:$0xe]  ;;  %v1987_v13 = vld [vmem:[#allocation2 + $0x14] sm:$0x1] }
  0x99   : > { %v1551_v61 = vrot.slane %v1549_v50, 4  ;;  %v1554_v63 = vrot.slane %v1552_v51, 5  ;;  %v595_v0 = vsel %vm15420_vm10, %v587_v32, %v594_v52  ;;  %764 = vst [vmem:[#allocation2 + $0xb4] sm:$0xf] %v763_v58  ;;  %vm2079_vm13 = vcmask 1046532  }
  0x9a   : > { %v1547_v2 = vsel %vm15406_vm9, %v1542_v48, %v1546_v49  ;;  %v15086_v4 = vld [vmem:[#allocation2 + $0xa8] sm:$0xff]   ;;  %765 = vst [vmem:[#allocation2 + $0xb8] sm:$0xf] %v595_v0  ;;  %vm15758_vm14 = vmor %vm2078_vm12, %vm2079_vm13  ;;  %v19362_v12 = vmov 0  ;;  %v12928_v15 = vrot.slane %v1982_v55, 9  ;;  %v2083_v16 = vrot.slane %v1983_v59, 5 }
  0x9b   : > { %v1204_v5 = vld [vmem:[#allocation2 + $0xac] sm:$0xf]  ;;  %v12917_v7 = vcombine.low %v1537_v56, %v1547_v2  ;;  %v1555_v8 = vor.u32 %v1554_v63, %v1551_v61  ;;  %v19363_v12 = vsel %vm15758_vm14, 4294967295, %v19362_v12  ;;  %14214 = vmatprep.mubr.bf16.mxu0 %v15086_v4  ;;  %v2086_v17 = vrot.slane %v1984_v60, 5  ;;  %v1988_v48 = vld [vmem:[#allocation2 + $0x18] sm:$0xe] }
  0x9c   : > { %v1558_v9 = vshll.u32 %v1204_v5, 16  ;;  %v1562_v11 = vshrl.u32 %v1204_v5, 16  ;;  %19364 = vst [vmem:[#allocation8_spill] sm:$0xff] %v19363_v12  ;;  %v766_v14 = vld [vmem:[#allocation2 + $0xbc] sm:$0x1]  ;;  %v2084_v23 = vsel %vm15758_vm14, %v12928_v15, %v2083_v16  ;;  %v2085_v24 = vrot.slane %v2083_v16, 4 }
  0x9d   : > { %14259 = vmatmul.mubr.bf16.gmra.mxu1 %v12917_v7  ;;  %v1205_v18 = vld [vmem:[#allocation2 + $0xb0] sm:$0x1]  ;;  %v1556_v19 = vrot.slane %v1555_v8, 4  ;;  %v767_v3 = vsel %vm15385_vm5, %v596_v57, %v766_v14  ;;  %v2090_v25 = vrot.slane %v1986_v1, 5  ;;  %v12929_v28 = vrot.slane %v1985_v6, 9 }
  0x9e   : > { %v1560_v22 = vrot.slane %v1558_v9, 5  ;;  %v1564_v20 = vrot.slane %v1562_v11, 4  ;;  %v1568_v21 = vshll.u32 %v1205_v18, 16  ;;  %768 = vst [vmem:[#allocation2 + $0xbc] sm:$0x1] %v767_v3  ;;  %v2093_v29 = vrot.slane %v1987_v13, 5 }
  0x9f   : > { %v2087_v33 = vsel %vm15758_vm14, %v2085_v24, %v2086_v17  ;;  %v2092_v34 = vrot.slane %v2090_v25, 4  ;;  %v2091_v46 = vsel %vm15758_vm14, %v12929_v28, %v2090_v25  ;;  %v1989_v50 = vld [vmem:[#allocation2 + $0x1c] sm:$0xf]  ;;  %v1990_v56 = vld [vmem:[#allocation2 + $0x20] sm:$0x1]  ;;  %v12930_v58 = vrot.slane %v1988_v48, 9 }
  0xa0   : > { %v1565_v27 = vor.u32 %v1564_v20, %v1560_v22  ;;  %v1570_v30 = vrot.slane %v1568_v21, 5  ;;  %v1206_v31 = vld [vmem:[#allocation2 + $0xb4] sm:$0xf]  ;;  %v1561_v35 = vsel %vm15406_vm9, %v1556_v19, %v1560_v22  ;;  %v12960_v40 = vcombine.low %v2084_v23, %v2087_v33  ;;  %v1991_v1 = vld [vmem:[#allocation2 + $0x24] sm:$0xe]  ;;  %v15092_v19 = vld [vmem:[#allocation2 + $0xc] sm:$0xff]  }
  0xa1   : > { %v15087_v36 = vld [vmem:[#allocation2 + $0xb4] sm:$0xff]   ;;  %v1573_v41 = vshrl.u32 %v1206_v31, 16  ;;  %v1576_v42 = vshll.u32 %v1206_v31, 16  ;;  %v2094_v47 = vsel %vm15758_vm14, %v2092_v34, %v2093_v29  ;;  %v2097_v59 = vrot.slane %v1989_v50, 5  ;;  %v1992_v2 = vld [vmem:[#allocation2 + $0x28] sm:$0xf] }
  0xa2   : > { %v1566_v32 = vrot.slane %v1565_v27, 4  ;;  %v1207_v37 = vld [vmem:[#allocation2 + $0xb8] sm:$0xf]  ;;  %14215 = vmatmul.mubr.bf16.gmra.mxu0 %v15087_v36  ;;  %v12961_v63 = vcombine.low %v2091_v46, %v2094_v47  ;;  %v2100_v0 = vrot.slane %v1990_v56, 5  ;;  %v1993_v7 = vld [vmem:[#allocation2 + $0x2c] sm:$0x1] }
  0xa3   : > { %v1582_v43 = vshll.u32 %v1207_v37, 16  ;;  %v1586_v44 = vshrl.u32 %v1207_v37, 16  ;;  %v1575_v52 = vrot.slane %v1573_v41, 4  ;;  %v1578_v54 = vrot.slane %v1576_v42, 5  ;;  %14282 = vmatprep.mubr.bf16.mxu0 %v12960_v40  ;;  %v15094_v17 = vld [vmem:[%s19332_s1 + $0x130] sm:$0xff]   ;;  %v15283_v28 = vld [vmem:[%s19332_s1 + $0x138] sm:$0xff]  }
  0xa4   : > { %v1571_v45 = vsel %vm15406_vm9, %v1566_v32, %v1570_v30  ;;  %v2098_v5 = vsel %vm15758_vm14, %v12930_v58, %v2097_v59  ;;  %v2099_v6 = vrot.slane %v2097_v59, 4  ;;  %v12931_v8 = vrot.slane %v1991_v1, 9  ;;  %v1994_v23 = vld [vmem:[#allocation2 + $0x30] sm:$0xe]  ;;  %v1995_v24 = vld [vmem:[#allocation2 + $0x34] sm:$0xf] }
  0xa5   : > { %v12918_v51 = vcombine.low %v1561_v35, %v1571_v45  ;;  %v1584_v55 = vrot.slane %v1582_v43, 5  ;;  %v1208_v49 = vld [vmem:[#allocation2 + $0xbc] sm:$0x1]  ;;  %v1588_v57 = vrot.slane %v1586_v44, 4  ;;  %v1579_v60 = vor.u32 %v1578_v54, %v1575_v52  ;;  %v1996_v25 = vld [vmem:[#allocation2 + $0x38] sm:$0x1] }
  0xa6   : > { %v1592_v61 = vshll.u32 %v1208_v49, 16  ;;  %v2104_v13 = vrot.slane %v1992_v2, 5  ;;  %v2107_v14 = vrot.slane %v1993_v7, 5  ;;  %v2101_v16 = vsel %vm15758_vm14, %v2099_v6, %v2100_v0  ;;  %v1997_v33 = vld [vmem:[#allocation2 + $0x3c] sm:$0xe]  ;;  %v15097_v37 = vld [vmem:[%s19332_s1 + $0x128] sm:$0xff]  }
  0xa7   : > { %14262 = vmatprep.mubr.bf16.mxu1 %v12918_v51  ;;  %v1589_v4 = vor.u32 %v1588_v57, %v1584_v55  ;;  %v1580_v9 = vrot.slane %v1579_v60, 4  ;;  %v12962_v22 = vcombine.low %v2098_v5, %v2101_v16  ;;  %v12932_v30 = vrot.slane %v1994_v23, 9  ;;  %v1998_v34 = vld [vmem:[#allocation2 + $0x40] sm:$0xf]  ;;  %v1999_v32 = vld [vmem:[#allocation2 + $0x44] sm:$0x1] }
  0xa8   : > { %v1594_v11 = vrot.slane %v1592_v61, 5  ;;  %v2106_v20 = vrot.slane %v2104_v13, 4  ;;  %v2105_v21 = vsel %vm15758_vm14, %v12931_v8, %v2104_v13  ;;  %v2111_v31 = vrot.slane %v1995_v24, 5  ;;  %v2000_v47 = vld [vmem:[#allocation2 + $0x48] sm:$0xe]  ;;  %v15100_v54 = vld [vmem:[%s19332_s1 + $0x120] sm:$0xff]  }
  0xa9   : > { %v1590_v15 = vrot.slane %v1589_v4, 4  ;;  %v1585_v18 = vsel %vm15406_vm9, %v1580_v9, %v1584_v55  ;;  %v2114_v35 = vrot.slane %v1996_v25, 5  ;;  %v2118_v36 = vrot.slane %v1998_v34, 5  ;;  %v2001_v50 = vld [vmem:[#allocation2 + $0x4c] sm:$0xf]  ;;  %v15093_v55 = vld [vmem:[#allocation2 + $0x18] sm:$0xff]  }
  0xaa   : > { %14283 = vmatmul.mubr.bf16.vlgmr.msra.gmra.mxu0 %v12961_v63  ;;  %v2108_v29 = vsel %vm15758_vm14, %v2106_v20, %v2107_v14  ;;  %v2112_v40 = vsel %vm15758_vm14, %v12932_v30, %v2111_v31  ;;  %v2113_v41 = vrot.slane %v2111_v31, 4  ;;  %v12933_v42 = vrot.slane %v1997_v33, 9  ;;  %v2002_v51 = vld [vmem:[#allocation2 + $0x50] sm:$0x1]  ;;  %v15095_v56 = vld [vmem:[#allocation2 + $0x24] sm:$0xff]   ;;  %v15103_v60 = vld [vmem:[%s19332_s1 + $0x118] sm:$0xff]  }
  0xab   : > { %v1595_v3 = vsel %vm15406_vm9, %v1590_v15, %v1594_v11  ;;  %14363 = vmatpush3.bf16.msra.mxu0 %v15283_v28  ;;  %14286 = vmatprep.mubr.bf16.mxu0 %v12962_v22  ;;  %v12963_v43 = vcombine.low %v2105_v21, %v2108_v29  ;;  %v2120_v44 = vrot.slane %v2118_v36, 4  ;;  %v2121_v45 = vrot.slane %v1999_v32, 5  ;;  %v2004_v58 = vld [vmem:[#allocation2 + $0x58] sm:$0xf]  ;;  %v2003_v59 = vld [vmem:[#allocation2 + $0x54] sm:$0xe] }
  0xac   : > { %v12919_v27 = vcombine.low %v1585_v18, %v1595_v3  ;;  %14364 = vmatprep.subr.bf16.mxu0 %v15094_v17  ;;  %v2115_v46 = vsel %vm15758_vm14, %v2113_v41, %v2114_v35  ;;  %v12934_v52 = vrot.slane %v2000_v47, 9  ;;  %v2125_v49 = vrot.slane %v2001_v50, 5  ;;  %v15107_v61 = vld [vmem:[%s19332_s1 + $0x170] sm:$0xff]   ;;  %v2005_v5 = vld [vmem:[#allocation2 + $0x5c] sm:$0x1]  ;;  %v15111_v3 = vld [vmem:[%s19332_s1 + $0x168] sm:$0xff]  }
  0xad   : > { %v12964_v48 = vcombine.low %v2112_v40, %v2115_v46  ;;  %v2128_v57 = vrot.slane %v2002_v51, 5  ;;  %v2119_v63 = vsel %vm15758_vm14, %v12933_v42, %v2118_v36  ;;  %v2122_v0 = vsel %vm15758_vm14, %v2120_v44, %v2121_v45  ;;  %v2006_v7 = vld [vmem:[#allocation2 + $0x60] sm:$0xe]  ;;  %v2007_v8 = vld [vmem:[#allocation2 + $0x64] sm:$0xf]  ;;  %v15108_v15 = vld [vmem:[%s19332_s1 + $0x110] sm:$0xff]  }
  0xae   : > { %14263 = vmatmul.mubr.bf16.gmra.mxu1 %v12919_v27  ;;  %v2127_v1 = vrot.slane %v2125_v49, 4  ;;  %v2132_v2 = vrot.slane %v2004_v58, 5  ;;  %v2126_v4 = vsel %vm15758_vm14, %v12934_v52, %v2125_v49  ;;  %v12965_v9 = vcombine.low %v2119_v63, %v2122_v0  ;;  %v2008_v13 = vld [vmem:[#allocation2 + $0x68] sm:$0x1]  ;;  %v15096_v16 = vld [vmem:[#allocation2 + $0x30] sm:$0xff]   ;;  %v15098_v21 = vld [vmem:[#allocation2 + $0x3c] sm:$0xff]  }
  0xaf   : > { %14330 = vmatprep.mubr.bf16.mxu1 %v15092_v19  ;;  %14365 = vmatpush3.bf16.msra.mxu0 %v15094_v17  ;;  %v12935_v11 = vrot.slane %v2003_v59, 9  ;;  %v2139_v14 = vrot.slane %v2007_v8, 5  ;;  %v2135_v19 = vrot.slane %v2005_v5, 5  ;;  %v12936_v22 = vrot.slane %v2006_v7, 9  ;;  %v2010_v20 = vld [vmem:[#allocation2 + $0x70] sm:$0xf] }
  0xb0   : > { %14366 = vmatprep.subr.bf16.mxu0 %v15097_v37  ;;  %v2129_v6 = vsel %vm15758_vm14, %v2127_v1, %v2128_v57  ;;  %v2134_v18 = vrot.slane %v2132_v2, 4  ;;  %v2142_v24 = vrot.slane %v2008_v13, 5  ;;  %v2011_v25 = vld [vmem:[#allocation2 + $0x74] sm:$0x1]  ;;  %v15112_v27 = vld [vmem:[%s19332_s1 + $0x160] sm:$0xff]   ;;  %v2146_v28 = vrot.slane %v2010_v20, 5 }
  0xb1   : > { %v12966_v17 = vcombine.low %v2126_v4, %v2129_v6  ;;  %v2141_v23 = vrot.slane %v2139_v14, 4  ;;  %v15113_v29 = vld [vmem:[%s19332_s1 + $0x108] sm:$0xff]   ;;  %v2133_v30 = vsel %vm15758_vm14, %v12935_v11, %v2132_v2  ;;  %v2140_v33 = vsel %vm15758_vm14, %v12936_v22, %v2139_v14  ;;  %v2012_v35 = vld [vmem:[#allocation2 + $0x78] sm:$0xe]  ;;  %v2013_v32 = vld [vmem:[#allocation2 + $0x7c] sm:$0xf] }
  0xb2   : > { %14287 = vmatmul.mubr.bf16.gmra.mxu0 %v12963_v43  ;;  %v2136_v31 = vsel %vm15758_vm14, %v2134_v18, %v2135_v19  ;;  %v2014_v40 = vld [vmem:[#allocation2 + $0x80] sm:$0x1]  ;;  %v2153_v41 = vrot.slane %v2013_v32, 5  ;;  %v2148_v43 = vrot.slane %v2146_v28, 4  ;;  %v12938_v44 = vrot.slane %v2012_v35, 9  ;;  %v15116_v47 = vld [vmem:[%s19332_s1 + $0x158] sm:$0xff]  }
  0xb3   : > { %14290 = vmatprep.mubr.bf16.mxu0 %v12964_v48  ;;  %14367 = vmatpush3.bf16.msra.mxu0 %v15097_v37  ;;  %v2143_v34 = vsel %vm15758_vm14, %v2141_v23, %v2142_v24  ;;  %v2149_v37 = vrot.slane %v2011_v25, 5  ;;  %v12967_v42 = vcombine.low %v2133_v30, %v2136_v31  ;;  %v2015_v45 = vld [vmem:[#allocation2 + $0x84] sm:$0xe]  ;;  %v2016_v46 = vld [vmem:[#allocation2 + $0x88] sm:$0xf]  ;;  %v15117_v58 = vld [vmem:[%s19332_s1 + $0x150] sm:$0xff]  }
  0xb4   : > { %14368 = vmatprep.subr.bf16.mxu0 %v15100_v54  ;;  %v15118_v48 = vld [vmem:[%s19332_s1 + $0x100] sm:$0xff]   ;;  %v15099_v50 = vld [vmem:[#allocation2 + $0x48] sm:$0xff]   ;;  %v12968_v51 = vcombine.low %v2140_v33, %v2143_v34  ;;  %v2155_v52 = vrot.slane %v2153_v41, 4  ;;  %v12939_v49 = vrot.slane %v2015_v45, 9  ;;  %v2160_v57 = vrot.slane %v2016_v46, 5 }
  0xb5   : > { %v2018_v63 = vld [vmem:[#allocation2 + $0x90] sm:$0xe]  ;;  %v2019_v0 = vld [vmem:[#allocation2 + $0x94] sm:$0xf]  ;;  %v2154_v1 = vsel %vm15758_vm14, %v12938_v44, %v2153_v41  ;;  %v2020_v5 = vld [vmem:[#allocation2 + $0x98] sm:$0x1] }
  0xb6   : > { %14331 = vmatmul.mubr.bf16.vlgmr.msra.gmra.mxu1 %v15093_v55  ;;  %v2017_v55 = vld [vmem:[#allocation2 + $0x8c] sm:$0x1]  ;;  %v2167_v6 = vrot.slane %v2019_v0, 5  ;;  %v2021_v7 = vld [vmem:[#allocation2 + $0x9c] sm:$0xe]  ;;  %v12940_v11 = vrot.slane %v2018_v63, 9 }
  0xb7   : > { %14334 = vmatprep.mubr.bf16.mxu1 %v15095_v56  ;;  %14411 = vmatpush3.bf16.msra.mxu1 %v15712_v10  ;;  %v2009_v10 = vld [vmem:[#allocation2 + $0x6c] sm:$0xe]  ;;  %v15101_v56 = vld [vmem:[#allocation2 + $0x54] sm:$0xff]   ;;  %v2163_v4 = vrot.slane %v2017_v55, 5  ;;  %v2022_v13 = vld [vmem:[#allocation2 + $0xa0] sm:$0xf] }
  0xb8   : > { %14369 = vmatpush3.bf16.msra.mxu0 %v15100_v54  ;;  %14412 = vmatprep.subr.bf16.mxu1 %v15107_v61  ;;  %v12937_v36 = vrot.slane %v2009_v10, 9  ;;  %v2156_v54 = vrot.slane %v2014_v40, 5  ;;  %v2023_v14 = vld [vmem:[#allocation2 + $0xa4] sm:$0x1]  ;;  %v12941_v18 = vrot.slane %v2021_v7, 9  ;;  %v2174_v19 = vrot.slane %v2022_v13, 5 }
  0xb9   : > { %14370 = vmatprep.subr.bf16.mxu0 %v15103_v60  ;;  %v15102_v22 = vld [vmem:[#allocation2 + $0x60] sm:$0xff]   ;;  %v2177_v23 = vrot.slane %v2023_v14, 5  ;;  %v2161_v10 = vsel %vm15758_vm14, %v12939_v49, %v2160_v57  ;;  %v2026_v31 = vld [vmem:[#allocation2 + $0xb0] sm:$0x1]  ;;  %v2027_v35 = vld [vmem:[#allocation2 + $0xb4] sm:$0xe] }
  0xba   : > { %14291 = vmatmul.mubr.bf16.gmra.mxu0 %v12965_v9  ;;  %v2147_v59 = vsel %vm15758_vm14, %v12937_v36, %v2146_v28  ;;  %v2157_v2 = vsel %vm15758_vm14, %v2155_v52, %v2156_v54  ;;  %v2162_v9 = vrot.slane %v2160_v57, 4  ;;  %v15122_v24 = vld [vmem:[%s19332_s1 + $0x140] sm:$0xff]   ;;  %v2025_v28 = vld [vmem:[#allocation2 + $0xac] sm:$0xf]  ;;  %v2184_v32 = vrot.slane %v2026_v31, 5 }
  0xbb   : > { %14413 = vmatpush3.bf16.msra.mxu1 %v15107_v61  ;;  %14294 = vmatprep.mubr.bf16.mxu0 %v12966_v17  ;;  %v15855_v61 = vld [vmem:[%s19332_s1 + $0x1b8] sm:$0xff]   ;;  %v2170_v17 = vrot.slane %v2020_v5, 5  ;;  %v12970_v20 = vcombine.low %v2154_v1, %v2157_v2  ;;  %v2181_v34 = vrot.slane %v2025_v28, 5  ;;  %v15883_v45 = vsel %vm15758_vm14, %v12941_v18, %v2174_v19  ;;  %v255_v54 = vld [vmem:[#allocation2 + $0xc0] sm:$0x1]  ;;  %v15109_v0 = vld [vmem:[#allocation2 + $0x84] sm:$0xff]  }
  0xbc   : > { %14371 = vmatpush3.bf16.msra.mxu0 %v15103_v60  ;;  %14414 = vmatprep.subr.bf16.mxu1 %v15111_v3  ;;  %v2150_v60 = vsel %vm15758_vm14, %v2148_v43, %v2149_v37  ;;  %v2164_v25 = vsel %vm15758_vm14, %v2162_v9, %v2163_v4  ;;  %v2028_v36 = vld [vmem:[#allocation2 + $0xb8] sm:$0xf]  ;;  %v2029_v37 = vld [vmem:[#allocation2 + $0xbc] sm:$0x1]  ;;  %v256_v49 = vsel %vm15385_vm5, 0, %v255_v54 }
  0xbd   : > { %14372 = vmatprep.subr.bf16.mxu0 %v15108_v15  ;;  %v12969_v8 = vcombine.low %v2147_v59, %v2150_v60  ;;  %v12971_v40 = vcombine.low %v2161_v10, %v2164_v25  ;;  %v2183_v41 = vrot.slane %v2181_v34, 4  ;;  %v15879_v43 = vld [vmem:[%s19332_s1 + $0x1f8] sm:$0xff]   ;;  %v2191_v52 = vrot.slane %v2029_v37, 5  ;;  %257 = vst [vmem:[#allocation2 + $0xc0] sm:$0x1] %v256_v49 }
  0xbe   : > { %14335 = vmatmul.mubr.bf16.gmra.mxu1 %v15096_v16  ;;  %v2169_v16 = vrot.slane %v2167_v6, 4  ;;  %v338_v55 = vld [vmem:[%s15378_s22 + $0x78] sm:$0xf]  ;;  %v339_v57 = vld [vmem:[%s15378_s22 + $0x7c] sm:$0xf] }
  0xbf   : > { %14338 = vmatprep.mubr.bf16.mxu1 %v15098_v21  ;;  %14415 = vmatpush3.bf16.msra.mxu1 %v15111_v3  ;;  %v15104_v3 = vld [vmem:[#allocation2 + $0x6c] sm:$0xff]   ;;  %v2176_v21 = vrot.slane %v2174_v19, 4  ;;  %v601_v59 = vshll.u32 %v338_v55, 16  ;;  %v606_v60 = vshrl.u32 %v339_v57, 16  ;;  %v609_v63 = vshll.u32 %v339_v57, 16 }
  0xc0   : > { %14373 = vmatpush3.bf16.msra.mxu0 %v15108_v15  ;;  %14416 = vmatprep.subr.bf16.mxu1 %v15112_v27  ;;  %v15121_v15 = vld [vmem:[%s19332_s1 + $0x148] sm:$0xff]   ;;  %v2171_v30 = vsel %vm15758_vm14, %v2169_v16, %v2170_v17  ;;  %v3031_v13 = vld [vmem:[#allocation2 + $0x14] sm:$0x1]  ;;  %v3034_v28 = vld [vmem:[#allocation2 + $0x20] sm:$0x1] }
  0xc1   : > { %14374 = vmatprep.subr.bf16.mxu0 %v15113_v29  ;;  %v15887_v46 = vsel %vm15758_vm14, %v2176_v21, %v2177_v23  ;;  %v3029_v7 = vld [vmem:[#allocation2 + $0xc] sm:$0xf]  ;;  %v3097_v21 = vshll.u32 %v3031_v13, 16  ;;  %v3033_v23 = vld [vmem:[#allocation2 + $0x1c] sm:$0xf] }
  0xc2   : > { %14295 = vmatmul.mubr.bf16.gmra.mxu0 %v12967_v42  ;;  %v2188_v42 = vrot.slane %v2028_v36, 5  ;;  %v12973_v2 = vcombine.low %v15883_v45, %v15887_v46  ;;  %v3078_v14 = vshrl.u32 %v3029_v7, 16  ;;  %v3121_v46 = vshll.u32 %v3034_v28, 16  ;;  %v3848_v54 = vld [vmem:[#allocation2 + $0x10] sm:$0xf]  ;;  %v15119_v28 = vld [vmem:[#allocation2 + $0xb4] sm:$0xff]  }
  0xc3   : > { %14417 = vmatpush3.bf16.msra.mxu1 %v15112_v27  ;;  %14298 = vmatprep.mubr.bf16.mxu0 %v12968_v51  ;;  %v2024_v27 = vld [vmem:[#allocation2 + $0xa8] sm:$0xe]  ;;  %v12943_v51 = vrot.slane %v2027_v35, 9 }
  0xc4   : > { %14375 = vmatpush3.bf16.msra.mxu0 %v15113_v29  ;;  %14418 = vmatprep.subr.bf16.mxu1 %v15116_v47  ;;  %v2168_v29 = vsel %vm15758_vm14, %v12940_v11, %v2167_v6  ;;  %v12942_v33 = vrot.slane %v2024_v27, 9  ;;  %v15909_v6 = vrot.slane %v606_v60, 7  ;;  %v769_v31 = vld [vmem:[#allocation2 + $0xc0] sm:$0xf]  ;;  %v3123_v49 = vrot.slane %v3121_v46, 5 }
  0xc5   : > { %14376 = vmatprep.subr.bf16.mxu0 %v15118_v48  ;;  %v12972_v44 = vcombine.low %v2168_v29, %v2171_v30  ;;  %v15907_v5 = vsel %vm15758_vm14, %v12943_v51, %v2188_v42  ;;  %v15110_v30 = vld [vmem:[#allocation2 + $0x90] sm:$0xff]   ;;  %v3036_v13 = vld [vmem:[#allocation2 + $0x28] sm:$0xf] }
  0xc6   : > { %14339 = vmatmul.mubr.bf16.gmra.mxu1 %v15099_v50  ;;  %v15895_v50 = vsel %vm15758_vm14, %v2183_v41, %v2184_v32  ;;  %v611_v17 = vor.u32 %v609_v63, %v15909_v6  ;;  %v3111_v32 = vshll.u32 %v3033_v23, 16  ;;  %v3115_v41 = vshrl.u32 %v3033_v23, 16 }
  0xc7   : > { %14342 = vmatprep.mubr.bf16.mxu1 %v15101_v56  ;;  %14419 = vmatpush3.bf16.msra.mxu1 %v15116_v47  ;;  %v15105_v47 = vld [vmem:[#allocation2 + $0x78] sm:$0xff]   ;;  %v2190_v56 = vrot.slane %v2188_v42, 4 }
  0xc8   : > { %14420 = vmatprep.subr.bf16.mxu1 %v15117_v58  ;;  %14377 = vmatpush3.bf16.msra.mxu0 %v15118_v48  ;;  %v15891_v48 = vsel %vm15758_vm14, %v12942_v33, %v2181_v34  ;;  %v3099_v34 = vrot.slane %v3097_v21, 5  ;;  %v15114_v42 = vld [vmem:[#allocation2 + $0x9c] sm:$0xff]   ;;  %v3113_v45 = vrot.slane %v3111_v32, 5  ;;  %v15115_v21 = vld [vmem:[#allocation2 + $0xa8] sm:$0xff]   ;;  %v3139_v32 = vshrl.u32 %v3036_v13, 16 }
  0xc9   : > { %14458 = vmatprep.subr.bf16.mxu0 %v15855_v61  ;;  %v12974_v4 = vcombine.low %v15891_v48, %v15895_v50  ;;  %v15914_v9 = vsel %vm15758_vm14, %v2190_v56, %v2191_v52  ;;  %v3117_v52 = vrot.slane %v3115_v41, 4 }
  0xca   : > { %14299 = vmatmul.mubr.bf16.gmra.mxu0 %v12969_v8  ;;  %v3030_v8 = vld [vmem:[#allocation2 + $0x10] sm:$0xf]  ;;  %v12975_v48 = vcombine.low %v15907_v5, %v15914_v9  ;;  %v3141_v46 = vrot.slane %v3139_v32, 4 }
  0xcb   : > { %14421 = vmatpush3.bf16.msra.mxu1 %v15117_v58  ;;  %14302 = vmatprep.mubr.bf16.mxu0 %v12970_v20  ;;  %v598_v58 = vshrl.u32 %v338_v55, 16  ;;  %v3087_v18 = vshll.u32 %v3030_v8, 16  ;;  %v3091_v19 = vshrl.u32 %v3030_v8, 16  ;;  %v3080_v20 = vrot.slane %v3078_v14, 4  ;;  %v3849_v55 = vld [vmem:[#allocation2 + $0x14] sm:$0x1] }
  0xcc   : > { %14422 = vmatprep.subr.bf16.mxu1 %v15121_v15 }
  0xcd   : > { %v600_v1 = vrot.slane %v598_v58, 7  ;;  %v3089_v25 = vrot.slane %v3087_v18, 5  ;;  %v3093_v27 = vrot.slane %v3091_v19, 4  ;;  %v3945_v58 = vrot.slane %v3848_v54, 5  ;;  %v3037_v19 = vld [vmem:[#allocation2 + $0x2c] sm:$0x1] }
  0xce   : > { %14343 = vmatmul.mubr.bf16.gmra.mxu1 %v15102_v22  ;;  %v3032_v22 = vld [vmem:[#allocation2 + $0x18] sm:$0xf] }
  0xcf   : > { %14346 = vmatprep.mubr.bf16.mxu1 %v15104_v3  ;;  %14423 = vmatpush3.bf16.msra.mxu1 %v15121_v15  ;;  %v604_v11 = vrot.slane %v600_v1, 4  ;;  %v3081_v15 = vshll.u32 %v3029_v7, 16  ;;  %v603_v16 = vor.u32 %v601_v59, %v600_v1  ;;  %v3105_v29 = vshll.u32 %v3032_v22, 16  ;;  %v3850_v59 = vld [vmem:[#allocation2 + $0x18] sm:$0xe] }
  0xd0   : > { %14424 = vmatprep.subr.bf16.mxu1 %v15122_v24  ;;  %v3094_v37 = vor.u32 %v3093_v27, %v3089_v25  ;;  %v3948_v1 = vrot.slane %v3849_v55, 5  ;;  %v3947_v8 = vrot.slane %v3945_v58, 4  ;;  %v13065_v9 = vrot.slane %v3850_v59, 9  ;;  %v3038_v27 = vld [vmem:[#allocation2 + $0x30] sm:$0xf] }
  0xd1   : > { %v3083_v3 = vrot.slane %v3081_v15, 5  ;;  %v612_v10 = vsel %vm15420_vm10, %v604_v11, %v611_v17  ;;  %v770_v36 = vsel %vm15431_vm11, %v603_v16, %v769_v31  ;;  %v3035_v11 = vld [vmem:[#allocation2 + $0x24] sm:$0xf] }
  0xd2   : > { %14303 = vmatmul.mubr.bf16.gmra.mxu0 %v12971_v40  ;;  %772 = vst [vmem:[#allocation2 + $0xc4] sm:$0xf] %v612_v10  ;;  %v3107_v40 = vrot.slane %v3105_v29, 5  ;;  %771 = vst [vmem:[#allocation2 + $0xc0] sm:$0xf] %v770_v36  ;;  %v3095_v50 = vrot.slane %v3094_v37, 4  ;;  %v15935_v18 = vsel %vm15758_vm14, %v3947_v8, %v3948_v1 }
  0xd3   : > { %14425 = vmatpush3.bf16.msra.mxu1 %v15122_v24  ;;  %14306 = vmatprep.mubr.bf16.mxu0 %v12972_v44  ;;  %v3102_v24 = vshrl.u32 %v3032_v22, 16  ;;  %v3084_v33 = vor.u32 %v3083_v3, %v3080_v20  ;;  %v3126_v22 = vshrl.u32 %v3035_v11, 16  ;;  %v3129_v20 = vshll.u32 %v3035_v11, 16  ;;  %v3040_v37 = vld [vmem:[#allocation2 + $0x38] sm:$0x1] }
  0xd4   : > { %14506 = vmatprep.subr.bf16.mxu1 %v15879_v43  ;;  %v3100_v60 = vsel %vm15406_vm9, %v3095_v50, %v3099_v34  ;;  %v3135_v3 = vshll.u32 %v3036_v13, 16  ;;  %v3039_v34 = vld [vmem:[#allocation2 + $0x34] sm:$0xf]  ;;  %v3145_v36 = vshll.u32 %v3037_v19, 16  ;;  %v3041_v19 = vld [vmem:[#allocation2 + $0x3c] sm:$0xf] }
  0xd5   : > { %v3104_v35 = vrot.slane %v3102_v24, 4  ;;  %v3085_v44 = vrot.slane %v3084_v33, 4  ;;  %v3131_v31 = vrot.slane %v3129_v20, 5  ;;  %v3163_v50 = vshrl.u32 %v3039_v34, 16  ;;  %v3857_v11 = vld [vmem:[#allocation2 + $0x34] sm:$0xf] }
  0xd6   : > { %14347 = vmatmul.mubr.bf16.gmra.mxu1 %v15105_v47  ;;  %v3847_v47 = vld [vmem:[#allocation2 + $0xc] sm:$0xe]  ;;  %v3137_v33 = vrot.slane %v3135_v3, 5  ;;  %v3966_v3 = vrot.slane %v3857_v11, 5  ;;  %v3862_v11 = vld [vmem:[#allocation2 + $0x48] sm:$0xe] }
  0xd7   : > { %14350 = vmatprep.mubr.bf16.mxu1 %v15109_v0  ;;  %v3108_v51 = vor.u32 %v3107_v40, %v3104_v35  ;;  %v3090_v56 = vsel %vm15406_vm9, %v3085_v44, %v3089_v25  ;;  %v13064_v57 = vrot.slane %v3847_v47, 9  ;;  %v3118_v0 = vor.u32 %v3117_v52, %v3113_v45 }
  0xd8   : > { %v13040_v5 = vcombine.low %v3090_v56, %v3100_v60  ;;  %v3150_v40 = vshrl.u32 %v3038_v27, 16  ;;  %v3153_v44 = vshll.u32 %v3038_v27, 16  ;;  %v3147_v47 = vrot.slane %v3145_v36, 5  ;;  %v3044_v36 = vld [vmem:[#allocation2 + $0x48] sm:$0xf] }
  0xd9   : > { %v3109_v63 = vrot.slane %v3108_v51, 4  ;;  %v15929_v7 = vsel %vm15758_vm14, %v13064_v57, %v3945_v58  ;;  %v3119_v15 = vrot.slane %v3118_v0, 4  ;;  %v3853_v51 = vld [vmem:[#allocation2 + $0x24] sm:$0xe]  ;;  %v3169_v56 = vshll.u32 %v3040_v37, 16 }
  0xda   : > { %14307 = vmatmul.mubr.bf16.gmra.mxu0 %v12973_v2  ;;  %v3851_v2 = vld [vmem:[#allocation2 + $0x1c] sm:$0xf]  ;;  %v13096_v24 = vcombine.low %v15929_v7, %v15935_v18  ;;  %v3155_v54 = vrot.slane %v3153_v44, 5  ;;  %v3854_v57 = vld [vmem:[#allocation2 + $0x28] sm:$0xf]  ;;  %v15120_v58 = vld [vmem:[#allocation2 + $0xc0] sm:$0xff]   ;;  %v3142_v59 = vor.u32 %v3141_v46, %v3137_v33 }
  0xdb   : > { %14310 = vmatprep.mubr.bf16.mxu0 %v12974_v4  ;;  %v3852_v4 = vld [vmem:[#allocation2 + $0x20] sm:$0x1]  ;;  %v3114_v14 = vsel %vm15406_vm9, %v3109_v63, %v3113_v45  ;;  %v3952_v16 = vrot.slane %v3851_v2, 5  ;;  %v3124_v23 = vsel %vm15406_vm9, %v3119_v15, %v3123_v49  ;;  %v3159_v45 = vshll.u32 %v3039_v34, 16  ;;  %v15124_v49 = vld [vmem:[%s19332_s1 + $0x1b0] sm:$0xff]  }
  0xdc   : > { %v3955_v17 = vrot.slane %v3852_v4, 5  ;;  %v13041_v29 = vcombine.low %v3114_v14, %v3124_v23  ;;  %v3165_v60 = vrot.slane %v3163_v50, 4  ;;  %v3855_v63 = vld [vmem:[#allocation2 + $0x2c] sm:$0x1]  ;;  %v13066_v0 = vrot.slane %v3853_v51, 9 }
  0xdd   : > { %v15943_v10 = vsel %vm15758_vm14, %v13065_v9, %v3952_v16  ;;  %v3954_v25 = vrot.slane %v3952_v16, 4  ;;  %v3161_v55 = vrot.slane %v3159_v45, 5  ;;  %v3959_v1 = vrot.slane %v3854_v57, 5  ;;  %v3856_v9 = vld [vmem:[#allocation2 + $0x30] sm:$0xe]  ;;  %v15125_v23 = vld [vmem:[%s19332_s1 + $0x1a8] sm:$0xff]  }
  0xde   : > { %14351 = vmatmul.mubr.bf16.gmra.mxu1 %v15110_v30  ;;  %v3128_v30 = vrot.slane %v3126_v22, 4  ;;  %v3962_v8 = vrot.slane %v3855_v63, 5  ;;  %v3143_v13 = vrot.slane %v3142_v59, 4  ;;  %v13067_v20 = vrot.slane %v3856_v9, 9  ;;  %v3045_v37 = vld [vmem:[#allocation2 + $0x4c] sm:$0xf] }
  0xdf   : > { %14354 = vmatprep.mubr.bf16.mxu1 %v15114_v42  ;;  %v15947_v35 = vsel %vm15758_vm14, %v3954_v25, %v3955_v17  ;;  %v3166_v14 = vor.u32 %v3165_v60, %v3161_v55  ;;  %v15958_v15 = vsel %vm15758_vm14, %v13066_v0, %v3959_v1  ;;  %v3961_v16 = vrot.slane %v3959_v1, 4  ;;  %v3858_v17 = vld [vmem:[#allocation2 + $0x38] sm:$0x1]  ;;  %v3046_v51 = vld [vmem:[#allocation2 + $0x50] sm:$0x1] }
  0xe0   : > { %v13097_v41 = vcombine.low %v15943_v10, %v15947_v35  ;;  %v3132_v42 = vor.u32 %v3131_v31, %v3128_v30  ;;  %v3148_v25 = vsel %vm15406_vm9, %v3143_v13, %v3147_v47  ;;  %v3042_v30 = vld [vmem:[#allocation2 + $0x40] sm:$0xf]  ;;  %v3174_v31 = vshrl.u32 %v3041_v19, 16  ;;  %v3859_v57 = vld [vmem:[#allocation2 + $0x3c] sm:$0xe] }
  0xe1   : > { %v3167_v27 = vrot.slane %v3166_v14, 4  ;;  %v3177_v45 = vshll.u32 %v3041_v19, 16  ;;  %v3183_v47 = vshll.u32 %v3042_v30, 16  ;;  %v3860_v59 = vld [vmem:[#allocation2 + $0x40] sm:$0xf]  ;;  %v3207_v1 = vshll.u32 %v3045_v37, 16 }
  0xe2   : > { %14311 = vmatmul.mubr.bf16.gmra.mxu0 %v12975_v48  ;;  %v3152_v48 = vrot.slane %v3150_v40, 4  ;;  %v3133_v52 = vrot.slane %v3132_v42, 4  ;;  %v3968_v42 = vrot.slane %v3966_v3, 4  ;;  %v3176_v44 = vrot.slane %v3174_v31, 4  ;;  %v15995_v13 = vld [vmem:[%s19332_s1 + $0x198] sm:$0xff]  }
  0xe3   : > { %14378 = vmatprep.mubr.bf16.mxu0 %v13040_v5  ;;  %v3171_v5 = vrot.slane %v3169_v56, 5  ;;  %v3201_v56 = vshll.u32 %v3044_v36, 16  ;;  %v3185_v7 = vrot.slane %v3183_v47, 5  ;;  %v13068_v9 = vrot.slane %v3859_v57, 9  ;;  %v3049_v10 = vld [vmem:[#allocation2 + $0x5c] sm:$0x1] }
  0xe4   : > { %v3138_v2 = vsel %vm15406_vm9, %v3133_v52, %v3137_v33  ;;  %v3156_v4 = vor.u32 %v3155_v54, %v3152_v48  ;;  %v3187_v48 = vshrl.u32 %v3042_v30, 16  ;;  %v3179_v54 = vrot.slane %v3177_v45, 5  ;;  %v15131_v47 = vld [vmem:[%s19332_s1 + $0x1e8] sm:$0xff]  }
  0xe5   : > { %v13042_v33 = vcombine.low %v3138_v2, %v3148_v25  ;;  %v3172_v40 = vsel %vm15406_vm9, %v3167_v27, %v3171_v5  ;;  %v3203_v0 = vrot.slane %v3201_v56, 5  ;;  %v3861_v2 = vld [vmem:[#allocation2 + $0x44] sm:$0x1]  ;;  %v3211_v5 = vshrl.u32 %v3045_v37, 16 }
  0xe6   : > { %14355 = vmatmul.mubr.bf16.gmra.mxu1 %v15115_v21  ;;  %v3157_v22 = vrot.slane %v3156_v4, 4  ;;  %v3969_v21 = vrot.slane %v3858_v17, 5  ;;  %v3189_v18 = vrot.slane %v3187_v48, 4  ;;  %v3180_v60 = vor.u32 %v3179_v54, %v3176_v44  ;;  %v15130_v54 = vld [vmem:[%s19332_s1 + $0x190] sm:$0xff]  }
  0xe7   : > { %14358 = vmatprep.mubr.bf16.mxu1 %v15119_v28  ;;  %v15968_v28 = vsel %vm15758_vm14, %v3961_v16, %v3962_v8  ;;  %v3217_v8 = vshll.u32 %v3046_v51, 16  ;;  %v3209_v17 = vrot.slane %v3207_v1, 5  ;;  %v3973_v19 = vrot.slane %v3860_v59, 5  ;;  %v16046_v1 = vld [vmem:[%s19332_s1 + $0x188] sm:$0xff]  }
  0xe8   : > { %v3162_v34 = vsel %vm15406_vm9, %v3157_v22, %v3161_v55  ;;  %v13098_v32 = vcombine.low %v15958_v15, %v15968_v28  ;;  %v15985_v52 = vsel %vm15758_vm14, %v3968_v42, %v3969_v21  ;;  %v3198_v55 = vshrl.u32 %v3044_v36, 16  ;;  %v3863_v22 = vld [vmem:[#allocation2 + $0x4c] sm:$0xf]  ;;  %v3864_v28 = vld [vmem:[#allocation2 + $0x50] sm:$0x1] }
  0xe9   : > { %v13043_v46 = vcombine.low %v3162_v34, %v3172_v40  ;;  %v3190_v4 = vor.u32 %v3189_v18, %v3185_v7  ;;  %v3181_v15 = vrot.slane %v3180_v60, 4  ;;  %v3213_v21 = vrot.slane %v3211_v5, 4  ;;  %v3048_v42 = vld [vmem:[#allocation2 + $0x58] sm:$0xf]  ;;  %v16035_v18 = vld [vmem:[%s19332_s1 + $0x1e0] sm:$0xff]  }
  0xea   : > { %14379 = vmatmul.mubr.bf16.vlgmr.msra.gmra.mxu0 %v13041_v29  ;;  %v3043_v29 = vld [vmem:[#allocation2 + $0x44] sm:$0x1]  ;;  %v3200_v63 = vrot.slane %v3198_v55, 4  ;;  %v3219_v25 = vrot.slane %v3217_v8, 5  ;;  %v3976_v27 = vrot.slane %v3861_v2, 5  ;;  %v3975_v31 = vrot.slane %v3973_v19, 4 }
  0xeb   : > { %14459 = vmatpush3.bf16.msra.mxu0 %v15855_v61  ;;  %v15976_v61 = vsel %vm15758_vm14, %v13067_v20, %v3966_v3  ;;  %14382 = vmatprep.mubr.bf16.mxu0 %v13042_v33  ;;  %v3193_v50 = vshll.u32 %v3043_v29, 16  ;;  %v15129_v20 = vld [vmem:[%s19332_s1 + $0x1f0] sm:$0xff]   ;;  %v3191_v3 = vrot.slane %v3190_v4, 4  ;;  %v3186_v30 = vsel %vm15406_vm9, %v3181_v15, %v3185_v7  ;;  %v3051_v60 = vld [vmem:[#allocation2 + $0x64] sm:$0xf] }
  0xec   : > { %14460 = vmatprep.subr.bf16.mxu0 %v15124_v49  ;;  %v15997_v14 = vpop.f32.mrf.mxu0  ;;  %v3204_v16 = vor.u32 %v3203_v0, %v3200_v63  ;;  %v3047_v33 = vld [vmem:[#allocation2 + $0x54] sm:$0xf]  ;;  %v3214_v36 = vor.u32 %v3213_v21, %v3209_v17  ;;  %v13069_v37 = vrot.slane %v3862_v11, 9  ;;  %v3980_v40 = vrot.slane %v3863_v22, 5  ;;  %v3052_v63 = vld [vmem:[#allocation2 + $0x68] sm:$0x1] }
  0xed   : > { %v3977_v45 = vsel %vm15758_vm14, %v3975_v31, %v3976_v27  ;;  %v3222_v55 = vshrl.u32 %v3047_v33, 16  ;;  %v3225_v56 = vshll.u32 %v3047_v33, 16  ;;  %v3231_v57 = vshll.u32 %v3048_v42, 16  ;;  %v3865_v11 = vld [vmem:[#allocation2 + $0x54] sm:$0xe] }
  0xee   : > { %14359 = vmatmul.mubr.bf16.gmra.mxu1 %v15120_v58  ;;  %v13099_v58 = vcombine.low %v15976_v61, %v15985_v52  ;;  %v3205_v29 = vrot.slane %v3204_v16, 4  ;;  %v16014_v35 = vpop.f32.mrf.mxu0  ;;  %v3215_v48 = vrot.slane %v3214_v36, 4  ;;  %v3982_v51 = vrot.slane %v3980_v40, 4  ;;  %v3866_v15 = vld [vmem:[#allocation2 + $0x58] sm:$0xf] }
  0xef   : > { %14426 = vmatprep.mubr.bf16.mxu1 %v13096_v24  ;;  %14461 = vmatpush3.bf16.msra.mxu0 %v15124_v49  ;;  %v3195_v24 = vrot.slane %v3193_v50, 5  ;;  %v15126_v49 = vld [vmem:[%s19332_s1 + $0x1a0] sm:$0xff]   ;;  %v16026_v50 = vsel %vm15758_vm14, %v13069_v37, %v3980_v40  ;;  %v3235_v7 = vshrl.u32 %v3048_v42, 16  ;;  %v3224_v8 = vrot.slane %v3222_v55, 4  ;;  %v15134_v61 = vld [vmem:[%s19332_s1 + $0x1d8] sm:$0xff]  }
  0xf0   : > { %14462 = vmatprep.subr.bf16.mxu0 %v15125_v23  ;;  %v3210_v44 = vsel %vm15406_vm9, %v3205_v29, %v3209_v17  ;;  %v16048_v2 = vpop.f32.mrf.mxu0  ;;  %v3233_v16 = vrot.slane %v3231_v57, 5  ;;  %v3259_v27 = vshrl.u32 %v3051_v60, 16  ;;  %v3265_v29 = vshll.u32 %v3052_v63, 16  ;;  %v3869_v33 = vld [vmem:[#allocation2 + $0x64] sm:$0xf] }
  0xf1   : > { %v3196_v34 = vsel %vm15406_vm9, %v3191_v3, %v3195_v24  ;;  %v3220_v24 = vsel %vm15406_vm9, %v3215_v48, %v3219_v25  ;;  %v3237_v17 = vrot.slane %v3235_v7, 4  ;;  %v3255_v25 = vshll.u32 %v3051_v60, 16  ;;  %v3870_v40 = vld [vmem:[#allocation2 + $0x68] sm:$0x1] }
  0xf2   : > { %14383 = vmatmul.mubr.bf16.gmra.mxu0 %v13043_v46  ;;  %v3050_v46 = vld [vmem:[#allocation2 + $0x60] sm:$0xf]  ;;  %v13045_v4 = vcombine.low %v3210_v44, %v3220_v24  ;;  %v3987_v31 = vrot.slane %v3866_v15, 5  ;;  %v16061_v52 = vpop.f32.mrf.mxu0  ;;  %v3261_v37 = vrot.slane %v3259_v27, 4  ;;  %v3994_v57 = vrot.slane %v3869_v33, 5 }
  0xf3   : > { %14463 = vmatpush3.bf16.msra.mxu0 %v15125_v23  ;;  %v16009_v23 = vsel %vm15758_vm14, %v13068_v9, %v3973_v19  ;;  %v3246_v0 = vshrl.u32 %v3050_v46, 16  ;;  %v3227_v9 = vrot.slane %v3225_v56, 5  ;;  %v3249_v21 = vshll.u32 %v3050_v46, 16  ;;  %19365 = vst [vmem:[#allocation9_spill] sm:$0xff] %v16061_v52  ;;  %v3055_v15 = vld [vmem:[#allocation2 + $0x74] sm:$0x1] }
  0xf4   : > { %14464 = vmatprep.subr.bf16.mxu0 %v15126_v49  ;;  %v3257_v36 = vrot.slane %v3255_v25, 5  ;;  %v3989_v44 = vrot.slane %v3987_v31, 4  ;;  %v3997_v7 = vrot.slane %v3870_v40, 5  ;;  %v3289_v33 = vshll.u32 %v3055_v15, 16  ;;  %v3876_v15 = vld [vmem:[#allocation2 + $0x80] sm:$0x1] }
  0xf5   : > { %v3248_v22 = vrot.slane %v3246_v0, 4  ;;  %v3228_v3 = vor.u32 %v3227_v9, %v3224_v8  ;;  %v16088_v8 = vld [vmem:[%s19332_s1 + $0x238] sm:$0xff]  }
  0xf6   : > { %14427 = vmatmul.mubr.bf16.vlgmr.msra.gmra.mxu1 %v13097_v41  ;;  %v13044_v41 = vcombine.low %v3186_v30, %v3196_v34  ;;  %v3251_v34 = vrot.slane %v3249_v21, 5  ;;  %v3262_v48 = vor.u32 %v3261_v37, %v3257_v36  ;;  %v16077_v24 = vpop.f32.mrf.mxu0  ;;  %v3058_v21 = vld [vmem:[#allocation2 + $0x80] sm:$0x1] }
  0xf7   : > { %14430 = vmatprep.mubr.bf16.mxu1 %v13098_v32  ;;  %14507 = vmatpush3.bf16.msra.mxu1 %v15879_v43  ;;  %v3983_v32 = vrot.slane %v3864_v28, 5  ;;  %v13100_v43 = vcombine.low %v16009_v23, %v3977_v45  ;;  %v3868_v28 = vld [vmem:[#allocation2 + $0x60] sm:$0xe]  ;;  %v16056_v30 = vpop.f32.mrf.mxu1  ;;  %v13070_v23 = vrot.slane %v3865_v11, 9  ;;  %v3053_v45 = vld [vmem:[#allocation2 + $0x6c] sm:$0xf] }
  0xf8   : > { %14465 = vmatpush3.bf16.msra.mxu0 %v15126_v49  ;;  %14508 = vmatprep.subr.bf16.mxu1 %v15129_v20  ;;  %v3241_v49 = vshll.u32 %v3049_v10, 16  ;;  %v3267_v10 = vrot.slane %v3265_v29, 5  ;;  %v13071_v56 = vrot.slane %v3868_v28, 9  ;;  %v3263_v63 = vrot.slane %v3262_v48, 4 }
  0xf9   : > { %14466 = vmatprep.subr.bf16.mxu0 %v15995_v13  ;;  %14386 = vmatprep.mubr.bf16.mxu0 %v13044_v41  ;;  %v16041_v59 = vsel %vm15758_vm14, %v3982_v51, %v3983_v32  ;;  %v3988_v41 = vsel %vm15758_vm14, %v13070_v23, %v3987_v31  ;;  %v15136_v32 = vld [vmem:[%s19332_s1 + $0x180] sm:$0xff]   ;;  %v3054_v51 = vld [vmem:[#allocation2 + $0x70] sm:$0xf]  ;;  %v3996_v11 = vrot.slane %v3994_v57, 4 }
  0xfa   : > { %v13101_v5 = vcombine.low %v16026_v50, %v16041_v59  ;;  %v3243_v19 = vrot.slane %v3241_v49, 5  ;;  %14387 = vmatmul.mubr.bf16.gmra.mxu0 %v13045_v4  ;;  %v15135_v4 = vld [vmem:[%s19332_s1 + $0x1d0] sm:$0xff]   ;;  %v3995_v9 = vsel %vm15758_vm14, %v13071_v56, %v3994_v57  ;;  %v3283_v59 = vshrl.u32 %v3054_v51, 16 }
  0xfb   : > { %14509 = vmatpush3.bf16.msra.mxu1 %v15129_v20  ;;  %v3867_v20 = vld [vmem:[#allocation2 + $0x5c] sm:$0x1]  ;;  %v3998_v28 = vsel %vm15758_vm14, %v3996_v11, %v3997_v7 }
  0xfc   : > { %14467 = vmatpush3.bf16.msra.mxu0 %v15995_v13  ;;  %14510 = vmatprep.subr.bf16.mxu1 %v15131_v47  ;;  %v3238_v13 = vor.u32 %v3237_v17, %v3233_v16  ;;  %v3056_v17 = vld [vmem:[#allocation2 + $0x78] sm:$0xf]  ;;  %v13103_v29 = vcombine.low %v3995_v9, %v3998_v28  ;;  %v3285_v37 = vrot.slane %v3283_v59, 4 }
  0xfd   : > { %14468 = vmatprep.subr.bf16.mxu0 %v15130_v54  ;;  %v3294_v40 = vshrl.u32 %v3056_v17, 16 }
  0xfe   : > { %14431 = vmatmul.mubr.bf16.gmra.mxu1 %v13099_v58  ;;  %v3229_v58 = vrot.slane %v3228_v3, 4  ;;  %v3239_v42 = vrot.slane %v3238_v13, 4  ;;  %v3057_v3 = vld [vmem:[#allocation2 + $0x7c] sm:$0xf]  ;;  %v16103_v13 = vpop.f32.mrf.mxu0 }
  0xff   : > { %14434 = vmatprep.mubr.bf16.mxu1 %v13100_v43  ;;  %14511 = vmatpush3.bf16.msra.mxu1 %v15131_v47  ;;  %v3252_v47 = vor.u32 %v3251_v34, %v3248_v22  ;;  %v3990_v43 = vrot.slane %v3867_v20, 5  ;;  %v3273_v22 = vshll.u32 %v3053_v45, 16  ;;  %v3279_v20 = vshll.u32 %v3054_v51, 16  ;;  %v3873_v34 = vld [vmem:[#allocation2 + $0x74] sm:$0x1] }
 0x100   : > { %14469 = vmatpush3.bf16.msra.mxu0 %v15130_v54  ;;  %14512 = vmatprep.subr.bf16.mxu1 %v16035_v18  ;;  %v3234_v46 = vsel %vm15406_vm9, %v3229_v58, %v3233_v16  ;;  %v16072_v54 = vpop.f32.mrf.mxu1  ;;  %v3244_v55 = vsel %vm15406_vm9, %v3239_v42, %v3243_v19  ;;  %v3270_v16 = vshrl.u32 %v3053_v45, 16  ;;  %v3268_v19 = vsel %vm15406_vm9, %v3263_v63, %v3267_v10  ;;  %v3872_v58 = vld [vmem:[#allocation2 + $0x70] sm:$0xf]  ;;  %v16111_v56 = vpop.f32.mrf.mxu0  ;;  %v15138_v63 = vld [vmem:[%s19332_s1 + $0x1c0] sm:$0xff]  }
 0x101   : > { %14470 = vmatprep.subr.bf16.mxu0 %v16046_v1  ;;  %v13046_v49 = vcombine.low %v3234_v46, %v3244_v55  ;;  %v3253_v60 = vrot.slane %v3252_v47, 4  ;;  %v3991_v0 = vsel %vm15758_vm14, %v3989_v44, %v3990_v43  ;;  %v3275_v23 = vrot.slane %v3273_v22, 5  ;;  %v3874_v46 = vld [vmem:[#allocation2 + $0x78] sm:$0xe]  ;;  %v3875_v55 = vld [vmem:[#allocation2 + $0x7c] sm:$0xf] }
 0x102   : > { %v16099_v25 = vpop.f32.mrf.mxu1  ;;  %v3272_v50 = vrot.slane %v3270_v16, 4  ;;  %v3281_v31 = vrot.slane %v3279_v20, 5  ;;  %v3297_v42 = vshll.u32 %v3056_v17, 16  ;;  %v3303_v10 = vshll.u32 %v3057_v3, 16  ;;  %v3060_v22 = vld [vmem:[#allocation2 + $0x88] sm:$0xf] }
 0x103   : > { %14513 = vmatpush3.bf16.msra.mxu1 %v16035_v18  ;;  %v13102_v18 = vcombine.low %v3988_v41, %v3991_v0  ;;  %14390 = vmatprep.mubr.bf16.mxu0 %v13046_v49  ;;  %v3291_v41 = vrot.slane %v3289_v33, 5  ;;  %v3307_v44 = vshrl.u32 %v3057_v3, 16  ;;  %v3313_v45 = vshll.u32 %v3058_v21, 16 }
 0x104   : > { %14471 = vmatpush3.bf16.msra.mxu0 %v16046_v1  ;;  %14514 = vmatprep.subr.bf16.mxu1 %v15134_v61  ;;  %v3258_v1 = vsel %vm15406_vm9, %v3253_v60, %v3257_v36  ;;  %v15137_v36 = vld [vmem:[%s19332_s1 + $0x1c8] sm:$0xff]   ;;  %v16109_v47 = vpop.f32.mrf.mxu1  ;;  %v3286_v48 = vor.u32 %v3285_v37, %v3281_v31  ;;  %v3299_v43 = vrot.slane %v3297_v42, 5  ;;  %v3305_v51 = vrot.slane %v3303_v10, 5 }
 0x105   : > { %14472 = vmatprep.subr.bf16.mxu0 %v15136_v32  ;;  %v13047_v27 = vcombine.low %v3258_v1, %v3268_v19  ;;  %19366 = vst [vmem:[#allocation10_spill] sm:$0xff] %v16109_v47  ;;  %v3309_v7 = vrot.slane %v3307_v44, 4  ;;  %v3315_v49 = vrot.slane %v3313_v45, 5  ;;  %v4001_v9 = vrot.slane %v3872_v58, 5  ;;  %v3059_v19 = vld [vmem:[#allocation2 + $0x84] sm:$0xf] }
 0x106   : > { %14435 = vmatmul.mubr.bf16.gmra.mxu1 %v13101_v5  ;;  %v3871_v5 = vld [vmem:[#allocation2 + $0x6c] sm:$0xe]  ;;  %v3287_v0 = vrot.slane %v3286_v48, 4  ;;  %v4004_v11 = vrot.slane %v3873_v34, 5  ;;  %v13073_v17 = vrot.slane %v3874_v46, 9  ;;  %v4008_v1 = vrot.slane %v3875_v55, 5  ;;  %v16118_v20 = vpop.f32.mrf.mxu1 }
 0x107   : > { %14438 = vmatprep.mubr.bf16.mxu1 %v13102_v18  ;;  %14515 = vmatpush3.bf16.msra.mxu1 %v15134_v61  ;;  %v3276_v61 = vor.u32 %v3275_v23, %v3272_v50  ;;  %v13072_v60 = vrot.slane %v3871_v5, 9  ;;  %v3310_v16 = vor.u32 %v3309_v7, %v3305_v51  ;;  %v4003_v28 = vrot.slane %v4001_v9, 4  ;;  %v16124_v50 = vpop.f32.mrf.mxu0  ;;  %v3061_v34 = vld [vmem:[#allocation2 + $0x8c] sm:$0x1]  ;;  %v3064_v44 = vld [vmem:[#allocation2 + $0x98] sm:$0x1] }
 0x108   : > { %14516 = vmatprep.subr.bf16.mxu1 %v15135_v4  ;;  %14473 = vmatpush3.bf16.msra.mxu0 %v15136_v32  ;;  %v3296_v32 = vrot.slane %v3294_v40, 4  ;;  %v3292_v3 = vsel %vm15406_vm9, %v3287_v0, %v3291_v41  ;;  %19367 = vst [vmem:[#allocation11_spill] sm:$0xff] %v16124_v50  ;;  %v4010_v23 = vrot.slane %v4008_v1, 4  ;;  %v4011_v58 = vrot.slane %v3876_v15, 5  ;;  %v3062_v40 = vld [vmem:[#allocation2 + $0x90] sm:$0xf]  ;;  %v16134_v45 = vpop.f32.mrf.mxu1 }
 0x109   : > { %14391 = vmatmul.mubr.bf16.gmra.mxu0 %v13047_v27  ;;  %14554 = vmatprep.subr.bf16.mxu0 %v16088_v8  ;;  %v3277_v57 = vrot.slane %v3276_v61, 4  ;;  %v4002_v27 = vsel %vm15758_vm14, %v13072_v60, %v4001_v9  ;;  %v3311_v5 = vrot.slane %v3310_v16, 4  ;;  %v4005_v33 = vsel %vm15758_vm14, %v4003_v28, %v4004_v11  ;;  %v3063_v41 = vld [vmem:[#allocation2 + $0x94] sm:$0xf]  ;;  %v3878_v0 = vld [vmem:[#allocation2 + $0x88] sm:$0xf] }
 0x10a   : > { %v3300_v18 = vor.u32 %v3299_v43, %v3296_v32  ;;  %v3318_v37 = vshrl.u32 %v3059_v19, 16  ;;  %v13104_v42 = vcombine.low %v4002_v27, %v4005_v33  ;;  %v3321_v10 = vshll.u32 %v3059_v19, 16 }
 0x10b   : > { %14517 = vmatpush3.bf16.msra.mxu1 %v15135_v4  ;;  %v3282_v4 = vsel %vm15406_vm9, %v3277_v57, %v3281_v31  ;;  %v3327_v61 = vshll.u32 %v3060_v22, 16  ;;  %v4012_v48 = vsel %vm15758_vm14, %v4010_v23, %v4011_v58  ;;  %v3331_v43 = vshrl.u32 %v3060_v22, 16  ;;  %v16140_v22 = vpop.f32.mrf.mxu1 }
 0x10c   : > { %14518 = vmatprep.subr.bf16.mxu1 %v15137_v36  ;;  %v3301_v21 = vrot.slane %v3300_v18, 4  ;;  %v13048_v59 = vcombine.low %v3282_v4, %v3292_v3  ;;  %v3320_v32 = vrot.slane %v3318_v37, 4  ;;  %v3323_v7 = vrot.slane %v3321_v10, 5  ;;  %v3879_v18 = vld [vmem:[#allocation2 + $0x8c] sm:$0x1] }
 0x10d   : > { %v16138_v55 = vpop.f32.mrf.mxu0  ;;  %v3337_v60 = vshll.u32 %v3061_v34, 16  ;;  %v3333_v9 = vrot.slane %v3331_v43, 4  ;;  %v3342_v11 = vshrl.u32 %v3062_v40, 16  ;;  %v3345_v15 = vshll.u32 %v3062_v40, 16 }
 0x10e   : > { %14439 = vmatmul.mubr.bf16.gmra.mxu1 %v13103_v29  ;;  %v4009_v29 = vsel %vm15758_vm14, %v13073_v17, %v4008_v1  ;;  %v3306_v31 = vsel %vm15406_vm9, %v3301_v21, %v3305_v51  ;;  %14394 = vmatprep.mubr.bf16.mxu0 %v13048_v59  ;;  %v3877_v51 = vld [vmem:[#allocation2 + $0x84] sm:$0xe]  ;;  %v3351_v4 = vshll.u32 %v3063_v41, 16  ;;  %v3324_v16 = vor.u32 %v3323_v7, %v3320_v32  ;;  %v3881_v59 = vld [vmem:[#allocation2 + $0x94] sm:$0xf] }
 0x10f   : > { %14519 = vmatpush3.bf16.msra.mxu1 %v15137_v36  ;;  %v3316_v36 = vsel %vm15406_vm9, %v3311_v5, %v3315_v49  ;;  %14442 = vmatprep.mubr.bf16.mxu1 %v13104_v42  ;;  %v13105_v57 = vcombine.low %v4009_v29, %v4012_v48  ;;  %v3329_v49 = vrot.slane %v3327_v61, 5  ;;  %v3339_v17 = vrot.slane %v3337_v60, 5  ;;  %v16142_v5 = vpop.f32.mrf.mxu0  ;;  %v16146_v48 = vpop.f32.mrf.mxu1 }
 0x110   : > { %14520 = vmatprep.subr.bf16.mxu1 %v15138_v63  ;;  %v13049_v46 = vcombine.low %v3306_v31, %v3316_v36  ;;  %v3355_v1 = vshrl.u32 %v3063_v41, 16  ;;  %v3361_v19 = vshll.u32 %v3064_v44, 16  ;;  %v3344_v21 = vrot.slane %v3342_v11, 4  ;;  %v3882_v36 = vld [vmem:[#allocation2 + $0x98] sm:$0x1]  ;;  %19368 = vst [vmem:[#allocation12_spill] sm:$0xff] %v16146_v48 }
 0x111   : > { %v3334_v3 = vor.u32 %v3333_v9, %v3329_v49  ;;  %v3347_v27 = vrot.slane %v3345_v15, 5  ;;  %v3353_v28 = vrot.slane %v3351_v4, 5  ;;  %v3325_v29 = vrot.slane %v3324_v16, 4  ;;  %v3065_v44 = vld [vmem:[#allocation2 + $0x9c] sm:$0xf]  ;;  %v16152_v7 = vpop.f32.mrf.mxu0 }
 0x112   : > { %14395 = vmatmul.mubr.bf16.gmra.mxu0 %v13049_v46  ;;  %v3357_v23 = vrot.slane %v3355_v1, 4  ;;  %v3363_v31 = vrot.slane %v3361_v19, 5  ;;  %v13074_v33 = vrot.slane %v3877_v51, 9  ;;  %v4015_v37 = vrot.slane %v3878_v0, 5  ;;  %v3066_v46 = vld [vmem:[#allocation2 + $0xa0] sm:$0xf] }
 0x113   : > { %14521 = vmatpush3.bf16.msra.mxu1 %v15138_v63  ;;  %v3880_v63 = vld [vmem:[#allocation2 + $0x90] sm:$0xe]  ;;  %v3335_v58 = vrot.slane %v3334_v3, 4  ;;  %v3348_v34 = vor.u32 %v3347_v27, %v3344_v21  ;;  %v4018_v40 = vrot.slane %v3879_v18, 5  ;;  %v3330_v42 = vsel %vm15406_vm9, %v3325_v29, %v3329_v49  ;;  %v3067_v4 = vld [vmem:[#allocation2 + $0xa4] sm:$0x1] }
 0x114   : > { %v3358_v10 = vor.u32 %v3357_v23, %v3353_v28  ;;  %v13075_v61 = vrot.slane %v3880_v63, 9  ;;  %v4022_v41 = vrot.slane %v3881_v59, 5  ;;  %v4016_v51 = vsel %vm15758_vm14, %v13074_v33, %v4015_v37  ;;  %v3069_v21 = vld [vmem:[#allocation2 + $0xac] sm:$0xf]  ;;  %v3070_v27 = vld [vmem:[#allocation2 + $0xb0] sm:$0x1] }
 0x115   : > { %v3340_v32 = vsel %vm15406_vm9, %v3335_v58, %v3339_v17  ;;  %v3349_v43 = vrot.slane %v3348_v34, 4  ;;  %v4025_v15 = vrot.slane %v3882_v36, 5  ;;  %v3366_v16 = vshrl.u32 %v3065_v44, 16  ;;  %v3068_v17 = vld [vmem:[#allocation2 + $0xa8] sm:$0xf]  ;;  %v16166_v34 = vpop.f32.mrf.mxu0 }
 0x116   : > { %14443 = vmatmul.mubr.bf16.gmra.mxu1 %v13105_v57  ;;  %v4017_v57 = vrot.slane %v4015_v37, 4  ;;  %v13050_v60 = vcombine.low %v3330_v42, %v3340_v32  ;;  %v3359_v0 = vrot.slane %v3358_v10, 4  ;;  %v4023_v49 = vsel %vm15758_vm14, %v13075_v61, %v4022_v41  ;;  %v3883_v58 = vld [vmem:[#allocation2 + $0x9c] sm:$0xe]  ;;  %19369 = vst [vmem:[#allocation13_spill] sm:$0xff] %v16166_v34 }
 0x117   : > { %v4024_v18 = vrot.slane %v4022_v41, 4  ;;  %v3354_v9 = vsel %vm15406_vm9, %v3349_v43, %v3353_v28  ;;  %v3369_v63 = vshll.u32 %v3065_v44, 16  ;;  %v3375_v3 = vshll.u32 %v3066_v46, 16  ;;  %v3884_v42 = vld [vmem:[#allocation2 + $0xa0] sm:$0xf] }
 0x118   : > { %v4019_v11 = vsel %vm15758_vm14, %v4017_v57, %v4018_v40  ;;  %14398 = vmatprep.mubr.bf16.mxu0 %v13050_v60  ;;  %v3364_v1 = vsel %vm15406_vm9, %v3359_v0, %v3363_v31  ;;  %v3368_v23 = vrot.slane %v3366_v16, 4  ;;  %v3379_v33 = vshrl.u32 %v3066_v46, 16  ;;  %v3885_v10 = vld [vmem:[#allocation2 + $0xa4] sm:$0x1]  ;;  %v3886_v60 = vld [vmem:[#allocation2 + $0xa8] sm:$0xe] }
 0x119   : > { %v13106_v19 = vcombine.low %v4016_v51, %v4019_v11  ;;  %v13051_v29 = vcombine.low %v3354_v9, %v3364_v1  ;;  %v4026_v28 = vsel %vm15758_vm14, %v4024_v18, %v4025_v15  ;;  %v3371_v40 = vrot.slane %v3369_v63, 5  ;;  %v3887_v15 = vld [vmem:[#allocation2 + $0xac] sm:$0xf]  ;;  %v4898_v34 = vld [vmem:[#allocation2 + $0x30] sm:$0xf] }
 0x11a   : > { %v16162_v59 = vpop.f32.mrf.mxu1  ;;  %v13107_v37 = vcombine.low %v4023_v49, %v4026_v28  ;;  %v3377_v31 = vrot.slane %v3375_v3, 5  ;;  %v3385_v36 = vshll.u32 %v3067_v4, 16  ;;  %v3381_v61 = vrot.slane %v3379_v33, 4  ;;  %v16170_v4 = vpop.f32.mrf.mxu0 }
 0x11b   : > { %14446 = vmatprep.mubr.bf16.mxu1 %v13106_v19  ;;  %14399 = vmatmul.mubr.bf16.gmra.mxu0 %v13051_v29  ;;  %v3390_v41 = vshrl.u32 %v3068_v17, 16  ;;  %v3393_v44 = vshll.u32 %v3068_v17, 16  ;;  %v3399_v32 = vshll.u32 %v3069_v21, 16  ;;  %v3372_v43 = vor.u32 %v3371_v40, %v3368_v23  ;;  %v3071_v40 = vld [vmem:[#allocation2 + $0xb4] sm:$0xf] }
 0x11c   : > { %v3387_v51 = vrot.slane %v3385_v36, 5  ;;  %v3403_v57 = vshrl.u32 %v3069_v21, 16  ;;  %v3409_v46 = vshll.u32 %v3070_v27, 16  ;;  %v16168_v0 = vpop.f32.mrf.mxu1  ;;  %v3382_v18 = vor.u32 %v3381_v61, %v3377_v31  ;;  %v3888_v21 = vld [vmem:[#allocation2 + $0xb0] sm:$0x1] }
 0x11d   : > { %v3392_v49 = vrot.slane %v3390_v41, 4  ;;  %v3395_v9 = vrot.slane %v3393_v44, 5  ;;  %v3401_v11 = vrot.slane %v3399_v32, 5  ;;  %v3373_v16 = vrot.slane %v3372_v43, 4  ;;  %v3072_v36 = vld [vmem:[#allocation2 + $0xb8] sm:$0xf] }
 0x11e   : > { %14447 = vmatmul.mubr.bf16.gmra.mxu1 %v13107_v37  ;;  %v3405_v1 = vrot.slane %v3403_v57, 4  ;;  %v3411_v19 = vrot.slane %v3409_v46, 5  ;;  %v13076_v17 = vrot.slane %v3883_v58, 9  ;;  %v3383_v63 = vrot.slane %v3382_v18, 4  ;;  %v16174_v61 = vpop.f32.mrf.mxu1  ;;  %v3073_v46 = vld [vmem:[#allocation2 + $0xbc] sm:$0x1] }
 0x11f   : > { %v3396_v3 = vor.u32 %v3395_v9, %v3392_v49  ;;  %v4029_v29 = vrot.slane %v3884_v42, 5  ;;  %v4032_v28 = vrot.slane %v3885_v10, 5  ;;  %v3378_v27 = vsel %vm15406_vm9, %v3373_v16, %v3377_v31  ;;  %v16180_v10 = vpop.f32.mrf.mxu0  ;;  %v3075_v16 = vld [vmem:[#allocation2 + $0xc4] sm:$0xf] }
 0x120   : > { %v3406_v23 = vor.u32 %v3405_v1, %v3401_v11  ;;  %v13077_v33 = vrot.slane %v3886_v60, 9  ;;  %v4036_v37 = vrot.slane %v3887_v15, 5  ;;  %v3388_v41 = vsel %vm15406_vm9, %v3383_v63, %v3387_v51  ;;  %v305_v60 = vld [vmem:[#allocation2 + $0xc8] sm:$0x1]  ;;  %v3074_v15 = vld [vmem:[#allocation2 + $0xc0] sm:$0xf] }
 0x121   : > { %v3397_v44 = vrot.slane %v3396_v3, 4  ;;  %v4030_v58 = vsel %vm15758_vm14, %v13076_v17, %v4029_v29  ;;  %v4031_v42 = vrot.slane %v4029_v29, 4  ;;  %v13052_v32 = vcombine.low %v3378_v27, %v3388_v41  ;;  %v3889_v29 = vld [vmem:[#allocation2 + $0xb4] sm:$0xe]  ;;  %v16190_v27 = vpop.f32.mrf.mxu1 }
 0x122   : > { %v3407_v43 = vrot.slane %v3406_v23, 4  ;;  %v4037_v31 = vsel %vm15758_vm14, %v13077_v33, %v4036_v37  ;;  %v4038_v57 = vrot.slane %v4036_v37, 4  ;;  %v4039_v49 = vrot.slane %v3888_v21, 5  ;;  %19370 = vst [vmem:[#allocation14_spill] sm:$0xff] %v16190_v27  ;;  %v3890_v21 = vld [vmem:[#allocation2 + $0xb8] sm:$0xf]  ;;  %v16194_v37 = vpop.f32.mrf.mxu0 }
 0x123   : > { %v3402_v18 = vsel %vm15406_vm9, %v3397_v44, %v3401_v11  ;;  %v4033_v51 = vsel %vm15758_vm14, %v4031_v42, %v4032_v28  ;;  %v3414_v9 = vshrl.u32 %v3071_v40, 16  ;;  %14402 = vmatprep.mubr.bf16.mxu0 %v13052_v32  ;;  %v3417_v63 = vshll.u32 %v3071_v40, 16 }
 0x124   : > { %v3412_v1 = vsel %vm15406_vm9, %v3407_v43, %v3411_v19  ;;  %v13108_v17 = vcombine.low %v4030_v58, %v4033_v51  ;;  %v3423_v3 = vshll.u32 %v3072_v36, 16  ;;  %v4040_v11 = vsel %vm15758_vm14, %v4038_v57, %v4039_v49  ;;  %v3891_v58 = vld [vmem:[#allocation2 + $0xbc] sm:$0x1] }
 0x125   : > { %v13053_v23 = vcombine.low %v3402_v18, %v3412_v1  ;;  %v3416_v33 = vrot.slane %v3414_v9, 4  ;;  %v3427_v28 = vshrl.u32 %v3072_v36, 16  ;;  %v13109_v41 = vcombine.low %v4037_v31, %v4040_v11  ;;  %v16198_v9 = vld [vmem:[#allocation2 + $0xc0] sm:$0xe]  ;;  %v16200_v31 = vpop.f32.mrf.mxu1 }
 0x126   : > { %14450 = vmatprep.mubr.bf16.mxu1 %v13108_v17  ;;  %v3419_v44 = vrot.slane %v3417_v63, 5  ;;  %v3425_v42 = vrot.slane %v3423_v3, 5  ;;  %v3433_v19 = vshll.u32 %v3073_v46, 16  ;;  %v306_v32 = vsel %vm15400_vm8, 0, %v305_v60  ;;  %v16202_v3 = vpop.f32.mrf.mxu0 }
 0x127   : > { %14403 = vmatmul.mubr.bf16.gmra.mxu0 %v13053_v23  ;;  %v3429_v40 = vrot.slane %v3427_v28, 4  ;;  %v3438_v43 = vshrl.u32 %v3074_v15, 16  ;;  %v3441_v18 = vshll.u32 %v3074_v15, 16  ;;  %14451 = vmatmul.mubr.bf16.gmra.mxu1 %v13109_v41  ;;  %307 = vst [vmem:[#allocation2 + $0xc8] sm:$0x1] %v306_v32  ;;  %v3447_v36 = vshll.u32 %v3075_v16, 16 }
 0x128   : > { %v3420_v57 = vor.u32 %v3419_v44, %v3416_v33  ;;  %v3435_v51 = vrot.slane %v3433_v19, 5  ;;  %v3451_v49 = vshrl.u32 %v3075_v16, 16  ;;  %v13078_v63 = vrot.slane %v3889_v29, 9  ;;  %19371 = vst [vmem:[#allocation15_spill] sm:$0xff] %v16202_v3  ;;  %v4892_v29 = vld [vmem:[#allocation2 + $0x18] sm:$0xf] }
 0x129   : > { %v3430_v1 = vor.u32 %v3429_v40, %v3425_v42  ;;  %v3440_v46 = vrot.slane %v3438_v43, 4  ;;  %v3443_v17 = vrot.slane %v3441_v18, 5  ;;  %v16204_v60 = vrot.slane %v3447_v36, 5  ;;  %v16211_v40 = vpop.f32.mrf.mxu1  ;;  %v4893_v18 = vld [vmem:[#allocation2 + $0x1c] sm:$0xf] }
 0x12a   : > { %v3421_v38 = vrot.slane %v3420_v57, 4  ;;  %v4043_v15 = vrot.slane %v3890_v21, 5  ;;  %v3453_v33 = vrot.slane %v3451_v49, 4  ;;  %v4046_v28 = vrot.slane %v3891_v58, 5  ;;  %v3893_v21 = vld [vmem:[#allocation2 + $0xc4] sm:$0xf] }
 0x12b   : > { %v3431_v23 = vrot.slane %v3430_v1, 4  ;;  %v3444_v11 = vor.u32 %v3443_v17, %v3440_v46  ;;  %v613_v16 = vrot.slane %v15909_v6, 4  ;;  %v13079_v43 = vrot.slane %v16198_v9, 9  ;;  %v4894_v36 = vld [vmem:[#allocation2 + $0x20] sm:$0x1] }
 0x12c   : > { %v3426_v41 = vsel %vm15406_vm9, %v3421_v38, %v3425_v42  ;;  %v4044_v44 = vsel %vm15758_vm14, %v13078_v63, %v4043_v15  ;;  %v4045_v19 = vrot.slane %v4043_v15, 4  ;;  %v4941_v49 = vshrl.u32 %v4892_v29, 16  ;;  %v4895_v1 = vld [vmem:[#allocation2 + $0x24] sm:$0xf]  ;;  %v4897_v38 = vld [vmem:[#allocation2 + $0x2c] sm:$0x1] }
 0x12d   : > { %v3436_v32 = vsel %vm15406_vm9, %v3431_v23, %v3435_v51  ;;  %v16216_v58 = vpop.f32.mrf.mxu0  ;;  %v16218_v57 = vrot.slane %v3444_v11, 4  ;;  %v3454_v17 = vor.u32 %v3453_v33, %v16204_v60  ;;  %v4896_v51 = vld [vmem:[#allocation2 + $0x28] sm:$0xf]  ;;  %v4944_v23 = vshll.u32 %v4892_v29, 16 }
 0x12e   : > { %v13054_v6 = vcombine.low %v3426_v41, %v3436_v32  ;;  %v4047_v42 = vsel %vm15758_vm14, %v4045_v19, %v4046_v28  ;;  %v773_v46 = vld [vmem:[#allocation2 + $0xc8] sm:$0x1]  ;;  %v4943_v15 = vrot.slane %v4941_v49, 4  ;;  %v4950_v11 = vshll.u32 %v4893_v18, 16  ;;  %v16225_v41 = vpop.f32.mrf.mxu1 }
 0x12f   : > { %v13110_v63 = vcombine.low %v4044_v44, %v4047_v42  ;;  %v774_v9 = vsel %vm15385_vm5, %v613_v16, %v773_v46  ;;  %v4050_v28 = vrot.slane %v3893_v21, 5  ;;  %v4954_v19 = vshrl.u32 %v4893_v18, 16  ;;  %v16227_v62 = vpop.f32.mrf.mxu0 }
 0x130   : > { %14406 = vmatprep.mubr.bf16.mxu0 %v13054_v6  ;;  %775 = vst [vmem:[#allocation2 + $0xc8] sm:$0x1] %v774_v9  ;;  %v4960_v32 = vshll.u32 %v4894_v36, 16  ;;  %v4965_v53 = vshrl.u32 %v4895_v1, 16  ;;  %v4946_v33 = vrot.slane %v4944_v23, 5  ;;  %v4952_v44 = vrot.slane %v4950_v11, 5 }
 0x131   : > { %14454 = vmatprep.mubr.bf16.mxu1 %v13110_v63  ;;  %v4968_v42 = vshll.u32 %v4895_v1, 16  ;;  %v4974_v6 = vshll.u32 %v4896_v51, 16  ;;  %v3455_v3 = vrot.slane %v3454_v17, 4  ;;  %v4956_v26 = vrot.slane %v4954_v19, 4  ;;  %v16231_v63 = vpop.f32.mrf.mxu1  ;;  %v16233_v48 = vpop.f32.mrf.mxu0  ;;  %v4899_v19 = vld [vmem:[#allocation2 + $0x34] sm:$0xf] }
 0x132   : > { %v4967_v16 = vrot.slane %v4965_v53, 4  ;;  %v4978_v49 = vshrl.u32 %v4896_v51, 16  ;;  %v4947_v29 = vor.u32 %v4946_v33, %v4943_v15  ;;  %v4984_v9 = vshll.u32 %v4897_v38, 16  ;;  %19372 = vst [vmem:[#allocation16_spill] sm:$0xff] %v16231_v63 }
 0x133   : > { %v4970_v46 = vrot.slane %v4968_v42, 5  ;;  %v16229_v27 = vrot.slane %v4974_v6, 5  ;;  %v4957_v21 = vor.u32 %v4956_v26, %v4952_v44  ;;  %v4962_v18 = vrot.slane %v4960_v32, 5 }
 0x134   : > { %v4980_v36 = vrot.slane %v4978_v49, 4  ;;  %v4052_v23 = vrot.slane %v4050_v28, 4  ;;  %v4948_v1 = vrot.slane %v4947_v29, 4  ;;  %v4986_v17 = vrot.slane %v4984_v9, 5  ;;  %v4900_v49 = vld [vmem:[#allocation2 + $0x38] sm:$0x1] }
 0x135   : > { %v4971_v11 = vor.u32 %v4970_v46, %v4967_v16  ;;  %v4958_v53 = vrot.slane %v4957_v21, 4  ;;  %v4989_v15 = vshrl.u32 %v4898_v34, 16  ;;  %v4992_v33 = vshll.u32 %v4898_v34, 16  ;;  %v4901_v34 = vld [vmem:[#allocation2 + $0x3c] sm:$0xf] }
 0x136   : > { %v4981_v51 = vor.u32 %v4980_v36, %v16229_v27  ;;  %v4051_v26 = vsel %vm15758_vm14, %v13079_v43, %v4050_v28  ;;  %v4953_v32 = vsel %vm15406_vm9, %v4948_v1, %v4952_v44  ;;  %v4998_v63 = vshll.u32 %v4899_v19, 16  ;;  %v16244_v36 = vpop.f32.mrf.mxu0 }
 0x137   : > { %v3076_v42 = vld [vmem:[#allocation2 + $0xc8] sm:$0x1]  ;;  %v4972_v6 = vrot.slane %v4971_v11, 4  ;;  %v4963_v9 = vsel %vm15406_vm9, %v4958_v53, %v4962_v18  ;;  %19373 = vst [vmem:[#allocation17_spill] sm:$0xff] %v16244_v36  ;;  %v3450_v43 = vsel %vm15406_vm9, %v16218_v57, %v16204_v60  ;;  %v4991_v44 = vrot.slane %v4989_v15, 4 }
 0x138   : > { %v3894_v38 = vld [vmem:[#allocation2 + $0xc8] sm:$0x1]  ;;  %v3457_v16 = vshll.u32 %v3076_v42, 16  ;;  %v4982_v21 = vrot.slane %v4981_v51, 4  ;;  %v13176_v28 = vcombine.low %v4953_v32, %v4963_v9  ;;  %v4994_v1 = vrot.slane %v4992_v33, 5  ;;  %v15139_v33 = vld [vmem:[#allocation2 + $0x18] sm:$0xff]  }
 0x139   : > { %v4053_v46 = vrot.slane %v3894_v38, 5  ;;  %v4902_v11 = vld [vmem:[#allocation2 + $0x40] sm:$0xf]  ;;  %v4977_v18 = vsel %vm15406_vm9, %v4972_v6, %v16229_v27  ;;  %v4903_v51 = vld [vmem:[#allocation2 + $0x44] sm:$0x1]  ;;  %v5000_v47 = vrot.slane %v4998_v63, 5 }
 0x13a   : > { %v16240_v29 = vpop.f32.mrf.mxu1  ;;  %v3459_v50 = vrot.slane %v3457_v16, 5  ;;  %v4987_v53 = vsel %vm15406_vm9, %v4982_v21, %v4986_v17  ;;  %v4995_v36 = vor.u32 %v4994_v1, %v4991_v44  ;;  %v5002_v60 = vshrl.u32 %v4899_v19, 16  ;;  %v4904_v21 = vld [vmem:[#allocation2 + $0x48] sm:$0xf] }
 0x13b   : > { %v4054_v42 = vsel %vm15758_vm14, %v4052_v23, %v4053_v46  ;;  %v5008_v32 = vshll.u32 %v4900_v49, 16  ;;  %v5013_v23 = vshrl.u32 %v4901_v34, 16  ;;  %v5016_v16 = vshll.u32 %v4901_v34, 16  ;;  %v4905_v49 = vld [vmem:[#allocation2 + $0x4c] sm:$0xf] }
 0x13c   : > { %v13111_v38 = vcombine.low %v4051_v26, %v4054_v42  ;;  %v16257_v57 = vpop.f32.mrf.mxu1  ;;  %v3460_v15 = vsel %vm15406_vm9, %v3455_v3, %v3459_v50  ;;  %v4996_v6 = vrot.slane %v4995_v36, 4  ;;  %v5004_v17 = vrot.slane %v5002_v60, 4 }
 0x13d   : > { %v13055_v27 = vcombine.low %v3450_v43, %v3460_v15  ;;  %v5022_v9 = vshll.u32 %v4902_v11, 16  ;;  %v5015_v26 = vrot.slane %v5013_v23, 4  ;;  %v5018_v63 = vrot.slane %v5016_v16, 5  ;;  %v4907_v23 = vld [vmem:[#allocation2 + $0x54] sm:$0xf]  ;;  %v15140_v16 = vld [vmem:[#allocation2 + $0x24] sm:$0xff]  }
 0x13e   : > { %14455 = vmatmul.mubr.bf16.gmra.mxu1 %v13111_v38  ;;  %v5026_v19 = vshrl.u32 %v4902_v11, 16  ;;  %v5005_v44 = vor.u32 %v5004_v17, %v5000_v47  ;;  %v5010_v1 = vrot.slane %v5008_v32, 5  ;;  %v5032_v3 = vshll.u32 %v4903_v51, 16  ;;  %v16263_v42 = vpop.f32.mrf.mxu1  ;;  %v4908_v17 = vld [vmem:[#allocation2 + $0x58] sm:$0xf] }
 0x13f   : > { %v16261_v46 = vpop.f32.mrf.mxu0  ;;  %14522 = vmatprep.mubr.bf16.mxu1 %v13176_v28  ;;  %14407 = vmatmul.mubr.bf16.gmra.mxu0 %v13055_v27  ;;  %v5024_v50 = vrot.slane %v5022_v9, 5  ;;  %v13177_v34 = vcombine.low %v4977_v18, %v4987_v53  ;;  %v5001_v36 = vsel %vm15406_vm9, %v4996_v6, %v5000_v47  ;;  %v5019_v43 = vor.u32 %v5018_v63, %v5015_v26  ;;  %v4906_v28 = vld [vmem:[#allocation2 + $0x50] sm:$0x1] }
 0x140   : > { %14474 = vmatprep.mubr.bf16.mxu0 %v15139_v33  ;;  %v5028_v38 = vrot.slane %v5026_v19, 4  ;;  %v5006_v11 = vrot.slane %v5005_v44, 4  ;;  %v5034_v15 = vrot.slane %v5032_v3, 5  ;;  %v16271_v32 = vadd.f32 %v16162_v59, %v16138_v55  ;;  %v15142_v47 = vld [vmem:[#allocation2 + $0x30] sm:$0xff]   ;;  %v4909_v19 = vld [vmem:[#allocation2 + $0x5c] sm:$0x1]  ;;  %v16275_v44 = vpop.f32.mrf.mxu1 }
 0x141   : > { %v16267_v60 = vpop.f32.mrf.mxu0  ;;  %v5037_v51 = vshrl.u32 %v4904_v21, 16  ;;  %v5020_v27 = vrot.slane %v5019_v43, 4  ;;  %v5040_v18 = vshll.u32 %v4904_v21, 16  ;;  %v5046_v53 = vshll.u32 %v4905_v49, 16  ;;  %19374 = vst [vmem:[#allocation18_spill] sm:$0xff] %v16275_v44  ;;  %v15144_v21 = vld [vmem:[%s19332_s1 + $0x230] sm:$0xff]  }
 0x142   : > { %v5029_v33 = vor.u32 %v5028_v38, %v5024_v50  ;;  %v5011_v6 = vsel %vm15406_vm9, %v5006_v11, %v5010_v1  ;;  %v5050_v26 = vshrl.u32 %v4905_v49, 16  ;;  %v5056_v63 = vshll.u32 %v4906_v28, 16  ;;  %v4910_v44 = vld [vmem:[#allocation2 + $0x60] sm:$0xf] }
 0x143   : > { %v5039_v9 = vrot.slane %v5037_v51, 4  ;;  %v13178_v55 = vcombine.low %v5001_v36, %v5011_v6  ;;  %v5025_v59 = vsel %vm15406_vm9, %v5020_v27, %v5024_v50  ;;  %v5042_v43 = vrot.slane %v5040_v18, 5  ;;  %v16279_v38 = vpop.f32.mrf.mxu0 }
 0x144   : > { %v5030_v3 = vrot.slane %v5029_v33, 4  ;;  %v5048_v1 = vrot.slane %v5046_v53, 5  ;;  %v5052_v11 = vrot.slane %v5050_v26, 4  ;;  %v5058_v49 = vrot.slane %v5056_v63, 5 }
 0x145   : > { %v16286_v28 = vadd.f32 %v16168_v0, %v16142_v5  ;;  %v5043_v36 = vor.u32 %v5042_v43, %v5039_v9  ;;  %v5061_v51 = vshrl.u32 %v4907_v23, 16  ;;  %v5064_v27 = vshll.u32 %v4907_v23, 16  ;;  %v15147_v23 = vld [vmem:[%s19332_s1 + $0x228] sm:$0xff]  }
 0x146   : > { %14523 = vmatmul.mubr.bf16.vlgmr.msra.gmra.mxu1 %v13177_v34  ;;  %v5035_v50 = vsel %vm15406_vm9, %v5030_v3, %v5034_v15  ;;  %v5053_v33 = vor.u32 %v5052_v11, %v5048_v1  ;;  %v5070_v18 = vshll.u32 %v4908_v17, 16  ;;  %v5074_v6 = vshrl.u32 %v4908_v17, 16  ;;  %v16293_v15 = vpop.f32.mrf.mxu0  ;;  %v4913_v11 = vld [vmem:[#allocation2 + $0x6c] sm:$0xf] }
 0x147   : > { %14526 = vmatprep.mubr.bf16.mxu1 %v13178_v55  ;;  %14475 = vmatmul.mubr.bf16.vlgmr.msra.gmra.mxu0 %v15140_v16  ;;  %v13179_v34 = vcombine.low %v5025_v59, %v5035_v50  ;;  %v5044_v5 = vrot.slane %v5043_v36, 4  ;;  %v5063_v0 = vrot.slane %v5061_v51, 4  ;;  %v5066_v26 = vrot.slane %v5064_v27, 5  ;;  %v4911_v55 = vld [vmem:[#allocation2 + $0x64] sm:$0xf]  ;;  %19375 = vst [vmem:[#allocation19_spill] sm:$0xff] %v16293_v15 }
 0x148   : > { %14555 = vmatpush3.bf16.msra.mxu0 %v16088_v8  ;;  %14478 = vmatprep.mubr.bf16.mxu0 %v15142_v47  ;;  %v5080_v63 = vshll.u32 %v4909_v19, 16  ;;  %v5054_v16 = vrot.slane %v5053_v33, 4  ;;  %v5072_v17 = vrot.slane %v5070_v18, 5  ;;  %v5076_v9 = vrot.slane %v5074_v6, 4  ;;  %v4912_v8 = vld [vmem:[#allocation2 + $0x68] sm:$0x1] }
 0x149   : > { %14556 = vmatprep.subr.bf16.mxu0 %v15144_v21  ;;  %v16300_v59 = vadd.f32 %v16174_v61, %v16152_v7  ;;  %v15143_v47 = vld [vmem:[#allocation2 + $0x3c] sm:$0xff]   ;;  %v5049_v19 = vsel %vm15406_vm9, %v5044_v5, %v5048_v1  ;;  %v5067_v3 = vor.u32 %v5066_v26, %v5063_v0  ;;  %v15145_v50 = vld [vmem:[#allocation2 + $0x48] sm:$0xff]   ;;  %v16308_v27 = vadd.f32 %v16200_v31, %v16170_v4  ;;  %v4914_v7 = vld [vmem:[#allocation2 + $0x70] sm:$0xf] }
 0x14a   : > { %v5082_v43 = vrot.slane %v5080_v63, 5  ;;  %v5059_v36 = vsel %vm15406_vm9, %v5054_v16, %v5058_v49  ;;  %v5077_v51 = vor.u32 %v5076_v9, %v5072_v17  ;;  %v5085_v33 = vshrl.u32 %v4910_v44, 16  ;;  %v15150_v1 = vld [vmem:[%s19332_s1 + $0x220] sm:$0xff]  }
 0x14b   : > { %v16290_v53 = vpop.f32.mrf.mxu1  ;;  %v13180_v18 = vcombine.low %v5049_v19, %v5059_v36  ;;  %v5068_v6 = vrot.slane %v5067_v3, 4  ;;  %v5088_v5 = vshll.u32 %v4910_v44, 16  ;;  %v5094_v0 = vshll.u32 %v4911_v55, 16  ;;  %v4915_v44 = vld [vmem:[#allocation2 + $0x74] sm:$0x1] }
 0x14c   : > { %14557 = vmatpush3.bf16.msra.mxu0 %v15144_v21  ;;  %v5078_v49 = vrot.slane %v5077_v51, 4  ;;  %v5087_v4 = vrot.slane %v5085_v33, 4  ;;  %v5098_v31 = vshrl.u32 %v4911_v55, 16  ;;  %v5104_v63 = vshll.u32 %v4912_v8, 16 }
 0x14d   : > { %v16310_v61 = vpop.f32.mrf.mxu1  ;;  %14558 = vmatprep.subr.bf16.mxu0 %v15147_v23  ;;  %v5073_v21 = vsel %vm15406_vm9, %v5068_v6, %v5072_v17  ;;  %v5090_v16 = vrot.slane %v5088_v5, 5  ;;  %v5096_v9 = vrot.slane %v5094_v0, 5  ;;  %v16321_v19 = vadd.f32 %v16211_v40, %v16180_v10  ;;  %v4916_v6 = vld [vmem:[#allocation2 + $0x78] sm:$0xf] }
 0x14e   : > { %14527 = vmatmul.mubr.bf16.gmra.mxu1 %v13179_v34  ;;  %v5083_v34 = vsel %vm15406_vm9, %v5078_v49, %v5082_v43  ;;  %v5100_v3 = vrot.slane %v5098_v31, 4  ;;  %v5106_v36 = vrot.slane %v5104_v63, 5  ;;  %v5109_v51 = vshrl.u32 %v4913_v11, 16  ;;  %v15153_v43 = vld [vmem:[%s19332_s1 + $0x218] sm:$0xff]  }
 0x14f   : > { %v16315_v26 = vpop.f32.mrf.mxu0  ;;  %14530 = vmatprep.mubr.bf16.mxu1 %v13180_v18  ;;  %14479 = vmatmul.mubr.bf16.gmra.mxu0 %v15143_v47  ;;  %v16325_v55 = vpop.f32.mrf.mxu1  ;;  %v13181_v8 = vcombine.low %v5073_v21, %v5083_v34  ;;  %v5091_v17 = vor.u32 %v5090_v16, %v5087_v4  ;;  %v5112_v33 = vshll.u32 %v4913_v11, 16  ;;  %v5118_v18 = vshll.u32 %v4914_v7, 16  ;;  %v4917_v49 = vld [vmem:[#allocation2 + $0x7c] sm:$0xf]  ;;  %v4918_v4 = vld [vmem:[#allocation2 + $0x80] sm:$0x1] }
 0x150   : > { %14482 = vmatprep.mubr.bf16.mxu0 %v15145_v50  ;;  %14559 = vmatpush3.bf16.msra.mxu0 %v15147_v23  ;;  %v5101_v10 = vor.u32 %v5100_v3, %v5096_v9  ;;  %v5111_v40 = vrot.slane %v5109_v51, 4  ;;  %v5122_v47 = vshrl.u32 %v4914_v7, 16  ;;  %v5128_v0 = vshll.u32 %v4915_v44, 16  ;;  %v15146_v63 = vld [vmem:[#allocation2 + $0x54] sm:$0xff]   ;;  %v4919_v3 = vld [vmem:[#allocation2 + $0x84] sm:$0xf] }
 0x151   : > { %v16327_v5 = vpop.f32.mrf.mxu0  ;;  %14560 = vmatprep.subr.bf16.mxu0 %v15150_v1  ;;  %v5092_v31 = vrot.slane %v5091_v17, 4  ;;  %v5114_v50 = vrot.slane %v5112_v33, 5  ;;  %v5120_v23 = vrot.slane %v5118_v18, 5  ;;  %v16334_v11 = vadd.f32 %v16225_v41, %v16194_v37  ;;  %v16336_v7 = vpop.f32.mrf.mxu1  ;;  %v15148_v44 = vld [vmem:[#allocation2 + $0x60] sm:$0xff]  }
 0x152   : > { %v5102_v21 = vrot.slane %v5101_v10, 4  ;;  %v5124_v16 = vrot.slane %v5122_v47, 4  ;;  %v5130_v34 = vrot.slane %v5128_v0, 5  ;;  %19376 = vst [vmem:[#allocation20_spill] sm:$0xff] %v16336_v7  ;;  %v16342_v33 = vadd.f32 %v16240_v29, %v16216_v58  ;;  %v15156_v58 = vld [vmem:[%s19332_s1 + $0x210] sm:$0xff]  }
 0x153   : > { %v5097_v51 = vsel %vm15406_vm9, %v5092_v31, %v5096_v9  ;;  %v5115_v17 = vor.u32 %v5114_v50, %v5111_v40  ;;  %v5133_v37 = vshrl.u32 %v4916_v6, 16  ;;  %v16344_v41 = vpop.f32.mrf.mxu0  ;;  %v5136_v47 = vshll.u32 %v4916_v6, 16  ;;  %v4920_v50 = vld [vmem:[#allocation2 + $0x88] sm:$0xf] }
 0x154   : > { %14561 = vmatpush3.bf16.msra.mxu0 %v15150_v1  ;;  %v5107_v18 = vsel %vm15406_vm9, %v5102_v21, %v5106_v36  ;;  %v5125_v10 = vor.u32 %v5124_v16, %v5120_v23  ;;  %v5142_v0 = vshll.u32 %v4917_v49, 16  ;;  %v5146_v1 = vshrl.u32 %v4917_v49, 16  ;;  %v4921_v21 = vld [vmem:[#allocation2 + $0x8c] sm:$0x1] }
 0x155   : > { %14562 = vmatprep.subr.bf16.mxu0 %v15153_v43  ;;  %v13182_v7 = vcombine.low %v5097_v51, %v5107_v18  ;;  %v5116_v15 = vrot.slane %v5115_v17, 4  ;;  %v5135_v9 = vrot.slane %v5133_v37, 4  ;;  %v5138_v40 = vrot.slane %v5136_v47, 5  ;;  %v15149_v51 = vld [vmem:[#allocation2 + $0x6c] sm:$0xff]   ;;  %v4923_v47 = vld [vmem:[#allocation2 + $0x94] sm:$0xf] }
 0x156   : > { %14531 = vmatmul.mubr.bf16.gmra.mxu1 %v13181_v8  ;;  %v5126_v29 = vrot.slane %v5125_v10, 4  ;;  %v5144_v31 = vrot.slane %v5142_v0, 5  ;;  %v5152_v8 = vshll.u32 %v4918_v4, 16  ;;  %v5148_v6 = vrot.slane %v5146_v1, 4 }
 0x157   : > { %14483 = vmatmul.mubr.bf16.gmra.mxu0 %v15146_v63  ;;  %14534 = vmatprep.mubr.bf16.mxu1 %v13182_v7  ;;  %v5121_v36 = vsel %vm15406_vm9, %v5116_v15, %v5120_v23  ;;  %v16357_v49 = vadd.f32 %v16257_v57, %v16227_v62  ;;  %v5157_v16 = vshrl.u32 %v4919_v3, 16  ;;  %v16359_v63 = vpop.f32.mrf.mxu0  ;;  %v5139_v17 = vor.u32 %v5138_v40, %v5135_v9  ;;  %v15159_v15 = vld [vmem:[%s19332_s1 + $0x208] sm:$0xff]   ;;  %v15151_v62 = vld [vmem:[#allocation2 + $0x78] sm:$0xff]  }
 0x158   : > { %14486 = vmatprep.mubr.bf16.mxu0 %v15148_v44  ;;  %19377 = vst [vmem:[#allocation21_spill] sm:$0xff] %v16359_v63  ;;  %v5131_v4 = vsel %vm15406_vm9, %v5126_v29, %v5130_v34  ;;  %v5154_v37 = vrot.slane %v5152_v8, 5  ;;  %14563 = vmatpush3.bf16.msra.mxu0 %v15153_v43  ;;  %v5160_v7 = vshll.u32 %v4919_v3, 16  ;;  %v4922_v44 = vld [vmem:[#allocation2 + $0x90] sm:$0xf]  ;;  %v5149_v57 = vor.u32 %v5148_v6, %v5144_v31 }
 0x159   : > { %v13183_v23 = vcombine.low %v5121_v36, %v5131_v4  ;;  %v5159_v18 = vrot.slane %v5157_v16, 4  ;;  %v5166_v10 = vshll.u32 %v4920_v50, 16  ;;  %14564 = vmatprep.subr.bf16.mxu0 %v15156_v58  ;;  %v5140_v0 = vrot.slane %v5139_v17, 4  ;;  %v4924_v16 = vld [vmem:[#allocation2 + $0x98] sm:$0x1]  ;;  %v15162_v4 = vld [vmem:[%s19332_s1 + $0x200] sm:$0xff]  }
 0x15a   : > { %v5162_v1 = vrot.slane %v5160_v7, 5  ;;  %v5170_v63 = vshrl.u32 %v4920_v50, 16  ;;  %v5176_v34 = vshll.u32 %v4921_v21, 16  ;;  %v16370_v43 = vadd.f32 %v16056_v30, %v15997_v14 }
 0x15b   : > { %v5150_v3 = vrot.slane %v5149_v57, 4  ;;  %v5168_v29 = vrot.slane %v5166_v10, 5  ;;  %v16374_v40 = vadd.f32 %v16263_v42, %v16233_v48  ;;  %v5145_v36 = vsel %vm15406_vm9, %v5140_v0, %v5144_v31  ;;  %v4927_v10 = vld [vmem:[#allocation2 + $0xa4] sm:$0x1] }
 0x15c   : > { %v5163_v50 = vor.u32 %v5162_v1, %v5159_v18  ;;  %v5172_v6 = vrot.slane %v5170_v63, 4  ;;  %v5178_v21 = vrot.slane %v5176_v34, 5  ;;  %14565 = vmatpush3.bf16.msra.mxu0 %v15156_v58  ;;  %v16384_v30 = vadd.f32 %v16290_v53, %v16261_v46 }
 0x15d   : > { %v16351_v52 = vpop.f32.mrf.mxu1  ;;  %v5155_v14 = vsel %vm15406_vm9, %v5150_v3, %v5154_v37  ;;  %v5181_v48 = vshrl.u32 %v4922_v44, 16  ;;  %v5184_v42 = vshll.u32 %v4922_v44, 16  ;;  %14566 = vmatprep.subr.bf16.mxu0 %v15159_v15  ;;  %v5190_v7 = vshll.u32 %v4923_v47, 16  ;;  %v4926_v37 = vld [vmem:[#allocation2 + $0xa0] sm:$0xf] }
 0x15e   : > { %14535 = vmatmul.mubr.bf16.gmra.mxu1 %v13183_v23  ;;  %v13184_v63 = vcombine.low %v5145_v36, %v5155_v14  ;;  %v5164_v17 = vrot.slane %v5163_v50, 4  ;;  %v5173_v58 = vor.u32 %v5172_v6, %v5168_v29  ;;  %v4925_v23 = vld [vmem:[#allocation2 + $0x9c] sm:$0xf]  ;;  %v5194_v44 = vshrl.u32 %v4923_v47, 16  ;;  %v15152_v36 = vld [vmem:[#allocation2 + $0x84] sm:$0xff]  }
 0x15f   : > { %v16366_v9 = vpop.f32.mrf.mxu1  ;;  %14487 = vmatmul.mubr.bf16.gmra.mxu0 %v15149_v51  ;;  %v5183_v46 = vrot.slane %v5181_v48, 4  ;;  %v5186_v53 = vrot.slane %v5184_v42, 5  ;;  %v5200_v18 = vshll.u32 %v4924_v16, 16  ;;  %v5192_v34 = vrot.slane %v5190_v7, 5  ;;  %v15154_v48 = vld [vmem:[#allocation2 + $0x90] sm:$0xff]  }
 0x160   : > { %14490 = vmatprep.mubr.bf16.mxu0 %v15151_v62  ;;  %14538 = vmatprep.mubr.bf16.mxu1 %v13184_v63  ;;  %v5169_v51 = vsel %vm15406_vm9, %v5164_v17, %v5168_v29  ;;  %v5174_v1 = vrot.slane %v5173_v58, 4  ;;  %v16399_v3 = vadd.f32 %v16310_v61, %v16267_v60  ;;  %v5196_v50 = vrot.slane %v5194_v44, 4  ;;  %v4928_v17 = vld [vmem:[#allocation2 + $0xa8] sm:$0xf] }
 0x161   : > { %v16391_v57 = vpop.f32.mrf.mxu1  ;;  %14567 = vmatpush3.bf16.msra.mxu0 %v15159_v15  ;;  %v5187_v62 = vor.u32 %v5186_v53, %v5183_v46  ;;  %v5202_v6 = vrot.slane %v5200_v18, 5  ;;  %v5205_v47 = vshrl.u32 %v4925_v23, 16  ;;  %v5208_v29 = vshll.u32 %v4925_v23, 16 }
 0x162   : > { %v16376_v8 = vpop.f32.mrf.mxu0  ;;  %19378 = vst [vmem:[#allocation22_spill] sm:$0xff] %v16399_v3  ;;  %14568 = vmatprep.subr.bf16.mxu0 %v15162_v4  ;;  %v5179_v14 = vsel %vm15406_vm9, %v5174_v1, %v5178_v21  ;;  %v5214_v42 = vshll.u32 %v4926_v37, 16  ;;  %v5218_v63 = vshrl.u32 %v4926_v37, 16  ;;  %v5197_v15 = vor.u32 %v5196_v50, %v5192_v34  ;;  %v4929_v3 = vld [vmem:[#allocation2 + $0xac] sm:$0xf] }
 0x163   : > { %v16405_v58 = vpop.f32.mrf.mxu1  ;;  %v13185_v60 = vcombine.low %v5169_v51, %v5179_v14  ;;  %v5188_v61 = vrot.slane %v5187_v62, 4  ;;  %v5207_v7 = vrot.slane %v5205_v47, 4  ;;  %v5210_v53 = vrot.slane %v5208_v29, 5 }
 0x164   : > { %v16389_v31 = vpop.f32.mrf.mxu0  ;;  %19380 = vst [vmem:[#allocation24_spill] sm:$0xff] %v16405_v58  ;;  %v5216_v44 = vrot.slane %v5214_v42, 5  ;;  %v5220_v18 = vrot.slane %v5218_v63, 4  ;;  %v16411_v21 = vadd.f32 %v16072_v54, %v16014_v35  ;;  %v5198_v37 = vrot.slane %v5197_v15, 4  ;;  %v4930_v35 = vld [vmem:[#allocation2 + $0xb0] sm:$0x1] }
 0x165   : > { %14569 = vmatpush3.bf16.msra.mxu0 %v15162_v4  ;;  %v5193_v23 = vsel %vm15406_vm9, %v5188_v61, %v5192_v34  ;;  %v16417_v51 = vadd.f32 %v16325_v55, %v16279_v38  ;;  %v5211_v62 = vor.u32 %v5210_v53, %v5207_v7  ;;  %v16423_v4 = vadd.f32 %v16351_v52, %v16315_v26 }
 0x166   : > { %v16393_v0 = vpop.f32.mrf.mxu0  ;;  %14539 = vmatmul.mubr.bf16.gmra.mxu1 %v13185_v60  ;;  %v5203_v34 = vsel %vm15406_vm9, %v5198_v37, %v5202_v6  ;;  %v5229_v47 = vshrl.u32 %v4928_v17, 16  ;;  %v5232_v14 = vshll.u32 %v4928_v17, 16  ;;  %v5238_v38 = vshll.u32 %v4929_v3, 16  ;;  %v15155_v6 = vld [vmem:[#allocation2 + $0x9c] sm:$0xff]  }
 0x167   : > { %14491 = vmatmul.mubr.bf16.gmra.mxu0 %v15152_v36  ;;  %19381 = vst [vmem:[#allocation25_spill] sm:$0xff] %v16423_v4  ;;  %v13186_v29 = vcombine.low %v5193_v23, %v5203_v34  ;;  %v5212_v36 = vrot.slane %v5211_v62, 4  ;;  %v5242_v63 = vshrl.u32 %v4929_v3, 16  ;;  %v5248_v15 = vshll.u32 %v4930_v35, 16  ;;  %v4933_v23 = vld [vmem:[#allocation2 + $0xbc] sm:$0x1] }
 0x168   : > { %v16401_v16 = vpop.f32.mrf.mxu0  ;;  %14494 = vmatprep.mubr.bf16.mxu0 %v15154_v48  ;;  %v5231_v52 = vrot.slane %v5229_v47, 4  ;;  %v5234_v26 = vrot.slane %v5232_v14, 5  ;;  %v5240_v61 = vrot.slane %v5238_v38, 5  ;;  %v4932_v48 = vld [vmem:[#allocation2 + $0xb8] sm:$0xf]  ;;  %v16439_v3 = vadd.f32 %v16366_v9, %v16327_v5 }
 0x169   : > { %19379 = vst [vmem:[#allocation23_spill] sm:$0xff] %v16401_v16  ;;  %v5224_v16 = vshll.u32 %v4927_v10, 16  ;;  %v5221_v10 = vor.u32 %v5220_v18, %v5216_v44  ;;  %14542 = vmatprep.mubr.bf16.mxu1 %v13186_v29  ;;  %v5217_v17 = vsel %vm15406_vm9, %v5212_v36, %v5216_v44  ;;  %v5244_v18 = vrot.slane %v5242_v63, 4 }
 0x16a   : > { %v16407_v46 = vpop.f32.mrf.mxu0  ;;  %19383 = vst [vmem:[#allocation27_spill] sm:$0xff] %v16439_v3  ;;  %v5235_v35 = vor.u32 %v5234_v26, %v5231_v52  ;;  %v5250_v34 = vrot.slane %v5248_v15, 5  ;;  %v5262_v29 = vshll.u32 %v4932_v48, 16  ;;  %v5266_v36 = vshrl.u32 %v4932_v48, 16 }
 0x16b   : > { %v5226_v50 = vrot.slane %v5224_v16, 5  ;;  %v5222_v42 = vrot.slane %v5221_v10, 4  ;;  %v4931_v16 = vld [vmem:[#allocation2 + $0xb4] sm:$0xf]  ;;  %v15157_v10 = vld [vmem:[#allocation2 + $0xa8] sm:$0xff]   ;;  %v5245_v38 = vor.u32 %v5244_v18, %v5240_v61  ;;  %v5272_v9 = vshll.u32 %v4933_v23, 16 }
 0x16c   : > { %v16419_v1 = vpop.f32.mrf.mxu0  ;;  %v5253_v47 = vshrl.u32 %v4931_v16, 16  ;;  %v5256_v44 = vshll.u32 %v4931_v16, 16  ;;  %v16449_v63 = vadd.f32 %v16391_v57, %v16344_v41  ;;  %v5268_v16 = vrot.slane %v5266_v36, 4  ;;  %v4935_v18 = vld [vmem:[#allocation2 + $0xc4] sm:$0xf] }
 0x16d   : > { %v5227_v53 = vsel %vm15406_vm9, %v5222_v42, %v5226_v50  ;;  %v5236_v42 = vrot.slane %v5235_v35, 4  ;;  %v5246_v26 = vrot.slane %v5245_v38, 4  ;;  %v5274_v57 = vrot.slane %v5272_v9, 5 }
 0x16e   : > { %v14264_v54 = vpop.f32.mrf.mxu1  ;;  %v16427_v55 = vpop.f32.mrf.mxu0  ;;  %v13187_v62 = vcombine.low %v5217_v17, %v5227_v53  ;;  %v5255_v5 = vrot.slane %v5253_v47, 4  ;;  %19385 = vst [vmem:[#allocation29_spill] sm:$0xff] %v16449_v63  ;;  %v4934_v17 = vld [vmem:[#allocation2 + $0xc0] sm:$0xf]  ;;  %v5258_v15 = vrot.slane %v5256_v44, 5  ;;  %v5264_v53 = vrot.slane %v5262_v29, 5 }
 0x16f   : > { %14495 = vmatmul.mubr.bf16.gmra.mxu0 %v15155_v6  ;;  %v5241_v41 = vsel %vm15406_vm9, %v5236_v42, %v5240_v61  ;;  %v16462_v23 = vadd.f32 %v14264_v54, %v16376_v8  ;;  %v4936_v6 = vld [vmem:[#allocation2 + $0xc8] sm:$0x1]  ;;  %v5251_v47 = vsel %vm15406_vm9, %v5246_v26, %v5250_v34  ;;  %v5277_v29 = vshrl.u32 %v4934_v17, 16  ;;  %v4937_v42 = vld [vmem:[#allocation2 + $0xcc] sm:$0xf]  ;;  %v15160_v34 = vld [vmem:[#allocation2 + $0xc0] sm:$0xff]  }
 0x170   : > { %v16429_v60 = vpop.f32.mrf.mxu1  ;;  %v16431_v7 = vpop.f32.mrf.mxu0  ;;  %14543 = vmatmul.mubr.bf16.gmra.mxu1 %v13187_v62  ;;  %v16457_v62 = vadd.f32 %v16099_v25, %v16048_v2  ;;  %14498 = vmatprep.mubr.bf16.mxu0 %v15157_v10  ;;  %v5259_v38 = vor.u32 %v5258_v15, %v5255_v5  ;;  %v5269_v44 = vor.u32 %v5268_v16, %v5264_v53  ;;  %v15158_v2 = vld [vmem:[#allocation2 + $0xb4] sm:$0xff]   ;;  %v5280_v10 = vshll.u32 %v4934_v17, 16 }
 0x171   : > { %19382 = vst [vmem:[#allocation26_spill] sm:$0xff] %v16431_v7  ;;  %19386 = vst [vmem:[#allocation30_spill] sm:$0xff] %v16462_v23  ;;  %v13188_v25 = vcombine.low %v5241_v41, %v5251_v47  ;;  %v5290_v61 = vshrl.u32 %v4935_v18, 16  ;;  %v5279_v58 = vrot.slane %v5277_v29, 4  ;;  %v5296_v7 = vshll.u32 %v4936_v6, 16 }
 0x172   : > { %v16441_v37 = vpop.f32.mrf.mxu1  ;;  %v16443_v14 = vpop.f32.mrf.mxu0  ;;  %v5260_v8 = vrot.slane %v5259_v38, 4  ;;  %v5270_v54 = vrot.slane %v5269_v44, 4  ;;  %v4938_v23 = vld [vmem:[#allocation2 + $0xd0] sm:$0xf]  ;;  %v5282_v5 = vrot.slane %v5280_v10, 5  ;;  %v16476_v17 = vadd.f32 %v16429_v60, %v16389_v31 }
 0x173   : > { %14546 = vmatprep.mubr.bf16.mxu1 %v13188_v25  ;;  %v5292_v15 = vrot.slane %v5290_v61, 4  ;;  %v4939_v16 = vld [vmem:[#allocation2 + $0xd4] sm:$0x1]  ;;  %v5298_v47 = vrot.slane %v5296_v7, 5  ;;  %v5301_v38 = vshrl.u32 %v4937_v42, 16  ;;  %v5304_v10 = vshll.u32 %v4937_v42, 16 }
 0x174   : > { %v16445_v50 = vpop.f32.mrf.mxu1  ;;  %v16451_v52 = vpop.f32.mrf.mxu0  ;;  %19388 = vst [vmem:[#allocation32_spill] sm:$0xff] %v16476_v17  ;;  %v5265_v41 = vsel %vm15406_vm9, %v5260_v8, %v5264_v53  ;;  %v5275_v6 = vsel %vm15406_vm9, %v5270_v54, %v5274_v57  ;;  %v5710_v61 = vld [vmem:[#allocation2 + $0x18] sm:$0xe]  ;;  %v5711_v31 = vld [vmem:[#allocation2 + $0x1c] sm:$0xf]  ;;  %v5310_v17 = vshll.u32 %v4938_v23, 16 }
 0x175   : > { %19384 = vst [vmem:[#allocation28_spill] sm:$0xff] %v16445_v50  ;;  %v5286_v50 = vshll.u32 %v4935_v18, 16  ;;  %v13189_v29 = vcombine.low %v5265_v41, %v5275_v6  ;;  %v5314_v3 = vshrl.u32 %v4938_v23, 16  ;;  %v5320_v53 = vshll.u32 %v4939_v16, 16  ;;  %v5712_v8 = vld [vmem:[#allocation2 + $0x20] sm:$0x1] }
 0x176   : > { %v16453_v48 = vpop.f32.mrf.mxu1  ;;  %v16464_v35 = vpop.f32.mrf.mxu0  ;;  %v5306_v54 = vrot.slane %v5304_v10, 5  ;;  %v5713_v42 = vld [vmem:[#allocation2 + $0x24] sm:$0xe]  ;;  %v5312_v23 = vrot.slane %v5310_v17, 5  ;;  %v5714_v41 = vld [vmem:[#allocation2 + $0x28] sm:$0xf] }
 0x177   : > { %v5288_v26 = vrot.slane %v5286_v50, 5  ;;  %v5283_v50 = vor.u32 %v5282_v5, %v5279_v58  ;;  %14499 = vmatmul.mubr.bf16.gmra.mxu0 %v15158_v2  ;;  %v16492_v58 = vadd.f32 %v16441_v37, %v16393_v0  ;;  %v1924_v2 = vadd.f32 %v16118_v20, %v16077_v24 }
 0x178   : > { %v16468_v36 = vpop.f32.mrf.mxu1  ;;  %v16470_v9 = vpop.f32.mrf.mxu0  ;;  %14547 = vmatmul.mubr.bf16.gmra.mxu1 %v13189_v29  ;;  %14502 = vmatprep.mubr.bf16.mxu0 %v15160_v34  ;;  %v5322_v16 = vrot.slane %v5320_v53, 5  ;;  %v13200_v37 = vrot.slane %v5710_v61, 9  ;;  %v5715_v29 = vld [vmem:[#allocation2 + $0x2c] sm:$0x1]  ;;  %v5808_v20 = vrot.slane %v5711_v31, 5 }
 0x179   : > { %19387 = vst [vmem:[#allocation31_spill] sm:$0xff] %v16470_v9  ;;  %v5293_v25 = vor.u32 %v5292_v15, %v5288_v26  ;;  %v5303_v9 = vrot.slane %v5301_v38, 4  ;;  %v5284_v7 = vrot.slane %v5283_v50, 4  ;;  %19390 = vst [vmem:[#allocation34_spill] sm:$0xff] %v16492_v58  ;;  %v5316_v15 = vrot.slane %v5314_v3, 4 }
 0x17a   : > { %v16472_v63 = vpop.f32.mrf.mxu1  ;;  %v16478_v18 = vpop.f32.mrf.mxu0  ;;  %v5811_v3 = vrot.slane %v5712_v8, 5  ;;  %v5810_v61 = vrot.slane %v5808_v20, 4 }
 0x17b   : > { %v5294_v57 = vrot.slane %v5293_v25, 4  ;;  %v5289_v34 = vsel %vm15406_vm9, %v5284_v7, %v5288_v26  ;;  %v5307_v0 = vor.u32 %v5306_v54, %v5303_v9  ;;  %v15161_v25 = vld [vmem:[#allocation2 + $0xcc] sm:$0xff]   ;;  %v5317_v24 = vor.u32 %v5316_v15, %v5312_v23 }
 0x17c   : > { %v16484_v44 = vpop.f32.mrf.mxu1  ;;  %v16486_v60 = vpop.f32.mrf.mxu0  ;;  %v13201_v26 = vrot.slane %v5713_v42, 9  ;;  %v5815_v7 = vrot.slane %v5714_v41, 5  ;;  %v5716_v42 = vld [vmem:[#allocation2 + $0x30] sm:$0xe] }
 0x17d   : > { %19389 = vst [vmem:[#allocation33_spill] sm:$0xff] %v16484_v44  ;;  %v5299_v38 = vsel %vm15406_vm9, %v5294_v57, %v5298_v47  ;;  %v5308_v53 = vrot.slane %v5307_v0, 4  ;;  %v2517_v44 = vadd.f32 %v16407_v46, %v16370_v43  ;;  %v5318_v9 = vrot.slane %v5317_v24, 4  ;;  %v5717_v0 = vld [vmem:[#allocation2 + $0x34] sm:$0xf] }
 0x17e   : > { %v16488_v4 = vpop.f32.mrf.mxu1  ;;  %v16494_v5 = vpop.f32.mrf.mxu0  ;;  %v13190_v10 = vcombine.low %v5289_v34, %v5299_v38  ;;  %v5809_v47 = vsel %vm15758_vm14, %v13200_v37, %v5808_v20  ;;  %v5818_v57 = vrot.slane %v5715_v29, 5  ;;  %v5816_v8 = vsel %vm15758_vm14, %v13201_v26, %v5815_v7  ;;  %v5718_v37 = vld [vmem:[#allocation2 + $0x38] sm:$0x1]  ;;  %v5720_v24 = vld [vmem:[#allocation2 + $0x40] sm:$0xf] }
 0x17f   : > { %v5313_v31 = vsel %vm15406_vm9, %v5308_v53, %v5312_v23  ;;  %v5817_v43 = vrot.slane %v5815_v7, 4  ;;  %v2515_v46 = vadd.f32 %v16419_v1, %v16411_v21  ;;  %14503 = vmatmul.mubr.bf16.gmra.mxu0 %v15161_v25  ;;  %v5323_v41 = vsel %vm15406_vm9, %v5318_v9, %v5322_v16  ;;  %v5721_v20 = vld [vmem:[#allocation2 + $0x44] sm:$0x1] }
 0x180   : > { %v16498_v6 = vpop.f32.mrf.mxu1  ;;  %v16504_v50 = vpop.f32.mrf.mxu0  ;;  %14550 = vmatprep.mubr.bf16.mxu1 %v13190_v10  ;;  %v5812_v34 = vsel %vm15758_vm14, %v5810_v61, %v5811_v3  ;;  %v16529_v38 = vadd.f32 %v16453_v48, %v2517_v44  ;;  %v2518_v23 = vadd.f32 %v16427_v55, %v16457_v62  ;;  %v13191_v21 = vcombine.low %v5313_v31, %v5323_v41  ;;  %v5719_v10 = vld [vmem:[#allocation2 + $0x3c] sm:$0xe] }
 0x181   : > { %v13232_v1 = vcombine.low %v5809_v47, %v5812_v34  ;;  %v5819_v25 = vsel %vm15758_vm14, %v5817_v43, %v5818_v57  ;;  %v16538_v16 = vadd.f32 %v16468_v36, %v2515_v46  ;;  %v1922_v55 = vadd.f32 %v16134_v45, %v16103_v13  ;;  %v5722_v47 = vld [vmem:[#allocation2 + $0x48] sm:$0xe] }
 0x182   : > { %v16506_v17 = vpop.f32.mrf.mxu1  ;;  %v16510_v58 = vpop.f32.mrf.mxu0  ;;  %v1925_v62 = vadd.f32 %v16140_v22, %v16111_v56  ;;  %v16547_v44 = vadd.f32 %v16472_v63, %v2518_v23  ;;  %v13202_v3 = vrot.slane %v5716_v42, 9  ;;  %14551 = vmatmul.mubr.bf16.gmra.mxu1 %v13191_v21  ;;  %v13233_v36 = vcombine.low %v5816_v8, %v5819_v25  ;;  %v5723_v22 = vld [vmem:[#allocation2 + $0x4c] sm:$0xf]  ;;  %v5726_v21 = vld [vmem:[#allocation2 + $0x58] sm:$0xf] }
 0x183   : > { %14570 = vmatprep.mubr.bf16.mxu0 %v13232_v1  ;;  %v5822_v26 = vrot.slane %v5717_v0, 5  ;;  %v5825_v7 = vrot.slane %v5718_v37, 5  ;;  %v2521_v9 = vadd.f32 %v16443_v14, %v1924_v2  ;;  %v13203_v57 = vrot.slane %v5719_v10, 9  ;;  %v5724_v14 = vld [vmem:[#allocation2 + $0x50] sm:$0x1] }
 0x184   : > { %v16514_v54 = vpop.f32.mrf.mxu1  ;;  %v16522_v15 = vpop.f32.mrf.mxu0  ;;  %v5829_v13 = vrot.slane %v5720_v24, 5  ;;  %v5832_v45 = vrot.slane %v5721_v20, 5  ;;  %v2519_v56 = vadd.f32 %v16451_v52, %v1922_v55  ;;  %v2522_v46 = vadd.f32 %v16464_v35, %v1925_v62  ;;  %v5725_v37 = vld [vmem:[#allocation2 + $0x54] sm:$0xe]  ;;  %v5727_v35 = vld [vmem:[#allocation2 + $0x5c] sm:$0x1] }
 0x185   : > { %19391 = vst [vmem:[#allocation35_spill] sm:$0xff] %v16514_v54  ;;  %v5823_v31 = vsel %vm15758_vm14, %v13202_v3, %v5822_v26  ;;  %v5824_v43 = vrot.slane %v5822_v26, 4  ;;  %v16556_v8 = vadd.f32 %v16488_v4, %v2521_v9  ;;  %v13204_v0 = vrot.slane %v5722_v47, 9  ;;  %v5729_v24 = vld [vmem:[#allocation2 + $0x64] sm:$0xf] }
 0x186   : > { %v16533_v29 = vpop.f32.mrf.mxu1  ;;  %v16540_v48 = vpop.f32.mrf.mxu0  ;;  %v5831_v42 = vrot.slane %v5829_v13, 4  ;;  %v16562_v41 = vadd.f32 %v16498_v6, %v2519_v56  ;;  %v16569_v23 = vadd.f32 %v16506_v17, %v2522_v46  ;;  %v5836_v4 = vrot.slane %v5723_v22, 5  ;;  %v5728_v3 = vld [vmem:[#allocation2 + $0x60] sm:$0xe] }
 0x187   : > { %v5826_v52 = vsel %vm15758_vm14, %v5824_v43, %v5825_v7  ;;  %14571 = vmatmul.mubr.bf16.vlgmr.msra.gmra.mxu0 %v13233_v36  ;;  %v5839_v10 = vrot.slane %v5724_v14, 5  ;;  %v2525_v6 = vadd.f32 %v16478_v18, %v16271_v32  ;;  %v5830_v55 = vsel %vm15758_vm14, %v13203_v57, %v5829_v13  ;;  %v5730_v18 = vld [vmem:[#allocation2 + $0x68] sm:$0x1] }
 0x188   : > { %v2838_v53 = vpop.f32.mrf.mxu1  ;;  %v16550_v61 = vpop.f32.mrf.mxu0  ;;  %v13234_v25 = vcombine.low %v5823_v31, %v5826_v52  ;;  %v5833_v17 = vsel %vm15758_vm14, %v5831_v42, %v5832_v45  ;;  %v5838_v62 = vrot.slane %v5836_v4, 4  ;;  %v5837_v36 = vsel %vm15758_vm14, %v13204_v0, %v5836_v4  ;;  %v5732_v52 = vld [vmem:[#allocation2 + $0x70] sm:$0xf] }
 0x189   : > { %v5843_v7 = vrot.slane %v5726_v21, 5  ;;  %v2523_v32 = vadd.f32 %v16486_v60, %v16286_v28  ;;  %v16588_v57 = vadd.f32 %v16533_v29, %v2525_v6  ;;  %v2526_v13 = vadd.f32 %v16494_v5, %v16300_v59  ;;  %v5731_v5 = vld [vmem:[#allocation2 + $0x6c] sm:$0xe]  ;;  %v5735_v21 = vld [vmem:[#allocation2 + $0x7c] sm:$0xf] }
 0x18a   : > { %v14341_v63 = vpop.f32.mrf.mxu1  ;;  %v16559_v2 = vpop.f32.mrf.mxu0  ;;  %14574 = vmatprep.mubr.bf16.mxu0 %v13234_v25  ;;  %v5840_v47 = vsel %vm15758_vm14, %v5838_v62, %v5839_v10  ;;  %v13235_v56 = vcombine.low %v5830_v55, %v5833_v17  ;;  %v13205_v22 = vrot.slane %v5725_v37, 9  ;;  %v5846_v31 = vrot.slane %v5727_v35, 5  ;;  %v5734_v55 = vld [vmem:[#allocation2 + $0x78] sm:$0xe]  ;;  %v5736_v62 = vld [vmem:[#allocation2 + $0x80] sm:$0x1] }
 0x18b   : > { %v16594_v43 = vadd.f32 %v2838_v53, %v2523_v32  ;;  %v13236_v28 = vcombine.low %v5837_v36, %v5840_v47  ;;  %v5845_v60 = vrot.slane %v5843_v7, 4  ;;  %v16596_v14 = vadd.f32 %v14341_v63, %v2526_v13  ;;  %v5733_v53 = vld [vmem:[#allocation2 + $0x74] sm:$0x1] }
 0x18c   : > { %v16564_v34 = vpop.f32.mrf.mxu1  ;;  %v16571_v1 = vpop.f32.mrf.mxu0  ;;  %v5850_v42 = vrot.slane %v5729_v24, 5  ;;  %v13206_v29 = vrot.slane %v5728_v3, 9  ;;  %v5853_v4 = vrot.slane %v5730_v18, 5  ;;  %v2529_v59 = vadd.f32 %v16510_v58, %v16308_v27  ;;  %v16626_v47 = vld [vmem:[#allocation2 + $0x94] sm:$0xf] }
 0x18d   : > { %19392 = vst [vmem:[#allocation36_spill] sm:$0xff] %v16564_v34  ;;  %v5857_v10 = vrot.slane %v5732_v52, 5  ;;  %v2527_v63 = vadd.f32 %v16522_v15, %v16321_v19  ;;  %v2530_v24 = vadd.f32 %v16540_v48, %v16334_v11  ;;  %v5844_v58 = vsel %vm15758_vm14, %v13205_v22, %v5843_v7  ;;  %v16622_v48 = vld [vmem:[#allocation2 + $0x88] sm:$0xf]  ;;  %v5739_v52 = vld [vmem:[#allocation2 + $0x8c] sm:$0x1] }
 0x18e   : > { %v14344_v20 = vpop.f32.mrf.mxu1  ;;  %v16579_v26 = vpop.f32.mrf.mxu0  ;;  %v5852_v37 = vrot.slane %v5850_v42, 4  ;;  %v5847_v17 = vsel %vm15758_vm14, %v5845_v60, %v5846_v31  ;;  %v5851_v36 = vsel %vm15758_vm14, %v13206_v29, %v5850_v42  ;;  %v13207_v32 = vrot.slane %v5731_v5, 9 }
 0x18f   : > { %14575 = vmatmul.mubr.bf16.gmra.mxu0 %v13235_v56  ;;  %v16606_v6 = vadd.f32 %v14344_v20, %v2529_v59  ;;  %v5864_v7 = vrot.slane %v5735_v21, 5  ;;  %v2533_v18 = vadd.f32 %v16559_v2, %v16342_v33  ;;  %v13237_v56 = vcombine.low %v5844_v58, %v5847_v17  ;;  %v5740_v21 = vld [vmem:[#allocation2 + $0x90] sm:$0xe] }
 0x190   : > { %v2854_v9 = vpop.f32.mrf.mxu1  ;;  %v16592_v45 = vpop.f32.mrf.mxu0  ;;  %14578 = vmatprep.mubr.bf16.mxu0 %v13236_v28  ;;  %v5854_v19 = vsel %vm15758_vm14, %v5852_v37, %v5853_v4  ;;  %v5859_v22 = vrot.slane %v5857_v10, 4  ;;  %v5860_v31 = vrot.slane %v5733_v53, 5  ;;  %v5737_v28 = vld [vmem:[#allocation2 + $0x84] sm:$0xe]  ;;  %v5867_v42 = vrot.slane %v5736_v62, 5 }
 0x191   : > { %v16618_v15 = vadd.f32 %v2854_v9, %v2527_v63  ;;  %v13238_v60 = vcombine.low %v5851_v36, %v5854_v19  ;;  %v2531_v29 = vadd.f32 %v16571_v1, %v16357_v49  ;;  %v5866_v59 = vrot.slane %v5864_v7, 4  ;;  %v5742_v63 = vld [vmem:[#allocation2 + $0x98] sm:$0x1]  ;;  %v16644_v1 = vld [vmem:[#allocation2 + $0xa0] sm:$0xf] }
 0x192   : > { %v14345_v46 = vpop.f32.mrf.mxu1  ;;  %v14304_v0 = vpop.f32.mrf.mxu0  ;;  %v5871_v33 = vrot.slane %v16622_v48, 5  ;;  %v2534_v5 = vadd.f32 %v16579_v26, %v16374_v40  ;;  %v5878_v49 = vrot.slane %v16626_v47, 5  ;;  %v5861_v40 = vsel %vm15758_vm14, %v5859_v22, %v5860_v31  ;;  %v19396_v22 = vld [vmem:[#allocation22_spill] sm:$0xff]  ;;  %v16666_v31 = vld [vmem:[#allocation2 + $0xb8] sm:$0xf] }
 0x193   : > { %v16620_v11 = vadd.f32 %v14345_v46, %v2530_v24  ;;  %v13208_v46 = vrot.slane %v5734_v55, 9  ;;  %v13209_v26 = vrot.slane %v5737_v28, 9  ;;  %v2537_v17 = vadd.f32 %v14304_v0, %v16384_v30 }
 0x194   : > { %v16600_v25 = vpop.f32.mrf.mxu1  ;;  %v16602_v35 = vpop.f32.mrf.mxu0  ;;  %v5868_v19 = vsel %vm15758_vm14, %v5866_v59, %v5867_v42  ;;  %v5873_v48 = vrot.slane %v5871_v33, 4  ;;  %v19342_v59 = vrot.slane %v16644_v1, 5 }
 0x195   : > { %19393 = vst [vmem:[#allocation37_spill] sm:$0xff] %v16600_v25  ;;  %v5865_v36 = vsel %vm15758_vm14, %v13208_v46, %v5864_v7  ;;  %v2535_v30 = vadd.f32 %v16602_v35, %v19396_v22  ;;  %v5881_v46 = vrot.slane %v5742_v63, 5  ;;  %v16684_v63 = vld [vmem:[#allocation2 + $0xb4] sm:$0xe] }
 0x196   : > { %v14348_v27 = vpop.f32.mrf.mxu1  ;;  %v14305_v3 = vpop.f32.mrf.mxu0 }
 0x197   : > { %v16633_v2 = vadd.f32 %v14348_v27, %v2533_v18  ;;  %14579 = vmatmul.mubr.bf16.gmra.mxu0 %v13237_v56  ;;  %v5858_v27 = vsel %vm15758_vm14, %v13207_v32, %v5857_v10  ;;  %v16655_v18 = vld [vmem:[#allocation2 + $0x9c] sm:$0xe]  ;;  %v16657_v56 = vld [vmem:[#allocation2 + $0xac] sm:$0xf]  ;;  %v13210_v10 = vrot.slane %v5740_v21, 9  ;;  %v2538_v7 = vadd.f32 %v14305_v3, %v16417_v51 }
 0x198   : > { %v2870_v20 = vpop.f32.mrf.mxu1  ;;  %v16628_v13 = vpop.f32.mrf.mxu0  ;;  %14582 = vmatprep.mubr.bf16.mxu0 %v13238_v60  ;;  %v16659_v32 = vld [vmem:[#allocation2 + $0xa4] sm:$0x1]  ;;  %v5880_v60 = vrot.slane %v5878_v49, 4  ;;  %v16677_v21 = vld [vmem:[#allocation2 + $0xb0] sm:$0x1]  ;;  %v5872_v3 = vsel %vm15758_vm14, %v13209_v26, %v5871_v33  ;;  %v5892_v22 = vrot.slane %v16657_v56, 5 }
 0x199   : > { %19394 = vst [vmem:[#allocation38_spill] sm:$0xff] %v16628_v13  ;;  %v16639_v53 = vadd.f32 %v2870_v20, %v2531_v29  ;;  %v5874_v20 = vrot.slane %v5739_v52, 5  ;;  %v16670_v52 = vld [vmem:[#allocation2 + $0xa8] sm:$0xe]  ;;  %v13240_v29 = vcombine.low %v5865_v36, %v5868_v19  ;;  %v5879_v19 = vsel %vm15758_vm14, %v13210_v10, %v5878_v49  ;;  %v16703_v49 = vld [vmem:[#allocation2 + $0xc8] sm:$0x1] }
 0x19a   : > { %v14349_v9 = vpop.f32.mrf.mxu1  ;;  %v14308_v4 = vpop.f32.mrf.mxu0  ;;  %v5888_v26 = vrot.slane %v16659_v32, 5  ;;  %v13212_v56 = vrot.slane %v16670_v52, 9 }
 0x19b   : > { %v16641_v55 = vadd.f32 %v14349_v9, %v2534_v5  ;;  %v13239_v9 = vcombine.low %v5858_v27, %v5861_v40  ;;  %v5875_v36 = vsel %vm15758_vm14, %v5873_v48, %v5874_v20 }
 0x19c   : > { %v16637_v37 = vpop.f32.mrf.mxu1  ;;  %v2452_v24 = vpop.f32.mrf.mxu0 }
 0x19d   : > { %19395 = vst [vmem:[#allocation39_spill] sm:$0xff] %v16637_v37  ;;  %v5894_v37 = vrot.slane %v5892_v22, 4 }
 0x19e   : > { %v14352_v58 = vpop.f32.mrf.mxu1  ;;  %v14309_v62 = vpop.f32.mrf.mxu0 }
 0x19f   : > { %v16663_v0 = vadd.f32 %v14352_v58, %v2537_v17  ;;  %v19398_v58 = vld [vmem:[#allocation25_spill] sm:$0xff]  ;;  %14583 = vmatmul.mubr.bf16.gmra.mxu0 %v13239_v9 }
 0x1a0   : > { %v2886_v47 = vpop.f32.mrf.mxu1  ;;  %v16668_v28 = vpop.f32.mrf.mxu0  ;;  %v2541_v27 = vadd.f32 %v14308_v4, %v19398_v58  ;;  %v16686_v17 = vld [vmem:[#allocation2 + $0xc4] sm:$0xf]  ;;  %v5882_v4 = vsel %vm15758_vm14, %v5880_v60, %v5881_v46  ;;  %v16701_v58 = vld [vmem:[#allocation2 + $0xc0] sm:$0xe]  ;;  %14586 = vmatprep.mubr.bf16.mxu0 %v13240_v29  ;;  %v5895_v46 = vrot.slane %v16677_v21, 5  ;;  %v13241_v29 = vcombine.low %v5872_v3, %v5875_v36 }
 0x1a1   : > { %19397 = vst [vmem:[#allocation22_spill] sm:$0xff] %v16668_v28  ;;  %v16673_v5 = vadd.f32 %v2886_v47, %v2535_v30  ;;  %v13211_v47 = vrot.slane %v16655_v18, 9  ;;  %v16694_v30 = vld [vmem:[#allocation2 + $0xbc] sm:$0x1]  ;;  %v5887_v18 = vrot.slane %v19342_v59, 4  ;;  %v19401_v9 = vld [vmem:[#allocation29_spill] sm:$0xff] }
 0x1a2   : > { %v14353_v42 = vpop.f32.mrf.mxu1  ;;  %v14312_v51 = vpop.f32.mrf.mxu0  ;;  %v2542_v60 = vadd.f32 %v14309_v62, %v19401_v9  ;;  %v13213_v59 = vrot.slane %v16684_v63, 9  ;;  %v19403_v62 = vrot.slane %v16666_v31, 5  ;;  %v5902_v21 = vrot.slane %v16694_v30, 5  ;;  %v19406_v28 = vld [vmem:[#allocation34_spill] sm:$0xff] }
 0x1a3   : > { %v16675_v35 = vadd.f32 %v14353_v42, %v2538_v7  ;;  %v19400_v42 = vld [vmem:[#allocation27_spill] sm:$0xff]  ;;  %v13214_v3 = vrot.slane %v16701_v58, 9  ;;  %v5909_v63 = vrot.slane %v16703_v49, 5 }
 0x1a4   : > { %v16682_v40 = vpop.f32.mrf.mxu1  ;;  %v2468_v33 = vpop.f32.mrf.mxu0  ;;  %v2539_v48 = vadd.f32 %v2452_v24, %v19400_v42  ;;  %v5906_v24 = vrot.slane %v16686_v17, 5  ;;  %v16713_v42 = vld [vmem:[#allocation2 + $0xcc] sm:$0xe] }
 0x1a5   : > { %19399 = vst [vmem:[#allocation25_spill] sm:$0xff] %v16682_v40  ;;  %v16715_v40 = vld [vmem:[#allocation2 + $0xd0] sm:$0xf]  ;;  %v19404_v17 = vld [vmem:[#allocation30_spill] sm:$0xff]  ;;  %v13215_v30 = vrot.slane %v16713_v42, 9  ;;  %v5893_v42 = vsel %vm15758_vm14, %v13212_v56, %v5892_v22 }
 0x1a6   : > { %v14356_v20 = vpop.f32.mrf.mxu1  ;;  %v14313_v32 = vpop.f32.mrf.mxu0  ;;  %v2545_v34 = vadd.f32 %v14312_v51, %v19404_v17  ;;  %v5908_v36 = vrot.slane %v5906_v24, 4  ;;  %v5913_v13 = vrot.slane %v16715_v40, 5 }
 0x1a7   : > { %v16708_v10 = vadd.f32 %v14356_v20, %v2541_v27  ;;  %v13242_v27 = vcombine.low %v5879_v19, %v5882_v4  ;;  %v5901_v20 = vrot.slane %v19403_v62, 4  ;;  %v19405_v19 = vld [vmem:[#allocation32_spill] sm:$0xff]  ;;  %v2546_v62 = vadd.f32 %v14313_v32, %v19406_v28  ;;  %14587 = vmatmul.mubr.bf16.gmra.mxu0 %v13241_v29 }
 0x1a8   : > { %v2902_v7 = vpop.f32.mrf.mxu1  ;;  %v16720_v52 = vpop.f32.mrf.mxu0  ;;  %v2543_v4 = vadd.f32 %v2468_v33, %v19405_v19  ;;  %v5889_v28 = vsel %vm15758_vm14, %v5887_v18, %v5888_v26  ;;  %v19408_v19 = vrot.slane %v16666_v31, 5  ;;  %v15164_v31 = vld [vmem:[%s19332_s1 + $0x270] sm:$0xff]  }
 0x1a9   : > { %v16718_v25 = vadd.f32 %v2902_v7, %v2539_v48  ;;  %19402 = vst [vmem:[#allocation27_spill] sm:$0xff] %v16720_v52  ;;  %v5757_v52 = vld [vmem:[#allocation2 + $0xd4] sm:$0x1]  ;;  %14590 = vmatprep.mubr.bf16.mxu0 %v13242_v27 }
 0x1aa   : > { %v14357_v9 = vpop.f32.mrf.mxu1  ;;  %v14380_v7 = vpop.f32.mrf.mxu0 }
 0x1ab   : > { %v16726_v54 = vadd.f32 %v14357_v9, %v2542_v60  ;;  %v16737_v58 = vadd.f32 %v14380_v7, %v16529_v38  ;;  %v19407_v9 = vrot.slane %v16644_v1, 5  ;;  %v5896_v38 = vsel %vm15758_vm14, %v5894_v37, %v5895_v46 }
 0x1ac   : > { %v16730_v48 = vpop.f32.mrf.mxu1  ;;  %v3624_v51 = vpop.f32.mrf.mxu0  ;;  %v5916_v1 = vrot.slane %v5757_v52, 5  ;;  %v13244_v17 = vcombine.low %v5893_v42, %v5896_v38 }
 0x1ad   : > { %v16740_v49 = vadd.f32 %v3624_v51, %v16538_v16  ;;  %v5886_v33 = vsel %vm15758_vm14, %v13211_v47, %v19407_v9 }
 0x1ae   : > { %v14360_v60 = vpop.f32.mrf.mxu1  ;;  %v14381_v40 = vpop.f32.mrf.mxu0  ;;  %v13243_v26 = vcombine.low %v5886_v33, %v5889_v28  ;;  %v5915_v33 = vrot.slane %v5913_v13, 4 }
 0x1af   : > { %v16748_v32 = vadd.f32 %v14360_v60, %v2545_v34  ;;  %v16755_v29 = vadd.f32 %v14381_v40, %v16547_v44  ;;  %v15163_v34 = vld [vmem:[%s19332_s1 + $0x278] sm:$0xff]   ;;  %v5910_v60 = vsel %vm15758_vm14, %v5908_v36, %v5909_v63 }
 0x1b0   : > { %v2918_v16 = vpop.f32.mrf.mxu1  ;;  %v16759_v47 = vpop.f32.mrf.mxu0  ;;  %14602 = vmatprep.subr.bf16.mxu1 %v15163_v34  ;;  %14591 = vmatmul.mubr.bf16.gmra.mxu0 %v13243_v26  ;;  %v5917_v63 = vsel %vm15758_vm14, %v5915_v33, %v5916_v1 }
 0x1b1   : > { %v16757_v27 = vadd.f32 %v2918_v16, %v2543_v4  ;;  %14603 = vmatpush3.bf16.msra.mxu1 %v15163_v34  ;;  %14594 = vmatprep.mubr.bf16.mxu0 %v13244_v17  ;;  %v5900_v4 = vsel %vm15758_vm14, %v13213_v59, %v19408_v19  ;;  %v15165_v34 = vld [vmem:[%s19332_s1 + $0x268] sm:$0xff]  }
 0x1b2   : > { %v14361_v18 = vpop.f32.mrf.mxu1  ;;  %v14384_v56 = vpop.f32.mrf.mxu0  ;;  %14604 = vmatprep.subr.bf16.mxu1 %v15164_v31 }
 0x1b3   : > { %v16764_v22 = vadd.f32 %v14361_v18, %v2546_v62  ;;  %v16769_v44 = vadd.f32 %v14384_v56, %v16556_v8  ;;  %v5903_v62 = vsel %vm15758_vm14, %v5901_v20, %v5902_v21  ;;  %v5907_v8 = vsel %vm15758_vm14, %v13214_v3, %v5906_v24 }
 0x1b4   : > { %v16766_v37 = vpop.f32.mrf.mxu1  ;;  %v3640_v46 = vpop.f32.mrf.mxu0  ;;  %v13245_v59 = vcombine.low %v5900_v4, %v5903_v62  ;;  %v13246_v21 = vcombine.low %v5907_v8, %v5910_v60 }
 0x1b5   : > { %v16774_v7 = vadd.f32 %v3640_v46, %v16562_v41  ;;  %14605 = vmatpush3.bf16.msra.mxu1 %v15164_v31 }
 0x1b6   : > { %v16771_v52 = vpop.f32.mrf.mxu1  ;;  %v14385_v51 = vpop.f32.mrf.mxu0  ;;  %14606 = vmatprep.subr.bf16.mxu1 %v15165_v34 }
 0x1b7   : > { %v3790_v41 = vadd.f32 %v14385_v51, %v16569_v23  ;;  %v5914_v23 = vsel %vm15758_vm14, %v13215_v30, %v5913_v13 }
 0x1b8   : > { %v16786_v9 = vpop.f32.mrf.mxu1  ;;  %v16794_v20 = vpop.f32.mrf.mxu0  ;;  %14595 = vmatmul.mubr.bf16.gmra.mxu0 %v13245_v59  ;;  %v13247_v26 = vcombine.low %v5914_v23, %v5917_v63 }
 0x1b9   : > { %14598 = vmatprep.mubr.bf16.mxu0 %v13246_v21  ;;  %14607 = vmatpush3.bf16.msra.mxu1 %v15165_v34 }
 0x1ba   : > { %v16792_v28 = vpop.f32.mrf.mxu1  ;;  %v14388_v36 = vpop.f32.mrf.mxu0 }
 0x1bb   : > { %v3793_v40 = vadd.f32 %v14388_v36, %v16588_v57 }
 0x1bc   : > { %v16796_v24 = vpop.f32.mrf.mxu1  ;;  %v3656_v38 = vpop.f32.mrf.mxu0 }
 0x1bd   : > { %v3791_v16 = vadd.f32 %v3656_v38, %v16594_v43 }
 0x1be   : > { %v16798_v3 = vpop.f32.mrf.mxu1  ;;  %v14389_v17 = vpop.f32.mrf.mxu0 }
 0x1bf   : > { %v3794_v13 = vadd.f32 %v14389_v17, %v16596_v14  ;;  %v15166_v14 = vld [vmem:[%s19332_s1 + $0x260] sm:$0xff]  }
 0x1c0   : > { %v16805_v42 = vpop.f32.mrf.mxu1  ;;  %v16816_v57 = vpop.f32.mrf.mxu0  ;;  %14599 = vmatmul.mubr.bf16.gmra.mxu0 %v13247_v26  ;;  %14608 = vmatprep.subr.bf16.mxu1 %v15166_v14 }
 0x1c1   : > { %14609 = vmatpush3.bf16.msra.mxu1 %v15166_v14 }
 0x1c2   : > { %v14433_v18 = vpop.f32.mrf.mxu1 }
 0x1c3   : > { %v16811_v56 = vadd.f32 %v14433_v18, %v3790_v41 }
 0x1c4   : > { %v16814_v30 = vpop.f32.mrf.mxu1 }
 0x1c6   : > { %v14436_v1 = vpop.f32.mrf.mxu1 }
 0x1c7   : > { %v16818_v43 = vadd.f32 %v14436_v1, %v3793_v40 }
 0x1c8   : > { %v4250_v46 = vpop.f32.mrf.mxu1 }
 0x1c9   : > { %v16820_v19 = vadd.f32 %v4250_v46, %v3791_v16  ;;  %v14392_v4 = vpop.f32.mrf.mxu0 }
 0x1ca   : > { %v14437_v62 = vpop.f32.mrf.mxu1  ;;  %v3797_v51 = vadd.f32 %v14392_v4, %v16606_v6 }
 0x1cb   : > { %v16826_v8 = vadd.f32 %v14437_v62, %v3794_v13  ;;  %v3672_v60 = vpop.f32.mrf.mxu0 }
 0x1cc   : > { %v16828_v41 = vpop.f32.mrf.mxu1  ;;  %v3795_v33 = vadd.f32 %v3672_v60, %v16618_v15 }
 0x1cd   : > { %19409 = vst [vmem:[#allocation29_spill] sm:$0xff] %v16828_v41  ;;  %v14393_v31 = vpop.f32.mrf.mxu0 }
 0x1ce   : > { %v14440_v59 = vpop.f32.mrf.mxu1  ;;  %v3798_v21 = vadd.f32 %v14393_v31, %v16620_v11 }
 0x1cf   : > { %v16832_v36 = vadd.f32 %v14440_v59, %v3797_v51  ;;  %v16836_v63 = vpop.f32.mrf.mxu0 }
 0x1d0   : > { %v4266_v6 = vpop.f32.mrf.mxu1 }
 0x1d1   : > { %v16834_v23 = vadd.f32 %v4266_v6, %v3795_v33 }
 0x1d2   : > { %v14441_v40 = vpop.f32.mrf.mxu1  ;;  %v14396_v34 = vpop.f32.mrf.mxu0 }
 0x1d3   : > { %v16838_v38 = vadd.f32 %v14441_v40, %v3798_v21  ;;  %v3801_v15 = vadd.f32 %v14396_v34, %v16633_v2  ;;  %v15167_v2 = vld [vmem:[%s19332_s1 + $0x258] sm:$0xff]  }
 0x1d4   : > { %v16840_v16 = vpop.f32.mrf.mxu1  ;;  %v3688_v18 = vpop.f32.mrf.mxu0  ;;  %14610 = vmatprep.subr.bf16.mxu1 %v15167_v2 }
 0x1d5   : > { %19410 = vst [vmem:[#allocation30_spill] sm:$0xff] %v16840_v16  ;;  %v3799_v17 = vadd.f32 %v3688_v18, %v16639_v53  ;;  %v15169_v53 = vld [vmem:[%s19332_s1 + $0x2b8] sm:$0xff]   ;;  %14611 = vmatpush3.bf16.msra.mxu1 %v15167_v2 }
 0x1d6   : > { %v14444_v26 = vpop.f32.mrf.mxu1  ;;  %v14397_v1 = vpop.f32.mrf.mxu0  ;;  %14650 = vmatprep.subr.bf16.mxu0 %v15169_v53 }
 0x1d7   : > { %v16844_v11 = vadd.f32 %v14444_v26, %v3801_v15  ;;  %v3802_v46 = vadd.f32 %v14397_v1, %v16641_v55  ;;  %14651 = vmatpush3.bf16.msra.mxu0 %v15169_v53  ;;  %v15168_v15 = vld [vmem:[%s19332_s1 + $0x250] sm:$0xff]  }
 0x1d8   : > { %v4282_v13 = vpop.f32.mrf.mxu1  ;;  %v16851_v14 = vpop.f32.mrf.mxu0  ;;  %14612 = vmatprep.subr.bf16.mxu1 %v15168_v15 }
 0x1d9   : > { %v16847_v4 = vadd.f32 %v4282_v13, %v3799_v17  ;;  %14613 = vmatpush3.bf16.msra.mxu1 %v15168_v15 }
 0x1da   : > { %v14445_v62 = vpop.f32.mrf.mxu1 }
 0x1db   : > { %v16849_v51 = vadd.f32 %v14445_v62, %v3802_v46  ;;  %v14400_v33 = vpop.f32.mrf.mxu0 }
 0x1dc   : > { %v16853_v60 = vpop.f32.mrf.mxu1  ;;  %v3805_v55 = vadd.f32 %v14400_v33, %v16663_v0  ;;  %v15170_v0 = vld [vmem:[%s19332_s1 + $0x2b0] sm:$0xff]  }
 0x1dd   : > { %19411 = vst [vmem:[#allocation32_spill] sm:$0xff] %v16853_v60  ;;  %v3704_v59 = vpop.f32.mrf.mxu0  ;;  %14652 = vmatprep.subr.bf16.mxu0 %v15170_v0 }
 0x1de   : > { %v14448_v31 = vpop.f32.mrf.mxu1  ;;  %v3803_v21 = vadd.f32 %v3704_v59, %v16673_v5  ;;  %14653 = vmatpush3.bf16.msra.mxu0 %v15170_v0 }
 0x1df   : > { %v16863_v6 = vadd.f32 %v14448_v31, %v3805_v55  ;;  %v14401_v34 = vpop.f32.mrf.mxu0 }
 0x1e0   : > { %v4298_v40 = vpop.f32.mrf.mxu1  ;;  %v3806_v26 = vadd.f32 %v14401_v34, %v16675_v35  ;;  %v15172_v35 = vld [vmem:[%s19332_s1 + $0x2a8] sm:$0xff]  }
 0x1e1   : > { %v16869_v18 = vadd.f32 %v4298_v40, %v3803_v21  ;;  %v16876_v5 = vpop.f32.mrf.mxu0  ;;  %14654 = vmatprep.subr.bf16.mxu0 %v15172_v35  ;;  %v15171_v21 = vld [vmem:[%s19332_s1 + $0x248] sm:$0xff]  }
 0x1e2   : > { %v14449_v17 = vpop.f32.mrf.mxu1  ;;  %14655 = vmatpush3.bf16.msra.mxu0 %v15172_v35  ;;  %14614 = vmatprep.subr.bf16.mxu1 %v15171_v21 }
 0x1e3   : > { %v16874_v13 = vadd.f32 %v14449_v17, %v3806_v26  ;;  %14615 = vmatpush3.bf16.msra.mxu1 %v15171_v21  ;;  %v15176_v17 = vld [vmem:[%s19332_s1 + $0x290] sm:$0xff]  }
 0x1e4   : > { %v16878_v1 = vpop.f32.mrf.mxu1 }
 0x1e5   : > { %19412 = vst [vmem:[#allocation34_spill] sm:$0xff] %v16878_v1 }
 0x1e7   : > { %v14404_v46 = vpop.f32.mrf.mxu0  ;;  %v14452_v2 = vpop.f32.mrf.mxu1 }
 0x1e8   : > { %v3809_v62 = vadd.f32 %v14404_v46, %v16708_v10  ;;  %v15173_v10 = vld [vmem:[%s19332_s1 + $0x2a0] sm:$0xff]  }
 0x1e9   : > { %v3720_v53 = vpop.f32.mrf.mxu0  ;;  %v4314_v31 = vpop.f32.mrf.mxu1  ;;  %14656 = vmatprep.subr.bf16.mxu0 %v15173_v10 }
 0x1ea   : > { %v3807_v33 = vadd.f32 %v3720_v53, %v16718_v25  ;;  %v16885_v55 = vadd.f32 %v14452_v2, %v3809_v62  ;;  %14657 = vmatpush3.bf16.msra.mxu0 %v15173_v10  ;;  %v15174_v25 = vld [vmem:[%s19332_s1 + $0x240] sm:$0xff]  }
 0x1eb   : > { %v14405_v59 = vpop.f32.mrf.mxu0  ;;  %v14453_v15 = vpop.f32.mrf.mxu1  ;;  %14616 = vmatprep.subr.bf16.mxu1 %v15174_v25  ;;  %v15177_v62 = vld [vmem:[#allocation2] sm:$0xff]  }
 0x1ec   : > { %v3810_v40 = vadd.f32 %v14405_v59, %v16726_v54  ;;  %v16891_v34 = vadd.f32 %v4314_v31, %v3807_v33  ;;  %v15175_v54 = vld [vmem:[%s19332_s1 + $0x298] sm:$0xff]   ;;  %14617 = vmatpush3.bf16.msra.mxu1 %v15174_v25  ;;  %14618 = vmatprep.mubr.bf16.mxu1 %v15177_v62  ;;  %v15181_v31 = vld [vmem:[%s19332_s1 + $0x288] sm:$0xff]   ;;  %v7424_v10 = vld [vmem:[#allocation2] sm:$0xf] }
 0x1ed   : > { %14658 = vmatprep.subr.bf16.mxu0 %v15175_v54  ;;  %v16907_v0 = vpop.f32.mrf.mxu1  ;;  %v16909_v35 = vpop.f32.mrf.mxu0  ;;  %v7425_v25 = vld [vmem:[#allocation2 + $0x4] sm:$0xf]  ;;  %v7473_v62 = vshrl.u32 %v7424_v10, 16  ;;  %v7476_v12 = vshll.u32 %v7424_v10, 16 }
 0x1ee   : > { %v16896_v26 = vadd.f32 %v14453_v15, %v3810_v40  ;;  %14659 = vmatpush3.bf16.msra.mxu0 %v15175_v54  ;;  %19413 = vst [vmem:[#allocation40_spill] sm:$0xff] %v16907_v0 }
 0x1ef   : > { %14660 = vmatprep.subr.bf16.mxu0 %v15176_v17 }
 0x1f2   : > { %14661 = vmatpush3.bf16.msra.mxu0 %v15176_v17 }
 0x1f3   : > { %14662 = vmatprep.subr.bf16.mxu0 %v15181_v31 }
 0x1f6   : > { %14663 = vmatpush3.bf16.msra.mxu0 %v15181_v31 }
 0x1fe   : > { %v14456_v46 = vpop.f32.mrf.mxu1 }
 0x1ff   : > { %v14408_v2 = vpop.f32.mrf.mxu0 }
 0x200   : > { %v4330_v53 = vpop.f32.mrf.mxu1  ;;  %v3813_v33 = vadd.f32 %v14408_v2, %v16748_v32  ;;  %v7482_v32 = vshll.u32 %v7425_v25, 16  ;;  %v7486_v2 = vshrl.u32 %v7425_v25, 16 }
 0x201   : > { %v3736_v59 = vpop.f32.mrf.mxu0 }
 0x202   : > { %v14457_v21 = vpop.f32.mrf.mxu1  ;;  %v3811_v40 = vadd.f32 %v3736_v59, %v16757_v27  ;;  %v16916_v15 = vadd.f32 %v14456_v46, %v3813_v33  ;;  %v7475_v46 = vrot.slane %v7473_v62, 4  ;;  %v7478_v33 = vrot.slane %v7476_v12, 5  ;;  %v15182_v12 = vld [vmem:[%s19332_s1 + $0x280] sm:$0xff]  }
 0x203   : > { %v14409_v54 = vpop.f32.mrf.mxu0  ;;  %v7484_v59 = vrot.slane %v7482_v32, 5  ;;  %v7488_v16 = vrot.slane %v7486_v2, 4  ;;  %14664 = vmatprep.subr.bf16.mxu0 %v15182_v12 }
 0x204   : > { %19414 = vst [vmem:[#allocation41_spill] sm:$0xff] %v16916_v15  ;;  %v16918_v17 = vpop.f32.mrf.mxu1  ;;  %v3814_v0 = vadd.f32 %v14409_v54, %v16764_v22  ;;  %v16921_v1 = vadd.f32 %v4330_v53, %v3811_v40  ;;  %v7479_v25 = vor.u32 %v7478_v33, %v7475_v46  ;;  %14665 = vmatpush3.bf16.msra.mxu0 %v15182_v12  ;;  %v16965_v12 = vld [vmem:[%s19332_s1 + $0x2f8] sm:$0xff]  }
 0x205   : > { %19415 = vst [vmem:[#allocation42_spill] sm:$0xff] %v16918_v17  ;;  %v16923_v60 = vpop.f32.mrf.mxu0  ;;  %v7426_v17 = vld [vmem:[#allocation2 + $0x8] sm:$0x1]  ;;  %v7489_v15 = vor.u32 %v7488_v16, %v7484_v59  ;;  %19422 = vst [vmem:[#allocation49_spill] sm:$0xff] %v16965_v12  ;;  %14698 = vmatprep.subr.bf16.mxu1 %v16965_v12 }
 0x206   : > { %v16925_v27 = vpop.f32.mrf.mxu1  ;;  %v16927_v41 = vadd.f32 %v14457_v21, %v3814_v0  ;;  %v7492_v22 = vshll.u32 %v7426_v17, 16  ;;  %v7480_v54 = vrot.slane %v7479_v25, 4 }
 0x207   : > { %v16929_v31 = vpop.f32.mrf.mxu0  ;;  %v7490_v62 = vrot.slane %v7489_v15, 4 }
 0x208   : > { %19416 = vst [vmem:[#allocation43_spill] sm:$0xff] %v16927_v41  ;;  %v16931_v10 = vpop.f32.mrf.mxu1  ;;  %v7494_v0 = vrot.slane %v7492_v22, 5  ;;  %v7485_v16 = vsel %vm15406_vm9, %v7480_v54, %v7484_v59 }
 0x209   : > { %v16933_v53 = vpop.f32.mrf.mxu0 }
 0x20a   : > { %v16935_v40 = vpop.f32.mrf.mxu1  ;;  %v7495_v17 = vsel %vm15406_vm9, %v7490_v62, %v7494_v0 }
 0x20b   : > { %v16940_v21 = vpop.f32.mrf.mxu0  ;;  %v13346_v2 = vcombine.low %v7485_v16, %v7495_v17 }
 0x20c   : > { %v16942_v32 = vpop.f32.mrf.mxu1 }
 0x20d   : > { %19417 = vst [vmem:[#allocation44_spill] sm:$0xff] %v16942_v32  ;;  %v16948_v46 = vpop.f32.mrf.mxu0  ;;  %14666 = vmatprep.mubr.bf16.mxu0 %v13346_v2 }
 0x20e   : > { %v16950_v33 = vpop.f32.mrf.mxu1 }
 0x20f   : > { %19418 = vst [vmem:[#allocation45_spill] sm:$0xff] %v16950_v33  ;;  %v16952_v15 = vpop.f32.mrf.mxu0 }
 0x210   : > { %v16954_v25 = vpop.f32.mrf.mxu1 }
 0x211   : > { %19419 = vst [vmem:[#allocation46_spill] sm:$0xff] %v16954_v25  ;;  %v16956_v22 = vpop.f32.mrf.mxu0 }
 0x212   : > { %v16958_v32 = vpop.f32.mrf.mxu1 }
 0x213   : > { %19420 = vst [vmem:[#allocation47_spill] sm:$0xff] %v16958_v32  ;;  %v14481_v41 = vpop.f32.mrf.mxu0 }
 0x214   : > { %v16960_v59 = vpop.f32.mrf.mxu1  ;;  %v16968_v54 = vadd.f32 %v14481_v41, %v16811_v56 }
 0x215   : > { %19421 = vst [vmem:[#allocation48_spill] sm:$0xff] %v16960_v59  ;;  %v16970_v62 = vpop.f32.mrf.mxu0 }
 0x216   : > { %19423 = vst [vmem:[#allocation50_spill] sm:$0xff] %v16968_v54  ;;  %v16972_v0 = vpop.f32.mrf.mxu1 }
 0x217   : > { %19424 = vst [vmem:[#allocation51_spill] sm:$0xff] %v16972_v0  ;;  %v14484_v16 = vpop.f32.mrf.mxu0 }
 0x218   : > { %v16975_v17 = vpop.f32.mrf.mxu1  ;;  %v16978_v2 = vadd.f32 %v14484_v16, %v16818_v43 }
 0x219   : > { %19425 = vst [vmem:[#allocation52_spill] sm:$0xff] %v16975_v17  ;;  %v4701_v39 = vpop.f32.mrf.mxu0 }
 0x21a   : > { %19426 = vst [vmem:[#allocation53_spill] sm:$0xff] %v16978_v2  ;;  %v16980_v59 = vpop.f32.mrf.mxu1  ;;  %v16983_v32 = vadd.f32 %v4701_v39, %v16820_v19  ;;  %v19469_v2 = vld [vmem:[#allocation21_spill] sm:$0xff] }
 0x21b   : > { %19427 = vst [vmem:[#allocation54_spill] sm:$0xff] %v16980_v59  ;;  %v14485_v56 = vpop.f32.mrf.mxu0 }
 0x21c   : > { %19428 = vst [vmem:[#allocation55_spill] sm:$0xff] %v16983_v32  ;;  %v16985_v41 = vpop.f32.mrf.mxu1  ;;  %v16988_v54 = vadd.f32 %v14485_v56, %v16826_v8  ;;  %v19465_v32 = vld [vmem:[#allocation19_spill] sm:$0xff] }
 0x21d   : > { %19429 = vst [vmem:[#allocation56_spill] sm:$0xff] %v16985_v41  ;;  %v16990_v0 = vpop.f32.mrf.mxu0 }
 0x21e   : > { %19430 = vst [vmem:[#allocation57_spill] sm:$0xff] %v16988_v54  ;;  %v16992_v12 = vpop.f32.mrf.mxu1  ;;  %v19457_v54 = vld [vmem:[#allocation13_spill] sm:$0xff] }
 0x21f   : > { %19431 = vst [vmem:[#allocation58_spill] sm:$0xff] %v16992_v12  ;;  %v14488_v17 = vpop.f32.mrf.mxu0 }
 0x220   : > { %v16994_v25 = vpop.f32.mrf.mxu1  ;;  %v16997_v43 = vadd.f32 %v14488_v17, %v16832_v36 }
 0x221   : > { %19432 = vst [vmem:[#allocation59_spill] sm:$0xff] %v16994_v25  ;;  %v4717_v16 = vpop.f32.mrf.mxu0 }
 0x222   : > { %19433 = vst [vmem:[#allocation60_spill] sm:$0xff] %v16997_v43  ;;  %v16999_v59 = vpop.f32.mrf.mxu1  ;;  %v17002_v39 = vadd.f32 %v4717_v16, %v16834_v23 }
 0x223   : > { %19434 = vst [vmem:[#allocation61_spill] sm:$0xff] %v16999_v59  ;;  %v14489_v19 = vpop.f32.mrf.mxu0 }
 0x224   : > { %19435 = vst [vmem:[#allocation62_spill] sm:$0xff] %v17002_v39  ;;  %v17004_v41 = vpop.f32.mrf.mxu1  ;;  %v17007_v8 = vadd.f32 %v14489_v19, %v16838_v38  ;;  %v19456_v39 = vld [vmem:[#allocation26_spill] sm:$0xff] }
 0x225   : > { %19436 = vst [vmem:[#allocation63_spill] sm:$0xff] %v17004_v41  ;;  %v17009_v56 = vpop.f32.mrf.mxu0 }
 0x226   : > { %19437 = vst [vmem:[#allocation64_spill] sm:$0xff] %v17007_v8  ;;  %19438 = vst [vmem:[#allocation65_spill] sm:$0xff] %v17009_v56  ;;  %v17011_v12 = vpop.f32.mrf.mxu1  ;;  %v19473_v56 = vld [vmem:[#allocation33_spill] sm:$0xff] }
 0x227   : > { %19439 = vst [vmem:[#allocation66_spill] sm:$0xff] %v17011_v12  ;;  %v14492_v25 = vpop.f32.mrf.mxu0 }
 0x228   : > { %v17014_v36 = vadd.f32 %v14492_v25, %v16844_v11  ;;  %v17016_v17 = vpop.f32.mrf.mxu1 }
 0x229   : > { %19441 = vst [vmem:[#allocation68_spill] sm:$0xff] %v17016_v17  ;;  %v4733_v59 = vpop.f32.mrf.mxu0 }
 0x22a   : > { %19440 = vst [vmem:[#allocation67_spill] sm:$0xff] %v17014_v36  ;;  %v17019_v23 = vadd.f32 %v4733_v59, %v16847_v4  ;;  %v17021_v16 = vpop.f32.mrf.mxu1  ;;  %v19450_v4 = vld [vmem:[#allocation9_spill] sm:$0xff]  ;;  %v19451_v59 = vld [vmem:[#allocation10_spill] sm:$0xff] }
 0x22b   : > { %19443 = vst [vmem:[#allocation70_spill] sm:$0xff] %v17021_v16  ;;  %v14493_v41 = vpop.f32.mrf.mxu0 }
 0x22c   : > { %19442 = vst [vmem:[#allocation69_spill] sm:$0xff] %v17019_v23  ;;  %v17024_v38 = vadd.f32 %v14493_v41, %v16849_v51  ;;  %v17026_v19 = vpop.f32.mrf.mxu1  ;;  %v1919_v23 = vadd.f32 %v19451_v59, %v19450_v4  ;;  %v19454_v41 = vld [vmem:[#allocation11_spill] sm:$0xff]  ;;  %v19462_v59 = vld [vmem:[#allocation16_spill] sm:$0xff] }
 0x22d   : > { %19445 = vst [vmem:[#allocation72_spill] sm:$0xff] %v17026_v19  ;;  %v17028_v8 = vpop.f32.mrf.mxu0  ;;  %v19455_v19 = vld [vmem:[#allocation12_spill] sm:$0xff]  ;;  %v19461_v4 = vld [vmem:[#allocation15_spill] sm:$0xff] }
 0x22e   : > { %19444 = vst [vmem:[#allocation71_spill] sm:$0xff] %v17024_v38  ;;  %19446 = vst [vmem:[#allocation73_spill] sm:$0xff] %v17028_v8  ;;  %v1923_v38 = vadd.f32 %v19455_v19, %v19454_v41  ;;  %v19466_v8 = vld [vmem:[#allocation20_spill] sm:$0xff]  ;;  %v19467_v41 = vld [vmem:[#allocation31_spill] sm:$0xff] }
 0x22f   : > { %v14496_v11 = vpop.f32.mrf.mxu0  ;;  %v1939_v19 = vadd.f32 %v19466_v8, %v19465_v32 }
 0x230   : > { %v17030_v12 = vpop.f32.mrf.mxu1  ;;  %v17033_v25 = vadd.f32 %v14496_v11, %v16863_v6  ;;  %v19458_v6 = vld [vmem:[#allocation14_spill] sm:$0xff] }
 0x231   : > { %19447 = vst [vmem:[#allocation74_spill] sm:$0xff] %v17030_v12  ;;  %v4749_v16 = vpop.f32.mrf.mxu0  ;;  %v2516_v12 = vadd.f32 %v19456_v39, %v1919_v23  ;;  %v1927_v11 = vadd.f32 %v19458_v6, %v19457_v54  ;;  %v2520_v39 = vadd.f32 %v19467_v41, %v1923_v38  ;;  %v19470_v54 = vld [vmem:[#allocation24_spill] sm:$0xff]  ;;  %v19475_v38 = vld [vmem:[#allocation22_spill] sm:$0xff] }
 0x232   : > { %19448 = vst [vmem:[#allocation75_spill] sm:$0xff] %v17033_v25  ;;  %v17035_v17 = vpop.f32.mrf.mxu1  ;;  %v17040_v36 = vadd.f32 %v4749_v16, %v16869_v18  ;;  %v1931_v18 = vadd.f32 %v19462_v59, %v19461_v4  ;;  %v19463_v16 = vld [vmem:[#allocation17_spill] sm:$0xff]  ;;  %v1943_v6 = vadd.f32 %v19470_v54, %v19469_v2 }
 0x233   : > { %19449 = vst [vmem:[#allocation76_spill] sm:$0xff] %v17035_v17  ;;  %v14497_v43 = vpop.f32.mrf.mxu0  ;;  %v2966_v4 = vadd.f32 %v19473_v56, %v2516_v12 }
 0x234   : > { %19452 = vst [vmem:[#allocation9_spill] sm:$0xff] %v17040_v36  ;;  %v17042_v51 = vpop.f32.mrf.mxu1  ;;  %v17050_v17 = vadd.f32 %v14497_v43, %v16874_v13  ;;  %v19464_v36 = vld [vmem:[#allocation18_spill] sm:$0xff]  ;;  %v19471_v13 = vld [vmem:[#allocation23_spill] sm:$0xff]  ;;  %v19472_v43 = vld [vmem:[#allocation28_spill] sm:$0xff]  ;;  %v2528_v59 = vadd.f32 %v16550_v61, %v1931_v18  ;;  %v2540_v41 = vadd.f32 %v19475_v38, %v1943_v6 }
 0x235   : > { %19453 = vst [vmem:[#allocation10_spill] sm:$0xff] %v17042_v51  ;;  %v1935_v51 = vadd.f32 %v19464_v36, %v19463_v16  ;;  %v17061_v23 = vpop.f32.mrf.mxu0  ;;  %v19474_v16 = vld [vmem:[#allocation38_spill] sm:$0xff]  ;;  %v3784_v12 = vadd.f32 %v16759_v47, %v2966_v4  ;;  %v19478_v61 = vld [vmem:[#allocation36_spill] sm:$0xff]  ;;  %v19479_v18 = vld [vmem:[#allocation37_spill] sm:$0xff] }
 0x236   : > { %19459 = vst [vmem:[#allocation11_spill] sm:$0xff] %v17050_v17  ;;  %v17052_v25 = vpop.f32.mrf.mxu1  ;;  %19468 = vst [vmem:[#allocation26_spill] sm:$0xff] %v17061_v23  ;;  %v1947_v17 = vadd.f32 %v19472_v43, %v19471_v13  ;;  %v2536_v32 = vadd.f32 %v19474_v16, %v1939_v19  ;;  %v19476_v23 = vld [vmem:[#allocation27_spill] sm:$0xff]  ;;  %v2978_v19 = vadd.f32 %v19479_v18, %v2528_v59 }
 0x237   : > { %19460 = vst [vmem:[#allocation12_spill] sm:$0xff] %v17052_v25  ;;  %v2524_v25 = vadd.f32 %v16504_v50, %v1927_v11  ;;  %v2532_v36 = vadd.f32 %v16592_v45, %v1935_v51  ;;  %v14500_v8 = vpop.f32.mrf.mxu0  ;;  %v19477_v13 = vld [vmem:[#allocation35_spill] sm:$0xff]  ;;  %v4377_v59 = vadd.f32 %v16786_v9, %v16740_v49 }
 0x238   : > { %v2544_v33 = vadd.f32 %v19476_v23, %v1947_v17  ;;  %v17075_v2 = vadd.f32 %v14500_v8, %v16885_v55  ;;  %v17077_v54 = vpop.f32.mrf.mxu1  ;;  %v2970_v50 = vadd.f32 %v19477_v13, %v2520_v39  ;;  %v19480_v17 = vld [vmem:[#allocation39_spill] sm:$0xff]  ;;  %v19481_v55 = vld [vmem:[#allocation25_spill] sm:$0xff]  ;;  %v2990_v39 = vadd.f32 %v16730_v48, %v2540_v41  ;;  %v19485_v41 = vld [vmem:[#allocation32_spill] sm:$0xff] }
 0x239   : > { %v4765_v56 = vpop.f32.mrf.mxu0  ;;  %v2974_v11 = vadd.f32 %v19478_v61, %v2524_v25  ;;  %v2982_v23 = vadd.f32 %v19480_v17, %v2532_v36  ;;  %v2986_v6 = vadd.f32 %v19481_v55, %v2536_v32  ;;  %v4379_v25 = vadd.f32 %v16771_v52, %v16737_v58  ;;  %v19490_v55 = vld [vmem:[#allocation44_spill] sm:$0xff] }
 0x23a   : > { %v17083_v45 = vadd.f32 %v4765_v56, %v16891_v34  ;;  %v17085_v51 = vpop.f32.mrf.mxu1  ;;  %v3788_v43 = vadd.f32 %v16794_v20, %v2970_v50  ;;  %v2994_v47 = vadd.f32 %v16766_v37, %v2544_v33  ;;  %v4380_v36 = vadd.f32 %v16792_v28, %v16755_v29  ;;  %v19486_v50 = vld [vmem:[#allocation34_spill] sm:$0xff]  ;;  %v19487_v56 = vld [vmem:[#allocation40_spill] sm:$0xff] }
 0x23b   : > { %v14501_v16 = vpop.f32.mrf.mxu0  ;;  %v4378_v20 = vadd.f32 %v16796_v24, %v3784_v12  ;;  %v3792_v48 = vadd.f32 %v16816_v57, %v2974_v11  ;;  %v4383_v37 = vadd.f32 %v16798_v3, %v16769_v44  ;;  %v4381_v58 = vadd.f32 %v16805_v42, %v16774_v7  ;;  %v19482_v42 = vld [vmem:[#allocation41_spill] sm:$0xff]  ;;  %v19488_v11 = vld [vmem:[#allocation42_spill] sm:$0xff] }
 0x23c   : > { %v17096_v34 = vadd.f32 %v14501_v16, %v16896_v26  ;;  %v17098_v4 = vpop.f32.mrf.mxu1  ;;  %v3796_v52 = vadd.f32 %v16836_v63, %v2978_v19  ;;  %v3800_v26 = vadd.f32 %v16851_v14, %v2982_v23  ;;  %v4382_v49 = vadd.f32 %v16814_v30, %v3788_v43  ;;  %v19483_v63 = vld [vmem:[#allocation29_spill] sm:$0xff]  ;;  %v19489_v23 = vld [vmem:[#allocation43_spill] sm:$0xff]  ;;  %v19492_v16 = vld [vmem:[#allocation46_spill] sm:$0xff] }
 0x23d   : > { %v4768_v32 = vpop.f32.mrf.mxu0  ;;  %v3804_v29 = vadd.f32 %v16876_v5, %v2986_v6  ;;  %v3808_v9 = vadd.f32 %v16909_v35, %v2990_v39  ;;  %v3812_v28 = vadd.f32 %v16923_v60, %v2994_v47  ;;  %v4830_v44 = vadd.f32 %v16929_v31, %v4379_v25  ;;  %v19484_v60 = vld [vmem:[#allocation30_spill] sm:$0xff]  ;;  %v19491_v6 = vld [vmem:[#allocation45_spill] sm:$0xff] }
 0x23e   : > { %v17112_v33 = vpop.f32.mrf.mxu1  ;;  %v4828_v3 = vadd.f32 %v16933_v53, %v4377_v59  ;;  %v4831_v7 = vadd.f32 %v16940_v21, %v4380_v36  ;;  %v4386_v14 = vadd.f32 %v19483_v63, %v3792_v48  ;;  %v4829_v30 = vadd.f32 %v16948_v46, %v4378_v20  ;;  %v19493_v47 = vld [vmem:[#allocation65_spill] sm:$0xff]  ;;  %v19495_v36 = vld [vmem:[#allocation47_spill] sm:$0xff] }
 0x23f   : > { %v14504_v24 = vpop.f32.mrf.mxu0  ;;  %v4834_v5 = vadd.f32 %v16952_v15, %v4383_v37  ;;  %v4832_v35 = vadd.f32 %v16956_v22, %v4381_v58  ;;  %v4390_v38 = vadd.f32 %v19484_v60, %v3796_v52  ;;  %v4394_v31 = vadd.f32 %v19485_v41, %v3800_v26  ;;  %v19498_v48 = vld [vmem:[#allocation51_spill] sm:$0xff]  ;;  %v19499_v58 = vld [vmem:[#allocation73_spill] sm:$0xff]  ;;  %v19508_v60 = vld [vmem:[#allocation62_spill] sm:$0xff] }
 0x240   : > { %v17122_v57 = vadd.f32 %v14504_v24, %v19482_v42  ;;  %v4833_v53 = vadd.f32 %v16970_v62, %v4382_v49  ;;  %v4398_v12 = vadd.f32 %v19486_v50, %v3804_v29  ;;  %v4402_v61 = vadd.f32 %v19487_v56, %v3808_v9  ;;  %v19500_v49 = vld [vmem:[#allocation55_spill] sm:$0xff]  ;;  %v19501_v29 = vld [vmem:[#allocation52_spill] sm:$0xff]  ;;  %v19503_v24 = vld [vmem:[#allocation54_spill] sm:$0xff] }
 0x241   : > { %v4781_v8 = vpop.f32.mrf.mxu0  ;;  %v4406_v46 = vadd.f32 %v19488_v11, %v3812_v28  ;;  %v4837_v15 = vadd.f32 %v16990_v0, %v4386_v14  ;;  %v5648_v22 = vadd.f32 %v16925_v27, %v4830_v44  ;;  %v5646_v19 = vadd.f32 %v16931_v10, %v4828_v3  ;;  %v19494_v0 = vld [vmem:[#allocation50_spill] sm:$0xff]  ;;  %v19496_v27 = vld [vmem:[#allocation48_spill] sm:$0xff]  ;;  %v19502_v28 = vld [vmem:[#allocation57_spill] sm:$0xff] }
 0x242   : > { %v4856_v21 = vadd.f32 %v4781_v8, %v16921_v1  ;;  %v14552_v13 = vpop.f32.mrf.mxu1  ;;  %v5649_v17 = vadd.f32 %v16935_v40, %v4831_v7  ;;  %v5647_v1 = vadd.f32 %v19490_v55, %v4829_v30  ;;  %v5652_v43 = vadd.f32 %v19491_v6, %v4834_v5  ;;  %v19497_v40 = vld [vmem:[#allocation53_spill] sm:$0xff]  ;;  %v19504_v3 = vld [vmem:[#allocation56_spill] sm:$0xff]  ;;  %v19505_v42 = vld [vmem:[#allocation26_spill] sm:$0xff] }
 0x243   : > { %v14505_v18 = vpop.f32.mrf.mxu0  ;;  %v17143_v39 = vadd.f32 %v19492_v16, %v4832_v35  ;;  %v4841_v25 = vadd.f32 %v19493_v47, %v4390_v38  ;;  %v17148_v20 = vadd.f32 %v19495_v36, %v19494_v0  ;;  %v17151_v10 = vadd.f32 %v19496_v27, %v4833_v53  ;;  %v17173_v30 = vld [vmem:[%s19333_s2] ss:$0 sm:$0xff]  ;;  %v19506_v5 = vld [vmem:[#allocation60_spill] sm:$0xff]  ;;  %v19507_v35 = vld [vmem:[#allocation58_spill] sm:$0xff] }
 0x244   : > { %v4859_v62 = vadd.f32 %v14505_v18, %v19489_v23  ;;  %v17155_v37 = vadd.f32 %v19498_v48, %v19497_v40  ;;  %v4845_v52 = vadd.f32 %v19499_v58, %v4394_v31  ;;  %v5599_v26 = vpop.f32.mrf.mxu1  ;;  %v17160_v9 = vadd.f32 %v19501_v29, %v19500_v49  ;;  %v19509_v38 = vld [vmem:[#allocation59_spill] sm:$0xff]  ;;  %v19510_v31 = vld [vmem:[#allocation64_spill] sm:$0xff]  ;;  %v19511_v53 = vld [vmem:[#allocation61_spill] sm:$0xff] }
 0x245   : > { %v4784_v59 = vpop.f32.mrf.mxu0  ;;  %v17164_v44 = vadd.f32 %v19503_v24, %v19502_v28  ;;  %v17167_v7 = vadd.f32 %v19504_v3, %v4837_v15  ;;  %v4849_v63 = vadd.f32 %v19505_v42, %v4398_v12  ;;  %v17177_v8 = vadd.f32 %v19507_v35, %v19506_v5  ;;  %v19512_v12 = vld [vmem:[#allocation63_spill] sm:$0xff]  ;;  %v19514_v18 = vld [vmem:[#allocation66_spill] sm:$0xff]  ;;  %v19515_v55 = vld [vmem:[#allocation69_spill] sm:$0xff] }
 0x246   : > { %v17181_v41 = vadd.f32 %v19509_v38, %v19508_v60  ;;  %v17185_v50 = vadd.f32 %v19511_v53, %v19510_v31  ;;  %v17188_v11 = vadd.f32 %v19512_v12, %v4841_v25  ;;  %v19513_v15 = vld [vmem:[#allocation67_spill] sm:$0xff]  ;;  %v19516_v6 = vld [vmem:[#allocation68_spill] sm:$0xff]  ;;  %v4853_v47 = vadd.f32 %v4768_v32, %v4402_v61  ;;  %v17201_v0 = vld [vmem:[%s19334_s3] ss:$0 sm:$0xff]  ;;  %v14553_v58 = vpop.f32.mrf.mxu1 }
 0x247   : > { %v14572_v14 = vpop.f32.mrf.mxu0  ;;  %v17192_v23 = vadd.f32 %v19514_v18, %v19513_v15  ;;  %v17196_v16 = vadd.f32 %v19516_v6, %v19515_v55  ;;  %v19517_v27 = vld [vmem:[#allocation71_spill] sm:$0xff]  ;;  %v19519_v25 = vld [vmem:[#allocation72_spill] sm:$0xff]  ;;  %v19521_v24 = vld [vmem:[#allocation74_spill] sm:$0xff]  ;;  %v17228_v31 = vadd.f32 %v17077_v54, %v17075_v2  ;;  %v17234_v12 = vadd.f32 %v17085_v51, %v17083_v45 }
 0x248   : > { %v6242_v56 = vadd.f32 %v14572_v14, %v5648_v22  ;;  %v19518_v22 = vld [vmem:[#allocation70_spill] sm:$0xff]  ;;  %v17208_v48 = vadd.f32 %v19519_v25, %v4845_v52  ;;  %v19520_v28 = vld [vmem:[#allocation75_spill] sm:$0xff]  ;;  %v19522_v61 = vld [vmem:[#allocation9_spill] sm:$0xff]  ;;  %v17238_v15 = vadd.f32 %v17098_v4, %v17096_v34  ;;  %v4857_v18 = vadd.f32 %v4784_v59, %v4406_v46  ;;  %v5602_v2 = vpop.f32.mrf.mxu1 }
 0x249   : > { %v6081_v36 = vpop.f32.mrf.mxu0  ;;  %v17205_v40 = vadd.f32 %v19518_v22, %v19517_v27  ;;  %v17213_v32 = vadd.f32 %v19521_v24, %v19520_v28  ;;  %v19523_v3 = vld [vmem:[#allocation76_spill] sm:$0xff]  ;;  %v19524_v14 = vld [vmem:[#allocation11_spill] sm:$0xff]  ;;  %v19525_v5 = vld [vmem:[#allocation10_spill] sm:$0xff]  ;;  %v17248_v45 = vadd.f32 %v5599_v26, %v4856_v21  ;;  %v17250_v51 = vadd.f32 %v14553_v58, %v4859_v62 }
 0x24a   : > { %v6345_v49 = vmul.f32 %v17173_v30, %v6242_v56  ;;  %v6240_v29 = vadd.f32 %v6081_v36, %v5646_v19  ;;  %v17217_v42 = vadd.f32 %v19523_v3, %v19522_v61  ;;  %v17221_v35 = vadd.f32 %v19525_v5, %v19524_v14  ;;  %v19526_v60 = vld [vmem:[#allocation12_spill] sm:$0xff] }
 0x24b   : > { %v17224_v38 = vadd.f32 %v19526_v60, %v4849_v63  ;;  %v14573_v52 = vpop.f32.mrf.mxu0  ;;  %v17241_v63 = vadd.f32 %v17112_v33, %v4853_v47  ;;  %v17246_v36 = vadd.f32 %v14552_v13, %v17122_v57  ;;  %v17253_v47 = vadd.f32 %v5602_v2, %v4857_v18 }
 0x24c   : > { %v6384_v19 = vadd.f32 %v17201_v0, %v6345_v49  ;;  %v6343_v53 = vmul.f32 %v17173_v30, %v6240_v29  ;;  %v6243_v56 = vadd.f32 %v14573_v52, %v5649_v17 }
 0x24d   : > { %v6084_v55 = vpop.f32.mrf.mxu0 }
 0x24e   : > { %vm6416_vm15 = vcmp.ge.f32.partialorder %v6384_v19, 0.0  ;;  %v6448_v54 = vmul.f32 0.01, %v6384_v19  ;;  %v6382_v6 = vadd.f32 %v17201_v0, %v6343_v53  ;;  %v6346_v17 = vmul.f32 %v17173_v30, %v6243_v56 }
 0x24f   : > { %v6241_v34 = vadd.f32 %v6084_v55, %v5647_v1  ;;  %v14576_v4 = vpop.f32.mrf.mxu0 }
 0x250   : > { %v6480_v33 = vsel %vm6416_vm15, %v6384_v19, %v6448_v54  ;;  %vm6414_vm0 = vcmp.ge.f32.partialorder %v6382_v6, 0.0  ;;  %v6446_v46 = vmul.f32 0.01, %v6382_v6  ;;  %v6385_v59 = vadd.f32 %v17201_v0, %v6346_v17  ;;  %v6933_v19 = vld [vmem:[#allocation2 + $0x18] sm:$0xf] }
 0x251   : > { %v13708_v27 = vpack.c.bf16 %v6480_v33, %v6480_v33  ;;  %v6344_v22 = vmul.f32 %v17173_v30, %v6241_v34  ;;  %v6246_v25 = vadd.f32 %v14576_v4, %v5652_v43  ;;  %v6097_v49 = vpop.f32.mrf.mxu0  ;;  %v6926_v17 = vld [vmem:[#allocation2 + $0xc] sm:$0xf] }
 0x252   : > { %v6478_v57 = vsel %vm6414_vm0, %v6382_v6, %v6446_v46  ;;  %vm6417_vm1 = vcmp.ge.f32.partialorder %v6385_v59, 0.0  ;;  %v6449_v21 = vmul.f32 0.01, %v6385_v59  ;;  %v6244_v13 = vadd.f32 %v6097_v49, %v17143_v39  ;;  %v6937_v49 = vld [vmem:[#allocation2 + $0x20] sm:$0x1] }
 0x253   : > { %v6624_v62 = vshrl.u32 %v13708_v27, 16  ;;  %v6627_v1 = vshll.u32 %v13708_v27, 16  ;;  %v13706_v26 = vpack.c.bf16 %v6478_v57, %v6478_v57  ;;  %v6383_v58 = vadd.f32 %v17201_v0, %v6344_v22  ;;  %v14577_v29 = vpop.f32.mrf.mxu0 }
 0x254   : > { %v6481_v28 = vsel %vm6417_vm1, %v6385_v59, %v6449_v21  ;;  %v6349_v24 = vmul.f32 %v17173_v30, %v6246_v25  ;;  %v6347_v61 = vmul.f32 %v17173_v30, %v6244_v13  ;;  %v6247_v3 = vadd.f32 %v14577_v29, %v17148_v20 }
 0x255   : > { %v6626_v43 = vrot.slane %v6624_v62, 7  ;;  %v6607_v14 = vshrl.u32 %v13706_v26, 16  ;;  %v6610_v5 = vshll.u32 %v13706_v26, 16  ;;  %v13709_v60 = vpack.c.bf16 %v6481_v28, %v6481_v28  ;;  %v6100_v52 = vpop.f32.mrf.mxu0 }
 0x256   : > { %vm6415_vm2 = vcmp.ge.f32.partialorder %v6383_v58, 0.0  ;;  %v6447_v39 = vmul.f32 0.01, %v6383_v58  ;;  %v6388_v53 = vadd.f32 %v17201_v0, %v6349_v24  ;;  %v6386_v56 = vadd.f32 %v17201_v0, %v6347_v61 }
 0x257   : > { %v6629_v18 = vor.u32 %v6627_v1, %v6626_v43  ;;  %v6630_v55 = vrot.slane %v6626_v43, 4  ;;  %v6609_v2 = vrot.slane %v6607_v14, 7  ;;  %v6632_v54 = vshrl.u32 %v13709_v60, 16  ;;  %v14580_v6 = vpop.f32.mrf.mxu0 }
 0x258   : > { %v6635_v34 = vshll.u32 %v13709_v60, 16  ;;  %v6479_v20 = vsel %vm6415_vm2, %v6383_v58, %v6447_v39  ;;  %vm6420_vm3 = vcmp.ge.f32.partialorder %v6388_v53, 0.0  ;;  %v6452_v4 = vmul.f32 0.01, %v6388_v53 }
 0x259   : > { %v6934_v46 = vsel %vm15431_vm11, %v6629_v18, %v6933_v19  ;;  %v6612_v59 = vor.u32 %v6610_v5, %v6609_v2  ;;  %v6613_v27 = vrot.slane %v6609_v2, 4  ;;  %v6634_v22 = vrot.slane %v6632_v54, 7  ;;  %v6113_v25 = vpop.f32.mrf.mxu0 }
 0x25a   : > { %6935 = vst [vmem:[#allocation2 + $0x18] sm:$0xf] %v6934_v46  ;;  %v13707_v57 = vpack.c.bf16 %v6479_v20, %v6479_v20  ;;  %v6484_v21 = vsel %vm6420_vm3, %v6388_v53, %v6452_v4  ;;  %vm6418_vm4 = vcmp.ge.f32.partialorder %v6386_v56, 0.0  ;;  %v6450_v13 = vmul.f32 0.01, %v6386_v56 }
 0x25b   : > { %v6927_v62 = vsel %vm15431_vm11, %v6612_v59, %v6926_v17  ;;  %v6637_v1 = vor.u32 %v6635_v34, %v6634_v22  ;;  %v6639_v26 = vrot.slane %v6634_v22, 4  ;;  %v13712_v58 = vpack.c.bf16 %v6484_v21, %v6484_v21  ;;  %v14581_v29 = vpop.f32.mrf.mxu0  ;;  %v6947_v22 = vld [vmem:[#allocation2 + $0x30] sm:$0xf] }
 0x25c   : > { %6928 = vst [vmem:[#allocation2 + $0xc] sm:$0xf] %v6927_v62  ;;  %v6615_v28 = vshrl.u32 %v13707_v57, 16  ;;  %v6618_v24 = vshll.u32 %v13707_v57, 16  ;;  %v6482_v61 = vsel %vm6418_vm4, %v6386_v56, %v6450_v13  ;;  %v6350_v43 = vmul.f32 %v17173_v30, %v6247_v3  ;;  %v6930_v56 = vld [vmem:[#allocation2 + $0x14] sm:$0x1] }
 0x25d   : > { %v6638_v5 = vsel %vm15420_vm10, %v6630_v55, %v6637_v1  ;;  %v6938_v19 = vsel %vm15385_vm5, %v6639_v26, %v6937_v49  ;;  %v6658_v39 = vshrl.u32 %v13712_v58, 16  ;;  %v6661_v53 = vshll.u32 %v13712_v58, 16  ;;  %v6116_v18 = vpop.f32.mrf.mxu0 }
 0x25e   : > { %6936 = vst [vmem:[#allocation2 + $0x1c] sm:$0xf] %v6638_v5  ;;  %6939 = vst [vmem:[#allocation2 + $0x20] sm:$0x1] %v6938_v19  ;;  %v6617_v2 = vrot.slane %v6615_v28, 7  ;;  %v13710_v54 = vpack.c.bf16 %v6482_v61, %v6482_v61  ;;  %v6389_v17 = vadd.f32 %v17201_v0, %v6350_v43  ;;  %v6245_v34 = vadd.f32 %v6100_v52, %v17151_v10 }
 0x25f   : > { %v17274_v20 = vrot.slane %v6658_v39, 7  ;;  %v6250_v3 = vadd.f32 %v14580_v6, %v17155_v37  ;;  %v6248_v55 = vadd.f32 %v6113_v25, %v17160_v9  ;;  %v6251_v4 = vadd.f32 %v14581_v29, %v17164_v44  ;;  %v14584_v52 = vpop.f32.mrf.mxu0  ;;  %v6940_v25 = vld [vmem:[#allocation2 + $0x24] sm:$0xf] }
 0x260   : > { %v6620_v46 = vor.u32 %v6618_v24, %v6617_v2  ;;  %v6622_v59 = vrot.slane %v6617_v2, 4  ;;  %v6641_v49 = vshrl.u32 %v13710_v54, 16  ;;  %v6644_v57 = vshll.u32 %v13710_v54, 16 }
 0x261   : > { %v6663_v21 = vor.u32 %v6661_v53, %v17274_v20  ;;  %v6664_v13 = vrot.slane %v17274_v20, 4  ;;  %vm6421_vm6 = vcmp.ge.f32.partialorder %v6389_v17, 0.0  ;;  %v6453_v10 = vmul.f32 0.01, %v6389_v17  ;;  %v6129_v39 = vpop.f32.mrf.mxu0 }
 0x262   : > { %v6621_v62 = vsel %vm15420_vm10, %v6613_v27, %v6620_v46  ;;  %v6931_v37 = vsel %vm15385_vm5, %v6622_v59, %v6930_v56  ;;  %v17285_v9 = vrot.slane %v6641_v49, 7  ;;  %v6348_v44 = vmul.f32 %v17173_v30, %v6245_v34 }
 0x263   : > { %6929 = vst [vmem:[#allocation2 + $0x10] sm:$0xf] %v6621_v62  ;;  %6932 = vst [vmem:[#allocation2 + $0x14] sm:$0x1] %v6931_v37  ;;  %v6948_v6 = vsel %vm15431_vm11, %v6663_v21, %v6947_v22  ;;  %v6485_v1 = vsel %vm6421_vm6, %v6389_v17, %v6453_v10  ;;  %v6353_v26 = vmul.f32 %v17173_v30, %v6250_v3  ;;  %v17304_v17 = vld [vmem:[%s19332_s1 + $0x338] sm:$0xff]   ;;  %v17313_v49 = vpop.f32.mrf.mxu0 }
 0x264   : > { %v6351_v58 = vmul.f32 %v17173_v30, %v6248_v55  ;;  %6949 = vst [vmem:[#allocation2 + $0x30] sm:$0xf] %v6948_v6  ;;  %v6646_v27 = vor.u32 %v6644_v57, %v17285_v9  ;;  %v6647_v29 = vrot.slane %v17285_v9, 4  ;;  %v13713_v28 = vpack.c.bf16 %v6485_v1, %v6485_v1  ;;  %14746 = vmatprep.subr.bf16.mxu0 %v17304_v17  ;;  %v6951_v55 = vld [vmem:[#allocation2 + $0x38] sm:$0x1] }
 0x265   : > { %v6387_v24 = vadd.f32 %v17201_v0, %v6348_v44  ;;  %v6392_v61 = vadd.f32 %v17201_v0, %v6353_v26  ;;  %v6354_v5 = vmul.f32 %v17173_v30, %v6251_v4  ;;  %v6249_v19 = vadd.f32 %v6116_v18, %v17167_v7  ;;  %v15184_v44 = vld [vmem:[%s19332_s1 + $0x2f0] sm:$0xff]  }
 0x266   : > { %v6390_v43 = vadd.f32 %v17201_v0, %v6351_v58  ;;  %v6941_v53 = vsel %vm15431_vm11, %v6646_v27, %v6940_v25  ;;  %v6666_v2 = vshrl.u32 %v13713_v28, 16  ;;  %v6669_v54 = vshll.u32 %v13713_v28, 16 }
 0x267   : > { %vm6419_vm7 = vcmp.ge.f32.partialorder %v6387_v24, 0.0  ;;  %6942 = vst [vmem:[#allocation2 + $0x24] sm:$0xf] %v6941_v53  ;;  %v6451_v34 = vmul.f32 0.01, %v6387_v24  ;;  %vm6424_vm8 = vcmp.ge.f32.partialorder %v6392_v61, 0.0  ;;  %v6393_v7 = vadd.f32 %v17201_v0, %v6354_v5 }
 0x268   : > { %v6456_v56 = vmul.f32 0.01, %v6392_v61  ;;  %vm6422_vm12 = vcmp.ge.f32.partialorder %v6390_v43, 0.0  ;;  %v6668_v20 = vrot.slane %v6666_v2, 7  ;;  %v6454_v3 = vmul.f32 0.01, %v6390_v43 }
 0x269   : > { %v6352_v18 = vmul.f32 %v17173_v30, %v6249_v19  ;;  %v6483_v4 = vsel %vm6419_vm7, %v6387_v24, %v6451_v34  ;;  %v6254_v59 = vadd.f32 %v14584_v52, %v17177_v8  ;;  %v17311_v22 = vadd.f32 %v6129_v39, %v17181_v41  ;;  %v15180_v52 = vld [vmem:[#allocation2 + $0x18] sm:$0xff]   ;;  %v19530_v5 = vld [vmem:[#allocation49_spill] sm:$0xff]  ;;  %v6944_v2 = vld [vmem:[#allocation2 + $0x2c] sm:$0x1] }
 0x26a   : > { %v6488_v46 = vsel %vm6424_vm8, %v6392_v61, %v6456_v56  ;;  %v6671_v57 = vor.u32 %v6669_v54, %v6668_v20  ;;  %v6673_v21 = vrot.slane %v6668_v20, 4  ;;  %v13711_v10 = vpack.c.bf16 %v6483_v4, %v6483_v4  ;;  %v15178_v37 = vld [vmem:[#allocation2 + $0xc] sm:$0xff]  }
 0x26b   : > { %v13716_v62 = vpack.c.bf16 %v6488_v46, %v6488_v46  ;;  %v6486_v6 = vsel %vm6422_vm12, %v6390_v43, %v6454_v3  ;;  %vm6425_vm13 = vcmp.ge.f32.partialorder %v6393_v7, 0.0  ;;  %v6457_v25 = vmul.f32 0.01, %v6393_v7  ;;  %14619 = vmatmul.mubr.bf16.vlgmr.msra.gmra.mxu1 %v15178_v37  ;;  %v6132_v43 = vpop.f32.mrf.mxu0 }
 0x26c   : > { %v6391_v8 = vadd.f32 %v17201_v0, %v6352_v18  ;;  %v6672_v41 = vsel %vm15420_vm10, %v6664_v13, %v6671_v57  ;;  %v6952_v1 = vsel %vm15385_vm5, %v6673_v21, %v6951_v55  ;;  %v6649_v26 = vshrl.u32 %v13711_v10, 16  ;;  %14622 = vmatprep.mubr.bf16.mxu1 %v15180_v52  ;;  %14699 = vmatpush3.bf16.msra.mxu1 %v19530_v5  ;;  %v15187_v13 = vld [vmem:[%s19332_s1 + $0x2e8] sm:$0xff]  }
 0x26d   : > { %v6652_v58 = vshll.u32 %v13711_v10, 16  ;;  %6950 = vst [vmem:[#allocation2 + $0x34] sm:$0xf] %v6672_v41  ;;  %6953 = vst [vmem:[#allocation2 + $0x38] sm:$0x1] %v6952_v1  ;;  %v6692_v27 = vshrl.u32 %v13716_v62, 16  ;;  %v13714_v24 = vpack.c.bf16 %v6486_v6, %v6486_v6  ;;  %v6489_v61 = vsel %vm6425_vm13, %v6393_v7, %v6457_v25  ;;  %14700 = vmatprep.subr.bf16.mxu1 %v15184_v44  ;;  %v14588_v37 = vpop.f32.mrf.mxu0 }
 0x26e   : > { %v6695_v28 = vshll.u32 %v13716_v62, 16  ;;  %v6651_v19 = vrot.slane %v6649_v26, 7  ;;  %v13717_v39 = vpack.c.bf16 %v6489_v61, %v6489_v61  ;;  %vm6423_vm15 = vcmp.ge.f32.partialorder %v6391_v8, 0.0  ;;  %v6961_v18 = vld [vmem:[#allocation2 + $0x48] sm:$0xf]  ;;  %v15190_v41 = vld [vmem:[%s19332_s1 + $0x2e0] sm:$0xff]  }
 0x26f   : > { %v6455_v53 = vmul.f32 0.01, %v6391_v8  ;;  %v6694_v54 = vrot.slane %v6692_v27, 7  ;;  %v6675_v34 = vshrl.u32 %v13714_v24, 16  ;;  %v6678_v56 = vshll.u32 %v13714_v24, 16 }
 0x270   : > { %v6357_v20 = vmul.f32 %v17173_v30, %v6254_v59  ;;  %v6654_v3 = vor.u32 %v6652_v58, %v6651_v19  ;;  %v6656_v7 = vrot.slane %v6651_v19, 4  ;;  %v6700_v55 = vshrl.u32 %v13717_v39, 16  ;;  %v6954_v10 = vld [vmem:[#allocation2 + $0x3c] sm:$0xf]  ;;  %14701 = vmatpush3.bf16.msra.mxu1 %v15184_v44  ;;  %v6965_v1 = vld [vmem:[#allocation2 + $0x50] sm:$0x1]  ;;  %v6145_v19 = vpop.f32.mrf.mxu0 }
 0x271   : > { %v6703_v4 = vshll.u32 %v13717_v39, 16  ;;  %v6697_v46 = vor.u32 %v6695_v28, %v6694_v54  ;;  %v6698_v57 = vrot.slane %v6694_v54, 4  ;;  %v6677_v21 = vrot.slane %v6675_v34, 7  ;;  %14702 = vmatprep.subr.bf16.mxu1 %v15187_v13  ;;  %v15193_v34 = vld [vmem:[%s19332_s1 + $0x2d8] sm:$0xff]  }
 0x272   : > { %v6487_v62 = vsel %vm6423_vm15, %v6391_v8, %v6455_v53  ;;  %v6655_v6 = vsel %vm15420_vm10, %v6647_v29, %v6654_v3  ;;  %v6945_v59 = vsel %vm15385_vm5, %v6656_v7, %v6944_v2  ;;  %v6702_v25 = vrot.slane %v6700_v55, 7 }
 0x273   : > { %v13715_v52 = vpack.c.bf16 %v6487_v62, %v6487_v62  ;;  %6943 = vst [vmem:[#allocation2 + $0x28] sm:$0xf] %v6655_v6  ;;  %6946 = vst [vmem:[#allocation2 + $0x2c] sm:$0x1] %v6945_v59  ;;  %v6962_v44 = vsel %vm15431_vm11, %v6697_v46, %v6961_v18  ;;  %v6680_v8 = vor.u32 %v6678_v56, %v6677_v21  ;;  %v6681_v9 = vrot.slane %v6677_v21, 4  ;;  %v15196_v62 = vld [vmem:[%s19332_s1 + $0x2d0] sm:$0xff]  }
 0x274   : > { %v6396_v29 = vadd.f32 %v17201_v0, %v6357_v20  ;;  %6963 = vst [vmem:[#allocation2 + $0x48] sm:$0xf] %v6962_v44  ;;  %v6705_v26 = vor.u32 %v6703_v4, %v6702_v25  ;;  %v6707_v58 = vrot.slane %v6702_v25, 4  ;;  %v6355_v5 = vmul.f32 %v17173_v30, %v17311_v22  ;;  %14703 = vmatpush3.bf16.msra.mxu1 %v15187_v13  ;;  %v6958_v22 = vld [vmem:[#allocation2 + $0x44] sm:$0x1] }
 0x275   : > { %v6683_v27 = vshrl.u32 %v13715_v52, 16  ;;  %v6686_v28 = vshll.u32 %v13715_v52, 16  ;;  %v6955_v24 = vsel %vm15431_vm11, %v6680_v8, %v6954_v10  ;;  %v6255_v54 = vadd.f32 %v17313_v49, %v17185_v50  ;;  %14704 = vmatprep.subr.bf16.mxu1 %v15190_v41  ;;  %v15185_v52 = vld [vmem:[#allocation2 + $0x30] sm:$0xff]   ;;  %v6975_v44 = vld [vmem:[#allocation2 + $0x60] sm:$0xf] }
 0x276   : > { %vm6428_vm0 = vcmp.ge.f32.partialorder %v6396_v29, 0.0  ;;  %v6460_v61 = vmul.f32 0.01, %v6396_v29  ;;  %6956 = vst [vmem:[#allocation2 + $0x3c] sm:$0xf] %v6955_v24  ;;  %v6706_v39 = vsel %vm15420_vm10, %v6698_v57, %v6705_v26  ;;  %v6966_v53 = vsel %vm15385_vm5, %v6707_v58, %v6965_v1  ;;  %v14589_v57 = vpop.f32.mrf.mxu0 }
 0x277   : > { %v6685_v2 = vrot.slane %v6683_v27, 7  ;;  %6964 = vst [vmem:[#allocation2 + $0x4c] sm:$0xf] %v6706_v39  ;;  %6967 = vst [vmem:[#allocation2 + $0x50] sm:$0x1] %v6966_v53  ;;  %v6394_v56 = vadd.f32 %v17201_v0, %v6355_v5  ;;  %v6253_v20 = vadd.f32 %v6132_v43, %v17188_v11  ;;  %v6258_v3 = vadd.f32 %v14588_v37, %v17192_v23 }
 0x278   : > { %v6492_v13 = vsel %vm6428_vm0, %v6396_v29, %v6460_v61  ;;  %v6358_v50 = vmul.f32 %v17173_v30, %v6255_v54  ;;  %14705 = vmatpush3.bf16.msra.mxu1 %v15190_v41  ;;  %v6259_v1 = vadd.f32 %v14589_v57, %v17205_v40  ;;  %v6148_v58 = vpop.f32.mrf.mxu0 }
 0x279   : > { %v6688_v7 = vor.u32 %v6686_v28, %v6685_v2  ;;  %v6690_v18 = vrot.slane %v6685_v2, 4  ;;  %v13720_v55 = vpack.c.bf16 %v6492_v13, %v6492_v13  ;;  %vm6426_vm1 = vcmp.ge.f32.partialorder %v6394_v56, 0.0  ;;  %14706 = vmatprep.subr.bf16.mxu1 %v15193_v34 }
 0x27a   : > { %v6458_v49 = vmul.f32 0.01, %v6394_v56  ;;  %v6356_v4 = vmul.f32 %v17173_v30, %v6253_v20  ;;  %v6361_v46 = vmul.f32 %v17173_v30, %v6258_v3  ;;  %v15183_v10 = vld [vmem:[#allocation2 + $0x24] sm:$0xff]   ;;  %v6397_v6 = vadd.f32 %v17201_v0, %v6358_v50  ;;  %v14592_v3 = vpop.f32.mrf.mxu0 }
 0x27b   : > { %v6689_v21 = vsel %vm15420_vm10, %v6681_v9, %v6688_v7  ;;  %v6959_v11 = vsel %vm15385_vm5, %v6690_v18, %v6958_v22  ;;  %v6726_v23 = vshrl.u32 %v13720_v55, 16  ;;  %v6729_v43 = vshll.u32 %v13720_v55, 16  ;;  %14623 = vmatmul.mubr.bf16.gmra.mxu1 %v15183_v10  ;;  %v15206_v7 = vld [vmem:[%s19332_s1 + $0x2c0] sm:$0xff]   ;;  %v6979_v10 = vld [vmem:[#allocation2 + $0x68] sm:$0x1] }
 0x27c   : > { %6957 = vst [vmem:[#allocation2 + $0x40] sm:$0xf] %v6689_v21  ;;  %6960 = vst [vmem:[#allocation2 + $0x44] sm:$0x1] %v6959_v11  ;;  %v6490_v37 = vsel %vm6426_vm1, %v6394_v56, %v6458_v49  ;;  %v6395_v59 = vadd.f32 %v17201_v0, %v6356_v4  ;;  %v6400_v25 = vadd.f32 %v17201_v0, %v6361_v46  ;;  %vm6429_vm2 = vcmp.ge.f32.partialorder %v6397_v6, 0.0 }
 0x27d   : > { %v17371_v41 = vrot.slane %v6726_v23, 7  ;;  %v13718_v8 = vpack.c.bf16 %v6490_v37, %v6490_v37  ;;  %v6256_v9 = vadd.f32 %v6145_v19, %v17196_v16  ;;  %v6461_v29 = vmul.f32 0.01, %v6397_v6  ;;  %14626 = vmatprep.mubr.bf16.mxu1 %v15185_v52  ;;  %14707 = vmatpush3.bf16.msra.mxu1 %v15193_v34  ;;  %v15201_v16 = vld [vmem:[%s19332_s1 + $0x2c8] sm:$0xff]   ;;  %v6968_v34 = vld [vmem:[#allocation2 + $0x54] sm:$0xf] }
 0x27e   : > { %vm6427_vm3 = vcmp.ge.f32.partialorder %v6395_v59, 0.0  ;;  %v6459_v26 = vmul.f32 0.01, %v6395_v59  ;;  %14708 = vmatprep.subr.bf16.mxu1 %v15196_v62  ;;  %vm6432_vm4 = vcmp.ge.f32.partialorder %v6400_v25, 0.0  ;;  %v6464_v19 = vmul.f32 0.01, %v6400_v25 }
 0x27f   : > { %v6731_v27 = vor.u32 %v6729_v43, %v17371_v41  ;;  %v6732_v28 = vrot.slane %v17371_v41, 4  ;;  %v6709_v24 = vshrl.u32 %v13718_v8, 16  ;;  %v6712_v61 = vshll.u32 %v13718_v8, 16  ;;  %v15188_v23 = vld [vmem:[#allocation2 + $0x48] sm:$0xff]   ;;  %v6161_v41 = vpop.f32.mrf.mxu0 }
 0x280   : > { %v6493_v40 = vsel %vm6429_vm2, %v6397_v6, %v6461_v29  ;;  %v6491_v5 = vsel %vm6427_vm3, %v6395_v59, %v6459_v26  ;;  %v6496_v22 = vsel %vm6432_vm4, %v6400_v25, %v6464_v19  ;;  %v6359_v13 = vmul.f32 %v17173_v30, %v6256_v9  ;;  %v6972_v59 = vld [vmem:[#allocation2 + $0x5c] sm:$0x1] }
 0x281   : > { %v6976_v39 = vsel %vm15431_vm11, %v6731_v27, %v6975_v44  ;;  %v6711_v53 = vrot.slane %v6709_v24, 7  ;;  %v13721_v2 = vpack.c.bf16 %v6493_v40, %v6493_v40  ;;  %v13719_v54 = vpack.c.bf16 %v6491_v5, %v6491_v5  ;;  %14709 = vmatpush3.bf16.msra.mxu1 %v15196_v62 }
 0x282   : > { %6977 = vst [vmem:[#allocation2 + $0x60] sm:$0xf] %v6976_v39  ;;  %v6362_v56 = vmul.f32 %v17173_v30, %v6259_v1  ;;  %v6257_v20 = vadd.f32 %v6148_v58, %v17208_v48  ;;  %14710 = vmatprep.subr.bf16.mxu1 %v15201_v16  ;;  %v13724_v21 = vpack.c.bf16 %v6496_v22, %v6496_v22  ;;  %v15209_v1 = vld [vmem:[%s19332_s1 + $0x378] sm:$0xff]  }
 0x283   : > { %v6714_v18 = vor.u32 %v6712_v61, %v6711_v53  ;;  %v6715_v55 = vrot.slane %v6711_v53, 4  ;;  %v6734_v50 = vshrl.u32 %v13721_v2, 16  ;;  %v6737_v49 = vshll.u32 %v13721_v2, 16  ;;  %v15186_v4 = vld [vmem:[#allocation2 + $0x3c] sm:$0xff]   ;;  %v14593_v2 = vpop.f32.mrf.mxu0 }
 0x284   : > { %v6717_v46 = vshrl.u32 %v13719_v54, 16  ;;  %v6720_v57 = vshll.u32 %v13719_v54, 16  ;;  %v6398_v11 = vadd.f32 %v17201_v0, %v6359_v13  ;;  %v6401_v62 = vadd.f32 %v17201_v0, %v6362_v56  ;;  %14627 = vmatmul.mubr.bf16.gmra.mxu1 %v15186_v4 }
 0x285   : > { %v6969_v48 = vsel %vm15431_vm11, %v6714_v18, %v6968_v34  ;;  %v6736_v43 = vrot.slane %v6734_v50, 7  ;;  %v6360_v37 = vmul.f32 %v17173_v30, %v6257_v20  ;;  %v6760_v25 = vshrl.u32 %v13724_v21, 16  ;;  %14630 = vmatprep.mubr.bf16.mxu1 %v15188_v23  ;;  %14711 = vmatpush3.bf16.msra.mxu1 %v15201_v16  ;;  %v6989_v16 = vld [vmem:[#allocation2 + $0x78] sm:$0xf] }
 0x286   : > { %6970 = vst [vmem:[#allocation2 + $0x54] sm:$0xf] %v6969_v48  ;;  %v6719_v6 = vrot.slane %v6717_v46, 7  ;;  %v6763_v52 = vshll.u32 %v13724_v21, 16  ;;  %vm6430_vm6 = vcmp.ge.f32.partialorder %v6398_v11, 0.0  ;;  %vm6433_vm7 = vcmp.ge.f32.partialorder %v6401_v62, 0.0  ;;  %14712 = vmatprep.subr.bf16.mxu1 %v15206_v7 }
 0x287   : > { %v6739_v44 = vor.u32 %v6737_v49, %v6736_v43  ;;  %v6741_v8 = vrot.slane %v6736_v43, 4  ;;  %v6462_v9 = vmul.f32 0.01, %v6398_v11  ;;  %v17396_v58 = vrot.slane %v6760_v25, 7  ;;  %v6982_v48 = vld [vmem:[#allocation2 + $0x6c] sm:$0xf] }
 0x288   : > { %v6722_v29 = vor.u32 %v6720_v57, %v6719_v6  ;;  %v6724_v26 = vrot.slane %v6719_v6, 4  ;;  %v6465_v27 = vmul.f32 0.01, %v6401_v62  ;;  %v6399_v5 = vadd.f32 %v17201_v0, %v6360_v37  ;;  %v6986_v25 = vld [vmem:[#allocation2 + $0x74] sm:$0x1] }
 0x289   : > { %v6740_v24 = vsel %vm15420_vm10, %v6732_v28, %v6739_v44  ;;  %v6980_v61 = vsel %vm15385_vm5, %v6741_v8, %v6979_v10  ;;  %v6494_v40 = vsel %vm6430_vm6, %v6398_v11, %v6462_v9  ;;  %v6765_v53 = vor.u32 %v6763_v52, %v17396_v58  ;;  %14713 = vmatpush3.bf16.msra.mxu1 %v15206_v7  ;;  %v6993_v10 = vld [vmem:[#allocation2 + $0x80] sm:$0x1] }
 0x28a   : > { %6978 = vst [vmem:[#allocation2 + $0x64] sm:$0xf] %v6740_v24  ;;  %6981 = vst [vmem:[#allocation2 + $0x68] sm:$0x1] %v6980_v61  ;;  %v6723_v19 = vsel %vm15420_vm10, %v6715_v55, %v6722_v29  ;;  %v6973_v39 = vsel %vm15385_vm5, %v6724_v26, %v6972_v59  ;;  %v6766_v28 = vrot.slane %v17396_v58, 4  ;;  %v13722_v54 = vpack.c.bf16 %v6494_v40, %v6494_v40 }
 0x28b   : > { %6971 = vst [vmem:[#allocation2 + $0x58] sm:$0xf] %v6723_v19  ;;  %6974 = vst [vmem:[#allocation2 + $0x5c] sm:$0x1] %v6973_v39  ;;  %v6497_v34 = vsel %vm6433_vm7, %v6401_v62, %v6465_v27  ;;  %vm6431_vm8 = vcmp.ge.f32.partialorder %v6399_v5, 0.0  ;;  %14794 = vmatprep.subr.bf16.mxu1 %v15209_v1  ;;  %v6990_v13 = vsel %vm15431_vm11, %v6765_v53, %v6989_v16  ;;  %v17432_v39 = vpop.f32.mrf.mxu0 }
 0x28c   : > { %v6463_v22 = vmul.f32 0.01, %v6399_v5  ;;  %v13725_v56 = vpack.c.bf16 %v6497_v34, %v6497_v34  ;;  %v6262_v20 = vadd.f32 %v14592_v3, %v17213_v32  ;;  %v6260_v18 = vadd.f32 %v6161_v41, %v17217_v42  ;;  %v17415_v55 = vld [vmem:[#allocation2 + $0xc] sm:$0xf]  ;;  %6991 = vst [vmem:[#allocation2 + $0x78] sm:$0xf] %v6990_v13 }
 0x28d   : > { %v6743_v7 = vshrl.u32 %v13722_v54, 16  ;;  %v6746_v50 = vshll.u32 %v13722_v54, 16  ;;  %v6263_v4 = vadd.f32 %v14593_v2, %v17221_v35  ;;  %v7497_v42 = vshrl.u32 %v17415_v55, 16  ;;  %v7428_v16 = vld [vmem:[#allocation2 + $0x10] sm:$0xf] }
 0x28e   : > { %v6495_v49 = vsel %vm6431_vm8, %v6399_v5, %v6463_v22  ;;  %v6768_v46 = vshrl.u32 %v13725_v56, 16  ;;  %v6771_v57 = vshll.u32 %v13725_v56, 16  ;;  %v6365_v11 = vmul.f32 %v17173_v30, %v6262_v20  ;;  %v7430_v34 = vld [vmem:[#allocation2 + $0x18] sm:$0xf]  ;;  %v7429_v13 = vld [vmem:[#allocation2 + $0x14] sm:$0x1] }
 0x28f   : > { %v13723_v21 = vpack.c.bf16 %v6495_v49, %v6495_v49  ;;  %v6745_v23 = vrot.slane %v6743_v7, 7  ;;  %v6363_v43 = vmul.f32 %v17173_v30, %v6260_v18  ;;  %v6366_v32 = vmul.f32 %v17173_v30, %v6263_v4 }
 0x290   : > { %v6770_v3 = vrot.slane %v6768_v46, 7  ;;  %v6404_v6 = vadd.f32 %v17201_v0, %v6365_v11  ;;  %v7499_v56 = vrot.slane %v7497_v42, 4  ;;  %v7500_v20 = vshll.u32 %v17415_v55, 16  ;;  %v7003_v46 = vld [vmem:[#allocation2 + $0x90] sm:$0xf] }
 0x291   : > { %v6751_v62 = vshrl.u32 %v13723_v21, 16  ;;  %v6754_v37 = vshll.u32 %v13723_v21, 16  ;;  %v6748_v35 = vor.u32 %v6746_v50, %v6745_v23  ;;  %v6749_v59 = vrot.slane %v6745_v23, 4  ;;  %v15191_v58 = vld [vmem:[#allocation2 + $0x60] sm:$0xff]  }
 0x292   : > { %v6402_v52 = vadd.f32 %v17201_v0, %v6363_v43  ;;  %v6405_v41 = vadd.f32 %v17201_v0, %v6366_v32  ;;  %v6773_v44 = vor.u32 %v6771_v57, %v6770_v3  ;;  %v6775_v8 = vrot.slane %v6770_v3, 4  ;;  %v15189_v30 = vld [vmem:[#allocation2 + $0x54] sm:$0xff]   ;;  %v6996_v3 = vld [vmem:[#allocation2 + $0x84] sm:$0xf] }
 0x293   : > { %v6753_v9 = vrot.slane %v6751_v62, 7  ;;  %vm6436_vm12 = vcmp.ge.f32.partialorder %v6404_v6, 0.0  ;;  %v6983_v1 = vsel %vm15431_vm11, %v6748_v35, %v6982_v48  ;;  %v6468_v29 = vmul.f32 0.01, %v6404_v6  ;;  %14631 = vmatmul.mubr.bf16.gmra.mxu1 %v15189_v30  ;;  %v14596_v48 = vpop.f32.mrf.mxu0 }
 0x294   : > { %vm6434_vm13 = vcmp.ge.f32.partialorder %v6402_v52, 0.0  ;;  %v6466_v26 = vmul.f32 0.01, %v6402_v52  ;;  %6984 = vst [vmem:[#allocation2 + $0x6c] sm:$0xf] %v6983_v1  ;;  %v6774_v27 = vsel %vm15420_vm10, %v6766_v28, %v6773_v44  ;;  %v6994_v24 = vsel %vm15385_vm5, %v6775_v8, %v6993_v10  ;;  %14634 = vmatprep.mubr.bf16.mxu1 %v15191_v58 }
 0x295   : > { %v6756_v0 = vor.u32 %v6754_v37, %v6753_v9  ;;  %v6758_v61 = vrot.slane %v6753_v9, 4  ;;  %6992 = vst [vmem:[#allocation2 + $0x7c] sm:$0xf] %v6774_v27  ;;  %6995 = vst [vmem:[#allocation2 + $0x80] sm:$0x1] %v6994_v24  ;;  %v6500_v40 = vsel %vm6436_vm12, %v6404_v6, %v6468_v29  ;;  %vm6437_vm15 = vcmp.ge.f32.partialorder %v6405_v41, 0.0 }
 0x296   : > { %v6498_v5 = vsel %vm6434_vm13, %v6402_v52, %v6466_v26  ;;  %v6469_v19 = vmul.f32 0.01, %v6405_v41  ;;  %v13728_v2 = vpack.c.bf16 %v6500_v40, %v6500_v40  ;;  %v7506_v18 = vshll.u32 %v7428_v16, 16  ;;  %v7431_v44 = vld [vmem:[#allocation2 + $0x1c] sm:$0xf]  ;;  %v6177_v26 = vpop.f32.mrf.mxu0 }
 0x297   : > { %v6757_v53 = vsel %vm15420_vm10, %v6749_v59, %v6756_v0  ;;  %v6987_v28 = vsel %vm15385_vm5, %v6758_v61, %v6986_v25  ;;  %v13726_v54 = vpack.c.bf16 %v6498_v5, %v6498_v5  ;;  %v7502_v21 = vrot.slane %v7500_v20, 5  ;;  %v7432_v29 = vld [vmem:[#allocation2 + $0x20] sm:$0x1] }
 0x298   : > { %6985 = vst [vmem:[#allocation2 + $0x70] sm:$0xf] %v6757_v53  ;;  %6988 = vst [vmem:[#allocation2 + $0x74] sm:$0x1] %v6987_v28  ;;  %v6501_v22 = vsel %vm6437_vm15, %v6405_v41, %v6469_v19  ;;  %v6794_v7 = vshrl.u32 %v13728_v2, 16  ;;  %v6797_v50 = vshll.u32 %v13728_v2, 16 }
 0x299   : > { %v6777_v49 = vshrl.u32 %v13726_v54, 16  ;;  %v6780_v4 = vshll.u32 %v13726_v54, 16  ;;  %v13729_v57 = vpack.c.bf16 %v6501_v22, %v6501_v22  ;;  %v7508_v11 = vrot.slane %v7506_v18, 5  ;;  %v7007_v41 = vld [vmem:[#allocation2 + $0x98] sm:$0x1] }
 0x29a   : > { %v7510_v23 = vshrl.u32 %v7428_v16, 16  ;;  %v6796_v43 = vrot.slane %v6794_v7, 7  ;;  %v7516_v10 = vshll.u32 %v7429_v13, 16  ;;  %v7521_v62 = vshrl.u32 %v7430_v34, 16  ;;  %v14597_v7 = vpop.f32.mrf.mxu0 }
 0x29b   : > { %v17439_v32 = vrot.slane %v6777_v49, 7  ;;  %v6802_v42 = vshrl.u32 %v13729_v57, 16  ;;  %v6805_v37 = vshll.u32 %v13729_v57, 16  ;;  %v7503_v55 = vor.u32 %v7502_v21, %v7499_v56  ;;  %v15199_v49 = vld [vmem:[%s19332_s1 + $0x330] sm:$0xff]  }
 0x29c   : > { %v7512_v6 = vrot.slane %v7510_v23, 4  ;;  %v6799_v35 = vor.u32 %v6797_v50, %v6796_v43  ;;  %v6800_v59 = vrot.slane %v6796_v43, 4  ;;  %v7518_v1 = vrot.slane %v7516_v10, 5  ;;  %v15194_v28 = vld [vmem:[#allocation2 + $0x78] sm:$0xff]   ;;  %v7433_v50 = vld [vmem:[#allocation2 + $0x24] sm:$0xf] }
 0x29d   : > { %v6782_v25 = vor.u32 %v6780_v4, %v17439_v32  ;;  %v6783_v52 = vrot.slane %v17439_v32, 4  ;;  %v6804_v8 = vrot.slane %v6802_v42, 7  ;;  %v7504_v9 = vrot.slane %v7503_v55, 4  ;;  %v17463_v23 = vld [vmem:[%s19333_s2] ss:$0 sm:$0xff] }
 0x29e   : > { %v7513_v30 = vor.u32 %v7512_v6, %v7508_v11  ;;  %v7004_v58 = vsel %vm15431_vm11, %v6799_v35, %v7003_v46  ;;  %v7523_v24 = vrot.slane %v7521_v62, 4  ;;  %v7524_v0 = vshll.u32 %v7430_v34, 16 }
 0x29f   : > { %v6997_v27 = vsel %vm15431_vm11, %v6782_v25, %v6996_v3  ;;  %v15192_v61 = vld [vmem:[#allocation2 + $0x6c] sm:$0xff]   ;;  %7005 = vst [vmem:[#allocation2 + $0x90] sm:$0xf] %v7004_v58  ;;  %v6807_v16 = vor.u32 %v6805_v37, %v6804_v8  ;;  %v6809_v40 = vrot.slane %v6804_v8, 4  ;;  %v7509_v19 = vsel %vm15406_vm9, %v7504_v9, %v7508_v11  ;;  %v17472_v37 = vld [vmem:[%s19334_s3] ss:$0 sm:$0xff] }
 0x2a0   : > { %6998 = vst [vmem:[#allocation2 + $0x84] sm:$0xf] %v6997_v27  ;;  %v7514_v53 = vrot.slane %v7513_v30, 4  ;;  %v7526_v2 = vrot.slane %v7524_v0, 5  ;;  %v7530_v54 = vshll.u32 %v7431_v44, 16  ;;  %v7534_v22 = vshrl.u32 %v7431_v44, 16  ;;  %14635 = vmatmul.mubr.bf16.gmra.mxu1 %v15192_v61  ;;  %v17489_v61 = vpop.f32.mrf.mxu0 }
 0x2a1   : > { %v7540_v13 = vshll.u32 %v7432_v29, 16  ;;  %v6808_v56 = vsel %vm15420_vm10, %v6800_v59, %v6807_v16  ;;  %v7008_v34 = vsel %vm15385_vm5, %v6809_v40, %v7007_v41  ;;  %v6261_v18 = vadd.f32 %v17432_v39, %v17224_v38  ;;  %14638 = vmatprep.mubr.bf16.mxu1 %v15194_v28  ;;  %v15204_v16 = vld [vmem:[%s19332_s1 + $0x320] sm:$0xff]  }
 0x2a2   : > { %v7519_v20 = vsel %vm15406_vm9, %v7514_v53, %v7518_v1  ;;  %7006 = vst [vmem:[#allocation2 + $0x94] sm:$0xf] %v6808_v56  ;;  %7009 = vst [vmem:[#allocation2 + $0x98] sm:$0x1] %v7008_v34  ;;  %v7527_v46 = vor.u32 %v7526_v2, %v7523_v24  ;;  %v7532_v57 = vrot.slane %v7530_v54, 5  ;;  %v7536_v21 = vrot.slane %v7534_v22, 4 }
 0x2a3   : > { %v13347_v4 = vcombine.low %v7509_v19, %v7519_v20  ;;  %v7542_v11 = vrot.slane %v7540_v13, 5  ;;  %v6364_v38 = vmul.f32 %v17463_v23, %v6261_v18  ;;  %v6266_v39 = vadd.f32 %v14596_v48, %v17228_v31  ;;  %v7434_v31 = vld [vmem:[#allocation2 + $0x28] sm:$0xf]  ;;  %v7435_v56 = vld [vmem:[#allocation2 + $0x2c] sm:$0x1] }
 0x2a4   : > { %v6264_v43 = vadd.f32 %v6177_v26, %v17234_v12  ;;  %v7528_v3 = vrot.slane %v7527_v46, 4  ;;  %v7537_v10 = vor.u32 %v7536_v21, %v7532_v57  ;;  %v6267_v62 = vadd.f32 %v14597_v7, %v17238_v15  ;;  %v15203_v12 = vld [vmem:[%s19332_s1 + $0x328] sm:$0xff]   ;;  %v17499_v21 = vpop.f32.mrf.mxu0 }
 0x2a5   : > { %14667 = vmatmul.mubr.bf16.vlgmr.msra.gmra.mxu0 %v13347_v4  ;;  %v7545_v42 = vshrl.u32 %v7433_v50, 16  ;;  %v6403_v55 = vadd.f32 %v17472_v37, %v6364_v38  ;;  %v6369_v6 = vmul.f32 %v17463_v23, %v6266_v39  ;;  %v7548_v48 = vshll.u32 %v7433_v50, 16  ;;  %v7000_v34 = vld [vmem:[#allocation2 + $0x8c] sm:$0x1]  ;;  %v7017_v38 = vld [vmem:[#allocation2 + $0xa8] sm:$0xf] }
 0x2a6   : > { %v6367_v35 = vmul.f32 %v17463_v23, %v6264_v43  ;;  %14747 = vmatpush3.bf16.msra.mxu0 %v17304_v17  ;;  %v7533_v15 = vsel %vm15406_vm9, %v7528_v3, %v7532_v57  ;;  %v7538_v59 = vrot.slane %v7537_v10, 4  ;;  %v6370_v25 = vmul.f32 %v17463_v23, %v6267_v62 }
 0x2a7   : > { %v7547_v41 = vrot.slane %v7545_v42, 4  ;;  %14748 = vmatprep.subr.bf16.mxu0 %v15199_v49  ;;  %vm6435_vm0 = vcmp.ge.f32.partialorder %v6403_v55, 0.0  ;;  %v6467_v44 = vmul.f32 0.01, %v6403_v55  ;;  %v6408_v8 = vadd.f32 %v17472_v37, %v6369_v6  ;;  %v7010_v6 = vld [vmem:[#allocation2 + $0x9c] sm:$0xf] }
 0x2a8   : > { %v6406_v9 = vadd.f32 %v17472_v37, %v6367_v35  ;;  %v7543_v17 = vsel %vm15406_vm9, %v7538_v59, %v7542_v11  ;;  %v6409_v30 = vadd.f32 %v17472_v37, %v6370_v25  ;;  %v7550_v1 = vrot.slane %v7548_v48, 5  ;;  %v15207_v11 = vld [vmem:[%s19332_s1 + $0x318] sm:$0xff]   ;;  %v7436_v59 = vld [vmem:[#allocation2 + $0x30] sm:$0xf] }
 0x2a9   : > { %v7554_v29 = vshll.u32 %v7434_v31, 16  ;;  %v13348_v26 = vcombine.low %v7533_v15, %v7543_v17  ;;  %v6499_v58 = vsel %vm6435_vm0, %v6403_v55, %v6467_v44  ;;  %vm6440_vm1 = vcmp.ge.f32.partialorder %v6408_v8, 0.0  ;;  %v7437_v17 = vld [vmem:[#allocation2 + $0x34] sm:$0xf] }
 0x2aa   : > { %v6472_v27 = vmul.f32 0.01, %v6408_v8  ;;  %14749 = vmatpush3.bf16.msra.mxu0 %v15199_v49  ;;  %v13727_v24 = vpack.c.bf16 %v6499_v58, %v6499_v58  ;;  %vm6438_vm2 = vcmp.ge.f32.partialorder %v6406_v9, 0.0  ;;  %v6470_v0 = vmul.f32 0.01, %v6406_v9 }
 0x2ab   : > { %vm6441_vm3 = vcmp.ge.f32.partialorder %v6409_v30, 0.0  ;;  %14750 = vmatprep.subr.bf16.mxu0 %v15203_v12  ;;  %14670 = vmatprep.mubr.bf16.mxu0 %v13348_v26  ;;  %v6473_v19 = vmul.f32 0.01, %v6409_v30  ;;  %v7551_v53 = vor.u32 %v7550_v1, %v7547_v41  ;;  %v17494_v28 = vrot.slane %v7554_v29, 5  ;;  %v15208_v1 = vld [vmem:[%s19332_s1 + $0x310] sm:$0xff]  }
 0x2ac   : > { %v6504_v40 = vsel %vm6440_vm1, %v6408_v8, %v6472_v27  ;;  %v6785_v2 = vshrl.u32 %v13727_v24, 16  ;;  %v6788_v54 = vshll.u32 %v13727_v24, 16  ;;  %v6502_v13 = vsel %vm6438_vm2, %v6406_v9, %v6470_v0  ;;  %v7021_v9 = vld [vmem:[#allocation2 + $0xb0] sm:$0x1]  ;;  %v7438_v58 = vld [vmem:[#allocation2 + $0x38] sm:$0x1] }
 0x2ad   : > { %v13732_v22 = vpack.c.bf16 %v6504_v40, %v6504_v40  ;;  %v13730_v20 = vpack.c.bf16 %v6502_v13, %v6502_v13  ;;  %v6505_v18 = vsel %vm6441_vm3, %v6409_v30, %v6473_v19  ;;  %v17497_v7 = vrot.slane %v7551_v53, 4  ;;  %v6193_v30 = vpop.f32.mrf.mxu0 }
 0x2ae   : > { %v7558_v50 = vshrl.u32 %v7434_v31, 16  ;;  %14751 = vmatpush3.bf16.msra.mxu0 %v15203_v12  ;;  %v6787_v49 = vrot.slane %v6785_v2, 7  ;;  %v13733_v57 = vpack.c.bf16 %v6505_v18, %v6505_v18  ;;  %v7564_v15 = vshll.u32 %v7435_v56, 16 }
 0x2af   : > { %v6828_v4 = vshrl.u32 %v13732_v22, 16  ;;  %v6831_v46 = vshll.u32 %v13732_v22, 16  ;;  %14752 = vmatprep.subr.bf16.mxu0 %v15204_v16  ;;  %v6811_v39 = vshrl.u32 %v13730_v20, 16  ;;  %v6814_v43 = vshll.u32 %v13730_v20, 16  ;;  %v14601_v56 = vpop.f32.mrf.mxu0 }
 0x2b0   : > { %v7557_v3 = vsel %vm15406_vm9, %v17497_v7, %v17494_v28  ;;  %v7560_v10 = vrot.slane %v7558_v50, 4  ;;  %v6790_v62 = vor.u32 %v6788_v54, %v6787_v49  ;;  %v6792_v42 = vrot.slane %v6787_v49, 4  ;;  %v15210_v49 = vld [vmem:[%s19332_s1 + $0x308] sm:$0xff]  }
 0x2b1   : > { %v6830_v55 = vrot.slane %v6828_v4, 7  ;;  %v6836_v35 = vshrl.u32 %v13733_v57, 16  ;;  %v17508_v31 = vrot.slane %v6811_v39, 7  ;;  %v6839_v48 = vshll.u32 %v13733_v57, 16 }
 0x2b2   : > { %v7561_v12 = vor.u32 %v7560_v10, %v17494_v28  ;;  %14753 = vmatpush3.bf16.msra.mxu0 %v15204_v16  ;;  %v6791_v25 = vsel %vm15420_vm10, %v6783_v52, %v6790_v62  ;;  %v7001_v41 = vsel %vm15385_vm5, %v6792_v42, %v7000_v34  ;;  %v7566_v24 = vrot.slane %v7564_v15, 5  ;;  %v7439_v34 = vld [vmem:[#allocation2 + $0x3c] sm:$0xf] }
 0x2b3   : > { %v6833_v44 = vor.u32 %v6831_v46, %v6830_v55  ;;  %v6834_v8 = vrot.slane %v6830_v55, 4  ;;  %14754 = vmatprep.subr.bf16.mxu0 %v15207_v11  ;;  %6999 = vst [vmem:[#allocation2 + $0x88] sm:$0xf] %v6791_v25  ;;  %7002 = vst [vmem:[#allocation2 + $0x8c] sm:$0x1] %v7001_v41  ;;  %v6816_v32 = vor.u32 %v6814_v43, %v17508_v31  ;;  %v6817_v29 = vrot.slane %v17508_v31, 4 }
 0x2b4   : > { %v6838_v52 = vrot.slane %v6836_v35, 7  ;;  %v7562_v26 = vrot.slane %v7561_v12, 4  ;;  %v7569_v0 = vshrl.u32 %v7436_v59, 16  ;;  %v7572_v16 = vshll.u32 %v7436_v59, 16  ;;  %v7444_v31 = vld [vmem:[#allocation2 + $0x50] sm:$0x1] }
 0x2b5   : > { %v7018_v27 = vsel %vm15431_vm11, %v6833_v44, %v7017_v38  ;;  %v7011_v40 = vsel %vm15431_vm11, %v6816_v32, %v7010_v6  ;;  %v7578_v28 = vshll.u32 %v7437_v17, 16  ;;  %v7582_v13 = vshrl.u32 %v7437_v17, 16 }
 0x2b6   : > { %7019 = vst [vmem:[#allocation2 + $0xa8] sm:$0xf] %v7018_v27  ;;  %v6841_v19 = vor.u32 %v6839_v48, %v6838_v52  ;;  %v6843_v53 = vrot.slane %v6838_v52, 4  ;;  %14755 = vmatpush3.bf16.msra.mxu0 %v15207_v11  ;;  %7012 = vst [vmem:[#allocation2 + $0x9c] sm:$0xf] %v7011_v40  ;;  %v7567_v2 = vsel %vm15406_vm9, %v7562_v26, %v7566_v24  ;;  %v7571_v54 = vrot.slane %v7569_v0, 4 }
 0x2b7   : > { %v7574_v22 = vrot.slane %v7572_v16, 5  ;;  %14756 = vmatprep.subr.bf16.mxu0 %v15208_v1  ;;  %v13349_v7 = vcombine.low %v7557_v3, %v7567_v2  ;;  %v7580_v50 = vrot.slane %v7578_v28, 5  ;;  %v7584_v46 = vrot.slane %v7582_v13, 4  ;;  %v7440_v3 = vld [vmem:[#allocation2 + $0x40] sm:$0xf] }
 0x2b8   : > { %v6842_v20 = vsel %vm15420_vm10, %v6834_v8, %v6841_v19  ;;  %v7022_v18 = vsel %vm15385_vm5, %v6843_v53, %v7021_v9  ;;  %v7588_v57 = vshll.u32 %v7438_v58, 16  ;;  %v6265_v11 = vadd.f32 %v17489_v61, %v17241_v63 }
 0x2b9   : > { %7020 = vst [vmem:[#allocation2 + $0xac] sm:$0xf] %v6842_v20  ;;  %7023 = vst [vmem:[#allocation2 + $0xb0] sm:$0x1] %v7022_v18  ;;  %v7575_v4 = vor.u32 %v7574_v22, %v7571_v54  ;;  %14671 = vmatmul.mubr.bf16.gmra.mxu0 %v13349_v7  ;;  %v6270_v38 = vadd.f32 %v17499_v21, %v17246_v36  ;;  %v6268_v39 = vadd.f32 %v6193_v30, %v17248_v45  ;;  %v15197_v21 = vld [vmem:[#allocation2 + $0x90] sm:$0xff]   ;;  %v15212_v45 = vld [vmem:[%s19332_s1 + $0x300] sm:$0xff]  }
 0x2ba   : > { %v6271_v43 = vadd.f32 %v14601_v56, %v17250_v51  ;;  %v7593_v10 = vshrl.u32 %v7439_v34, 16  ;;  %v7585_v42 = vor.u32 %v7584_v46, %v7580_v50  ;;  %v7590_v55 = vrot.slane %v7588_v57, 5  ;;  %v15195_v35 = vld [vmem:[#allocation2 + $0x84] sm:$0xff]   ;;  %14757 = vmatpush3.bf16.msra.mxu0 %v15208_v1  ;;  %v17559_v1 = vld [vmem:[%s19332_s1 + $0x3b8] sm:$0xff]  }
 0x2bb   : > { %v7576_v62 = vrot.slane %v7575_v4, 4  ;;  %v6368_v6 = vmul.f32 %v17463_v23, %v6265_v11  ;;  %v6373_v48 = vmul.f32 %v17463_v23, %v6270_v38  ;;  %v6371_v63 = vmul.f32 %v17463_v23, %v6268_v39  ;;  %14758 = vmatprep.subr.bf16.mxu0 %v15210_v49  ;;  %14639 = vmatmul.mubr.bf16.gmra.mxu1 %v15195_v35  ;;  %v7031_v4 = vld [vmem:[#allocation2 + $0xc0] sm:$0xf]  ;;  %v7441_v38 = vld [vmem:[#allocation2 + $0x44] sm:$0x1] }
 0x2bc   : > { %v6374_v61 = vmul.f32 %v17463_v23, %v6271_v43  ;;  %v7595_v36 = vrot.slane %v7593_v10, 4  ;;  %v7586_v12 = vrot.slane %v7585_v42, 4  ;;  %v7596_v59 = vshll.u32 %v7439_v34, 16  ;;  %14642 = vmatprep.mubr.bf16.mxu1 %v15197_v21  ;;  %v7014_v34 = vld [vmem:[#allocation2 + $0xa4] sm:$0x1] }
 0x2bd   : > { %v7581_v51 = vsel %vm15406_vm9, %v7576_v62, %v7580_v50  ;;  %v6407_v15 = vadd.f32 %v17472_v37, %v6368_v6  ;;  %v6412_v25 = vadd.f32 %v17472_v37, %v6373_v48  ;;  %v6410_v41 = vadd.f32 %v17472_v37, %v6371_v63  ;;  %v7024_v43 = vld [vmem:[#allocation2 + $0xb4] sm:$0xf]  ;;  %v7442_v42 = vld [vmem:[#allocation2 + $0x48] sm:$0xf] }
 0x2be   : > { %v6413_v44 = vadd.f32 %v17472_v37, %v6374_v61  ;;  %v7602_v8 = vshll.u32 %v7440_v3, 16  ;;  %v7591_v9 = vsel %vm15406_vm9, %v7586_v12, %v7590_v55  ;;  %v7598_v30 = vrot.slane %v7596_v59, 5  ;;  %14759 = vmatpush3.bf16.msra.mxu0 %v15210_v49 }
 0x2bf   : > { %vm6439_vm4 = vcmp.ge.f32.partialorder %v6407_v15, 0.0  ;;  %v6471_v17 = vmul.f32 0.01, %v6407_v15  ;;  %v13350_v32 = vcombine.low %v7581_v51, %v7591_v9  ;;  %vm6444_vm6 = vcmp.ge.f32.partialorder %v6412_v25, 0.0  ;;  %14760 = vmatprep.subr.bf16.mxu0 %v15212_v45 }
 0x2c0   : > { %v6476_v52 = vmul.f32 0.01, %v6412_v25  ;;  %vm6442_vm7 = vcmp.ge.f32.partialorder %v6410_v41, 0.0  ;;  %v6474_v58 = vmul.f32 0.01, %v6410_v41  ;;  %vm6445_vm8 = vcmp.ge.f32.partialorder %v6413_v44, 0.0 }
 0x2c1   : > { %v6503_v26 = vsel %vm6439_vm4, %v6407_v15, %v6471_v17  ;;  %v6477_v27 = vmul.f32 0.01, %v6413_v44  ;;  %14674 = vmatprep.mubr.bf16.mxu0 %v13350_v32  ;;  %v7599_v16 = vor.u32 %v7598_v30, %v7595_v36  ;;  %v17561_v40 = vrot.slane %v7602_v8, 5 }
 0x2c2   : > { %v13731_v24 = vpack.c.bf16 %v6503_v26, %v6503_v26  ;;  %v6508_v0 = vsel %vm6444_vm6, %v6412_v25, %v6476_v52  ;;  %v6506_v53 = vsel %vm6442_vm7, %v6410_v41, %v6474_v58  ;;  %v7606_v2 = vshrl.u32 %v7440_v3, 16  ;;  %14761 = vmatpush3.bf16.msra.mxu0 %v15212_v45  ;;  %v7443_v45 = vld [vmem:[#allocation2 + $0x4c] sm:$0xf]  ;;  %v7035_v25 = vld [vmem:[#allocation2 + $0xc8] sm:$0x1]  ;;  %v6196_v52 = vpop.f32.mrf.mxu0 }
 0x2c3   : > { %v13736_v19 = vpack.c.bf16 %v6508_v0, %v6508_v0  ;;  %v6509_v28 = vsel %vm6445_vm8, %v6413_v44, %v6477_v27  ;;  %v13734_v13 = vpack.c.bf16 %v6506_v53, %v6506_v53  ;;  %14842 = vmatprep.subr.bf16.mxu0 %v17559_v1  ;;  %v7600_v7 = vrot.slane %v7599_v16, 4  ;;  %v7445_v26 = vld [vmem:[#allocation2 + $0x54] sm:$0xf]  ;;  %v7446_v16 = vld [vmem:[#allocation2 + $0x58] sm:$0xf] }
 0x2c4   : > { %v6819_v54 = vshrl.u32 %v13731_v24, 16  ;;  %v6822_v22 = vshll.u32 %v13731_v24, 16  ;;  %v13737_v56 = vpack.c.bf16 %v6509_v28, %v6509_v28  ;;  %v7608_v50 = vrot.slane %v7606_v2, 4 }
 0x2c5   : > { %v6862_v20 = vshrl.u32 %v13736_v19, 16  ;;  %v6865_v18 = vshll.u32 %v13736_v19, 16  ;;  %v6845_v46 = vshrl.u32 %v13734_v13, 16  ;;  %v6848_v57 = vshll.u32 %v13734_v13, 16  ;;  %v7448_v13 = vld [vmem:[#allocation2 + $0x60] sm:$0xf] }
 0x2c6   : > { %v6821_v49 = vrot.slane %v6819_v54, 7  ;;  %v6870_v11 = vshrl.u32 %v13737_v56, 16  ;;  %v6873_v3 = vshll.u32 %v13737_v56, 16  ;;  %v7605_v10 = vsel %vm15406_vm9, %v7600_v7, %v17561_v40 }
 0x2c7   : > { %v6864_v39 = vrot.slane %v6862_v20, 7  ;;  %v7609_v62 = vor.u32 %v7608_v50, %v17561_v40  ;;  %v17568_v35 = vrot.slane %v6845_v46, 7  ;;  %v7612_v21 = vshll.u32 %v7441_v38, 16 }
 0x2c8   : > { %v6824_v55 = vor.u32 %v6822_v22, %v6821_v49  ;;  %v6826_v6 = vrot.slane %v6821_v49, 4  ;;  %v6872_v48 = vrot.slane %v6870_v11, 7  ;;  %v7617_v17 = vshrl.u32 %v7442_v42, 16 }
 0x2c9   : > { %v6867_v63 = vor.u32 %v6865_v18, %v6864_v39  ;;  %v6868_v61 = vrot.slane %v6864_v39, 4  ;;  %v7610_v36 = vrot.slane %v7609_v62, 4  ;;  %v6850_v15 = vor.u32 %v6848_v57, %v17568_v35 }
 0x2ca   : > { %v6825_v51 = vsel %vm15420_vm10, %v6817_v29, %v6824_v55  ;;  %v7015_v12 = vsel %vm15385_vm5, %v6826_v6, %v7014_v34  ;;  %v6851_v59 = vrot.slane %v17568_v35, 4  ;;  %v6875_v44 = vor.u32 %v6873_v3, %v6872_v48  ;;  %v7447_v34 = vld [vmem:[#allocation2 + $0x5c] sm:$0x1] }
 0x2cb   : > { %7013 = vst [vmem:[#allocation2 + $0xa0] sm:$0xf] %v6825_v51  ;;  %7016 = vst [vmem:[#allocation2 + $0xa4] sm:$0x1] %v7015_v12  ;;  %v7032_v41 = vsel %vm15431_vm11, %v6867_v63, %v7031_v4  ;;  %v6877_v8 = vrot.slane %v6872_v48, 4  ;;  %v7614_v9 = vrot.slane %v7612_v21, 5  ;;  %v7025_v29 = vsel %vm15431_vm11, %v6850_v15, %v7024_v43 }
 0x2cc   : > { %7033 = vst [vmem:[#allocation2 + $0xc0] sm:$0xf] %v7032_v41  ;;  %v7620_v30 = vshll.u32 %v7442_v42, 16  ;;  %v7626_v32 = vshll.u32 %v7443_v45, 16  ;;  %7026 = vst [vmem:[#allocation2 + $0xb4] sm:$0xf] %v7025_v29  ;;  %v6876_v58 = vsel %vm15420_vm10, %v6868_v61, %v6875_v44  ;;  %v6269_v54 = vadd.f32 %v6196_v52, %v17253_v47 }
 0x2cd   : > { %v7036_v27 = vsel %vm15385_vm5, %v6877_v8, %v7035_v25  ;;  %v7615_v24 = vsel %vm15406_vm9, %v7610_v36, %v7614_v9  ;;  %v7630_v0 = vshrl.u32 %v7443_v45, 16  ;;  %7034 = vst [vmem:[#allocation2 + $0xc4] sm:$0xf] %v6876_v58  ;;  %v7619_v40 = vrot.slane %v7617_v17, 4  ;;  %v7449_v48 = vld [vmem:[#allocation2 + $0x64] sm:$0xf] }
 0x2ce   : > { %7037 = vst [vmem:[#allocation2 + $0xc8] sm:$0x1] %v7036_v27  ;;  %v13351_v33 = vcombine.low %v7605_v10, %v7615_v24  ;;  %v7622_v19 = vrot.slane %v7620_v30, 5  ;;  %v7628_v53 = vrot.slane %v7626_v32, 5  ;;  %v7636_v2 = vshll.u32 %v7444_v31, 16  ;;  %v15202_v61 = vld [vmem:[#allocation2 + $0xa8] sm:$0xff]  }
 0x2cf   : > { %v7632_v28 = vrot.slane %v7630_v0, 4  ;;  %v7641_v22 = vshrl.u32 %v7445_v26, 16  ;;  %v7644_v20 = vshll.u32 %v7445_v26, 16  ;;  %v7650_v18 = vshll.u32 %v7446_v16, 16  ;;  %v7450_v45 = vld [vmem:[#allocation2 + $0x68] sm:$0x1] }
 0x2d0   : > { %14675 = vmatmul.mubr.bf16.gmra.mxu0 %v13351_v33  ;;  %v7623_v56 = vor.u32 %v7622_v19, %v7619_v40  ;;  %v7654_v7 = vshrl.u32 %v7446_v16, 16  ;;  %v7638_v49 = vrot.slane %v7636_v2, 5  ;;  %v6372_v4 = vmul.f32 %v17463_v23, %v6269_v54  ;;  %v7451_v25 = vld [vmem:[#allocation2 + $0x6c] sm:$0xf]  ;;  %v7452_v31 = vld [vmem:[#allocation2 + $0x70] sm:$0xf] }
 0x2d1   : > { %v7633_v50 = vor.u32 %v7632_v28, %v7628_v53  ;;  %v7643_v46 = vrot.slane %v7641_v22, 4  ;;  %v7646_v11 = vrot.slane %v7644_v20, 5  ;;  %v7652_v38 = vrot.slane %v7650_v18, 5  ;;  %v7453_v52 = vld [vmem:[#allocation2 + $0x74] sm:$0x1] }
 0x2d2   : > { %v7624_v57 = vrot.slane %v7623_v56, 4  ;;  %v7656_v39 = vrot.slane %v7654_v7, 4  ;;  %v6411_v47 = vadd.f32 %v17472_v37, %v6372_v4  ;;  %v7660_v3 = vshll.u32 %v7447_v34, 16  ;;  %v15200_v62 = vld [vmem:[#allocation2 + $0x9c] sm:$0xff]   ;;  %v7454_v34 = vld [vmem:[#allocation2 + $0x78] sm:$0xf] }
 0x2d3   : > { %v7634_v43 = vrot.slane %v7633_v50, 4  ;;  %v7665_v10 = vshrl.u32 %v7448_v13, 16  ;;  %v7647_v55 = vor.u32 %v7646_v11, %v7643_v46  ;;  %v7668_v63 = vshll.u32 %v7448_v13, 16  ;;  %14643 = vmatmul.mubr.bf16.gmra.mxu1 %v15200_v62  ;;  %v7028_v20 = vld [vmem:[#allocation2 + $0xbc] sm:$0x1] }
 0x2d4   : > { %v7629_v42 = vsel %vm15406_vm9, %v7624_v57, %v7628_v53  ;;  %v7657_v6 = vor.u32 %v7656_v39, %v7652_v38  ;;  %vm6443_vm11 = vcmp.ge.f32.partialorder %v6411_v47, 0.0  ;;  %v6475_v36 = vmul.f32 0.01, %v6411_v47  ;;  %14646 = vmatprep.mubr.bf16.mxu1 %v15202_v61  ;;  %v7457_v62 = vld [vmem:[#allocation2 + $0x84] sm:$0xf] }
 0x2d5   : > { %v7639_v23 = vsel %vm15406_vm9, %v7634_v43, %v7638_v49  ;;  %v7662_v21 = vrot.slane %v7660_v3, 5  ;;  %v7648_v51 = vrot.slane %v7647_v55, 4  ;;  %v7667_v15 = vrot.slane %v7665_v10, 4 }
 0x2d6   : > { %v13352_v37 = vcombine.low %v7629_v42, %v7639_v23  ;;  %v7658_v12 = vrot.slane %v7657_v6, 4  ;;  %v6507_v41 = vsel %vm6443_vm11, %v6411_v47, %v6475_v36  ;;  %v7670_v44 = vrot.slane %v7668_v63, 5  ;;  %v7456_v47 = vld [vmem:[#allocation2 + $0x80] sm:$0x1] }
 0x2d7   : > { %v7674_v8 = vshll.u32 %v7449_v48, 16  ;;  %v7678_v9 = vshrl.u32 %v7449_v48, 16  ;;  %v13735_v29 = vpack.c.bf16 %v6507_v41, %v6507_v41  ;;  %v7653_v17 = vsel %vm15406_vm9, %v7648_v51, %v7652_v38  ;;  %v7455_v38 = vld [vmem:[#allocation2 + $0x7c] sm:$0xf]  ;;  %v7458_v51 = vld [vmem:[#allocation2 + $0x88] sm:$0xf] }
 0x2d8   : > { %14678 = vmatprep.mubr.bf16.mxu0 %v13352_v37  ;;  %v7663_v30 = vsel %vm15406_vm9, %v7658_v12, %v7662_v21  ;;  %v7684_v32 = vshll.u32 %v7450_v45, 16  ;;  %v7671_v58 = vor.u32 %v7670_v44, %v7667_v15  ;;  %v7689_v40 = vshrl.u32 %v7451_v25, 16  ;;  %v7459_v12 = vld [vmem:[#allocation2 + $0x8c] sm:$0x1] }
 0x2d9   : > { %v13353_v26 = vcombine.low %v7653_v17, %v7663_v30  ;;  %v7676_v27 = vrot.slane %v7674_v8, 5  ;;  %v7680_v24 = vrot.slane %v7678_v9, 4  ;;  %v6853_v0 = vshrl.u32 %v13735_v29, 16 }
 0x2da   : > { %v6856_v16 = vshll.u32 %v13735_v29, 16  ;;  %v7686_v33 = vrot.slane %v7684_v32, 5  ;;  %v7672_v19 = vrot.slane %v7671_v58, 4  ;;  %v7692_v28 = vshll.u32 %v7451_v25, 16  ;;  %v7460_v25 = vld [vmem:[#allocation2 + $0x90] sm:$0xf] }
 0x2db   : > { %14679 = vmatmul.mubr.bf16.gmra.mxu0 %v13353_v26  ;;  %v7681_v53 = vor.u32 %v7680_v24, %v7676_v27  ;;  %v7698_v2 = vshll.u32 %v7452_v31, 16  ;;  %v6855_v54 = vrot.slane %v6853_v0, 7  ;;  %v7691_v22 = vrot.slane %v7689_v40, 4  ;;  %v7461_v58 = vld [vmem:[#allocation2 + $0x94] sm:$0xf] }
 0x2dc   : > { %v7702_v13 = vshrl.u32 %v7452_v31, 16  ;;  %v7708_v56 = vshll.u32 %v7453_v52, 16  ;;  %v7677_v18 = vsel %vm15406_vm9, %v7672_v19, %v7676_v27  ;;  %v7694_v50 = vrot.slane %v7692_v28, 5  ;;  %v7463_v19 = vld [vmem:[#allocation2 + $0x9c] sm:$0xf] }
 0x2dd   : > { %v7682_v7 = vrot.slane %v7681_v53, 4  ;;  %v7700_v49 = vrot.slane %v7698_v2, 5  ;;  %v6858_v4 = vor.u32 %v6856_v16, %v6855_v54  ;;  %v6860_v46 = vrot.slane %v6855_v54, 4 }
 0x2de   : > { %v7704_v57 = vrot.slane %v7702_v13, 4  ;;  %v7710_v11 = vrot.slane %v7708_v56, 5  ;;  %v7695_v43 = vor.u32 %v7694_v50, %v7691_v22  ;;  %v7713_v3 = vshrl.u32 %v7454_v34, 16 }
 0x2df   : > { %v7687_v39 = vsel %vm15406_vm9, %v7682_v7, %v7686_v33  ;;  %v7716_v10 = vshll.u32 %v7454_v34, 16  ;;  %v6859_v42 = vsel %vm15420_vm10, %v6851_v59, %v6858_v4  ;;  %v7029_v55 = vsel %vm15385_vm5, %v6860_v46, %v7028_v20  ;;  %v7462_v33 = vld [vmem:[#allocation2 + $0x98] sm:$0x1] }
 0x2e0   : > { %v13354_v6 = vcombine.low %v7677_v18, %v7687_v39  ;;  %v7705_v48 = vor.u32 %v7704_v57, %v7700_v49  ;;  %7027 = vst [vmem:[#allocation2 + $0xb8] sm:$0xf] %v6859_v42  ;;  %7030 = vst [vmem:[#allocation2 + $0xbc] sm:$0x1] %v7029_v55  ;;  %v7696_v63 = vrot.slane %v7695_v43, 4  ;;  %v7715_v61 = vrot.slane %v7713_v3, 4 }
 0x2e1   : > { %v7718_v23 = vrot.slane %v7716_v10, 5  ;;  %v7722_v36 = vshll.u32 %v7455_v38, 16  ;;  %v7726_v45 = vshrl.u32 %v7455_v38, 16  ;;  %v7732_v37 = vshll.u32 %v7456_v47, 16  ;;  %v7465_v39 = vld [vmem:[#allocation2 + $0xa4] sm:$0x1] }
 0x2e2   : > { %14682 = vmatprep.mubr.bf16.mxu0 %v13354_v6  ;;  %v7706_v21 = vrot.slane %v7705_v48, 4  ;;  %v7737_v35 = vshrl.u32 %v7457_v62, 16  ;;  %v7701_v14 = vsel %vm15406_vm9, %v7696_v63, %v7700_v49  ;;  %v7740_v15 = vshll.u32 %v7457_v62, 16  ;;  %v7464_v49 = vld [vmem:[#allocation2 + $0xa0] sm:$0xf] }
 0x2e3   : > { %v7719_v59 = vor.u32 %v7718_v23, %v7715_v61  ;;  %v7724_v60 = vrot.slane %v7722_v36, 5  ;;  %v7728_v44 = vrot.slane %v7726_v45, 4  ;;  %v7734_v8 = vrot.slane %v7732_v37, 5  ;;  %v7466_v43 = vld [vmem:[#allocation2 + $0xa8] sm:$0xf] }
 0x2e4   : > { %v7711_v41 = vsel %vm15406_vm9, %v7706_v21, %v7710_v11  ;;  %v7739_v9 = vrot.slane %v7737_v35, 4  ;;  %v7742_v17 = vrot.slane %v7740_v15, 5  ;;  %v7746_v30 = vshll.u32 %v7458_v51, 16  ;;  %v7467_v36 = vld [vmem:[#allocation2 + $0xac] sm:$0xf] }
 0x2e5   : > { %v13355_v31 = vcombine.low %v7701_v14, %v7711_v41  ;;  %v7720_v29 = vrot.slane %v7719_v59, 4  ;;  %v7729_v32 = vor.u32 %v7728_v44, %v7724_v60  ;;  %v7750_v52 = vshrl.u32 %v7458_v51, 16  ;;  %v7468_v14 = vld [vmem:[#allocation2 + $0xb0] sm:$0x1]  ;;  %v8242_v59 = vld [vmem:[#allocation2] sm:$0xe] }
 0x2e6   : > { %v7756_v26 = vshll.u32 %v7459_v12, 16  ;;  %v7761_v27 = vshrl.u32 %v7460_v25, 16  ;;  %v7743_v0 = vor.u32 %v7742_v17, %v7739_v9  ;;  %v7748_v16 = vrot.slane %v7746_v30, 5 }
 0x2e7   : > { %14683 = vmatmul.mubr.bf16.gmra.mxu0 %v13355_v31  ;;  %v7725_v24 = vsel %vm15406_vm9, %v7720_v29, %v7724_v60  ;;  %v7764_v40 = vshll.u32 %v7460_v25, 16  ;;  %v7730_v53 = vrot.slane %v7729_v32, 4  ;;  %v7752_v28 = vrot.slane %v7750_v52, 4  ;;  %v15205_v20 = vld [vmem:[#allocation2 + $0xb4] sm:$0xff]   ;;  %v8243_v31 = vld [vmem:[#allocation2 + $0x4] sm:$0xf] }
 0x2e8   : > { %v7758_v2 = vrot.slane %v7756_v26, 5  ;;  %v7763_v54 = vrot.slane %v7761_v27, 4  ;;  %v7744_v22 = vrot.slane %v7743_v0, 4  ;;  %v7770_v56 = vshll.u32 %v7461_v58, 16  ;;  %14647 = vmatmul.mubr.bf16.gmra.mxu1 %v15205_v20  ;;  %v8244_v32 = vld [vmem:[#allocation2 + $0x8] sm:$0x1] }
 0x2e9   : > { %v7766_v13 = vrot.slane %v7764_v40, 5  ;;  %v7774_v34 = vshrl.u32 %v7461_v58, 16  ;;  %v7735_v18 = vsel %vm15406_vm9, %v7730_v53, %v7734_v8  ;;  %v7753_v7 = vor.u32 %v7752_v28, %v7748_v16  ;;  %v8245_v26 = vld [vmem:[#allocation2 + $0xc] sm:$0xe]  ;;  %v8247_v28 = vld [vmem:[#allocation2 + $0x14] sm:$0x1] }
 0x2ea   : > { %v7780_v50 = vshll.u32 %v7462_v33, 16  ;;  %v7785_v4 = vshrl.u32 %v7463_v19, 16  ;;  %v13356_v46 = vcombine.low %v7725_v24, %v7735_v18  ;;  %v7749_v57 = vsel %vm15406_vm9, %v7744_v22, %v7748_v16  ;;  %v8246_v16 = vld [vmem:[#allocation2 + $0x10] sm:$0xf] }
 0x2eb   : > { %v7767_v11 = vor.u32 %v7766_v13, %v7763_v54  ;;  %v7772_v38 = vrot.slane %v7770_v56, 5  ;;  %v7754_v47 = vrot.slane %v7753_v7, 4  ;;  %v7776_v3 = vrot.slane %v7774_v34, 4  ;;  %v7469_v56 = vld [vmem:[#allocation2 + $0xb4] sm:$0xf] }
 0x2ec   : > { %v7782_v10 = vrot.slane %v7780_v50, 5  ;;  %v7787_v62 = vrot.slane %v7785_v4, 4  ;;  %14686 = vmatprep.mubr.bf16.mxu0 %v13356_v46  ;;  %v7788_v55 = vshll.u32 %v7463_v19, 16  ;;  %v7794_v6 = vshll.u32 %v7464_v49, 16 }
 0x2ed   : > { %v7768_v42 = vrot.slane %v7767_v11, 4  ;;  %v7798_v48 = vshrl.u32 %v7464_v49, 16  ;;  %v7759_v63 = vsel %vm15406_vm9, %v7754_v47, %v7758_v2  ;;  %v7777_v61 = vor.u32 %v7776_v3, %v7772_v38  ;;  %v7470_v11 = vld [vmem:[#allocation2 + $0xb8] sm:$0xf] }
 0x2ee   : > { %v7804_v23 = vshll.u32 %v7465_v39, 16  ;;  %v7809_v21 = vshrl.u32 %v7466_v43, 16  ;;  %v13357_v45 = vcombine.low %v7749_v57, %v7759_v63  ;;  %v7790_v51 = vrot.slane %v7788_v55, 5 }
 0x2ef   : > { %v7773_v37 = vsel %vm15406_vm9, %v7768_v42, %v7772_v38  ;;  %v7796_v35 = vrot.slane %v7794_v6, 5  ;;  %v7778_v60 = vrot.slane %v7777_v61, 4  ;;  %v7800_v12 = vrot.slane %v7798_v48, 4 }
 0x2f0   : > { %v7806_v15 = vrot.slane %v7804_v23, 5  ;;  %v7811_v25 = vrot.slane %v7809_v21, 4  ;;  %14687 = vmatmul.mubr.bf16.gmra.mxu0 %v13357_v45  ;;  %v7791_v41 = vor.u32 %v7790_v51, %v7787_v62  ;;  %v7812_v44 = vshll.u32 %v7466_v43, 16  ;;  %v7471_v43 = vld [vmem:[#allocation2 + $0xbc] sm:$0x1] }
 0x2f1   : > { %v7818_v8 = vshll.u32 %v7467_v36, 16  ;;  %v7822_v9 = vshrl.u32 %v7467_v36, 16  ;;  %v7783_v29 = vsel %vm15406_vm9, %v7778_v60, %v7782_v10  ;;  %v7801_v17 = vor.u32 %v7800_v12, %v7796_v35  ;;  %v8249_v23 = vld [vmem:[#allocation2 + $0x1c] sm:$0xf]  ;;  %v8248_v51 = vld [vmem:[#allocation2 + $0x18] sm:$0xe] }
 0x2f2   : > { %v7828_v30 = vshll.u32 %v7468_v14, 16  ;;  %v13370_v52 = vrot.slane %v8242_v59, 9  ;;  %v13358_v58 = vcombine.low %v7773_v37, %v7783_v29  ;;  %v7792_v27 = vrot.slane %v7791_v41, 4  ;;  %v8250_v12 = vld [vmem:[#allocation2 + $0x20] sm:$0x1] }
 0x2f3   : > { %v7814_v24 = vrot.slane %v7812_v44, 5  ;;  %v7820_v0 = vrot.slane %v7818_v8, 5  ;;  %v7802_v33 = vrot.slane %v7801_v17, 4  ;;  %v7824_v40 = vrot.slane %v7822_v9, 4  ;;  %v8253_v8 = vld [vmem:[#allocation2 + $0x2c] sm:$0x1] }
 0x2f4   : > { %v7830_v19 = vrot.slane %v7828_v30, 5  ;;  %v8340_v53 = vrot.slane %v8243_v31, 5  ;;  %14690 = vmatprep.mubr.bf16.mxu0 %v13358_v58  ;;  %v7797_v2 = vsel %vm15406_vm9, %v7792_v27, %v7796_v35  ;;  %v8343_v22 = vrot.slane %v8244_v32, 5  ;;  %v8252_v35 = vld [vmem:[#allocation2 + $0x28] sm:$0xf]  ;;  %v15286_v27 = vld [vmem:[%s19332_s1 + $0x378] sm:$0xff]  }
 0x2f5   : > { %v7815_v54 = vor.u32 %v7814_v24, %v7811_v25  ;;  %v13371_v13 = vrot.slane %v8245_v26, 9  ;;  %v7807_v34 = vsel %vm15406_vm9, %v7802_v33, %v7806_v15  ;;  %v7825_v20 = vor.u32 %v7824_v40, %v7820_v0  ;;  %v8251_v15 = vld [vmem:[#allocation2 + $0x24] sm:$0xe]  ;;  %v15213_v25 = vld [vmem:[%s19332_s1 + $0x370] sm:$0xff]  }
 0x2f6   : > { %v8341_v7 = vsel %vm15758_vm14, %v13370_v52, %v8340_v53  ;;  %v8342_v50 = vrot.slane %v8340_v53, 4  ;;  %v13359_v49 = vcombine.low %v7797_v2, %v7807_v34  ;;  %v8347_v46 = vrot.slane %v8246_v16, 5  ;;  %v8255_v9 = vld [vmem:[#allocation2 + $0x34] sm:$0xf]  ;;  %v8254_v32 = vld [vmem:[#allocation2 + $0x30] sm:$0xe] }
 0x2f7   : > { %v7816_v4 = vrot.slane %v7815_v54, 4  ;;  %v8350_v57 = vrot.slane %v8247_v28, 5  ;;  %v7826_v38 = vrot.slane %v7825_v20, 4  ;;  %v7833_v47 = vshrl.u32 %v7469_v56, 16  ;;  %v8258_v53 = vld [vmem:[#allocation2 + $0x40] sm:$0xf] }
 0x2f8   : > { %v8344_v39 = vsel %vm15758_vm14, %v8342_v50, %v8343_v22  ;;  %v7836_v3 = vshll.u32 %v7469_v56, 16  ;;  %14691 = vmatmul.mubr.bf16.gmra.mxu0 %v13359_v49  ;;  %v8348_v42 = vsel %vm15758_vm14, %v13371_v13, %v8347_v46  ;;  %v8349_v55 = vrot.slane %v8347_v46, 4  ;;  %v15216_v28 = vld [vmem:[%s19332_s1 + $0x368] sm:$0xff]   ;;  %v8257_v49 = vld [vmem:[#allocation2 + $0x3c] sm:$0xe] }
 0x2f9   : > { %v7821_v10 = vsel %vm15406_vm9, %v7816_v4, %v7820_v0  ;;  %v13402_v62 = vcombine.low %v8341_v7, %v8344_v39  ;;  %v7831_v6 = vsel %vm15406_vm9, %v7826_v38, %v7830_v19  ;;  %v7835_v48 = vrot.slane %v7833_v47, 4  ;;  %v8256_v0 = vld [vmem:[#allocation2 + $0x38] sm:$0x1]  ;;  %v8261_v56 = vld [vmem:[#allocation2 + $0x4c] sm:$0xf] }
 0x2fa   : > { %v7838_v63 = vrot.slane %v7836_v3, 5  ;;  %v7842_v61 = vshll.u32 %v7470_v11, 16  ;;  %v13360_v36 = vcombine.low %v7821_v10, %v7831_v6  ;;  %v8351_v21 = vsel %vm15758_vm14, %v8349_v55, %v8350_v57  ;;  %v8259_v4 = vld [vmem:[#allocation2 + $0x44] sm:$0x1]  ;;  %v8260_v46 = vld [vmem:[#allocation2 + $0x48] sm:$0xe] }
 0x2fb   : > { %14714 = vmatprep.mubr.bf16.mxu1 %v13402_v62  ;;  %v7846_v45 = vshrl.u32 %v7470_v11, 16  ;;  %v7852_v37 = vshll.u32 %v7471_v43, 16  ;;  %v13403_v14 = vcombine.low %v8348_v42, %v8351_v21  ;;  %v8354_v44 = vrot.slane %v8249_v23, 5  ;;  %v15211_v11 = vld [vmem:[#allocation2 + $0xc] sm:$0xff]   ;;  %v8264_v3 = vld [vmem:[#allocation2 + $0x58] sm:$0xf] }
 0x2fc   : > { %v7839_v59 = vor.u32 %v7838_v63, %v7835_v48  ;;  %v7844_v60 = vrot.slane %v7842_v61, 5  ;;  %14694 = vmatprep.mubr.bf16.mxu0 %v13360_v36  ;;  %v13372_v17 = vrot.slane %v8248_v51, 9  ;;  %v8361_v30 = vrot.slane %v8252_v35, 5  ;;  %v8262_v47 = vld [vmem:[#allocation2 + $0x50] sm:$0x1]  ;;  %v15219_v48 = vld [vmem:[%s19332_s1 + $0x360] sm:$0xff]  }
 0x2fd   : > { %v7848_v41 = vrot.slane %v7846_v45, 4  ;;  %14715 = vmatmul.mubr.bf16.vlgmr.msra.gmra.mxu1 %v13403_v14  ;;  %v7854_v29 = vrot.slane %v7852_v37, 5  ;;  %v8356_v26 = vrot.slane %v8354_v44, 4  ;;  %v8357_v58 = vrot.slane %v8250_v12, 5  ;;  %v8263_v6 = vld [vmem:[#allocation2 + $0x54] sm:$0xe] }
 0x2fe   : > { %v7840_v31 = vrot.slane %v7839_v59, 4  ;;  %14795 = vmatpush3.bf16.msra.mxu1 %v15286_v27  ;;  %v13373_v24 = vrot.slane %v8251_v15, 9  ;;  %v8355_v16 = vsel %vm15758_vm14, %v13372_v17, %v8354_v44  ;;  %v8363_v33 = vrot.slane %v8361_v30, 4  ;;  %v8267_v63 = vld [vmem:[#allocation2 + $0x64] sm:$0xf] }
 0x2ff   : > { %v7849_v52 = vor.u32 %v7848_v41, %v7844_v60  ;;  %v8364_v40 = vrot.slane %v8253_v8, 5  ;;  %14796 = vmatprep.subr.bf16.mxu1 %v15213_v25  ;;  %v8368_v19 = vrot.slane %v8255_v9, 5  ;;  %v8358_v22 = vsel %vm15758_vm14, %v8356_v26, %v8357_v58  ;;  %v8265_v21 = vld [vmem:[#allocation2 + $0x5c] sm:$0x1]  ;;  %v8266_v45 = vld [vmem:[#allocation2 + $0x60] sm:$0xe] }
 0x300   : > { %v7845_v2 = vsel %vm15406_vm9, %v7840_v31, %v7844_v60  ;;  %v13374_v13 = vrot.slane %v8254_v32, 9  ;;  %v13404_v34 = vcombine.low %v8355_v16, %v8358_v22  ;;  %v8371_v50 = vrot.slane %v8256_v0, 5  ;;  %v8268_v59 = vld [vmem:[#allocation2 + $0x68] sm:$0x1]  ;;  %v8270_v41 = vld [vmem:[#allocation2 + $0x70] sm:$0xf] }
 0x301   : > { %v7850_v54 = vrot.slane %v7849_v52, 4  ;;  %v8365_v20 = vsel %vm15758_vm14, %v8363_v33, %v8364_v40  ;;  %v8370_v7 = vrot.slane %v8368_v19, 4  ;;  %v8362_v38 = vsel %vm15758_vm14, %v13373_v24, %v8361_v30  ;;  %v8273_v17 = vld [vmem:[#allocation2 + $0x7c] sm:$0xf]  ;;  %v8272_v27 = vld [vmem:[#allocation2 + $0x78] sm:$0xe] }
 0x302   : > { %v8369_v39 = vsel %vm15758_vm14, %v13374_v13, %v8368_v19  ;;  %14797 = vmatpush3.bf16.msra.mxu1 %v15213_v25  ;;  %v8375_v43 = vrot.slane %v8258_v53, 5  ;;  %14718 = vmatprep.mubr.bf16.mxu1 %v13404_v34  ;;  %v13405_v62 = vcombine.low %v8362_v38, %v8365_v20  ;;  %v8382_v55 = vrot.slane %v8261_v56, 5  ;;  %v8269_v25 = vld [vmem:[#allocation2 + $0x6c] sm:$0xe]  ;;  %v15222_v58 = vld [vmem:[%s19332_s1 + $0x358] sm:$0xff]  }
 0x303   : > { %v7855_v57 = vsel %vm15406_vm9, %v7850_v54, %v7854_v29  ;;  %v8372_v42 = vsel %vm15758_vm14, %v8370_v7, %v8371_v50  ;;  %14798 = vmatprep.subr.bf16.mxu1 %v15216_v28  ;;  %v8378_v36 = vrot.slane %v8259_v4, 5  ;;  %v13375_v37 = vrot.slane %v8257_v49, 9  ;;  %v8271_v29 = vld [vmem:[#allocation2 + $0x74] sm:$0x1]  ;;  %v15214_v24 = vld [vmem:[#allocation2 + $0x18] sm:$0xff]  }
 0x304   : > { %v13361_v10 = vcombine.low %v7845_v2, %v7855_v57  ;;  %v13406_v61 = vcombine.low %v8369_v39, %v8372_v42  ;;  %v8377_v23 = vrot.slane %v8375_v43, 4  ;;  %v8384_v51 = vrot.slane %v8382_v55, 4  ;;  %v8274_v19 = vld [vmem:[#allocation2 + $0x80] sm:$0x1]  ;;  %v8276_v53 = vld [vmem:[#allocation2 + $0x88] sm:$0xf] }
 0x305   : > { %14719 = vmatmul.mubr.bf16.gmra.mxu1 %v13405_v62  ;;  %v8385_v35 = vrot.slane %v8262_v47, 5  ;;  %v8389_v14 = vrot.slane %v8264_v3, 5  ;;  %v13376_v12 = vrot.slane %v8260_v46, 9  ;;  %v8396_v15 = vrot.slane %v8267_v63, 5  ;;  %v8275_v56 = vld [vmem:[#allocation2 + $0x84] sm:$0xe] }
 0x306   : > { %14695 = vmatmul.mubr.bf16.gmra.mxu0 %v13361_v10  ;;  %14722 = vmatprep.mubr.bf16.mxu1 %v13406_v61  ;;  %v8379_v60 = vsel %vm15758_vm14, %v8377_v23, %v8378_v36  ;;  %v8376_v44 = vsel %vm15758_vm14, %v13375_v37, %v8375_v43  ;;  %v8392_v31 = vrot.slane %v8265_v21, 5  ;;  %v13377_v32 = vrot.slane %v8263_v6, 9  ;;  %v8279_v34 = vld [vmem:[#allocation2 + $0x94] sm:$0xf]  ;;  %v8277_v4 = vld [vmem:[#allocation2 + $0x8c] sm:$0x1] }
 0x307   : > { %14762 = vmatprep.mubr.bf16.mxu0 %v15211_v11  ;;  %v8386_v8 = vsel %vm15758_vm14, %v8384_v51, %v8385_v35  ;;  %14799 = vmatpush3.bf16.msra.mxu1 %v15216_v28  ;;  %v8391_v9 = vrot.slane %v8389_v14, 4  ;;  %v8383_v30 = vsel %vm15758_vm14, %v13376_v12, %v8382_v55  ;;  %v8398_v52 = vrot.slane %v8396_v15, 4  ;;  %v15215_v28 = vld [vmem:[#allocation2 + $0x24] sm:$0xff]   ;;  %v15225_v46 = vld [vmem:[%s19332_s1 + $0x350] sm:$0xff]   ;;  %v8280_v47 = vld [vmem:[#allocation2 + $0x98] sm:$0x1] }
 0x308   : > { %14800 = vmatprep.subr.bf16.mxu1 %v15219_v48  ;;  %v8399_v26 = vrot.slane %v8268_v59, 5  ;;  %v13407_v0 = vcombine.low %v8376_v44, %v8379_v60  ;;  %v13378_v33 = vrot.slane %v8266_v45, 9  ;;  %v8403_v40 = vrot.slane %v8270_v41, 5  ;;  %v8278_v57 = vld [vmem:[#allocation2 + $0x90] sm:$0xe]  ;;  %v17721_v21 = vld [vmem:[%s19332_s1 + $0x348] sm:$0xff]  }
 0x309   : > { %v17682_v16 = vsel %vm15758_vm14, %v8391_v9, %v8392_v31  ;;  %v13408_v2 = vcombine.low %v8383_v30, %v8386_v8  ;;  %v17686_v54 = vsel %vm15758_vm14, %v13377_v32, %v8389_v14  ;;  %v8410_v13 = vrot.slane %v8273_v17, 5  ;;  %v15229_v3 = vld [vmem:[%s19332_s1 + $0x3b0] sm:$0xff]   ;;  %v8281_v6 = vld [vmem:[#allocation2 + $0x9c] sm:$0xe]  ;;  %v8284_v45 = vld [vmem:[#allocation2 + $0xa8] sm:$0xe] }
 0x30a   : > { %v17690_v22 = vsel %vm15758_vm14, %v8398_v52, %v8399_v26  ;;  %v17694_v20 = vsel %vm15758_vm14, %v13378_v33, %v8396_v15  ;;  %v13379_v7 = vrot.slane %v8269_v25, 9  ;;  %v8405_v50 = vrot.slane %v8403_v40, 4  ;;  %v8285_v37 = vld [vmem:[#allocation2 + $0xac] sm:$0xf]  ;;  %v8283_v60 = vld [vmem:[#allocation2 + $0xa4] sm:$0x1] }
 0x30b   : > { %14801 = vmatpush3.bf16.msra.mxu1 %v15219_v48  ;;  %v8406_v49 = vrot.slane %v8271_v29, 5  ;;  %v13409_v11 = vcombine.low %v17686_v54, %v17682_v16  ;;  %v8412_v38 = vrot.slane %v8410_v13, 4  ;;  %v8413_v39 = vrot.slane %v8274_v19, 5  ;;  %v8282_v48 = vld [vmem:[#allocation2 + $0xa0] sm:$0xf]  ;;  %v15232_v12 = vld [vmem:[%s19332_s1 + $0x3a8] sm:$0xff]  }
 0x30c   : > { %14802 = vmatprep.subr.bf16.mxu1 %v15222_v58  ;;  %v8417_v43 = vrot.slane %v8276_v53, 5  ;;  %v13410_v10 = vcombine.low %v17694_v20, %v17690_v22  ;;  %v13380_v42 = vrot.slane %v8272_v27, 9  ;;  %v8424_v55 = vrot.slane %v8279_v34, 5  ;;  %v8288_v8 = vld [vmem:[#allocation2 + $0xb8] sm:$0xf]  ;;  %v15217_v9 = vld [vmem:[#allocation2 + $0x30] sm:$0xff]  }
 0x30d   : > { %14723 = vmatmul.mubr.bf16.gmra.mxu1 %v13407_v0  ;;  %v17708_v62 = vsel %vm15758_vm14, %v8405_v50, %v8406_v49  ;;  %v17712_v63 = vsel %vm15758_vm14, %v13379_v7, %v8403_v40  ;;  %v17716_v61 = vsel %vm15758_vm14, %v8412_v38, %v8413_v39  ;;  %v8420_v36 = vrot.slane %v8277_v4, 5  ;;  %v8286_v17 = vld [vmem:[#allocation2 + $0xb0] sm:$0x1]  ;;  %v9286_v32 = vld [vmem:[#allocation2 + $0xc] sm:$0xf]  ;;  %v15218_v52 = vld [vmem:[#allocation2 + $0x3c] sm:$0xff]  }
 0x30e   : > { %14763 = vmatmul.mubr.bf16.vlgmr.msra.gmra.mxu0 %v15214_v24  ;;  %14726 = vmatprep.mubr.bf16.mxu1 %v13408_v2  ;;  %v8419_v23 = vrot.slane %v8417_v43, 4  ;;  %v17725_v51 = vsel %vm15758_vm14, %v13380_v42, %v8410_v13  ;;  %v13381_v35 = vrot.slane %v8275_v56, 9  ;;  %v8426_v14 = vrot.slane %v8424_v55, 4  ;;  %v15234_v0 = vld [vmem:[%s19332_s1 + $0x3a0] sm:$0xff]   ;;  %v8287_v33 = vld [vmem:[#allocation2 + $0xb4] sm:$0xe] }
 0x30f   : > { %14766 = vmatprep.mubr.bf16.mxu0 %v15215_v28  ;;  %14803 = vmatpush3.bf16.msra.mxu1 %v15222_v58  ;;  %v8427_v59 = vrot.slane %v8280_v47, 5  ;;  %v13411_v15 = vcombine.low %v17712_v63, %v17708_v62  ;;  %v13382_v41 = vrot.slane %v8278_v57, 9  ;;  %v8431_v44 = vrot.slane %v8282_v48, 5  ;;  %v9287_v2 = vld [vmem:[#allocation2 + $0x10] sm:$0xf]  ;;  %v15235_v50 = vld [vmem:[%s19332_s1 + $0x340] sm:$0xff]  }
 0x310   : > { %14843 = vmatpush3.bf16.msra.mxu0 %v17559_v1  ;;  %v17735_v25 = vsel %vm15758_vm14, %v8419_v23, %v8420_v36  ;;  %14804 = vmatprep.subr.bf16.mxu1 %v15225_v46  ;;  %v13412_v1 = vcombine.low %v17725_v51, %v17716_v61  ;;  %v17741_v31 = vsel %vm15758_vm14, %v13381_v35, %v8417_v43  ;;  %v8438_v30 = vrot.slane %v8285_v37, 5  ;;  %v9289_v13 = vld [vmem:[#allocation2 + $0x18] sm:$0xf]  ;;  %v8289_v7 = vld [vmem:[#allocation2 + $0xbc] sm:$0x1] }
 0x311   : > { %14844 = vmatprep.subr.bf16.mxu0 %v15229_v3  ;;  %v17745_v29 = vsel %vm15758_vm14, %v8426_v14, %v8427_v59  ;;  %v17749_v26 = vsel %vm15758_vm14, %v13382_v41, %v8424_v55  ;;  %v13383_v58 = vrot.slane %v8281_v6, 9  ;;  %v8433_v27 = vrot.slane %v8431_v44, 4  ;;  %v9288_v47 = vld [vmem:[#allocation2 + $0x14] sm:$0x1]  ;;  %v9291_v14 = vld [vmem:[#allocation2 + $0x20] sm:$0x1] }
 0x312   : > { %v8434_v24 = vrot.slane %v8283_v60, 5  ;;  %v13413_v40 = vcombine.low %v17741_v31, %v17735_v25  ;;  %v13414_v19 = vcombine.low %v17749_v26, %v17745_v29  ;;  %v13384_v53 = vrot.slane %v8284_v45, 9  ;;  %v9292_v45 = vld [vmem:[#allocation2 + $0x24] sm:$0xf]  ;;  %v10108_v25 = vld [vmem:[#allocation2 + $0x1c] sm:$0xf] }
 0x313   : > { %14805 = vmatpush3.bf16.msra.mxu1 %v15225_v46  ;;  %v8445_v28 = vrot.slane %v8288_v8, 5  ;;  %v8440_v34 = vrot.slane %v8438_v30, 4  ;;  %v9335_v49 = vshrl.u32 %v9286_v32, 16  ;;  %v9338_v4 = vshll.u32 %v9286_v32, 16  ;;  %v9290_v46 = vld [vmem:[#allocation2 + $0x1c] sm:$0xf] }
 0x314   : > { %14845 = vmatpush3.bf16.msra.mxu0 %v15229_v3  ;;  %v17760_v56 = vsel %vm15758_vm14, %v8433_v27, %v8434_v24  ;;  %14806 = vmatprep.subr.bf16.mxu1 %v17721_v21  ;;  %v17771_v57 = vsel %vm15758_vm14, %v13383_v58, %v8431_v44  ;;  %v17775_v38 = vsel %vm15758_vm14, %v13384_v53, %v8438_v30  ;;  %v8441_v39 = vrot.slane %v8286_v17, 5  ;;  %v9293_v17 = vld [vmem:[#allocation2 + $0x28] sm:$0xf]  ;;  %v15221_v30 = vld [vmem:[#allocation2 + $0x54] sm:$0xff]   ;;  %v9294_v58 = vld [vmem:[#allocation2 + $0x2c] sm:$0x1] }
 0x315   : > { %14846 = vmatprep.subr.bf16.mxu0 %v15232_v12  ;;  %14727 = vmatmul.mubr.bf16.gmra.mxu1 %v13409_v11  ;;  %v13385_v43 = vrot.slane %v8287_v33, 9  ;;  %v8447_v3 = vrot.slane %v8445_v28, 4  ;;  %v9337_v42 = vrot.slane %v9335_v49, 4  ;;  %v9340_v16 = vrot.slane %v9338_v4, 5  ;;  %v15239_v53 = vld [vmem:[%s19332_s1 + $0x390] sm:$0xff]  }
 0x316   : > { %14767 = vmatmul.mubr.bf16.gmra.mxu0 %v15217_v9  ;;  %14730 = vmatprep.mubr.bf16.mxu1 %v13410_v10  ;;  %v9344_v54 = vshll.u32 %v9287_v2, 16  ;;  %v13415_v11 = vcombine.low %v17771_v57, %v17760_v56  ;;  %v8448_v55 = vrot.slane %v8289_v7, 5  ;;  %v9348_v6 = vshrl.u32 %v9287_v2, 16  ;;  %v15237_v10 = vld [vmem:[%s19332_s1 + $0x398] sm:$0xff]   ;;  %v9303_v57 = vld [vmem:[#allocation2 + $0x50] sm:$0x1] }
 0x317   : > { %14770 = vmatprep.mubr.bf16.mxu0 %v15218_v52  ;;  %14807 = vmatpush3.bf16.msra.mxu1 %v17721_v21  ;;  %v9359_v48 = vshrl.u32 %v9289_v13, 16  ;;  %v17785_v23 = vsel %vm15758_vm14, %v8440_v34, %v8441_v39  ;;  %v9341_v22 = vor.u32 %v9340_v16, %v9337_v42  ;;  %v9362_v36 = vshll.u32 %v9289_v13, 16  ;;  %v17795_v21 = vld [vmem:[%s19332_s1 + $0x3f8] sm:$0xff]   ;;  %v9295_v42 = vld [vmem:[#allocation2 + $0x30] sm:$0xf] }
 0x318   : > { %14847 = vmatpush3.bf16.msra.mxu0 %v15232_v12  ;;  %14808 = vmatprep.subr.bf16.mxu1 %v15235_v50  ;;  %v17787_v20 = vrot.slane %v9344_v54, 5  ;;  %v17799_v37 = vsel %vm15758_vm14, %v13385_v43, %v8445_v28  ;;  %v9350_v35 = vrot.slane %v9348_v6, 4  ;;  %v9368_v60 = vshll.u32 %v9290_v46, 16  ;;  %v15220_v12 = vld [vmem:[#allocation2 + $0x48] sm:$0xff]   ;;  %v15223_v6 = vld [vmem:[#allocation2 + $0x60] sm:$0xff]  }
 0x319   : > { %14848 = vmatprep.subr.bf16.mxu0 %v15234_v0  ;;  %v9361_v59 = vrot.slane %v9359_v48, 4  ;;  %v17803_v41 = vsel %vm15758_vm14, %v8447_v3, %v8448_v55  ;;  %v9354_v44 = vshll.u32 %v9288_v47, 16  ;;  %v9364_v8 = vrot.slane %v9362_v36, 5  ;;  %v10105_v47 = vld [vmem:[#allocation2 + $0x10] sm:$0xf]  ;;  %v15242_v54 = vld [vmem:[%s19332_s1 + $0x388] sm:$0xff]  }
 0x31a   : > { %v9372_v9 = vshrl.u32 %v9290_v46, 16  ;;  %v9351_v32 = vor.u32 %v9350_v35, %v17787_v20  ;;  %v17806_v52 = vrot.slane %v9368_v60, 5  ;;  %v9383_v27 = vshrl.u32 %v9292_v45, 16  ;;  %v10106_v55 = vld [vmem:[#allocation2 + $0x14] sm:$0x1]  ;;  %v15224_v35 = vld [vmem:[#allocation2 + $0x6c] sm:$0xff]  }
 0x31b   : > { %14809 = vmatpush3.bf16.msra.mxu1 %v15235_v50  ;;  %v9386_v24 = vshll.u32 %v9292_v45, 16  ;;  %v9342_v33 = vrot.slane %v9341_v22, 4  ;;  %v9365_v28 = vor.u32 %v9364_v8, %v9361_v59  ;;  %v9378_v13 = vshll.u32 %v9291_v14, 16  ;;  %v9296_v45 = vld [vmem:[#allocation2 + $0x34] sm:$0xf] }
 0x31c   : > { %14849 = vmatpush3.bf16.msra.mxu0 %v15234_v0  ;;  %v9374_v2 = vrot.slane %v9372_v9, 4  ;;  %14890 = vmatprep.subr.bf16.mxu1 %v17795_v21  ;;  %v17812_v0 = vld [vmem:[#allocation2 + $0xc] sm:$0xe]  ;;  %v9352_v34 = vrot.slane %v9351_v32, 4  ;;  %v9385_v7 = vrot.slane %v9383_v27, 4  ;;  %v9392_v49 = vshll.u32 %v9293_v17, 16 }
 0x31d   : > { %14850 = vmatprep.subr.bf16.mxu0 %v15237_v10  ;;  %14731 = vmatmul.mubr.bf16.gmra.mxu1 %v13411_v15  ;;  %v9388_v50 = vrot.slane %v9386_v24, 5  ;;  %v13416_v4 = vcombine.low %v17775_v38, %v17785_v23  ;;  %v9356_v46 = vrot.slane %v9354_v44, 5  ;;  %v9396_v43 = vshrl.u32 %v9293_v17, 16  ;;  %v9297_v60 = vld [vmem:[#allocation2 + $0x38] sm:$0x1]  ;;  %v15243_v32 = vld [vmem:[%s19332_s1 + $0x380] sm:$0xff]  }
 0x31e   : > { %14771 = vmatmul.mubr.bf16.gmra.mxu0 %v15220_v12  ;;  %14734 = vmatprep.mubr.bf16.mxu1 %v13412_v1  ;;  %v9375_v39 = vor.u32 %v9374_v2, %v17806_v52  ;;  %v13417_v62 = vcombine.low %v17799_v37, %v17803_v41  ;;  %v9366_v63 = vrot.slane %v9365_v28, 4  ;;  %v17825_v3 = vrot.slane %v9392_v49, 5  ;;  %v9298_v8 = vld [vmem:[#allocation2 + $0x3c] sm:$0xf]  ;;  %v9304_v23 = vld [vmem:[#allocation2 + $0x54] sm:$0xf] }
 0x31f   : > { %14774 = vmatprep.mubr.bf16.mxu0 %v15221_v30  ;;  %v9389_v15 = vor.u32 %v9388_v50, %v9385_v7  ;;  %v9357_v61 = vsel %vm15406_vm9, %v9352_v34, %v9356_v46  ;;  %v9398_v1 = vrot.slane %v9396_v43, 4  ;;  %v9402_v16 = vshll.u32 %v9294_v58, 16  ;;  %v9299_v58 = vld [vmem:[#allocation2 + $0x40] sm:$0xf]  ;;  %v10118_v41 = vld [vmem:[#allocation2 + $0x44] sm:$0x1] }
 0x320   : > { %14851 = vmatpush3.bf16.msra.mxu0 %v15237_v10  ;;  %v9376_v51 = vrot.slane %v9375_v39, 4  ;;  %v9347_v48 = vsel %vm15406_vm9, %v9342_v33, %v17787_v20  ;;  %v9380_v22 = vrot.slane %v9378_v13, 5  ;;  %v13506_v10 = vrot.slane %v17812_v0, 9  ;;  %v10117_v37 = vld [vmem:[#allocation2 + $0x40] sm:$0xf] }
 0x321   : > { %14852 = vmatprep.subr.bf16.mxu0 %v15239_v53  ;;  %v10202_v36 = vrot.slane %v10105_v47, 5  ;;  %v17836_v14 = vrot.slane %v9389_v15, 4  ;;  %v9399_v59 = vor.u32 %v9398_v1, %v17825_v3  ;;  %v9407_v12 = vshrl.u32 %v9295_v42, 16  ;;  %v10107_v47 = vld [vmem:[#allocation2 + $0x18] sm:$0xe] }
 0x322   : > { %v9410_v44 = vshll.u32 %v9295_v42, 16  ;;  %v17839_v9 = vcombine.low %v9347_v48, %v9357_v61  ;;  %v9371_v20 = vsel %vm15406_vm9, %v9366_v63, %v17806_v52  ;;  %v9381_v17 = vsel %vm15406_vm9, %v9376_v51, %v9380_v22  ;;  %v17872_v63 = vld [vmem:[%s19332_s1 + $0x438] sm:$0xff]   ;;  %v10109_v61 = vld [vmem:[#allocation2 + $0x20] sm:$0x1]  ;;  %v10111_v1 = vld [vmem:[#allocation2 + $0x28] sm:$0xf] }
 0x323   : > { %v10204_v30 = vrot.slane %v10202_v36, 4  ;;  %v9404_v27 = vrot.slane %v9402_v16, 5  ;;  %v9409_v24 = vrot.slane %v9407_v12, 4  ;;  %v9416_v28 = vshll.u32 %v9296_v45, 16  ;;  %v10110_v48 = vld [vmem:[#allocation2 + $0x24] sm:$0xe] }
 0x324   : > { %14853 = vmatpush3.bf16.msra.mxu0 %v15239_v53  ;;  %v9412_v33 = vrot.slane %v9410_v44, 5  ;;  %v9400_v52 = vrot.slane %v9399_v59, 4  ;;  %v10205_v53 = vrot.slane %v10106_v55, 5  ;;  %v9420_v2 = vshrl.u32 %v9296_v45, 16  ;;  %v17878_v22 = vld [vmem:[#allocation2 + $0x2c] sm:$0x1] }
 0x325   : > { %14854 = vmatprep.subr.bf16.mxu0 %v15242_v54  ;;  %14735 = vmatmul.mubr.bf16.gmra.mxu1 %v13413_v40  ;;  %v9431_v13 = vshrl.u32 %v9298_v8, 16  ;;  %v17855_v0 = vcombine.low %v9371_v20, %v9381_v17  ;;  %v9395_v34 = vsel %vm15406_vm9, %v17836_v14, %v17825_v3  ;;  %v9418_v50 = vrot.slane %v9416_v28, 5  ;;  %v15228_v12 = vld [vmem:[#allocation2 + $0x84] sm:$0xff]  }
 0x326   : > { %14775 = vmatmul.mubr.bf16.gmra.mxu0 %v15223_v6  ;;  %14738 = vmatprep.mubr.bf16.mxu1 %v13414_v19  ;;  %v9413_v7 = vor.u32 %v9412_v33, %v9409_v24  ;;  %v17863_v31 = vsel %vm15758_vm14, %v13506_v10, %v10202_v36  ;;  %v17867_v40 = vsel %vm15758_vm14, %v10204_v30, %v10205_v53  ;;  %v9422_v29 = vrot.slane %v9420_v2, 4  ;;  %v9300_v19 = vld [vmem:[#allocation2 + $0x44] sm:$0x1]  ;;  %v9301_v10 = vld [vmem:[#allocation2 + $0x48] sm:$0xf]  ;;  %v15226_v36 = vld [vmem:[#allocation2 + $0x78] sm:$0xff]  }
 0x327   : > { %14778 = vmatprep.mubr.bf16.mxu0 %v15224_v35  ;;  %v9426_v26 = vshll.u32 %v9297_v60, 16  ;;  %v9433_v49 = vrot.slane %v9431_v13, 4  ;;  %v9434_v46 = vshll.u32 %v9298_v8, 16  ;;  %v9440_v39 = vshll.u32 %v9299_v58, 16  ;;  %v9302_v60 = vld [vmem:[#allocation2 + $0x4c] sm:$0xf] }
 0x328   : > { %14855 = vmatpush3.bf16.msra.mxu0 %v15242_v54  ;;  %v9444_v43 = vshrl.u32 %v9299_v58, 16  ;;  %v9405_v15 = vsel %vm15406_vm9, %v9400_v52, %v9404_v27  ;;  %v9414_v3 = vrot.slane %v9413_v7, 4  ;;  %v9423_v42 = vor.u32 %v9422_v29, %v9418_v50 }
 0x329   : > { %14856 = vmatprep.subr.bf16.mxu0 %v15243_v32  ;;  %v10209_v51 = vrot.slane %v10108_v25, 5  ;;  %v9436_v16 = vrot.slane %v9434_v46, 5  ;;  %v17876_v54 = vrot.slane %v9440_v39, 5  ;;  %v9450_v6 = vshll.u32 %v9300_v19, 16  ;;  %v15231_v46 = vld [vmem:[#allocation2 + $0x90] sm:$0xff]  }
 0x32a   : > { %v9446_v55 = vrot.slane %v9444_v43, 4  ;;  %v13538_v45 = vcombine.low %v17863_v31, %v17867_v40  ;;  %v9424_v35 = vrot.slane %v9423_v42, 4  ;;  %v9428_v14 = vrot.slane %v9426_v26, 5 }
 0x32b   : > { %v10211_v59 = vrot.slane %v10209_v51, 4  ;;  %v17882_v44 = vcombine.low %v9395_v34, %v9405_v15  ;;  %v9437_v8 = vor.u32 %v9436_v16, %v9433_v49  ;;  %v10212_v17 = vrot.slane %v10109_v61, 5  ;;  %v10114_v49 = vld [vmem:[#allocation2 + $0x34] sm:$0xf] }
 0x32c   : > { %14857 = vmatpush3.bf16.msra.mxu0 %v15243_v32  ;;  %v9447_v20 = vor.u32 %v9446_v55, %v17876_v54  ;;  %v9429_v30 = vsel %vm15406_vm9, %v9424_v35, %v9428_v14  ;;  %v13507_v32 = vrot.slane %v10107_v47, 9  ;;  %v10216_v58 = vrot.slane %v10111_v1, 5  ;;  %v15233_v1 = vld [vmem:[#allocation2 + $0x9c] sm:$0xff]  }
 0x32d   : > { %14938 = vmatprep.subr.bf16.mxu0 %v17872_v63  ;;  %14739 = vmatmul.mubr.bf16.gmra.mxu1 %v13415_v11  ;;  %v9455_v27 = vshrl.u32 %v9301_v10, 16  ;;  %v9419_v24 = vsel %vm15406_vm9, %v9414_v3, %v9418_v50  ;;  %v9452_v28 = vrot.slane %v9450_v6, 5  ;;  %v17898_v56 = vsel %vm15758_vm14, %v10211_v59, %v10212_v17  ;;  %v9306_v50 = vld [vmem:[#allocation2 + $0x5c] sm:$0x1]  ;;  %v10115_v59 = vld [vmem:[#allocation2 + $0x38] sm:$0x1] }
 0x32e   : > { %14779 = vmatmul.mubr.bf16.gmra.mxu0 %v15226_v36  ;;  %14742 = vmatprep.mubr.bf16.mxu1 %v13416_v4  ;;  %v9448_v33 = vrot.slane %v9447_v20, 4  ;;  %v17900_v11 = vcombine.low %v9419_v24, %v9429_v30  ;;  %v17904_v52 = vsel %vm15758_vm14, %v13507_v32, %v10209_v51  ;;  %v13508_v53 = vrot.slane %v10110_v48, 9  ;;  %v9305_v4 = vld [vmem:[#allocation2 + $0x58] sm:$0xf]  ;;  %v10116_v20 = vld [vmem:[#allocation2 + $0x3c] sm:$0xe] }
 0x32f   : > { %14782 = vmatprep.mubr.bf16.mxu0 %v15228_v12  ;;  %v10219_v38 = vrot.slane %v17878_v22, 5  ;;  %v9438_v2 = vrot.slane %v9437_v8, 4  ;;  %v9457_v13 = vrot.slane %v9455_v27, 4  ;;  %v9458_v34 = vshll.u32 %v9301_v10, 16  ;;  %v10113_v22 = vld [vmem:[#allocation2 + $0x30] sm:$0xe] }
 0x330   : > { %v9464_v7 = vshll.u32 %v9302_v60, 16  ;;  %v13539_v25 = vcombine.low %v17904_v52, %v17898_v56  ;;  %v17911_v29 = vsel %vm15758_vm14, %v13508_v53, %v10216_v58  ;;  %v10218_v26 = vrot.slane %v10216_v58, 4  ;;  %v9307_v58 = vld [vmem:[#allocation2 + $0x60] sm:$0xf] }
 0x331   : > { %v9468_v19 = vshrl.u32 %v9302_v60, 16  ;;  %v9453_v39 = vsel %vm15406_vm9, %v9448_v33, %v9452_v28  ;;  %v9460_v43 = vrot.slane %v9458_v34, 5  ;;  %v9479_v15 = vshrl.u32 %v9304_v23, 16  ;;  %v9308_v28 = vld [vmem:[#allocation2 + $0x64] sm:$0xf] }
 0x332   : > { %v9466_v47 = vrot.slane %v9464_v7, 5  ;;  %v9474_v42 = vshll.u32 %v9303_v57, 16  ;;  %v9482_v61 = vshll.u32 %v9304_v23, 16  ;;  %v9488_v51 = vshll.u32 %v9305_v4, 16  ;;  %v15236_v57 = vld [vmem:[#allocation2 + $0xa8] sm:$0xff]  }
 0x333   : > { %v9470_v3 = vrot.slane %v9468_v19, 4  ;;  %v9443_v16 = vsel %vm15406_vm9, %v9438_v2, %v17876_v54  ;;  %v9461_v55 = vor.u32 %v9460_v43, %v9457_v13  ;;  %v9481_v6 = vrot.slane %v9479_v15, 4  ;;  %v15244_v2 = vld [vmem:[%s19332_s1 + $0x3f0] sm:$0xff]   ;;  %v9310_v43 = vld [vmem:[#allocation2 + $0x6c] sm:$0xf] }
 0x334   : > { %v9492_v48 = vshrl.u32 %v9305_v4, 16  ;;  %v9484_v36 = vrot.slane %v9482_v61, 5  ;;  %v17921_v35 = vrot.slane %v9488_v51, 5  ;;  %v9498_v14 = vshll.u32 %v9306_v50, 16  ;;  %v9309_v50 = vld [vmem:[#allocation2 + $0x68] sm:$0x1] }
 0x335   : > { %14743 = vmatmul.mubr.bf16.gmra.mxu1 %v13417_v62  ;;  %v9471_v10 = vor.u32 %v9470_v3, %v9466_v47  ;;  %v17924_v60 = vcombine.low %v9443_v16, %v9453_v39  ;;  %v17928_v54 = vsel %vm15758_vm14, %v10218_v26, %v10219_v38  ;;  %v10223_v8 = vrot.slane %v10114_v49, 5  ;;  %v15238_v15 = vld [vmem:[#allocation2 + $0xb4] sm:$0xff]  }
 0x336   : > { %14783 = vmatmul.mubr.bf16.gmra.mxu0 %v15231_v46  ;;  %14810 = vmatprep.mubr.bf16.mxu1 %v17839_v9  ;;  %v9494_v12 = vrot.slane %v9492_v48, 4  ;;  %v9462_v62 = vrot.slane %v9461_v55, 4  ;;  %v9476_v30 = vrot.slane %v9474_v42, 5  ;;  %v9485_v32 = vor.u32 %v9484_v36, %v9481_v6  ;;  %v17956_v48 = vpop.f32.mrf.mxu1 }
 0x337   : > { %14786 = vmatprep.mubr.bf16.mxu0 %v15233_v1  ;;  %v9472_v17 = vrot.slane %v9471_v10, 4  ;;  %v13509_v24 = vrot.slane %v10113_v22, 9  ;;  %v10225_v9 = vrot.slane %v10223_v8, 4  ;;  %v10226_v33 = vrot.slane %v10115_v59, 5  ;;  %v9311_v1 = vld [vmem:[#allocation2 + $0x70] sm:$0xf] }
 0x338   : > { %v9495_v27 = vor.u32 %v9494_v12, %v17921_v35  ;;  %v9486_v38 = vrot.slane %v9485_v32, 4  ;;  %v9500_v23 = vrot.slane %v9498_v14, 5  ;;  %v10230_v4 = vrot.slane %v10117_v37, 5 }
 0x339   : > { %v9477_v53 = vsel %vm15406_vm9, %v9472_v17, %v9476_v30  ;;  %v13540_v13 = vcombine.low %v17911_v29, %v17928_v54  ;;  %v17940_v7 = vsel %vm15758_vm14, %v10225_v9, %v10226_v33  ;;  %v9503_v26 = vshrl.u32 %v9307_v58, 16  ;;  %v17978_v9 = vpop.f32.mrf.mxu1  ;;  %v15241_v33 = vld [vmem:[#allocation2 + $0xc0] sm:$0xff]   ;;  %v15252_v29 = vld [vmem:[%s19332_s1 + $0x428] sm:$0xff]  }
 0x33a   : > { %v9496_v34 = vrot.slane %v9495_v27, 4  ;;  %v9467_v19 = vsel %vm15406_vm9, %v9462_v62, %v9466_v47  ;;  %v17946_v49 = vsel %vm15758_vm14, %v13509_v24, %v10223_v8  ;;  %v13510_v46 = vrot.slane %v10116_v20, 9  ;;  %v10120_v20 = vld [vmem:[#allocation2 + $0x4c] sm:$0xf]  ;;  %v10119_v27 = vld [vmem:[#allocation2 + $0x48] sm:$0xe] }
 0x33b   : > { %v10233_v39 = vrot.slane %v10118_v41, 5  ;;  %v17948_v3 = vcombine.low %v9467_v19, %v9477_v53  ;;  %v9505_v42 = vrot.slane %v9503_v26, 4  ;;  %v9506_v61 = vshll.u32 %v9307_v58, 16  ;;  %v10121_v24 = vld [vmem:[#allocation2 + $0x50] sm:$0x1]  ;;  %v15246_v26 = vld [vmem:[%s19332_s1 + $0x3e0] sm:$0xff]  }
 0x33c   : > { %v9512_v51 = vshll.u32 %v9308_v28, 16  ;;  %v9491_v47 = vsel %vm15406_vm9, %v9486_v38, %v17921_v35  ;;  %v13541_v16 = vcombine.low %v17946_v49, %v17940_v7  ;;  %v10232_v55 = vrot.slane %v10230_v4, 4 }
 0x33d   : > { %14811 = vmatmul.mubr.bf16.vlgmr.msra.gmra.mxu1 %v17855_v0  ;;  %v9516_v6 = vshrl.u32 %v9308_v28, 16  ;;  %v9501_v22 = vsel %vm15406_vm9, %v9496_v34, %v9500_v23  ;;  %v9508_v10 = vrot.slane %v9506_v61, 5  ;;  %v9312_v0 = vld [vmem:[#allocation2 + $0x74] sm:$0x1]  ;;  %v9527_v14 = vshrl.u32 %v9310_v43, 16 }
 0x33e   : > { %14787 = vmatmul.mubr.bf16.gmra.mxu0 %v15236_v57  ;;  %14814 = vmatprep.mubr.bf16.mxu1 %v17882_v44  ;;  %v17961_v36 = vrot.slane %v9512_v51, 5  ;;  %v9522_v59 = vshll.u32 %v9309_v50, 16  ;;  %v9530_v12 = vshll.u32 %v9310_v43, 16  ;;  %v9536_v8 = vshll.u32 %v9311_v1, 16  ;;  %v15245_v44 = vld [vmem:[%s19332_s1 + $0x3e8] sm:$0xff]  }
 0x33f   : > { %14790 = vmatprep.mubr.bf16.mxu0 %v15238_v15  ;;  %14891 = vmatpush3.bf16.msra.mxu1 %v17795_v21  ;;  %v9518_v35 = vrot.slane %v9516_v6, 4  ;;  %v17969_v37 = vsel %vm15758_vm14, %v13510_v46, %v10230_v4  ;;  %v9509_v41 = vor.u32 %v9508_v10, %v9505_v42  ;;  %v9529_v62 = vrot.slane %v9527_v14, 4  ;;  %v10123_v23 = vld [vmem:[#allocation2 + $0x58] sm:$0xf]  ;;  %v10122_v61 = vld [vmem:[#allocation2 + $0x54] sm:$0xe] }
 0x340   : > { %14892 = vmatprep.subr.bf16.mxu1 %v15244_v2  ;;  %v9540_v17 = vshrl.u32 %v9311_v1, 16  ;;  %v17973_v21 = vsel %vm15758_vm14, %v10232_v55, %v10233_v39  ;;  %v9532_v32 = vrot.slane %v9530_v12, 5  ;;  %v17976_v58 = vrot.slane %v9536_v8, 5  ;;  %v9313_v46 = vld [vmem:[#allocation2 + $0x78] sm:$0xf] }
 0x341   : > { %v9519_v30 = vor.u32 %v9518_v35, %v17961_v36  ;;  %v17980_v28 = vcombine.low %v9491_v47, %v9501_v22  ;;  %v9546_v53 = vshll.u32 %v9312_v0, 16  ;;  %v10237_v38 = vrot.slane %v10120_v20, 5  ;;  %v10124_v51 = vld [vmem:[#allocation2 + $0x5c] sm:$0x1]  ;;  %v17991_v22 = vpop.f32.mrf.mxu1 }
 0x342   : > { %v9542_v57 = vrot.slane %v9540_v17, 4  ;;  %v9510_v4 = vrot.slane %v9509_v41, 4  ;;  %v9524_v50 = vrot.slane %v9522_v59, 5  ;;  %v9533_v19 = vor.u32 %v9532_v32, %v9529_v62  ;;  %v9314_v6 = vld [vmem:[#allocation2 + $0x7c] sm:$0xf] }
 0x343   : > { %14893 = vmatpush3.bf16.msra.mxu1 %v15244_v2  ;;  %v9520_v34 = vrot.slane %v9519_v30, 4  ;;  %v13542_v39 = vcombine.low %v17969_v37, %v17973_v21  ;;  %v10239_v15 = vrot.slane %v10237_v38, 4  ;;  %v10240_v42 = vrot.slane %v10121_v24, 5  ;;  %v9317_v62 = vld [vmem:[#allocation2 + $0x88] sm:$0xf]  ;;  %v15256_v21 = vld [vmem:[%s19332_s1 + $0x418] sm:$0xff]  }
 0x344   : > { %14894 = vmatprep.subr.bf16.mxu1 %v15245_v44  ;;  %v9543_v43 = vor.u32 %v9542_v57, %v17976_v58  ;;  %v9534_v1 = vrot.slane %v9533_v19, 4  ;;  %v13511_v47 = vrot.slane %v10119_v27, 9  ;;  %v10244_v55 = vrot.slane %v10123_v23, 5  ;;  %v18018_v27 = vpop.f32.mrf.mxu1 }
 0x345   : > { %14815 = vmatmul.mubr.bf16.gmra.mxu1 %v17900_v11  ;;  %v9525_v2 = vsel %vm15406_vm9, %v9520_v34, %v9524_v50  ;;  %v9548_v0 = vrot.slane %v9546_v53, 5  ;;  %v17999_v11 = vsel %vm15758_vm14, %v10239_v15, %v10240_v42  ;;  %v9551_v14 = vshrl.u32 %v9313_v46, 16  ;;  %v9318_v53 = vld [vmem:[#allocation2 + $0x8c] sm:$0x1]  ;;  %v10126_v50 = vld [vmem:[#allocation2 + $0x64] sm:$0xf] }
 0x346   : > { %14791 = vmatmul.mubr.bf16.gmra.mxu0 %v15241_v33  ;;  %14818 = vmatprep.mubr.bf16.mxu1 %v17924_v60  ;;  %v9544_v10 = vrot.slane %v9543_v43, 4  ;;  %v9515_v35 = vsel %vm15406_vm9, %v9510_v4, %v17961_v36  ;;  %v18006_v59 = vsel %vm15758_vm14, %v13511_v47, %v10237_v38  ;;  %v13512_v31 = vrot.slane %v10122_v61, 9  ;;  %v9316_v60 = vld [vmem:[#allocation2 + $0x84] sm:$0xf]  ;;  %v15248_v42 = vld [vmem:[%s19332_s1 + $0x3d0] sm:$0xff]  }
 0x347   : > { %14858 = vmatprep.mubr.bf16.mxu0 %v13538_v45  ;;  %14895 = vmatpush3.bf16.msra.mxu1 %v15245_v44  ;;  %v10247_v40 = vrot.slane %v10124_v51, 5  ;;  %v9315_v45 = vld [vmem:[#allocation2 + $0x80] sm:$0x1]  ;;  %v18008_v12 = vcombine.low %v9515_v35, %v9525_v2  ;;  %v9553_v8 = vrot.slane %v9551_v14, 4  ;;  %v9554_v20 = vshll.u32 %v9313_v46, 16  ;;  %v15247_v44 = vld [vmem:[%s19332_s1 + $0x3d8] sm:$0xff]  }
 0x348   : > { %14896 = vmatprep.subr.bf16.mxu1 %v15246_v26  ;;  %v9560_v41 = vshll.u32 %v9314_v6, 16  ;;  %v9539_v36 = vsel %vm15406_vm9, %v9534_v1, %v17976_v58  ;;  %v13543_v17 = vcombine.low %v18006_v59, %v17999_v11  ;;  %v10246_v30 = vrot.slane %v10244_v55, 4  ;;  %v10125_v47 = vld [vmem:[#allocation2 + $0x60] sm:$0xe] }
 0x349   : > { %v9564_v32 = vshrl.u32 %v9314_v6, 16  ;;  %v9549_v24 = vsel %vm15406_vm9, %v9544_v10, %v9548_v0  ;;  %v9556_v33 = vrot.slane %v9554_v20, 5  ;;  %v9575_v38 = vshrl.u32 %v9316_v60, 16  ;;  %v18045_v6 = vpop.f32.mrf.mxu1  ;;  %v18051_v10 = vld [vmem:[#allocation2 + $0x70] sm:$0xf]  ;;  %v15251_v0 = vld [vmem:[%s19332_s1 + $0x3c8] sm:$0xff]  }
 0x34a   : > { %v18022_v57 = vrot.slane %v9560_v41, 5  ;;  %v9570_v4 = vshll.u32 %v9315_v45, 16  ;;  %v9578_v34 = vshll.u32 %v9316_v60, 16  ;;  %v9584_v58 = vshll.u32 %v9317_v62, 16  ;;  %v9319_v45 = vld [vmem:[#allocation2 + $0x90] sm:$0xf] }
 0x34b   : > { %14897 = vmatpush3.bf16.msra.mxu1 %v15246_v26  ;;  %v9566_v23 = vrot.slane %v9564_v32, 4  ;;  %v18026_v19 = vsel %vm15758_vm14, %v13512_v31, %v10244_v55  ;;  %v9557_v46 = vor.u32 %v9556_v33, %v9553_v8  ;;  %v9577_v43 = vrot.slane %v9575_v38, 4  ;;  %v15250_v26 = vld [vmem:[%s19332_s1 + $0x430] sm:$0xff]   ;;  %v10127_v55 = vld [vmem:[#allocation2 + $0x68] sm:$0x1]  ;;  %v18081_v38 = vld [vmem:[%s19332_s1 + $0x420] sm:$0xff]  }
 0x34c   : > { %14898 = vmatprep.subr.bf16.mxu1 %v15247_v44  ;;  %v9588_v15 = vshrl.u32 %v9317_v62, 16  ;;  %v18040_v61 = vsel %vm15758_vm14, %v10246_v30, %v10247_v40  ;;  %v9580_v2 = vrot.slane %v9578_v34, 5  ;;  %v18043_v1 = vrot.slane %v9584_v58, 5  ;;  %v18063_v8 = vld [vmem:[#allocation2 + $0x6c] sm:$0xe]  ;;  %v18070_v30 = vpop.f32.mrf.mxu1 }
 0x34d   : > { %14819 = vmatmul.mubr.bf16.gmra.mxu1 %v17948_v3  ;;  %v9567_v51 = vor.u32 %v9566_v23, %v18022_v57  ;;  %v13490_v56 = vcombine.low %v9539_v36, %v9549_v24  ;;  %v10251_v3 = vrot.slane %v10126_v50, 5  ;;  %v9558_v14 = vrot.slane %v9557_v46, 4  ;;  %v10130_v20 = vld [vmem:[#allocation2 + $0x74] sm:$0x1]  ;;  %v9321_v50 = vld [vmem:[#allocation2 + $0x98] sm:$0x1] }
 0x34e   : > { %14859 = vmatmul.mubr.bf16.vlgmr.msra.gmra.mxu0 %v13539_v25  ;;  %14822 = vmatprep.mubr.bf16.mxu1 %v17980_v28  ;;  %v9590_v52 = vrot.slane %v9588_v15, 4  ;;  %v9594_v25 = vshll.u32 %v9318_v53, 16  ;;  %v9572_v31 = vrot.slane %v9570_v4, 5  ;;  %v9581_v40 = vor.u32 %v9580_v2, %v9577_v43  ;;  %v9320_v36 = vld [vmem:[#allocation2 + $0x94] sm:$0xf] }
 0x34f   : > { %14862 = vmatprep.mubr.bf16.mxu0 %v13540_v13  ;;  %v9568_v35 = vrot.slane %v9567_v51, 4  ;;  %14899 = vmatpush3.bf16.msra.mxu1 %v15247_v44  ;;  %v13544_v54 = vcombine.low %v18026_v19, %v18040_v61  ;;  %v10253_v28 = vrot.slane %v10251_v3, 4  ;;  %v10254_v60 = vrot.slane %v10127_v55, 5  ;;  %v9322_v46 = vld [vmem:[#allocation2 + $0x9c] sm:$0xf] }
 0x350   : > { %14939 = vmatpush3.bf16.msra.mxu0 %v17872_v63  ;;  %v9591_v13 = vor.u32 %v9590_v52, %v18043_v1  ;;  %14900 = vmatprep.subr.bf16.mxu1 %v15248_v42  ;;  %v18067_v63 = vrot.slane %v9581_v40, 4  ;;  %v13513_v44 = vrot.slane %v10125_v47, 9  ;;  %v10258_v62 = vrot.slane %v18051_v10, 5  ;;  %v9323_v47 = vld [vmem:[#allocation2 + $0xa0] sm:$0xf] }
 0x351   : > { %14940 = vmatprep.subr.bf16.mxu0 %v15250_v26  ;;  %v9573_v41 = vsel %vm15406_vm9, %v9568_v35, %v9572_v31  ;;  %v9596_v24 = vrot.slane %v9594_v25, 5  ;;  %v18076_v33 = vsel %vm15758_vm14, %v10253_v28, %v10254_v60  ;;  %v9599_v53 = vshrl.u32 %v9319_v45, 16  ;;  %v9324_v25 = vld [vmem:[#allocation2 + $0xa4] sm:$0x1]  ;;  %v10132_v31 = vld [vmem:[#allocation2 + $0x7c] sm:$0xf] }
 0x352   : > { %v18072_v32 = vrot.slane %v9591_v13, 4  ;;  %v9563_v23 = vsel %vm15406_vm9, %v9558_v14, %v18022_v57  ;;  %v18088_v4 = vsel %vm15758_vm14, %v13513_v44, %v10251_v3  ;;  %v13514_v34 = vrot.slane %v18063_v8, 9  ;;  %v15254_v57 = vld [vmem:[%s19332_s1 + $0x3c0] sm:$0xff]   ;;  %v18106_v3 = vpop.f32.mrf.mxu1  ;;  %v10131_v60 = vld [vmem:[#allocation2 + $0x78] sm:$0xe] }
 0x353   : > { %v10261_v58 = vrot.slane %v10130_v20, 5  ;;  %14901 = vmatpush3.bf16.msra.mxu1 %v15248_v42  ;;  %v18091_v43 = vcombine.low %v9563_v23, %v9573_v41  ;;  %v9601_v15 = vrot.slane %v9599_v53, 4  ;;  %v9602_v51 = vshll.u32 %v9319_v45, 16  ;;  %v10133_v8 = vld [vmem:[#allocation2 + $0x80] sm:$0x1] }
 0x354   : > { %14941 = vmatpush3.bf16.msra.mxu0 %v15250_v26  ;;  %v9608_v2 = vshll.u32 %v9320_v36, 16  ;;  %14902 = vmatprep.subr.bf16.mxu1 %v15251_v0  ;;  %v9587_v42 = vsel %vm15406_vm9, %v18067_v63, %v18043_v1  ;;  %v13545_v26 = vcombine.low %v18088_v4, %v18076_v33  ;;  %v10260_v55 = vrot.slane %v10258_v62, 4  ;;  %v18127_v20 = vpop.f32.mrf.mxu1 }
 0x355   : > { %14942 = vmatprep.subr.bf16.mxu0 %v15252_v29  ;;  %14823 = vmatmul.mubr.bf16.gmra.mxu1 %v18008_v12  ;;  %v9612_v52 = vshrl.u32 %v9320_v36, 16  ;;  %v9597_v7 = vsel %vm15406_vm9, %v18072_v32, %v9596_v24  ;;  %v9604_v49 = vrot.slane %v9602_v51, 5  ;;  %v9623_v12 = vshrl.u32 %v9322_v46, 16  ;;  %v18133_v32 = vld [vmem:[#allocation2 + $0x88] sm:$0xf] }
 0x356   : > { %14863 = vmatmul.mubr.bf16.gmra.mxu0 %v13541_v16  ;;  %14826 = vmatprep.mubr.bf16.mxu1 %v13490_v56  ;;  %v9610_v16 = vrot.slane %v9608_v2, 5  ;;  %v9618_v10 = vshll.u32 %v9321_v50, 16  ;;  %v9626_v14 = vshll.u32 %v9322_v46, 16  ;;  %v9632_v35 = vshll.u32 %v9323_v47, 16  ;;  %v18135_v50 = vld [vmem:[#allocation2 + $0x84] sm:$0xe] }
 0x357   : > { %14866 = vmatprep.mubr.bf16.mxu0 %v13542_v39  ;;  %v9614_v1 = vrot.slane %v9612_v52, 4  ;;  %14903 = vmatpush3.bf16.msra.mxu1 %v15251_v0  ;;  %v9605_v40 = vor.u32 %v9604_v49, %v9601_v15  ;;  %v9625_v45 = vrot.slane %v9623_v12, 4  ;;  %v9636_v13 = vshrl.u32 %v9323_v47, 16  ;;  %v18121_v39 = vld [vmem:[%s19332_s1 + $0x478] sm:$0xff]   ;;  %v9325_v46 = vld [vmem:[#allocation2 + $0xa8] sm:$0xf] }
 0x358   : > { %14943 = vmatpush3.bf16.msra.mxu0 %v15252_v29  ;;  %v9642_v37 = vshll.u32 %v9324_v25, 16  ;;  %14904 = vmatprep.subr.bf16.mxu1 %v15254_v57  ;;  %v18125_v56 = vsel %vm15758_vm14, %v10260_v55, %v10261_v58  ;;  %v9628_v29 = vrot.slane %v9626_v14, 5  ;;  %v9634_v28 = vrot.slane %v9632_v35, 5  ;;  %v10136_v2 = vld [vmem:[#allocation2 + $0x8c] sm:$0x1]  ;;  %v15257_v47 = vld [vmem:[%s19332_s1 + $0x410] sm:$0xff]   ;;  %v18151_v25 = vpop.f32.mrf.mxu1 }
 0x359   : > { %14944 = vmatprep.subr.bf16.mxu0 %v18081_v38  ;;  %v9615_v0 = vor.u32 %v9614_v1, %v9610_v16  ;;  %v18131_v41 = vsel %vm15758_vm14, %v13514_v34, %v10258_v62  ;;  %v9606_v63 = vrot.slane %v9605_v40, 4  ;;  %v9638_v44 = vrot.slane %v9636_v13, 4  ;;  %v9326_v52 = vld [vmem:[#allocation2 + $0xac] sm:$0xf]  ;;  %v9328_v14 = vld [vmem:[#allocation2 + $0xb4] sm:$0xf] }
 0x35a   : > { %v10265_v36 = vrot.slane %v10132_v31, 5  ;;  %v13492_v24 = vcombine.low %v9587_v42, %v9597_v7  ;;  %v9620_v23 = vrot.slane %v9618_v10, 5  ;;  %v9629_v58 = vor.u32 %v9628_v29, %v9625_v45  ;;  %v9327_v10 = vld [vmem:[#allocation2 + $0xb0] sm:$0x1]  ;;  %v9329_v35 = vld [vmem:[#allocation2 + $0xb8] sm:$0xf] }
 0x35b   : > { %v9616_v53 = vrot.slane %v9615_v0, 4  ;;  %14905 = vmatpush3.bf16.msra.mxu1 %v15254_v57  ;;  %v13546_v15 = vcombine.low %v18131_v41, %v18125_v56  ;;  %v9639_v62 = vor.u32 %v9638_v44, %v9634_v28  ;;  %v9644_v34 = vrot.slane %v9642_v37, 5  ;;  %v15261_v31 = vld [vmem:[%s19332_s1 + $0x408] sm:$0xff]   ;;  %v18174_v0 = vpop.f32.mrf.mxu1 }
 0x35c   : > { %14945 = vmatpush3.bf16.msra.mxu0 %v18081_v38  ;;  %v13515_v51 = vrot.slane %v10131_v60, 9  ;;  %14986 = vmatprep.subr.bf16.mxu1 %v18121_v39  ;;  %v9630_v57 = vrot.slane %v9629_v58, 4  ;;  %v10267_v42 = vrot.slane %v10265_v36, 4  ;;  %v10272_v55 = vrot.slane %v18133_v32, 5 }
 0x35d   : > { %14946 = vmatprep.subr.bf16.mxu0 %v15256_v21  ;;  %14827 = vmatmul.mubr.bf16.gmra.mxu1 %v18091_v43  ;;  %v9621_v38 = vsel %vm15406_vm9, %v9616_v53, %v9620_v23  ;;  %v9611_v11 = vsel %vm15406_vm9, %v9606_v63, %v9610_v16  ;;  %v9640_v59 = vrot.slane %v9639_v62, 4  ;;  %v9647_v43 = vshrl.u32 %v9325_v46, 16  ;;  %v18176_v53 = vld [vmem:[#allocation2 + $0x94] sm:$0xf] }
 0x35e   : > { %14867 = vmatmul.mubr.bf16.gmra.mxu0 %v13543_v17  ;;  %14830 = vmatprep.mubr.bf16.mxu1 %v13492_v24  ;;  %v10268_v17 = vrot.slane %v10133_v8, 5  ;;  %v13493_v7 = vcombine.low %v9611_v11, %v9621_v38  ;;  %v18160_v49 = vsel %vm15758_vm14, %v13515_v51, %v10265_v36  ;;  %v13516_v12 = vrot.slane %v18135_v50, 9  ;;  %v18188_v38 = vpop.f32.mrf.mxu1 }
 0x35f   : > { %14870 = vmatprep.mubr.bf16.mxu0 %v13544_v54  ;;  %v10275_v1 = vrot.slane %v10136_v2, 5  ;;  %v9645_v19 = vsel %vm15406_vm9, %v9640_v59, %v9644_v34  ;;  %v9649_v61 = vrot.slane %v9647_v43, 4  ;;  %v9650_v54 = vshll.u32 %v9325_v46, 16  ;;  %v15262_v46 = vld [vmem:[%s19332_s1 + $0x400] sm:$0xff]   ;;  %v10139_v43 = vld [vmem:[#allocation2 + $0x98] sm:$0x1] }
 0x360   : > { %14947 = vmatpush3.bf16.msra.mxu0 %v15256_v21  ;;  %v9656_v16 = vshll.u32 %v9326_v52, 16  ;;  %v9635_v40 = vsel %vm15406_vm9, %v9630_v57, %v9634_v28  ;;  %v18172_v45 = vsel %vm15758_vm14, %v10267_v42, %v10268_v17  ;;  %v10274_v13 = vrot.slane %v10272_v55, 4  ;;  %v9330_v21 = vld [vmem:[#allocation2 + $0xbc] sm:$0x1]  ;;  %v10141_v42 = vld [vmem:[#allocation2 + $0xa0] sm:$0xf] }
 0x361   : > { %14948 = vmatprep.subr.bf16.mxu0 %v15257_v47  ;;  %v9660_v37 = vshrl.u32 %v9326_v52, 16  ;;  %v13494_v29 = vcombine.low %v9635_v40, %v9645_v19  ;;  %v9652_v60 = vrot.slane %v9650_v54, 5  ;;  %v9671_v63 = vshrl.u32 %v9328_v14, 16 }
 0x362   : > { %v9658_v8 = vrot.slane %v9656_v16, 5  ;;  %v9666_v36 = vshll.u32 %v9327_v10, 16  ;;  %v9674_v32 = vshll.u32 %v9328_v14, 16  ;;  %v9680_v24 = vshll.u32 %v9329_v35, 16 }
 0x363   : > { %v9662_v44 = vrot.slane %v9660_v37, 4  ;;  %v9653_v28 = vor.u32 %v9652_v60, %v9649_v61  ;;  %v9673_v23 = vrot.slane %v9671_v63, 4  ;;  %v9684_v58 = vshrl.u32 %v9329_v35, 16 }
 0x364   : > { %14949 = vmatpush3.bf16.msra.mxu0 %v15257_v47  ;;  %v9690_v50 = vshll.u32 %v9330_v21, 16  ;;  %v10276_v62 = vsel %vm15758_vm14, %v10274_v13, %v10275_v1  ;;  %v9676_v51 = vrot.slane %v9674_v32, 5  ;;  %v9682_v2 = vrot.slane %v9680_v24, 5  ;;  %v18186_v47 = vld [vmem:[#allocation2 + $0x90] sm:$0xe] }
 0x365   : > { %14950 = vmatprep.subr.bf16.mxu0 %v15261_v31  ;;  %14831 = vmatmul.mubr.bf16.gmra.mxu1 %v13493_v7  ;;  %v9663_v34 = vor.u32 %v9662_v44, %v9658_v8  ;;  %v13547_v33 = vcombine.low %v18160_v49, %v18172_v45  ;;  %v9654_v4 = vrot.slane %v9653_v28, 4  ;;  %v10279_v57 = vrot.slane %v18176_v53, 5  ;;  %v9331_v7 = vld [vmem:[#allocation2 + $0xc0] sm:$0xf]  ;;  %v10142_v49 = vld [vmem:[#allocation2 + $0xa4] sm:$0x1] }
 0x366   : > { %14871 = vmatmul.mubr.bf16.gmra.mxu0 %v13545_v26  ;;  %14834 = vmatprep.mubr.bf16.mxu1 %v13494_v29  ;;  %v9686_v26 = vrot.slane %v9684_v58, 4  ;;  %v10273_v52 = vsel %vm15758_vm14, %v13516_v12, %v10272_v55  ;;  %v9668_v59 = vrot.slane %v9666_v36, 5  ;;  %v9677_v17 = vor.u32 %v9676_v51, %v9673_v23  ;;  %v9332_v55 = vld [vmem:[#allocation2 + $0xc4] sm:$0xf]  ;;  %v18201_v12 = vpop.f32.mrf.mxu1  ;;  %v9333_v29 = vld [vmem:[#allocation2 + $0xc8] sm:$0x1] }
 0x367   : > { %14874 = vmatprep.mubr.bf16.mxu0 %v13546_v15  ;;  %v9664_v11 = vrot.slane %v9663_v34, 4  ;;  %v13548_v56 = vcombine.low %v10273_v52, %v10276_v62  ;;  %v9692_v15 = vrot.slane %v9690_v50, 5  ;;  %v13517_v1 = vrot.slane %v18186_v47, 9  ;;  %v10144_v32 = vld [vmem:[#allocation2 + $0xac] sm:$0xf] }
 0x368   : > { %14951 = vmatpush3.bf16.msra.mxu0 %v15261_v31  ;;  %v9687_v41 = vor.u32 %v9686_v26, %v9682_v2  ;;  %v9678_v14 = vrot.slane %v9677_v17, 4  ;;  %v10281_v19 = vrot.slane %v10279_v57, 4  ;;  %v10286_v61 = vrot.slane %v10141_v42, 5  ;;  %v10140_v31 = vld [vmem:[#allocation2 + $0x9c] sm:$0xe]  ;;  %v18211_v58 = vpop.f32.mrf.mxu1  ;;  %v18215_v26 = vpop.f32.mrf.mxu0 }
 0x369   : > { %14952 = vmatprep.subr.bf16.mxu0 %v15262_v46  ;;  %v9669_v10 = vsel %vm15406_vm9, %v9664_v11, %v9668_v59  ;;  %v9659_v54 = vsel %vm15406_vm9, %v9654_v4, %v9658_v8  ;;  %v10282_v35 = vrot.slane %v10139_v43, 5  ;;  %v9695_v40 = vshrl.u32 %v9331_v7, 16  ;;  %v10147_v23 = vld [vmem:[#allocation2 + $0xb8] sm:$0xf]  ;;  %v10143_v51 = vld [vmem:[#allocation2 + $0xa8] sm:$0xe] }
 0x36a   : > { %v9688_v16 = vrot.slane %v9687_v41, 4  ;;  %v13495_v45 = vcombine.low %v9659_v54, %v9669_v10  ;;  %v9683_v13 = vsel %vm15406_vm9, %v9678_v14, %v9682_v2  ;;  %v10288_v37 = vrot.slane %v10286_v61, 4  ;;  %v10145_v47 = vld [vmem:[#allocation2 + $0xb0] sm:$0x1]  ;;  %v10146_v4 = vld [vmem:[#allocation2 + $0xb4] sm:$0xe]  ;;  %v18223_v10 = vpop.f32.mrf.mxu1 }
 0x36b   : > { %v10289_v21 = vrot.slane %v10142_v49, 5  ;;  %v9697_v63 = vrot.slane %v9695_v40, 4  ;;  %v9698_v44 = vshll.u32 %v9331_v7, 16  ;;  %v9704_v36 = vshll.u32 %v9332_v55, 16  ;;  %v10148_v59 = vld [vmem:[#allocation2 + $0xbc] sm:$0x1]  ;;  %v18227_v40 = vpop.f32.mrf.mxu0 }
 0x36c   : > { %14953 = vmatpush3.bf16.msra.mxu0 %v15262_v46  ;;  %v9693_v60 = vsel %vm15406_vm9, %v9688_v16, %v9692_v15  ;;  %v10283_v24 = vsel %vm15758_vm14, %v10281_v19, %v10282_v35  ;;  %v13518_v53 = vrot.slane %v10140_v31, 9  ;;  %v9708_v28 = vshrl.u32 %v9332_v55, 16  ;;  %v11148_v43 = vld [vmem:[#allocation2 + $0x18] sm:$0xf]  ;;  %v18221_v49 = vld [vmem:[#allocation2 + $0xc0] sm:$0xe] }
 0x36d   : > { %14835 = vmatmul.mubr.bf16.gmra.mxu1 %v13495_v45  ;;  %v13496_v8 = vcombine.low %v9683_v13, %v9693_v60  ;;  %v10290_v50 = vsel %vm15758_vm14, %v10288_v37, %v10289_v21  ;;  %v9700_v46 = vrot.slane %v9698_v44, 5  ;;  %v9706_v62 = vrot.slane %v9704_v36, 5  ;;  %v11149_v35 = vld [vmem:[#allocation2 + $0x1c] sm:$0xf]  ;;  %v10151_v21 = vld [vmem:[#allocation2 + $0xc8] sm:$0x1] }
 0x36e   : > { %14875 = vmatmul.mubr.bf16.gmra.mxu0 %v13547_v33  ;;  %v9714_v34 = vshll.u32 %v9333_v29, 16  ;;  %v9710_v2 = vrot.slane %v9708_v28, 4  ;;  %v10293_v33 = vrot.slane %v10144_v32, 5  ;;  %v10280_v42 = vsel %vm15758_vm14, %v13517_v1, %v10279_v57  ;;  %v18225_v57 = vld [vmem:[#allocation2 + $0xc4] sm:$0xf] }
 0x36f   : > { %14878 = vmatprep.mubr.bf16.mxu0 %v13548_v56  ;;  %14838 = vmatprep.mubr.bf16.mxu1 %v13496_v8  ;;  %v10287_v52 = vsel %vm15758_vm14, %v13518_v53, %v10286_v61  ;;  %v9701_v11 = vor.u32 %v9700_v46, %v9697_v63  ;;  %v10300_v17 = vrot.slane %v10147_v23, 5  ;;  %v13549_v7 = vcombine.low %v10280_v42, %v10283_v24  ;;  %v11151_v60 = vld [vmem:[#allocation2 + $0x24] sm:$0xf]  ;;  %v11150_v32 = vld [vmem:[#allocation2 + $0x20] sm:$0x1]  ;;  %v18239_v24 = vpop.f32.mrf.mxu1 }
 0x370   : > { %v13550_v56 = vcombine.low %v10287_v52, %v10290_v50  ;;  %v9711_v41 = vor.u32 %v9710_v2, %v9706_v62  ;;  %v10295_v15 = vrot.slane %v10293_v33, 4  ;;  %v9716_v19 = vrot.slane %v9714_v34, 5  ;;  %v11152_v46 = vld [vmem:[#allocation2 + $0x28] sm:$0xf] }
 0x371   : > { %v9702_v14 = vrot.slane %v9701_v11, 4  ;;  %v13519_v55 = vrot.slane %v10143_v51, 9  ;;  %v10296_v54 = vrot.slane %v10145_v47, 5  ;;  %v13520_v61 = vrot.slane %v10146_v4, 9  ;;  %v15255_v51 = vld [vmem:[#allocation2 + $0x18] sm:$0xff]  }
 0x372   : > { %v9712_v1 = vrot.slane %v9711_v41, 4  ;;  %v10303_v16 = vrot.slane %v10148_v59, 5  ;;  %v11197_v31 = vshrl.u32 %v11148_v43, 16  ;;  %v10302_v37 = vrot.slane %v10300_v17, 4  ;;  %v11154_v59 = vld [vmem:[#allocation2 + $0x30] sm:$0xf] }
 0x373   : > { %v10294_v45 = vsel %vm15758_vm14, %v13519_v55, %v10293_v33  ;;  %v10297_v13 = vsel %vm15758_vm14, %v10295_v15, %v10296_v54  ;;  %v13521_v29 = vrot.slane %v18221_v49, 9  ;;  %v9707_v63 = vsel %vm15406_vm9, %v9702_v14, %v9706_v62  ;;  %v18243_v33 = vpop.f32.mrf.mxu0  ;;  %v11155_v54 = vld [vmem:[#allocation2 + $0x34] sm:$0xf] }
 0x374   : > { %v9717_v44 = vsel %vm15406_vm9, %v9712_v1, %v9716_v19  ;;  %v10307_v36 = vrot.slane %v18225_v57, 5  ;;  %v11199_v8 = vrot.slane %v11197_v31, 4  ;;  %v11200_v28 = vshll.u32 %v11148_v43, 16  ;;  %v11153_v1 = vld [vmem:[#allocation2 + $0x2c] sm:$0x1] }
 0x375   : > { %v13497_v53 = vcombine.low %v9707_v63, %v9717_v44  ;;  %v11206_v23 = vshll.u32 %v11149_v35, 16  ;;  %v11210_v50 = vshrl.u32 %v11149_v35, 16  ;;  %v13551_v34 = vcombine.low %v10294_v45, %v10297_v13  ;;  %v18253_v13 = vpop.f32.mrf.mxu0  ;;  %v11156_v44 = vld [vmem:[#allocation2 + $0x38] sm:$0x1] }
 0x376   : > { %14879 = vmatmul.mubr.bf16.gmra.mxu0 %v13549_v7  ;;  %v10301_v62 = vsel %vm15758_vm14, %v13520_v61, %v10300_v17  ;;  %v10310_v2 = vrot.slane %v10151_v21, 5  ;;  %v11221_v47 = vshrl.u32 %v11151_v60, 16  ;;  %v11202_v4 = vrot.slane %v11200_v28, 5  ;;  %v18249_v17 = vpop.f32.mrf.mxu1 }
 0x377   : > { %14882 = vmatprep.mubr.bf16.mxu0 %v13550_v56  ;;  %14839 = vmatmul.mubr.bf16.gmra.mxu1 %v13497_v53  ;;  %v11208_v42 = vrot.slane %v11206_v23, 5  ;;  %v11212_v52 = vrot.slane %v11210_v50, 4  ;;  %v11216_v11 = vshll.u32 %v11150_v32, 16  ;;  %v10304_v43 = vsel %vm15758_vm14, %v10302_v37, %v10303_v16  ;;  %v15258_v23 = vld [vmem:[#allocation2 + $0x24] sm:$0xff]  }
 0x378   : > { %14906 = vmatprep.mubr.bf16.mxu1 %v15255_v51  ;;  %v10309_v7 = vrot.slane %v10307_v36, 4  ;;  %v11224_v56 = vshll.u32 %v11151_v60, 16  ;;  %v11230_v41 = vshll.u32 %v11152_v46, 16  ;;  %v11203_v15 = vor.u32 %v11202_v4, %v11199_v8  ;;  %v18255_v28 = vpop.f32.mrf.mxu1 }
 0x379   : > { %v11213_v14 = vor.u32 %v11212_v52, %v11208_v42  ;;  %v11223_v19 = vrot.slane %v11221_v47, 4  ;;  %v11234_v55 = vshrl.u32 %v11152_v46, 16  ;;  %v11245_v31 = vshrl.u32 %v11154_v59, 16  ;;  %19533 = vst [vmem:[#allocation13_spill] sm:$0xff] %v18255_v28  ;;  %v15264_v46 = vld [vmem:[%s19332_s1 + $0x470] sm:$0xff]  }
 0x37a   : > { %v11226_v61 = vrot.slane %v11224_v56, 5  ;;  %v18251_v35 = vrot.slane %v11230_v41, 5  ;;  %v11248_v45 = vshll.u32 %v11154_v59, 16  ;;  %v13552_v16 = vcombine.low %v10301_v62, %v10304_v43  ;;  %v15260_v47 = vld [vmem:[#allocation2 + $0x30] sm:$0xff]   ;;  %v18267_v43 = vpop.f32.mrf.mxu0  ;;  %v11157_v41 = vld [vmem:[#allocation2 + $0x3c] sm:$0xf] }
 0x37b   : > { %v11214_v37 = vrot.slane %v11213_v14, 4  ;;  %v11218_v21 = vrot.slane %v11216_v11, 5  ;;  %v11236_v60 = vrot.slane %v11234_v55, 4  ;;  %v11204_v63 = vrot.slane %v11203_v15, 4  ;;  %v18278_v55 = vpop.f32.mrf.mxu1 }
 0x37c   : > { %v11247_v32 = vrot.slane %v11245_v31, 4  ;;  %v11250_v8 = vrot.slane %v11248_v45, 5  ;;  %v11254_v53 = vshll.u32 %v11155_v54, 16  ;;  %v10311_v50 = vsel %vm15758_vm14, %v10309_v7, %v10310_v2  ;;  %19534 = vst [vmem:[#allocation14_spill] sm:$0xff] %v18278_v55 }
 0x37d   : > { %v11237_v51 = vor.u32 %v11236_v60, %v18251_v35  ;;  %v11240_v62 = vshll.u32 %v11153_v1, 16  ;;  %v11219_v4 = vsel %vm15406_vm9, %v11214_v37, %v11218_v21  ;;  %v11227_v52 = vor.u32 %v11226_v61, %v11223_v19  ;;  %v11158_v19 = vld [vmem:[#allocation2 + $0x40] sm:$0xf] }
 0x37e   : > { %14883 = vmatmul.mubr.bf16.gmra.mxu0 %v13551_v34  ;;  %v11258_v34 = vshrl.u32 %v11155_v54, 16  ;;  %v11251_v11 = vor.u32 %v11250_v8, %v11247_v32  ;;  %v18265_v59 = vrot.slane %v11254_v53, 5  ;;  %v10308_v2 = vsel %vm15758_vm14, %v13521_v29, %v10307_v36  ;;  %v15267_v29 = vld [vmem:[%s19332_s1 + $0x468] sm:$0xff]   ;;  %v11162_v53 = vld [vmem:[#allocation2 + $0x50] sm:$0x1] }
 0x37f   : > { %14886 = vmatprep.mubr.bf16.mxu0 %v13552_v16  ;;  %14907 = vmatmul.mubr.bf16.vlgmr.msra.gmra.mxu1 %v15258_v23  ;;  %v11264_v56 = vshll.u32 %v11156_v44, 16  ;;  %v13553_v15 = vcombine.low %v10308_v2, %v10311_v50  ;;  %v11209_v14 = vsel %vm15406_vm9, %v11204_v63, %v11208_v42  ;;  %v11238_v57 = vrot.slane %v11237_v51, 4  ;;  %v11160_v36 = vld [vmem:[#allocation2 + $0x48] sm:$0xf]  ;;  %v18284_v42 = vpop.f32.mrf.mxu0  ;;  %v11161_v44 = vld [vmem:[#allocation2 + $0x4c] sm:$0xf]  ;;  %v18286_v51 = vpop.f32.mrf.mxu1 }
 0x380   : > { %v11260_v7 = vrot.slane %v11258_v34, 4  ;;  %14910 = vmatprep.mubr.bf16.mxu1 %v15260_v47  ;;  %14987 = vmatpush3.bf16.msra.mxu1 %v18121_v39  ;;  %v13618_v54 = vcombine.low %v11209_v14, %v11219_v4  ;;  %v11242_v49 = vrot.slane %v11240_v62, 5  ;;  %v11228_v61 = vrot.slane %v11227_v52, 4  ;;  %v11159_v39 = vld [vmem:[#allocation2 + $0x44] sm:$0x1]  ;;  %19535 = vst [vmem:[#allocation15_spill] sm:$0xff] %v18286_v51 }
 0x381   : > { %14988 = vmatprep.subr.bf16.mxu1 %v15264_v46  ;;  %v11252_v31 = vrot.slane %v11251_v11, 4  ;;  %v11269_v45 = vshrl.u32 %v11157_v41, 16  ;;  %v11272_v16 = vshll.u32 %v11157_v41, 16  ;;  %v11266_v21 = vrot.slane %v11264_v56, 5  ;;  %v15263_v62 = vld [vmem:[#allocation2 + $0x3c] sm:$0xff]   ;;  %v15265_v11 = vld [vmem:[#allocation2 + $0x48] sm:$0xff]  }
 0x382   : > { %v11261_v1 = vor.u32 %v11260_v7, %v18265_v59  ;;  %v11278_v60 = vshll.u32 %v11158_v19, 16  ;;  %v11282_v63 = vshrl.u32 %v11158_v19, 16  ;;  %v11293_v23 = vshrl.u32 %v11160_v36, 16 }
 0x383   : > { %v11271_v32 = vrot.slane %v11269_v45, 4  ;;  %v11274_v8 = vrot.slane %v11272_v16, 5  ;;  %v11296_v50 = vshll.u32 %v11160_v36, 16  ;;  %v11243_v34 = vsel %vm15406_vm9, %v11238_v57, %v11242_v49  ;;  %v11163_v49 = vld [vmem:[#allocation2 + $0x54] sm:$0xf]  ;;  %v18306_v16 = vpop.f32.mrf.mxu1 }
 0x384   : > { %v11262_v37 = vrot.slane %v11261_v1, 4  ;;  %14989 = vmatpush3.bf16.msra.mxu1 %v15264_v46  ;;  %v18290_v47 = vrot.slane %v11278_v60, 5  ;;  %v11284_v4 = vrot.slane %v11282_v63, 4  ;;  %v11288_v52 = vshll.u32 %v11159_v39, 16  ;;  %v15270_v46 = vld [vmem:[%s19332_s1 + $0x460] sm:$0xff]   ;;  %19536 = vst [vmem:[#allocation16_spill] sm:$0xff] %v18306_v16 }
 0x385   : > { %14990 = vmatprep.subr.bf16.mxu1 %v15267_v29  ;;  %v11275_v7 = vor.u32 %v11274_v8, %v11271_v32  ;;  %v11295_v56 = vrot.slane %v11293_v23, 4  ;;  %v11298_v41 = vrot.slane %v11296_v50, 5  ;;  %v11302_v19 = vshll.u32 %v11161_v44, 16  ;;  %v11164_v45 = vld [vmem:[#allocation2 + $0x58] sm:$0xf] }
 0x386   : > { %14887 = vmatmul.mubr.bf16.gmra.mxu0 %v13553_v15  ;;  %v11267_v2 = vsel %vm15406_vm9, %v11262_v37, %v11266_v21  ;;  %v18297_v15 = vpop.f32.mrf.mxu0  ;;  %v11285_v14 = vor.u32 %v11284_v4, %v18290_v47  ;;  %v11312_v57 = vshll.u32 %v11162_v53, 16  ;;  %v11233_v1 = vsel %vm15406_vm9, %v11228_v61, %v18251_v35  ;;  %v15266_v4 = vld [vmem:[#allocation2 + $0x54] sm:$0xff]   ;;  %v11174_v16 = vld [vmem:[#allocation2 + $0x80] sm:$0x1] }
 0x387   : > { %14954 = vmatprep.mubr.bf16.mxu0 %v13618_v54  ;;  %14911 = vmatmul.mubr.bf16.gmra.mxu1 %v15263_v62  ;;  %v11306_v54 = vshrl.u32 %v11161_v44, 16  ;;  %v11257_v36 = vsel %vm15406_vm9, %v11252_v31, %v18265_v59  ;;  %v11276_v39 = vrot.slane %v11275_v7, 4  ;;  %v11299_v21 = vor.u32 %v11298_v41, %v11295_v56  ;;  %v15273_v44 = vld [vmem:[%s19332_s1 + $0x458] sm:$0xff]   ;;  %v11167_v62 = vld [vmem:[#allocation2 + $0x64] sm:$0xf]  ;;  %v18321_v56 = vpop.f32.mrf.mxu1 }
 0x388   : > { %14914 = vmatprep.mubr.bf16.mxu1 %v15265_v11  ;;  %14991 = vmatpush3.bf16.msra.mxu1 %v15267_v29  ;;  %v11286_v37 = vrot.slane %v11285_v14, 4  ;;  %v18308_v60 = vrot.slane %v11302_v19, 5  ;;  %v13619_v35 = vcombine.low %v11233_v1, %v11243_v34  ;;  %v13620_v61 = vcombine.low %v11257_v36, %v11267_v2  ;;  %v18313_v8 = vpop.f32.mrf.mxu0  ;;  %v11166_v29 = vld [vmem:[#allocation2 + $0x60] sm:$0xf]  ;;  %v11168_v36 = vld [vmem:[#allocation2 + $0x68] sm:$0x1] }
 0x389   : > { %v11308_v63 = vrot.slane %v11306_v54, 4  ;;  %14992 = vmatprep.subr.bf16.mxu1 %v15270_v46  ;;  %v11290_v32 = vrot.slane %v11288_v52, 5  ;;  %v11317_v59 = vshrl.u32 %v11163_v49, 16  ;;  %v11314_v53 = vrot.slane %v11312_v57, 5  ;;  %v11165_v52 = vld [vmem:[#allocation2 + $0x5c] sm:$0x1] }
 0x38a   : > { %v11320_v23 = vshll.u32 %v11163_v49, 16  ;;  %v11326_v50 = vshll.u32 %v11164_v45, 16  ;;  %v11281_v11 = vsel %vm15406_vm9, %v11276_v39, %v18290_v47  ;;  %v11330_v7 = vshrl.u32 %v11164_v45, 16  ;;  %v15268_v41 = vld [vmem:[#allocation2 + $0x60] sm:$0xff]   ;;  %v15276_v47 = vld [vmem:[%s19332_s1 + $0x450] sm:$0xff]  }
 0x38b   : > { %v11309_v31 = vor.u32 %v11308_v63, %v18308_v60  ;;  %v11291_v34 = vsel %vm15406_vm9, %v11286_v37, %v11290_v32  ;;  %v11319_v2 = vrot.slane %v11317_v59, 4  ;;  %v11300_v14 = vrot.slane %v11299_v21, 4 }
 0x38c   : > { %14993 = vmatpush3.bf16.msra.mxu1 %v15270_v46  ;;  %v11322_v54 = vrot.slane %v11320_v23, 5  ;;  %v18323_v57 = vrot.slane %v11326_v50, 5  ;;  %v11332_v1 = vrot.slane %v11330_v7, 4  ;;  %v11341_v39 = vshrl.u32 %v11166_v29, 16  ;;  %v18335_v50 = vpop.f32.mrf.mxu1 }
 0x38d   : > { %v11310_v19 = vrot.slane %v11309_v31, 4  ;;  %14994 = vmatprep.subr.bf16.mxu1 %v15273_v44  ;;  %v11344_v46 = vshll.u32 %v11166_v29, 16  ;;  %v11350_v45 = vshll.u32 %v11167_v62, 16  ;;  %v13621_v37 = vcombine.low %v11281_v11, %v11291_v34  ;;  %v15279_v34 = vld [vmem:[%s19332_s1 + $0x448] sm:$0xff]  }
 0x38e   : > { %14955 = vmatmul.mubr.bf16.vlgmr.msra.gmra.mxu0 %v13619_v35  ;;  %v11323_v63 = vor.u32 %v11322_v54, %v11319_v2  ;;  %v11336_v21 = vshll.u32 %v11165_v52, 16  ;;  %v11169_v35 = vld [vmem:[#allocation2 + $0x6c] sm:$0xf]  ;;  %v11333_v32 = vor.u32 %v11332_v1, %v18323_v57  ;;  %v11343_v59 = vrot.slane %v11341_v39, 4  ;;  %v11171_v39 = vld [vmem:[#allocation2 + $0x74] sm:$0x1] }
 0x38f   : > { %14958 = vmatprep.mubr.bf16.mxu0 %v13620_v61  ;;  %14915 = vmatmul.mubr.bf16.gmra.mxu1 %v15266_v4  ;;  %v11315_v61 = vsel %vm15406_vm9, %v11310_v19, %v11314_v53  ;;  %v11346_v31 = vrot.slane %v11344_v46, 5  ;;  %v11352_v7 = vrot.slane %v11350_v45, 5  ;;  %v11354_v4 = vshrl.u32 %v11167_v62, 16 }
 0x390   : > { %v18328_v49 = vpop.f32.mrf.mxu0  ;;  %14918 = vmatprep.mubr.bf16.mxu1 %v15268_v41  ;;  %14995 = vmatpush3.bf16.msra.mxu1 %v15273_v44  ;;  %v11324_v29 = vrot.slane %v11323_v63, 4  ;;  %v11360_v11 = vshll.u32 %v11168_v36, 16  ;;  %v11305_v53 = vsel %vm15406_vm9, %v11300_v14, %v18308_v60  ;;  %v11334_v52 = vrot.slane %v11333_v32, 4  ;;  %v11170_v44 = vld [vmem:[#allocation2 + $0x70] sm:$0xf]  ;;  %v18353_v32 = vpop.f32.mrf.mxu1 }
 0x391   : > { %14996 = vmatprep.subr.bf16.mxu1 %v15276_v47  ;;  %v11347_v2 = vor.u32 %v11346_v31, %v11343_v59  ;;  %v11365_v19 = vshrl.u32 %v11169_v35, 16  ;;  %v18347_v54 = vadd.f32 %v18215_v26, %v17956_v48  ;;  %v18351_v62 = vadd.f32 %v18227_v40, %v17978_v9  ;;  %v11172_v63 = vld [vmem:[#allocation2 + $0x78] sm:$0xf]  ;;  %v15269_v59 = vld [vmem:[#allocation2 + $0x6c] sm:$0xff]  }
 0x392   : > { %v18333_v23 = vpop.f32.mrf.mxu0  ;;  %v13622_v1 = vcombine.low %v11305_v53, %v11315_v61  ;;  %v11356_v36 = vrot.slane %v11354_v4, 4  ;;  %v11338_v46 = vrot.slane %v11336_v21, 5  ;;  %v11368_v45 = vshll.u32 %v11169_v35, 16  ;;  %v15282_v21 = vld [vmem:[%s19332_s1 + $0x440] sm:$0xff]   ;;  %v18367_v55 = vpop.f32.mrf.mxu1 }
 0x393   : > { %v11348_v60 = vrot.slane %v11347_v2, 4  ;;  %v11367_v14 = vrot.slane %v11365_v19, 4  ;;  %v11329_v48 = vsel %vm15406_vm9, %v11324_v29, %v18323_v57  ;;  %v11362_v26 = vrot.slane %v11360_v11, 5 }
 0x394   : > { %v18343_v41 = vpop.f32.mrf.mxu0  ;;  %14997 = vmatpush3.bf16.msra.mxu1 %v15276_v47  ;;  %v11357_v9 = vor.u32 %v11356_v36, %v11352_v7  ;;  %v11374_v61 = vshll.u32 %v11170_v44, 16  ;;  %v15271_v47 = vld [vmem:[#allocation2 + $0x78] sm:$0xff]   ;;  %v11339_v35 = vsel %vm15406_vm9, %v11334_v52, %v11338_v46  ;;  %v11370_v4 = vrot.slane %v11368_v45, 5  ;;  %v11175_v45 = vld [vmem:[#allocation2 + $0x84] sm:$0xf] }
 0x395   : > { %14998 = vmatprep.subr.bf16.mxu1 %v15279_v34  ;;  %v11353_v31 = vsel %vm15406_vm9, %v11348_v60, %v11352_v7  ;;  %v11378_v57 = vshrl.u32 %v11170_v44, 16  ;;  %v11389_v53 = vshrl.u32 %v11172_v63, 16  ;;  %v11392_v2 = vshll.u32 %v11172_v63, 16 }
 0x396   : > { %14959 = vmatmul.mubr.bf16.gmra.mxu0 %v13621_v37  ;;  %v18358_v40 = vpop.f32.mrf.mxu0  ;;  %v11173_v37 = vld [vmem:[#allocation2 + $0x7c] sm:$0xf]  ;;  %v11358_v29 = vrot.slane %v11357_v9, 4  ;;  %v11376_v11 = vrot.slane %v11374_v61, 5  ;;  %v11371_v19 = vor.u32 %v11370_v4, %v11367_v14  ;;  %v11384_v36 = vshll.u32 %v11171_v39, 16 }
 0x397   : > { %14962 = vmatprep.mubr.bf16.mxu0 %v13622_v1  ;;  %14919 = vmatmul.mubr.bf16.gmra.mxu1 %v15269_v59  ;;  %v11380_v1 = vrot.slane %v11378_v57, 4  ;;  %v11398_v51 = vshll.u32 %v11173_v37, 16  ;;  %v11391_v44 = vrot.slane %v11389_v53, 4  ;;  %v11394_v46 = vrot.slane %v11392_v2, 5  ;;  %v18379_v2 = vpop.f32.mrf.mxu1 }
 0x398   : > { %14922 = vmatprep.mubr.bf16.mxu1 %v15271_v47  ;;  %14999 = vmatpush3.bf16.msra.mxu1 %v15279_v34  ;;  %v11363_v52 = vsel %vm15406_vm9, %v11358_v29, %v11362_v26  ;;  %v11402_v60 = vshrl.u32 %v11173_v37, 16  ;;  %v13623_v63 = vcombine.low %v11329_v48, %v11339_v35  ;;  %v11372_v14 = vrot.slane %v11371_v19, 4  ;;  %v11176_v34 = vld [vmem:[#allocation2 + $0x88] sm:$0xf]  ;;  %v15274_v19 = vld [vmem:[#allocation2 + $0x90] sm:$0xff]  }
 0x399   : > { %15000 = vmatprep.subr.bf16.mxu1 %v15282_v21  ;;  %v13624_v59 = vcombine.low %v11353_v31, %v11363_v52  ;;  %v11381_v9 = vor.u32 %v11380_v1, %v11376_v11  ;;  %v11395_v39 = vor.u32 %v11394_v46, %v11391_v44  ;;  %v11400_v61 = vrot.slane %v11398_v51, 5  ;;  %v11179_v46 = vld [vmem:[#allocation2 + $0x94] sm:$0xf] }
 0x39a   : > { %v11404_v47 = vrot.slane %v11402_v60, 4  ;;  %v11408_v4 = vshll.u32 %v11174_v16, 16  ;;  %v18377_v26 = vadd.f32 %v18243_v33, %v17991_v22  ;;  %v11386_v37 = vrot.slane %v11384_v36, 5  ;;  %v15272_v16 = vld [vmem:[#allocation2 + $0x84] sm:$0xff]   ;;  %v11177_v33 = vld [vmem:[#allocation2 + $0x8c] sm:$0x1] }
 0x39b   : > { %v18371_v7 = vpop.f32.mrf.mxu0  ;;  %v11382_v29 = vrot.slane %v11381_v9, 4  ;;  %v11413_v53 = vshrl.u32 %v11175_v45, 16  ;;  %v18383_v48 = vadd.f32 %v18253_v13, %v18018_v27  ;;  %v18387_v51 = vadd.f32 %v18267_v43, %v18045_v6  ;;  %v11178_v27 = vld [vmem:[#allocation2 + $0x90] sm:$0xf]  ;;  %v18399_v9 = vpop.f32.mrf.mxu1 }
 0x39c   : > { %15001 = vmatpush3.bf16.msra.mxu1 %v15282_v21  ;;  %v11405_v35 = vor.u32 %v11404_v47, %v11400_v61  ;;  %v11416_v31 = vshll.u32 %v11175_v45, 16  ;;  %v11396_v21 = vrot.slane %v11395_v39, 4  ;;  %v11422_v52 = vshll.u32 %v11176_v34, 16 }
 0x39d   : > { %v18373_v57 = vpop.f32.mrf.mxu0  ;;  %v11387_v1 = vsel %vm15406_vm9, %v11382_v29, %v11386_v37  ;;  %v11415_v36 = vrot.slane %v11413_v53, 4  ;;  %v11377_v6 = vsel %vm15406_vm9, %v11372_v14, %v11376_v11  ;;  %v11410_v43 = vrot.slane %v11408_v4, 5  ;;  %v11181_v29 = vld [vmem:[#allocation2 + $0x9c] sm:$0xf]  ;;  %v11180_v53 = vld [vmem:[#allocation2 + $0x98] sm:$0x1] }
 0x39e   : > { %14963 = vmatmul.mubr.bf16.gmra.mxu0 %v13623_v63  ;;  %v11406_v13 = vrot.slane %v11405_v35, 4  ;;  %v11418_v44 = vrot.slane %v11416_v31, 5  ;;  %v18397_v60 = vadd.f32 %v18284_v42, %v18070_v30  ;;  %v13625_v45 = vcombine.low %v11377_v6, %v11387_v1 }
 0x39f   : > { %14966 = vmatprep.mubr.bf16.mxu0 %v13624_v59  ;;  %v18389_v22 = vpop.f32.mrf.mxu0  ;;  %14923 = vmatmul.mubr.bf16.gmra.mxu1 %v15272_v16  ;;  %v11424_v63 = vrot.slane %v11422_v52, 5  ;;  %v11426_v59 = vshrl.u32 %v11176_v34, 16  ;;  %v11437_v14 = vshrl.u32 %v11178_v27, 16  ;;  %v11440_v4 = vshll.u32 %v11178_v27, 16  ;;  %v15275_v27 = vld [vmem:[#allocation2 + $0x9c] sm:$0xff]  }
 0x3a0   : > { %14926 = vmatprep.mubr.bf16.mxu1 %v15274_v19  ;;  %v11411_v39 = vsel %vm15406_vm9, %v11406_v13, %v11410_v43  ;;  %v11419_v11 = vor.u32 %v11418_v44, %v11415_v36  ;;  %v11401_v37 = vsel %vm15406_vm9, %v11396_v21, %v11400_v61  ;;  %v11432_v42 = vshll.u32 %v11177_v33, 16  ;;  %v11182_v13 = vld [vmem:[#allocation2 + $0xa0] sm:$0xf]  ;;  %v18407_v43 = vpop.f32.mrf.mxu1 }
 0x3a1   : > { %v18403_v47 = vpop.f32.mrf.mxu0  ;;  %v11428_v30 = vrot.slane %v11426_v59, 4  ;;  %v11446_v16 = vshll.u32 %v11179_v46, 16  ;;  %v13626_v35 = vcombine.low %v11401_v37, %v11411_v39  ;;  %v11439_v34 = vrot.slane %v11437_v14, 4  ;;  %v11183_v59 = vld [vmem:[#allocation2 + $0xa4] sm:$0x1] }
 0x3a2   : > { %v11442_v31 = vrot.slane %v11440_v4, 5  ;;  %v11450_v19 = vshrl.u32 %v11179_v46, 16  ;;  %v11420_v1 = vrot.slane %v11419_v11, 4  ;;  %v11461_v36 = vshrl.u32 %v11181_v29, 16 }
 0x3a3   : > { %v11429_v52 = vor.u32 %v11428_v30, %v11424_v63  ;;  %v11448_v6 = vrot.slane %v11446_v16, 5  ;;  %v11456_v21 = vshll.u32 %v11180_v53, 16  ;;  %v11464_v39 = vshll.u32 %v11181_v29, 16 }
 0x3a4   : > { %v11443_v61 = vor.u32 %v11442_v31, %v11439_v34  ;;  %v11452_v33 = vrot.slane %v11450_v19, 4  ;;  %v18413_v46 = vadd.f32 %v18297_v15, %v18106_v3  ;;  %v11434_v14 = vrot.slane %v11432_v42, 5  ;;  %v11184_v34 = vld [vmem:[#allocation2 + $0xa8] sm:$0xf]  ;;  %v18423_v42 = vpop.f32.mrf.mxu1 }
 0x3a5   : > { %v11430_v11 = vrot.slane %v11429_v52, 4  ;;  %v11463_v4 = vrot.slane %v11461_v36, 4  ;;  %v18419_v53 = vadd.f32 %v18313_v8, %v18127_v20  ;;  %v11474_v15 = vshrl.u32 %v11182_v13, 16 }
 0x3a6   : > { %14967 = vmatmul.mubr.bf16.gmra.mxu0 %v13625_v45  ;;  %v15277_v45 = vld [vmem:[#allocation2 + $0xa8] sm:$0xff]   ;;  %v11444_v37 = vrot.slane %v11443_v61, 4  ;;  %v11453_v30 = vor.u32 %v11452_v33, %v11448_v6  ;;  %v11480_v29 = vshll.u32 %v11183_v59, 16  ;;  %v11425_v31 = vsel %vm15406_vm9, %v11420_v1, %v11424_v63 }
 0x3a7   : > { %14970 = vmatprep.mubr.bf16.mxu0 %v13626_v35  ;;  %v18409_v44 = vpop.f32.mrf.mxu0  ;;  %14927 = vmatmul.mubr.bf16.gmra.mxu1 %v15275_v27  ;;  %v11466_v35 = vrot.slane %v11464_v39, 5  ;;  %v11435_v3 = vsel %vm15406_vm9, %v11430_v11, %v11434_v14  ;;  %v11458_v52 = vrot.slane %v11456_v21, 5  ;;  %v11185_v61 = vld [vmem:[#allocation2 + $0xac] sm:$0xf]  ;;  %v11476_v39 = vrot.slane %v11474_v15, 4 }
 0x3a8   : > { %19537 = vst [vmem:[#allocation17_spill] sm:$0xff] %v18409_v44  ;;  %v11470_v44 = vshll.u32 %v11182_v13, 16  ;;  %14930 = vmatprep.mubr.bf16.mxu1 %v15277_v45  ;;  %v11454_v19 = vrot.slane %v11453_v30, 4  ;;  %v13627_v20 = vcombine.low %v11425_v31, %v11435_v3  ;;  %v11449_v8 = vsel %vm15406_vm9, %v11444_v37, %v11448_v6  ;;  %v11186_v13 = vld [vmem:[#allocation2 + $0xb0] sm:$0x1]  ;;  %v18435_v3 = vpop.f32.mrf.mxu1 }
 0x3a9   : > { %v18415_v16 = vpop.f32.mrf.mxu0  ;;  %v11467_v27 = vor.u32 %v11466_v35, %v11463_v4  ;;  %v11485_v63 = vshrl.u32 %v11184_v34, 16  ;;  %v11488_v1 = vshll.u32 %v11184_v34, 16  ;;  %v11187_v21 = vld [vmem:[#allocation2 + $0xb4] sm:$0xf]  ;;  %v11482_v30 = vrot.slane %v11480_v29, 5 }
 0x3aa   : > { %19538 = vst [vmem:[#allocation18_spill] sm:$0xff] %v18415_v16  ;;  %v11472_v33 = vrot.slane %v11470_v44, 5  ;;  %v11459_v59 = vsel %vm15406_vm9, %v11454_v19, %v11458_v52  ;;  %v11494_v35 = vshll.u32 %v11185_v61, 16  ;;  %v11188_v6 = vld [vmem:[#allocation2 + $0xb8] sm:$0xf]  ;;  %v11498_v19 = vshrl.u32 %v11185_v61, 16 }
 0x3ab   : > { %v18427_v36 = vpop.f32.mrf.mxu0  ;;  %v11468_v11 = vrot.slane %v11467_v27, 4  ;;  %v13628_v14 = vcombine.low %v11449_v8, %v11459_v59  ;;  %v15278_v44 = vld [vmem:[#allocation2 + $0xb4] sm:$0xff]   ;;  %v11487_v15 = vrot.slane %v11485_v63, 4  ;;  %v11490_v31 = vrot.slane %v11488_v1, 5  ;;  %v15280_v52 = vld [vmem:[#allocation2 + $0xc0] sm:$0xff]   ;;  %v18444_v1 = vpop.f32.mrf.mxu1 }
 0x3ac   : > { %19539 = vst [vmem:[#allocation19_spill] sm:$0xff] %v18427_v36  ;;  %v11477_v4 = vor.u32 %v11476_v39, %v11472_v33  ;;  %v11496_v34 = vrot.slane %v11494_v35, 5  ;;  %v11500_v39 = vrot.slane %v11498_v19, 4  ;;  %v11189_v59 = vld [vmem:[#allocation2 + $0xbc] sm:$0x1]  ;;  %v11512_v36 = vshll.u32 %v11187_v21, 16 }
 0x3ad   : > { %v18433_v45 = vpop.f32.mrf.mxu0  ;;  %v11473_v37 = vsel %vm15406_vm9, %v11468_v11, %v11472_v33  ;;  %v11491_v29 = vor.u32 %v11490_v31, %v11487_v15  ;;  %v11518_v16 = vshll.u32 %v11188_v6, 16  ;;  %v11966_v63 = vld [vmem:[#allocation2 + $0x18] sm:$0xe]  ;;  %v11967_v15 = vld [vmem:[#allocation2 + $0x1c] sm:$0xf]  ;;  %v11522_v19 = vshrl.u32 %v11188_v6, 16 }
 0x3ae   : > { %19540 = vst [vmem:[#allocation20_spill] sm:$0xff] %v18433_v45  ;;  %14971 = vmatmul.mubr.bf16.gmra.mxu0 %v13627_v20  ;;  %v11478_v27 = vrot.slane %v11477_v4, 4  ;;  %v11504_v45 = vshll.u32 %v11186_v13, 16  ;;  %v11509_v20 = vshrl.u32 %v11187_v21, 16  ;;  %v11501_v4 = vor.u32 %v11500_v39, %v11496_v34  ;;  %v11968_v21 = vld [vmem:[#allocation2 + $0x20] sm:$0x1] }
 0x3af   : > { %14974 = vmatprep.mubr.bf16.mxu0 %v13628_v14  ;;  %14931 = vmatmul.mubr.bf16.gmra.mxu1 %v15278_v44  ;;  %v11492_v14 = vrot.slane %v11491_v29, 4  ;;  %v11514_v44 = vrot.slane %v11512_v36, 5  ;;  %v13642_v29 = vrot.slane %v11966_v63, 9  ;;  %v11524_v39 = vrot.slane %v11522_v19, 4 }
 0x3b0   : > { %v14688_v8 = vpop.f32.mrf.mxu0  ;;  %14934 = vmatprep.mubr.bf16.mxu1 %v15280_v52  ;;  %v11483_v61 = vsel %vm15406_vm9, %v11478_v27, %v11482_v30  ;;  %v11506_v33 = vrot.slane %v11504_v45, 5  ;;  %v11511_v11 = vrot.slane %v11509_v20, 4  ;;  %v11528_v52 = vshll.u32 %v11189_v59, 16  ;;  %v15281_v20 = vld [vmem:[#allocation2 + $0xcc] sm:$0xff]  }
 0x3b1   : > { %v18440_v28 = vadd.f32 %v14688_v8, %v18321_v56  ;;  %v13629_v13 = vcombine.low %v11473_v37, %v11483_v61  ;;  %v11520_v56 = vrot.slane %v11518_v16, 5  ;;  %v11190_v8 = vld [vmem:[#allocation2 + $0xc0] sm:$0xf]  ;;  %v11497_v45 = vsel %vm15406_vm9, %v11492_v14, %v11496_v34  ;;  %v11191_v14 = vld [vmem:[#allocation2 + $0xc4] sm:$0xf] }
 0x3b2   : > { %v8099_v35 = vpop.f32.mrf.mxu0  ;;  %v11502_v30 = vrot.slane %v11501_v4, 4  ;;  %v11515_v37 = vor.u32 %v11514_v44, %v11511_v11  ;;  %v11530_v61 = vrot.slane %v11528_v52, 5  ;;  %v12067_v34 = vrot.slane %v11968_v21, 5  ;;  %v11969_v44 = vld [vmem:[#allocation2 + $0x24] sm:$0xe] }
 0x3b3   : > { %v18447_v31 = vadd.f32 %v8099_v35, %v18335_v50  ;;  %v12064_v50 = vrot.slane %v11967_v15, 5  ;;  %v18454_v35 = vpop.f32.mrf.mxu1  ;;  %v11533_v4 = vshrl.u32 %v11190_v8, 16  ;;  %v11525_v63 = vor.u32 %v11524_v39, %v11520_v56 }
 0x3b4   : > { %v14689_v27 = vpop.f32.mrf.mxu0  ;;  %v11507_v16 = vsel %vm15406_vm9, %v11502_v30, %v11506_v33  ;;  %v11516_v59 = vrot.slane %v11515_v37, 4  ;;  %v11536_v21 = vshll.u32 %v11190_v8, 16  ;;  %v11542_v30 = vshll.u32 %v11191_v14, 16 }
 0x3b5   : > { %19541 = vst [vmem:[#allocation31_spill] sm:$0xff] %v18447_v31  ;;  %v18452_v36 = vadd.f32 %v14689_v27, %v18353_v32  ;;  %v13630_v31 = vcombine.low %v11497_v45, %v11507_v16  ;;  %v12065_v32 = vsel %vm15758_vm14, %v13642_v29, %v12064_v50  ;;  %v12066_v19 = vrot.slane %v12064_v50, 4  ;;  %v18468_v37 = vpop.f32.mrf.mxu1  ;;  %v11970_v29 = vld [vmem:[#allocation2 + $0x28] sm:$0xf] }
 0x3b6   : > { %14975 = vmatmul.mubr.bf16.gmra.mxu0 %v13629_v13  ;;  %v8102_v6 = vpop.f32.mrf.mxu0  ;;  %v11192_v13 = vld [vmem:[#allocation2 + $0xc8] sm:$0x1]  ;;  %v11521_v33 = vsel %vm15406_vm9, %v11516_v59, %v11520_v56  ;;  %v11535_v52 = vrot.slane %v11533_v4, 4  ;;  %v11546_v27 = vshrl.u32 %v11191_v14, 16  ;;  %v11538_v39 = vrot.slane %v11536_v21, 5 }
 0x3b7   : > { %v18459_v11 = vadd.f32 %v8102_v6, %v18367_v55  ;;  %14935 = vmatmul.mubr.bf16.gmra.mxu1 %v15281_v20  ;;  %14978 = vmatprep.mubr.bf16.mxu0 %v13630_v31  ;;  %v11526_v55 = vrot.slane %v11525_v63, 4  ;;  %v12068_v20 = vsel %vm15758_vm14, %v12066_v19, %v12067_v34  ;;  %v11552_v16 = vshll.u32 %v11192_v13, 16  ;;  %v11971_v56 = vld [vmem:[#allocation2 + $0x2c] sm:$0x1] }
 0x3b8   : > { %v14692_v15 = vpop.f32.mrf.mxu0  ;;  %v13643_v50 = vrot.slane %v11969_v44, 9  ;;  %v13674_v8 = vcombine.low %v12065_v32, %v12068_v20  ;;  %v11548_v59 = vrot.slane %v11546_v27, 4  ;;  %v11193_v4 = vld [vmem:[#allocation2 + $0xcc] sm:$0xf]  ;;  %v11539_v14 = vor.u32 %v11538_v39, %v11535_v52  ;;  %v11195_v52 = vld [vmem:[#allocation2 + $0xd4] sm:$0x1] }
 0x3b9   : > { %19542 = vst [vmem:[#allocation21_spill] sm:$0xff] %v18459_v11  ;;  %v18466_v45 = vadd.f32 %v14692_v15, %v18379_v2  ;;  %v11531_v31 = vsel %vm15406_vm9, %v11526_v55, %v11530_v61  ;;  %v11544_v2 = vrot.slane %v11542_v30, 5  ;;  %v11554_v15 = vrot.slane %v11552_v16, 5  ;;  %v11194_v61 = vld [vmem:[#allocation2 + $0xd0] sm:$0xf] }
 0x3ba   : > { %v8115_v6 = vpop.f32.mrf.mxu0  ;;  %v13631_v63 = vcombine.low %v11521_v33, %v11531_v31  ;;  %15002 = vmatprep.mubr.bf16.mxu1 %v13674_v8  ;;  %v12071_v19 = vrot.slane %v11970_v29, 5  ;;  %v12074_v21 = vrot.slane %v11971_v56, 5  ;;  %v11540_v32 = vrot.slane %v11539_v14, 4 }
 0x3bb   : > { %19543 = vst [vmem:[#allocation24_spill] sm:$0xff] %v18466_v45  ;;  %v18475_v45 = vadd.f32 %v8115_v6, %v18399_v9  ;;  %v11549_v34 = vor.u32 %v11548_v59, %v11544_v2  ;;  %v11557_v30 = vshrl.u32 %v11193_v4, 16  ;;  %v11560_v9 = vshll.u32 %v11193_v4, 16  ;;  %v11972_v4 = vld [vmem:[#allocation2 + $0x30] sm:$0xe] }
 0x3bc   : > { %v14693_v11 = vpop.f32.mrf.mxu0  ;;  %v11545_v39 = vsel %vm15406_vm9, %v11540_v32, %v11544_v2  ;;  %v11566_v56 = vshll.u32 %v11194_v61, 16  ;;  %v11576_v59 = vshll.u32 %v11195_v52, 16  ;;  %v18496_v2 = vadd.f32 %v18328_v49, %v18151_v25 }
 0x3bd   : > { %v18478_v13 = vadd.f32 %v14693_v11, %v18407_v43  ;;  %v14716_v44 = vpop.f32.mrf.mxu1  ;;  %v11550_v27 = vrot.slane %v11549_v34, 4  ;;  %v12072_v43 = vsel %vm15758_vm14, %v13643_v50, %v12071_v19  ;;  %v12073_v11 = vrot.slane %v12071_v19, 4  ;;  %v11974_v19 = vld [vmem:[#allocation2 + $0x38] sm:$0x1] }
 0x3be   : > { %14979 = vmatmul.mubr.bf16.gmra.mxu0 %v13631_v63  ;;  %v8118_v55 = vpop.f32.mrf.mxu0  ;;  %v18481_v33 = vadd.f32 %v14716_v44, %v18347_v54  ;;  %v11559_v16 = vrot.slane %v11557_v30, 4  ;;  %v11562_v6 = vrot.slane %v11560_v9, 5  ;;  %v11973_v54 = vld [vmem:[#allocation2 + $0x34] sm:$0xf]  ;;  %v11568_v44 = vrot.slane %v11566_v56, 5 }
 0x3bf   : > { %v18484_v20 = vadd.f32 %v8118_v55, %v18423_v42  ;;  %v8613_v29 = vpop.f32.mrf.mxu1  ;;  %v11555_v31 = vsel %vm15406_vm9, %v11550_v27, %v11554_v15  ;;  %v12075_v8 = vsel %vm15758_vm14, %v12073_v11, %v12074_v21  ;;  %v11570_v42 = vshrl.u32 %v11194_v61, 16  ;;  %v11975_v27 = vld [vmem:[#allocation2 + $0x3c] sm:$0xe]  ;;  %v11977_v56 = vld [vmem:[#allocation2 + $0x44] sm:$0x1] }
 0x3c0   : > { %v13632_v50 = vcombine.low %v11545_v39, %v11555_v31  ;;  %v13675_v14 = vcombine.low %v12072_v43, %v12075_v8  ;;  %v11563_v34 = vor.u32 %v11562_v6, %v11559_v16  ;;  %v11578_v55 = vrot.slane %v11576_v59, 5  ;;  %v11976_v43 = vld [vmem:[#allocation2 + $0x40] sm:$0xf]  ;;  %v11978_v8 = vld [vmem:[#allocation2 + $0x48] sm:$0xe] }
 0x3c1   : > { %v14717_v63 = vpop.f32.mrf.mxu1  ;;  %v11572_v32 = vrot.slane %v11570_v42, 4  ;;  %v12078_v30 = vrot.slane %v11973_v54, 5  ;;  %v13644_v61 = vrot.slane %v11972_v4, 9  ;;  %v18499_v52 = vadd.f32 %v8613_v29, %v18351_v62  ;;  %v11979_v54 = vld [vmem:[#allocation2 + $0x4c] sm:$0xf] }
 0x3c2   : > { %14982 = vmatprep.mubr.bf16.mxu0 %v13632_v50  ;;  %15003 = vmatmul.mubr.bf16.vlgmr.msra.gmra.mxu1 %v13675_v14  ;;  %v11564_v21 = vrot.slane %v11563_v34, 4  ;;  %v18502_v9 = vadd.f32 %v14717_v63, %v18377_v26  ;;  %v12081_v49 = vrot.slane %v11974_v19, 5  ;;  %v13645_v4 = vrot.slane %v11975_v27, 9  ;;  %v11980_v50 = vld [vmem:[#allocation2 + $0x50] sm:$0x1] }
 0x3c3   : > { %v8616_v15 = vpop.f32.mrf.mxu1  ;;  %v11573_v39 = vor.u32 %v11572_v32, %v11568_v44  ;;  %v12080_v25 = vrot.slane %v12078_v30, 4  ;;  %v12079_v26 = vsel %vm15758_vm14, %v13644_v61, %v12078_v30  ;;  %v12085_v63 = vrot.slane %v11976_v43, 5 }
 0x3c4   : > { %v18505_v16 = vadd.f32 %v8616_v15, %v18383_v48  ;;  %v11569_v62 = vsel %vm15406_vm9, %v11564_v21, %v11568_v44  ;;  %v12088_v44 = vrot.slane %v11977_v56, 5  ;;  %v12092_v19 = vrot.slane %v11979_v54, 5  ;;  %v11985_v54 = vld [vmem:[#allocation2 + $0x64] sm:$0xf] }
 0x3c5   : > { %v14720_v6 = vpop.f32.mrf.mxu1  ;;  %v11574_v42 = vrot.slane %v11573_v39, 4  ;;  %v12082_v48 = vsel %vm15758_vm14, %v12080_v25, %v12081_v49  ;;  %v12086_v30 = vsel %vm15758_vm14, %v13645_v4, %v12085_v63  ;;  %v12087_v15 = vrot.slane %v12085_v63, 4  ;;  %v11982_v39 = vld [vmem:[#allocation2 + $0x58] sm:$0xf] }
 0x3c6   : > { %v14696_v11 = vpop.f32.mrf.mxu0  ;;  %v18515_v29 = vadd.f32 %v14720_v6, %v18387_v51  ;;  %v13676_v14 = vcombine.low %v12079_v26, %v12082_v48  ;;  %v13646_v21 = vrot.slane %v11978_v8, 9  ;;  %v12099_v4 = vrot.slane %v11982_v39, 5 }
 0x3c7   : > { %v18508_v31 = vadd.f32 %v14696_v11, %v18435_v3  ;;  %v8629_v3 = vpop.f32.mrf.mxu1  ;;  %v11579_v51 = vsel %vm15406_vm9, %v11574_v42, %v11578_v55  ;;  %v12094_v11 = vrot.slane %v12092_v19, 4  ;;  %v12089_v5 = vsel %vm15758_vm14, %v12087_v15, %v12088_v44  ;;  %v11983_v42 = vld [vmem:[#allocation2 + $0x5c] sm:$0x1] }
 0x3c8   : > { %v8131_v59 = vpop.f32.mrf.mxu0  ;;  %v13633_v27 = vcombine.low %v11569_v62, %v11579_v51  ;;  %15006 = vmatprep.mubr.bf16.mxu1 %v13676_v14  ;;  %v12093_v55 = vsel %vm15758_vm14, %v13646_v21, %v12092_v19  ;;  %v18534_v49 = vadd.f32 %v8629_v3, %v18397_v60  ;;  %v13677_v62 = vcombine.low %v12086_v30, %v12089_v5  ;;  %v11981_v3 = vld [vmem:[#allocation2 + $0x54] sm:$0xe]  ;;  %v11984_v30 = vld [vmem:[#allocation2 + $0x60] sm:$0xe]  ;;  %v11991_v21 = vld [vmem:[#allocation2 + $0x7c] sm:$0xf] }
 0x3c9   : > { %v18520_v34 = vadd.f32 %v8131_v59, %v18444_v1  ;;  %v14721_v61 = vpop.f32.mrf.mxu1  ;;  %v12095_v1 = vrot.slane %v11980_v50, 5  ;;  %v8186_v63 = vadd.f32 %v18333_v23, %v18174_v0  ;;  %v12106_v14 = vrot.slane %v11985_v54, 5 }
 0x3ca   : > { %v14697_v32 = vpop.f32.mrf.mxu0  ;;  %v18537_v6 = vadd.f32 %v14721_v61, %v18413_v46  ;;  %14983 = vmatmul.mubr.bf16.gmra.mxu0 %v13633_v27  ;;  %v11986_v46 = vld [vmem:[#allocation2 + $0x68] sm:$0x1]  ;;  %15007 = vmatmul.mubr.bf16.gmra.mxu1 %v13677_v62  ;;  %v8189_v44 = vadd.f32 %v18343_v41, %v18188_v38  ;;  %v12101_v51 = vrot.slane %v12099_v4, 4  ;;  %v8187_v61 = vadd.f32 %v18358_v40, %v18201_v12 }
 0x3cb   : > { %v18527_v43 = vadd.f32 %v14697_v32, %v18454_v35  ;;  %v8632_v56 = vpop.f32.mrf.mxu1  ;;  %v12096_v26 = vsel %vm15758_vm14, %v12094_v11, %v12095_v1  ;;  %v12102_v32 = vrot.slane %v11983_v42, 5  ;;  %v12109_v15 = vrot.slane %v11986_v46, 5 }
 0x3cc   : > { %v8134_v25 = vpop.f32.mrf.mxu0  ;;  %v18545_v8 = vadd.f32 %v8632_v56, %v18419_v53  ;;  %v13678_v60 = vcombine.low %v12093_v55, %v12096_v26  ;;  %v18555_v53 = vld [vmem:[#allocation2 + $0x70] sm:$0xf]  ;;  %v13647_v11 = vrot.slane %v11981_v3, 9  ;;  %v8192_v12 = vadd.f32 %v18371_v7, %v18211_v58  ;;  %v11990_v7 = vld [vmem:[#allocation2 + $0x78] sm:$0xe] }
 0x3cd   : > { %v18540_v35 = vadd.f32 %v8134_v25, %v18468_v37  ;;  %v14724_v59 = vpop.f32.mrf.mxu1  ;;  %v12103_v38 = vsel %vm15758_vm14, %v12101_v51, %v12102_v32  ;;  %v12113_v1 = vrot.slane %v18555_v53, 5  ;;  %v12120_v54 = vrot.slane %v11991_v21, 5  ;;  %v11987_v53 = vld [vmem:[#allocation2 + $0x6c] sm:$0xe] }
 0x3ce   : > { %v14764_v48 = vpop.f32.mrf.mxu0  ;;  %v18553_v50 = vadd.f32 %v14724_v59, %v18496_v2  ;;  %15010 = vmatprep.mubr.bf16.mxu1 %v13678_v60  ;;  %v12100_v55 = vsel %vm15758_vm14, %v13647_v11, %v12099_v4  ;;  %v8190_v4 = vadd.f32 %v18373_v57, %v18223_v10  ;;  %v8191_v10 = vadd.f32 %v18403_v47, %v18249_v17 }
 0x3cf   : > { %v18550_v37 = vadd.f32 %v14764_v48, %v18481_v33  ;;  %v8645_v0 = vpop.f32.mrf.mxu1  ;;  %v12108_v33 = vrot.slane %v12106_v14, 4  ;;  %v11989_v48 = vld [vmem:[#allocation2 + $0x74] sm:$0x1]  ;;  %v12115_v58 = vrot.slane %v12113_v1, 4  ;;  %v13649_v21 = vrot.slane %v11987_v53, 9 }
 0x3d0   : > { %v9063_v19 = vpop.f32.mrf.mxu0  ;;  %v18562_v2 = vadd.f32 %v8645_v0, %v8186_v63  ;;  %v11992_v63 = vld [vmem:[#allocation2 + $0x80] sm:$0x1]  ;;  %v12116_v32 = vrot.slane %v11989_v48, 5  ;;  %v18598_v0 = vld [vmem:[#allocation2 + $0x94] sm:$0xf] }
 0x3d1   : > { %v18560_v23 = vadd.f32 %v9063_v19, %v18499_v52  ;;  %v14725_v41 = vpop.f32.mrf.mxu1  ;;  %v13648_v52 = vrot.slane %v11984_v30, 9  ;;  %v12110_v25 = vsel %vm15758_vm14, %v12108_v33, %v12109_v15  ;;  %v8193_v19 = vadd.f32 %v18389_v22, %v18239_v24 }
 0x3d2   : > { %v14765_v27 = vpop.f32.mrf.mxu0  ;;  %v18574_v5 = vadd.f32 %v14725_v41, %v8189_v44  ;;  %v18594_v44 = vld [vmem:[#allocation2 + $0x88] sm:$0xf]  ;;  %v12117_v24 = vsel %vm15758_vm14, %v12115_v58, %v12116_v32  ;;  %v13650_v22 = vrot.slane %v11990_v7, 9  ;;  %v19545_v41 = vld [vmem:[#allocation17_spill] sm:$0xff]  ;;  %v11996_v58 = vld [vmem:[#allocation2 + $0x90] sm:$0xe] }
 0x3d3   : > { %v18570_v39 = vadd.f32 %v14765_v27, %v18502_v9  ;;  %v8648_v56 = vpop.f32.mrf.mxu1  ;;  %v13679_v9 = vcombine.low %v12100_v55, %v12103_v38  ;;  %v12107_v26 = vsel %vm15758_vm14, %v13648_v52, %v12106_v14  ;;  %v12122_v14 = vrot.slane %v12120_v54, 4  ;;  %v19544_v38 = vld [vmem:[#allocation13_spill] sm:$0xff]  ;;  %v11998_v7 = vld [vmem:[#allocation2 + $0x98] sm:$0x1] }
 0x3d4   : > { %v9066_v40 = vpop.f32.mrf.mxu0  ;;  %v18585_v42 = vadd.f32 %v8648_v56, %v8187_v61  ;;  %v13680_v59 = vcombine.low %v12107_v26, %v12110_v25  ;;  %v12127_v27 = vrot.slane %v18594_v44, 5  ;;  %v8196_v52 = vadd.f32 %v19545_v41, %v19544_v38  ;;  %v11995_v26 = vld [vmem:[#allocation2 + $0x8c] sm:$0x1]  ;;  %v12000_v44 = vld [vmem:[#allocation2 + $0xa0] sm:$0xf] }
 0x3d5   : > { %v18581_v62 = vadd.f32 %v9066_v40, %v18505_v16  ;;  %v14728_v46 = vpop.f32.mrf.mxu1  ;;  %15011 = vmatmul.mubr.bf16.gmra.mxu1 %v13679_v9  ;;  %v12121_v56 = vsel %vm15758_vm14, %v13650_v22, %v12120_v54 }
 0x3d6   : > { %v14768_v60 = vpop.f32.mrf.mxu0  ;;  %v18592_v3 = vadd.f32 %v14728_v46, %v8192_v12  ;;  %15014 = vmatprep.mubr.bf16.mxu1 %v13680_v59  ;;  %v12114_v12 = vsel %vm15758_vm14, %v13649_v21, %v12113_v1  ;;  %v12129_v46 = vrot.slane %v12127_v27, 4  ;;  %v19551_v21 = vld [vmem:[#allocation20_spill] sm:$0xff] }
 0x3d7   : > { %v18590_v16 = vadd.f32 %v14768_v60, %v18515_v29  ;;  %v8661_v30 = vpop.f32.mrf.mxu1  ;;  %v12123_v29 = vrot.slane %v11992_v63, 5  ;;  %v19546_v63 = vld [vmem:[#allocation14_spill] sm:$0xff] }
 0x3d8   : > { %v9079_v51 = vpop.f32.mrf.mxu0  ;;  %v18605_v33 = vadd.f32 %v8661_v30, %v8190_v4  ;;  %v19547_v4 = vld [vmem:[#allocation18_spill] sm:$0xff] }
 0x3d9   : > { %v18603_v57 = vadd.f32 %v9079_v51, %v18534_v49  ;;  %v14729_v61 = vpop.f32.mrf.mxu1  ;;  %v12124_v17 = vsel %vm15758_vm14, %v12122_v14, %v12123_v29  ;;  %v12134_v49 = vrot.slane %v18598_v0, 5  ;;  %v8194_v1 = vadd.f32 %v19547_v4, %v19546_v63  ;;  %v11993_v14 = vld [vmem:[#allocation2 + $0x84] sm:$0xe]  ;;  %v19549_v51 = vld [vmem:[#allocation19_spill] sm:$0xff]  ;;  %v12003_v29 = vld [vmem:[#allocation2 + $0xac] sm:$0xf] }
 0x3da   : > { %v14769_v15 = vpop.f32.mrf.mxu0  ;;  %v18615_v47 = vadd.f32 %v14729_v61, %v8193_v19  ;;  %v13682_v60 = vcombine.low %v12121_v56, %v12124_v17  ;;  %v19548_v19 = vld [vmem:[#allocation15_spill] sm:$0xff]  ;;  %v12130_v0 = vrot.slane %v11995_v26, 5  ;;  %v13651_v38 = vrot.slane %v11993_v14, 9 }
 0x3db   : > { %v18611_v11 = vadd.f32 %v14769_v15, %v18537_v6  ;;  %v8664_v40 = vpop.f32.mrf.mxu1  ;;  %v13681_v6 = vcombine.low %v12114_v12, %v12117_v24  ;;  %v12136_v54 = vrot.slane %v12134_v49, 4  ;;  %v8197_v32 = vadd.f32 %v19549_v51, %v19548_v19  ;;  %v19550_v15 = vld [vmem:[#allocation16_spill] sm:$0xff] }
 0x3dc   : > { %v9082_v25 = vpop.f32.mrf.mxu0  ;;  %v18627_v9 = vadd.f32 %v8664_v40, %v8191_v10  ;;  %v8195_v24 = vadd.f32 %v19551_v21, %v19550_v15  ;;  %v12131_v41 = vsel %vm15758_vm14, %v12129_v46, %v12130_v0  ;;  %v12141_v12 = vrot.slane %v12000_v44, 5  ;;  %v12004_v44 = vld [vmem:[#allocation2 + $0xb0] sm:$0x1]  ;;  %v11999_v19 = vld [vmem:[#allocation2 + $0x9c] sm:$0xe] }
 0x3dd   : > { %v18623_v55 = vadd.f32 %v9082_v25, %v18545_v8  ;;  %v14732_v59 = vpop.f32.mrf.mxu1  ;;  %15015 = vmatmul.mubr.bf16.gmra.mxu1 %v13681_v6  ;;  %v12151_v15 = vrot.slane %v12004_v44, 5  ;;  %v19552_v21 = vld [vmem:[#allocation31_spill] sm:$0xff] }
 0x3de   : > { %v14772_v48 = vpop.f32.mrf.mxu0  ;;  %v18634_v53 = vadd.f32 %v14732_v59, %v8196_v52  ;;  %15018 = vmatprep.mubr.bf16.mxu1 %v13682_v60  ;;  %v13652_v52 = vrot.slane %v11996_v58, 9  ;;  %v12143_v14 = vrot.slane %v12141_v12, 4 }
 0x3df   : > { %v18632_v8 = vadd.f32 %v14772_v48, %v18553_v50  ;;  %v8677_v10 = vpop.f32.mrf.mxu1  ;;  %v12137_v50 = vrot.slane %v11998_v7, 5  ;;  %v12128_v48 = vsel %vm15758_vm14, %v13651_v38, %v12127_v27  ;;  %v12001_v7 = vld [vmem:[#allocation2 + $0xa4] sm:$0x1] }
 0x3e0   : > { %v9095_v30 = vpop.f32.mrf.mxu0  ;;  %v18643_v61 = vadd.f32 %v8677_v10, %v8194_v1  ;;  %v13683_v46 = vcombine.low %v12128_v48, %v12131_v41  ;;  %v12135_v58 = vsel %vm15758_vm14, %v13652_v52, %v12134_v49  ;;  %v12009_v10 = vld [vmem:[#allocation2 + $0xc4] sm:$0xf] }
 0x3e1   : > { %v18641_v22 = vadd.f32 %v9095_v30, %v18562_v2  ;;  %v14733_v25 = vpop.f32.mrf.mxu1  ;;  %v12138_v6 = vsel %vm15758_vm14, %v12136_v54, %v12137_v50  ;;  %v12148_v2 = vrot.slane %v12003_v29, 5  ;;  %v12002_v54 = vld [vmem:[#allocation2 + $0xa8] sm:$0xe]  ;;  %v12144_v30 = vrot.slane %v12001_v7, 5  ;;  %v19553_v7 = vld [vmem:[#allocation21_spill] sm:$0xff] }
 0x3e2   : > { %v14773_v17 = vpop.f32.mrf.mxu0  ;;  %v18652_v56 = vadd.f32 %v14733_v25, %v8197_v32  ;;  %v13684_v4 = vcombine.low %v12135_v58, %v12138_v6  ;;  %v12006_v32 = vld [vmem:[#allocation2 + $0xb8] sm:$0xf]  ;;  %v13653_v50 = vrot.slane %v11999_v19, 9  ;;  %v12162_v6 = vrot.slane %v12009_v10, 5  ;;  %v12010_v19 = vld [vmem:[#allocation2 + $0xc8] sm:$0x1] }
 0x3e3   : > { %v18648_v40 = vadd.f32 %v14773_v17, %v18574_v5  ;;  %v8680_v60 = vpop.f32.mrf.mxu1  ;;  %v12150_v51 = vrot.slane %v12148_v2, 4  ;;  %v13654_v17 = vrot.slane %v12002_v54, 9  ;;  %v12155_v41 = vrot.slane %v12006_v32, 5  ;;  %v12005_v32 = vld [vmem:[#allocation2 + $0xb4] sm:$0xe] }
 0x3e4   : > { %v9098_v26 = vpop.f32.mrf.mxu0  ;;  %v18661_v5 = vadd.f32 %v8680_v60, %v8195_v24  ;;  %v12142_v48 = vsel %vm15758_vm14, %v13653_v50, %v12141_v12 }
 0x3e5   : > { %v18657_v59 = vadd.f32 %v9098_v26, %v18585_v42  ;;  %v14736_v1 = vpop.f32.mrf.mxu1  ;;  %15019 = vmatmul.mubr.bf16.gmra.mxu1 %v13683_v46  ;;  %v12152_v25 = vsel %vm15758_vm14, %v12150_v51, %v12151_v15  ;;  %v12157_v44 = vrot.slane %v12155_v41, 4  ;;  %v19554_v51 = vld [vmem:[#allocation24_spill] sm:$0xff] }
 0x3e6   : > { %v14776_v63 = vpop.f32.mrf.mxu0  ;;  %v18667_v42 = vadd.f32 %v14736_v1, %v18440_v28  ;;  %15022 = vmatprep.mubr.bf16.mxu1 %v13684_v4  ;;  %v12145_v28 = vsel %vm15758_vm14, %v12143_v14, %v12144_v30  ;;  %v12007_v4 = vld [vmem:[#allocation2 + $0xbc] sm:$0x1]  ;;  %v12012_v1 = vld [vmem:[#allocation2 + $0xd0] sm:$0xf] }
 0x3e7   : > { %v18664_v27 = vadd.f32 %v14776_v63, %v18592_v3  ;;  %v8693_v0 = vpop.f32.mrf.mxu1  ;;  %v13685_v58 = vcombine.low %v12142_v48, %v12145_v28  ;;  %v12169_v15 = vrot.slane %v12012_v1, 5  ;;  %v12011_v28 = vld [vmem:[#allocation2 + $0xcc] sm:$0xe] }
 0x3e8   : > { %v9111_v49 = vpop.f32.mrf.mxu0  ;;  %v18673_v24 = vadd.f32 %v8693_v0, %v19552_v21  ;;  %v12008_v0 = vld [vmem:[#allocation2 + $0xc0] sm:$0xe] }
 0x3e9   : > { %v18670_v29 = vadd.f32 %v9111_v49, %v18605_v33  ;;  %v14737_v38 = vpop.f32.mrf.mxu1  ;;  %v12164_v49 = vrot.slane %v12162_v6, 4  ;;  %v12171_v1 = vrot.slane %v12169_v15, 4 }
 0x3ea   : > { %v14777_v3 = vpop.f32.mrf.mxu0  ;;  %v18683_v33 = vadd.f32 %v14737_v38, %v18452_v36  ;;  %v13655_v38 = vrot.slane %v12005_v32, 9 }
 0x3eb   : > { %v18678_v52 = vadd.f32 %v14777_v3, %v18615_v47  ;;  %v8696_v60 = vpop.f32.mrf.mxu1  ;;  %v12149_v47 = vsel %vm15758_vm14, %v13654_v17, %v12148_v2  ;;  %v12158_v2 = vrot.slane %v12007_v4, 5  ;;  %v12165_v3 = vrot.slane %v12010_v19, 5  ;;  %v12013_v17 = vld [vmem:[#allocation2 + $0xd4] sm:$0x1] }
 0x3ec   : > { %v9114_v26 = vpop.f32.mrf.mxu0  ;;  %v8793_v63 = vadd.f32 %v8696_v60, %v19553_v7  ;;  %v13686_v36 = vcombine.low %v12149_v47, %v12152_v25  ;;  %v13656_v60 = vrot.slane %v12008_v0, 9  ;;  %v13657_v4 = vrot.slane %v12011_v28, 9 }
 0x3ed   : > { %v18688_v46 = vadd.f32 %v9114_v26, %v18627_v9  ;;  %v14740_v54 = vpop.f32.mrf.mxu1  ;;  %15023 = vmatmul.mubr.bf16.gmra.mxu1 %v13685_v58  ;;  %v12159_v25 = vsel %vm15758_vm14, %v12157_v44, %v12158_v2  ;;  %v12166_v58 = vsel %vm15758_vm14, %v12164_v49, %v12165_v3 }
 0x3ee   : > { %v14780_v14 = vpop.f32.mrf.mxu0  ;;  %v8798_v9 = vadd.f32 %v14740_v54, %v19554_v51  ;;  %15026 = vmatprep.mubr.bf16.mxu1 %v13686_v36 }
 0x3ef   : > { %v18694_v12 = vadd.f32 %v14780_v14, %v18634_v53  ;;  %v8709_v10 = vpop.f32.mrf.mxu1  ;;  %v12172_v14 = vrot.slane %v12013_v17, 5 }
 0x3f0   : > { %v9127_v30 = vpop.f32.mrf.mxu0  ;;  %v8796_v50 = vadd.f32 %v8709_v10, %v18475_v45  ;;  %v12156_v45 = vsel %vm15758_vm14, %v13655_v38, %v12155_v41 }
 0x3f1   : > { %v18698_v21 = vadd.f32 %v9127_v30, %v18643_v61  ;;  %v14741_v26 = vpop.f32.mrf.mxu1  ;;  %v13687_v54 = vcombine.low %v12156_v45, %v12159_v25  ;;  %v12173_v30 = vsel %vm15758_vm14, %v12171_v1, %v12172_v14 }
 0x3f2   : > { %v14781_v53 = vpop.f32.mrf.mxu0  ;;  %v8799_v61 = vadd.f32 %v14741_v26, %v18478_v13 }
 0x3f3   : > { %v18704_v48 = vadd.f32 %v14781_v53, %v18652_v56  ;;  %v8712_v7 = vpop.f32.mrf.mxu1  ;;  %v12163_v56 = vsel %vm15758_vm14, %v13656_v60, %v12162_v6 }
 0x3f4   : > { %v9130_v47 = vpop.f32.mrf.mxu0  ;;  %v8797_v44 = vadd.f32 %v8712_v7, %v18484_v20  ;;  %v13688_v51 = vcombine.low %v12163_v56, %v12166_v58 }
 0x3f5   : > { %v18712_v36 = vadd.f32 %v9130_v47, %v18661_v5  ;;  %v14744_v13 = vpop.f32.mrf.mxu1  ;;  %15027 = vmatmul.mubr.bf16.gmra.mxu1 %v13687_v54  ;;  %v12170_v5 = vsel %vm15758_vm14, %v13657_v4, %v12169_v15 }
 0x3f6   : > { %v14784_v19 = vpop.f32.mrf.mxu0  ;;  %v8802_v41 = vadd.f32 %v14744_v13, %v18508_v31  ;;  %15030 = vmatprep.mubr.bf16.mxu1 %v13688_v51  ;;  %v13689_v31 = vcombine.low %v12170_v5, %v12173_v30 }
 0x3f7   : > { %v18718_v32 = vadd.f32 %v14784_v19, %v18667_v42  ;;  %v8725_v6 = vpop.f32.mrf.mxu1 }
 0x3f8   : > { %v9143_v49 = vpop.f32.mrf.mxu0  ;;  %v8800_v2 = vadd.f32 %v8725_v6, %v18520_v34 }
 0x3f9   : > { %v18726_v20 = vadd.f32 %v9143_v49, %v18673_v24  ;;  %v14745_v10 = vpop.f32.mrf.mxu1 }
 0x3fa   : > { %v14785_v0 = vpop.f32.mrf.mxu0  ;;  %v8803_v3 = vadd.f32 %v14745_v10, %v18527_v43 }
 0x3fb   : > { %v18730_v42 = vadd.f32 %v14785_v0, %v18683_v33  ;;  %v8728_v17 = vpop.f32.mrf.mxu1 }
 0x3fc   : > { %v9146_v28 = vpop.f32.mrf.mxu0  ;;  %v8801_v18 = vadd.f32 %v8728_v17, %v18540_v35 }
 0x3fd   : > { %v18733_v15 = vadd.f32 %v9146_v28, %v8793_v63  ;;  %v14812_v38 = vpop.f32.mrf.mxu1  ;;  %15031 = vmatmul.mubr.bf16.gmra.mxu1 %v13689_v31 }
 0x3fe   : > { %v14788_v53 = vpop.f32.mrf.mxu0  ;;  %v18739_v34 = vadd.f32 %v14812_v38, %v18550_v37 }
 0x3ff   : > { %v18736_v24 = vadd.f32 %v14788_v53, %v8798_v9  ;;  %v9881_v33 = vpop.f32.mrf.mxu1 }
 0x400   : > { %v9159_v25 = vpop.f32.mrf.mxu0  ;;  %v18744_v43 = vadd.f32 %v9881_v33, %v18560_v23 }
 0x401   : > { %v18741_v26 = vadd.f32 %v9159_v25, %v8796_v50  ;;  %v14813_v63 = vpop.f32.mrf.mxu1 }
 0x402   : > { %v14789_v60 = vpop.f32.mrf.mxu0  ;;  %v18749_v35 = vadd.f32 %v14813_v63, %v18570_v39 }
 0x403   : > { %v18746_v58 = vadd.f32 %v14789_v60, %v8799_v61  ;;  %v9884_v9 = vpop.f32.mrf.mxu1 }
 0x404   : > { %v9162_v47 = vpop.f32.mrf.mxu0  ;;  %v18754_v37 = vadd.f32 %v9884_v9, %v18581_v62 }
 0x405   : > { %v18751_v45 = vadd.f32 %v9162_v47, %v8797_v44  ;;  %v14816_v50 = vpop.f32.mrf.mxu1 }
 0x406   : > { %v14792_v7 = vpop.f32.mrf.mxu0  ;;  %v18759_v23 = vadd.f32 %v14816_v50, %v18590_v16 }
 0x407   : > { %v18756_v4 = vadd.f32 %v14792_v7, %v8802_v41  ;;  %v9897_v61 = vpop.f32.mrf.mxu1 }
 0x408   : > { %v9175_v1 = vpop.f32.mrf.mxu0  ;;  %v18764_v39 = vadd.f32 %v9897_v61, %v18603_v57 }
 0x409   : > { %v18761_v14 = vadd.f32 %v9175_v1, %v8800_v2  ;;  %v14817_v56 = vpop.f32.mrf.mxu1 }
 0x40a   : > { %v14793_v54 = vpop.f32.mrf.mxu0  ;;  %v18769_v62 = vadd.f32 %v14817_v56, %v18611_v11 }
 0x40b   : > { %v18766_v44 = vadd.f32 %v14793_v54, %v8803_v3  ;;  %v9900_v51 = vpop.f32.mrf.mxu1 }
 0x40c   : > { %v9178_v19 = vpop.f32.mrf.mxu0  ;;  %v18774_v16 = vadd.f32 %v9900_v51, %v18623_v55 }
 0x40d   : > { %v18771_v13 = vadd.f32 %v9178_v19, %v8801_v18  ;;  %v14820_v49 = vpop.f32.mrf.mxu1 }
 0x40e   : > { %v18776_v41 = vpop.f32.mrf.mxu0  ;;  %v18779_v57 = vadd.f32 %v14820_v49, %v18632_v8 }
 0x40f   : > { %v9913_v30 = vpop.f32.mrf.mxu1 }
 0x410   : > { %v18781_v5 = vpop.f32.mrf.mxu0  ;;  %v18784_v6 = vadd.f32 %v9913_v30, %v18641_v22 }
 0x411   : > { %v14821_v2 = vpop.f32.mrf.mxu1 }
 0x412   : > { %v18786_v11 = vpop.f32.mrf.mxu0  ;;  %v18789_v0 = vadd.f32 %v14821_v2, %v18648_v40 }
 0x413   : > { %v9916_v10 = vpop.f32.mrf.mxu1 }
 0x414   : > { %v18791_v55 = vpop.f32.mrf.mxu0  ;;  %v18794_v31 = vadd.f32 %v9916_v10, %v18657_v59 }
 0x415   : > { %v14824_v3 = vpop.f32.mrf.mxu1 }
 0x416   : > { %v18796_v8 = vpop.f32.mrf.mxu0  ;;  %v18799_v28 = vadd.f32 %v14824_v3, %v18664_v27 }
 0x417   : > { %v9929_v17 = vpop.f32.mrf.mxu1 }
 0x418   : > { %v18801_v22 = vpop.f32.mrf.mxu0  ;;  %v18804_v18 = vadd.f32 %v9929_v17, %v18670_v29 }
 0x419   : > { %v14825_v53 = vpop.f32.mrf.mxu1 }
 0x41a   : > { %v18806_v40 = vpop.f32.mrf.mxu0  ;;  %v18809_v38 = vadd.f32 %v14825_v53, %v18678_v52 }
 0x41b   : > { %v9932_v25 = vpop.f32.mrf.mxu1 }
 0x41c   : > { %v18811_v59 = vpop.f32.mrf.mxu0  ;;  %v18814_v33 = vadd.f32 %v9932_v25, %v18688_v46 }
 0x41d   : > { %v14828_v60 = vpop.f32.mrf.mxu1 }
 0x41e   : > { %v18816_v27 = vpop.f32.mrf.mxu0  ;;  %v18819_v63 = vadd.f32 %v14828_v60, %v18694_v12 }
 0x41f   : > { %v9945_v47 = vpop.f32.mrf.mxu1 }
 0x420   : > { %v18821_v29 = vpop.f32.mrf.mxu0  ;;  %v18824_v9 = vadd.f32 %v9945_v47, %v18698_v21 }
 0x421   : > { %v14829_v7 = vpop.f32.mrf.mxu1 }
 0x422   : > { %v18826_v52 = vpop.f32.mrf.mxu0  ;;  %v18829_v50 = vadd.f32 %v14829_v7, %v18704_v48 }
 0x423   : > { %v9948_v1 = vpop.f32.mrf.mxu1 }
 0x424   : > { %v18831_v46 = vpop.f32.mrf.mxu0  ;;  %v18834_v61 = vadd.f32 %v9948_v1, %v18712_v36 }
 0x425   : > { %v14832_v54 = vpop.f32.mrf.mxu1 }
 0x426   : > { %v18836_v12 = vpop.f32.mrf.mxu0  ;;  %v18839_v56 = vadd.f32 %v14832_v54, %v18718_v32 }
 0x427   : > { %v9961_v19 = vpop.f32.mrf.mxu1 }
 0x428   : > { %v18841_v21 = vpop.f32.mrf.mxu0  ;;  %v18844_v51 = vadd.f32 %v9961_v19, %v18726_v20 }
 0x429   : > { %v14833_v49 = vpop.f32.mrf.mxu1 }
 0x42a   : > { %v18846_v48 = vpop.f32.mrf.mxu0  ;;  %v18849_v30 = vadd.f32 %v14833_v49, %v18730_v42 }
 0x42b   : > { %v9964_v2 = vpop.f32.mrf.mxu1 }
 0x42c   : > { %v18851_v36 = vpop.f32.mrf.mxu0  ;;  %v18854_v10 = vadd.f32 %v9964_v2, %v18733_v15 }
 0x42d   : > { %v14836_v3 = vpop.f32.mrf.mxu1 }
 0x42e   : > { %19555 = vst [vmem:[#allocation23_spill] sm:$0xff] %v18854_v10  ;;  %v18856_v32 = vpop.f32.mrf.mxu0  ;;  %v18859_v17 = vadd.f32 %v14836_v3, %v18736_v24 }
 0x42f   : > { %v9977_v53 = vpop.f32.mrf.mxu1 }
 0x430   : > { %19556 = vst [vmem:[#allocation28_spill] sm:$0xff] %v18859_v17  ;;  %v18861_v20 = vpop.f32.mrf.mxu0  ;;  %v18864_v25 = vadd.f32 %v9977_v53, %v18741_v26 }
 0x431   : > { %v14837_v60 = vpop.f32.mrf.mxu1 }
 0x432   : > { %19557 = vst [vmem:[#allocation33_spill] sm:$0xff] %v18864_v25  ;;  %v18866_v42 = vpop.f32.mrf.mxu0  ;;  %v18869_v47 = vadd.f32 %v14837_v60, %v18746_v58 }
 0x433   : > { %v9980_v7 = vpop.f32.mrf.mxu1 }
 0x434   : > { %19558 = vst [vmem:[#allocation38_spill] sm:$0xff] %v18869_v47  ;;  %v18871_v15 = vpop.f32.mrf.mxu0  ;;  %v18874_v1 = vadd.f32 %v9980_v7, %v18751_v45 }
 0x436   : > { %19559 = vst [vmem:[#allocation22_spill] sm:$0xff] %v18874_v1  ;;  %v18876_v24 = vpop.f32.mrf.mxu0 }
 0x437   : > { %v14840_v19 = vpop.f32.mrf.mxu1 }
 0x438   : > { %v18878_v54 = vpop.f32.mrf.mxu0  ;;  %v18883_v26 = vadd.f32 %v14840_v19, %v18756_v4 }
 0x439   : > { %v9993_v2 = vpop.f32.mrf.mxu1 }
 0x43a   : > { %v18880_v49 = vpop.f32.mrf.mxu0  ;;  %19560 = vst [vmem:[#allocation27_spill] sm:$0xff] %v18883_v26  ;;  %v18888_v58 = vadd.f32 %v9993_v2, %v18761_v14 }
 0x43b   : > { %v14841_v53 = vpop.f32.mrf.mxu1 }
 0x43c   : > { %v18885_v3 = vpop.f32.mrf.mxu0  ;;  %19562 = vst [vmem:[#allocation36_spill] sm:$0xff] %v18888_v58  ;;  %v18893_v45 = vadd.f32 %v14841_v53, %v18766_v44 }
 0x43d   : > { %19561 = vst [vmem:[#allocation35_spill] sm:$0xff] %v18885_v3  ;;  %v9996_v7 = vpop.f32.mrf.mxu1 }
 0x43e   : > { %v18890_v60 = vpop.f32.mrf.mxu0  ;;  %19564 = vst [vmem:[#allocation39_spill] sm:$0xff] %v18893_v45  ;;  %v18898_v47 = vadd.f32 %v9996_v7, %v18771_v13 }
 0x43f   : > { %19563 = vst [vmem:[#allocation37_spill] sm:$0xff] %v18890_v60  ;;  %v14908_v4 = vpop.f32.mrf.mxu1 }
 0x440   : > { %v18895_v1 = vpop.f32.mrf.mxu0  ;;  %19566 = vst [vmem:[#allocation41_spill] sm:$0xff] %v18898_v47 }
 0x441   : > { %19565 = vst [vmem:[#allocation25_spill] sm:$0xff] %v18895_v1  ;;  %v10925_v26 = vpop.f32.mrf.mxu1 }
 0x442   : > { %v18900_v19 = vpop.f32.mrf.mxu0 }
 0x443   : > { %19567 = vst [vmem:[#allocation29_spill] sm:$0xff] %v18900_v19  ;;  %v18904_v14 = vpop.f32.mrf.mxu1 }
 0x444   : > { %v18902_v25 = vpop.f32.mrf.mxu0 }
 0x445   : > { %19568 = vst [vmem:[#allocation30_spill] sm:$0xff] %v18902_v25  ;;  %v18908_v58 = vpop.f32.mrf.mxu1 }
 0x446   : > { %v18906_v2 = vpop.f32.mrf.mxu0 }
 0x447   : > { %19569 = vst [vmem:[#allocation32_spill] sm:$0xff] %v18906_v2  ;;  %v18912_v53 = vpop.f32.mrf.mxu1 }
 0x448   : > { %v18910_v44 = vpop.f32.mrf.mxu0  ;;  %19571 = vst [vmem:[#allocation40_spill] sm:$0xff] %v18912_v53 }
 0x449   : > { %19570 = vst [vmem:[#allocation34_spill] sm:$0xff] %v18910_v44  ;;  %v18916_v13 = vpop.f32.mrf.mxu1 }
 0x44a   : > { %v18914_v45 = vpop.f32.mrf.mxu0  ;;  %19573 = vst [vmem:[#allocation43_spill] sm:$0xff] %v18916_v13 }
 0x44b   : > { %19572 = vst [vmem:[#allocation42_spill] sm:$0xff] %v18914_v45  ;;  %v18920_v47 = vpop.f32.mrf.mxu1 }
 0x44c   : > { %v18918_v7 = vpop.f32.mrf.mxu0  ;;  %19575 = vst [vmem:[#allocation45_spill] sm:$0xff] %v18920_v47 }
 0x44d   : > { %19574 = vst [vmem:[#allocation44_spill] sm:$0xff] %v18918_v7  ;;  %v18922_v25 = vpop.f32.mrf.mxu1 }
 0x44e   : > { %v14956_v19 = vpop.f32.mrf.mxu0  ;;  %19576 = vst [vmem:[#allocation46_spill] sm:$0xff] %v18922_v25 }
 0x44f   : > { %v18924_v60 = vpop.f32.mrf.mxu1 }
 0x450   : > { %v11743_v1 = vpop.f32.mrf.mxu0  ;;  %19577 = vst [vmem:[#allocation65_spill] sm:$0xff] %v18924_v60 }
 0x451   : > { %v18928_v17 = vpop.f32.mrf.mxu1 }
 0x452   : > { %v18926_v2 = vpop.f32.mrf.mxu0  ;;  %19578 = vst [vmem:[#allocation50_spill] sm:$0xff] %v18928_v17 }
 0x453   : > { %v18932_v53 = vpop.f32.mrf.mxu1 }
 0x454   : > { %v18930_v44 = vpop.f32.mrf.mxu0  ;;  %19580 = vst [vmem:[#allocation48_spill] sm:$0xff] %v18932_v53 }
 0x455   : > { %19579 = vst [vmem:[#allocation47_spill] sm:$0xff] %v18930_v44  ;;  %v18936_v13 = vpop.f32.mrf.mxu1 }
 0x456   : > { %v18934_v45 = vpop.f32.mrf.mxu0  ;;  %19582 = vst [vmem:[#allocation51_spill] sm:$0xff] %v18936_v13 }
 0x457   : > { %19581 = vst [vmem:[#allocation53_spill] sm:$0xff] %v18934_v45  ;;  %v18940_v47 = vpop.f32.mrf.mxu1 }
 0x458   : > { %v18938_v7 = vpop.f32.mrf.mxu0  ;;  %19584 = vst [vmem:[#allocation55_spill] sm:$0xff] %v18940_v47 }
 0x459   : > { %19583 = vst [vmem:[#allocation73_spill] sm:$0xff] %v18938_v7  ;;  %v18942_v25 = vpop.f32.mrf.mxu1 }
 0x45a   : > { %19585 = vst [vmem:[#allocation52_spill] sm:$0xff] %v18942_v25  ;;  %v18944_v3 = vpop.f32.mrf.mxu0 }
 0x45b   : > { %19586 = vst [vmem:[#allocation57_spill] sm:$0xff] %v18944_v3  ;;  %v18946_v60 = vpop.f32.mrf.mxu1 }
 0x45c   : > { %19587 = vst [vmem:[#allocation54_spill] sm:$0xff] %v18946_v60  ;;  %v18950_v17 = vpop.f32.mrf.mxu0 }
 0x45d   : > { %v18948_v10 = vpop.f32.mrf.mxu1  ;;  %19589 = vst [vmem:[#allocation26_spill] sm:$0xff] %v18950_v17 }
 0x45e   : > { %19588 = vst [vmem:[#allocation56_spill] sm:$0xff] %v18948_v10  ;;  %v18956_v45 = vpop.f32.mrf.mxu0 }
 0x45f   : > { %v18952_v44 = vpop.f32.mrf.mxu1  ;;  %19592 = vst [vmem:[#allocation62_spill] sm:$0xff] %v18956_v45 }
 0x460   : > { %19590 = vst [vmem:[#allocation60_spill] sm:$0xff] %v18952_v44  ;;  %v18962_v47 = vpop.f32.mrf.mxu0 }
 0x461   : > { %v18954_v53 = vpop.f32.mrf.mxu1  ;;  %19595 = vst [vmem:[#allocation61_spill] sm:$0xff] %v18962_v47 }
 0x462   : > { %19591 = vst [vmem:[#allocation58_spill] sm:$0xff] %v18954_v53  ;;  %v18968_v60 = vpop.f32.mrf.mxu0 }
 0x463   : > { %v18958_v13 = vpop.f32.mrf.mxu1  ;;  %19598 = vst [vmem:[#allocation66_spill] sm:$0xff] %v18968_v60 }
 0x464   : > { %19593 = vst [vmem:[#allocation59_spill] sm:$0xff] %v18958_v13  ;;  %v18974_v44 = vpop.f32.mrf.mxu0 }
 0x465   : > { %v18960_v7 = vpop.f32.mrf.mxu1 }
 0x466   : > { %19594 = vst [vmem:[#allocation64_spill] sm:$0xff] %v18960_v7  ;;  %v18980_v13 = vpop.f32.mrf.mxu0 }
 0x467   : > { %v18964_v25 = vpop.f32.mrf.mxu1  ;;  %19603 = vst [vmem:[#allocation72_spill] sm:$0xff] %v18980_v13 }
 0x468   : > { %19596 = vst [vmem:[#allocation63_spill] sm:$0xff] %v18964_v25  ;;  %v18986_v25 = vpop.f32.mrf.mxu0 }
 0x469   : > { %v18966_v3 = vpop.f32.mrf.mxu1 }
 0x46a   : > { %19597 = vst [vmem:[#allocation67_spill] sm:$0xff] %v18966_v3 }
 0x46b   : > { %v18970_v10 = vpop.f32.mrf.mxu1 }
 0x46c   : > { %19599 = vst [vmem:[#allocation69_spill] sm:$0xff] %v18970_v10  ;;  %v18992_v10 = vpop.f32.mrf.mxu0 }
 0x46d   : > { %v18972_v17 = vpop.f32.mrf.mxu1 }
 0x46e   : > { %19600 = vst [vmem:[#allocation68_spill] sm:$0xff] %v18972_v17 }
 0x46f   : > { %v18976_v53 = vpop.f32.mrf.mxu1 }
 0x470   : > { %19601 = vst [vmem:[#allocation71_spill] sm:$0xff] %v18976_v53  ;;  %v10636_v53 = vadd.f32 %v18776_v41, %v18739_v34  ;;  %v10638_v34 = vadd.f32 %v18801_v22, %v18764_v39  ;;  %v10641_v41 = vadd.f32 %v18806_v40, %v18769_v62  ;;  %v19032_v39 = vadd.f32 %v18831_v46, %v18794_v31  ;;  %v19069_v40 = vld [vmem:[%s19334_s3 + $0x1] ss:$0 sm:$0xff] }
 0x471   : > { %v18978_v45 = vpop.f32.mrf.mxu1  ;;  %v19036_v62 = vadd.f32 %v18836_v12, %v18799_v28  ;;  %v19056_v28 = vadd.f32 %v18851_v36, %v18814_v33  ;;  %v19060_v22 = vadd.f32 %v18856_v32, %v18819_v63  ;;  %v19610_v36 = vld [vmem:[#allocation23_spill] sm:$0xff] }
 0x472   : > { %19602 = vst [vmem:[#allocation70_spill] sm:$0xff] %v18978_v45  ;;  %v18998_v45 = vpop.f32.mrf.mxu0  ;;  %v19611_v32 = vld [vmem:[#allocation35_spill] sm:$0xff] }
 0x473   : > { %v18982_v7 = vpop.f32.mrf.mxu1 }
 0x474   : > { %19604 = vst [vmem:[#allocation75_spill] sm:$0xff] %v18982_v7  ;;  %v10637_v7 = vadd.f32 %v18786_v11, %v18749_v35  ;;  %v19047_v11 = vadd.f32 %v18841_v21, %v18804_v18  ;;  %v19064_v18 = vadd.f32 %v18861_v20, %v18824_v9  ;;  %v19083_v9 = vadd.f32 %v18876_v24, %v18839_v56  ;;  %v19615_v24 = vld [vmem:[#allocation47_spill] sm:$0xff] }
 0x475   : > { %v18984_v47 = vpop.f32.mrf.mxu1  ;;  %v19095_v21 = vadd.f32 %v18880_v49, %v18849_v30  ;;  %v19101_v20 = vadd.f32 %v19611_v32, %v19610_v36  ;;  %v19627_v32 = vld [vmem:[#allocation73_spill] sm:$0xff] }
 0x476   : > { %19605 = vst [vmem:[#allocation74_spill] sm:$0xff] %v18984_v47  ;;  %v10634_v47 = vadd.f32 %v18781_v5, %v18744_v43  ;;  %v19020_v43 = vadd.f32 %v18816_v27, %v18779_v57 }
 0x477   : > { %v18988_v3 = vpop.f32.mrf.mxu1 }
 0x478   : > { %19606 = vst [vmem:[#allocation9_spill] sm:$0xff] %v18988_v3  ;;  %v11086_v3 = vadd.f32 %v14908_v4, %v10636_v53  ;;  %v11084_v35 = vadd.f32 %v10925_v26, %v10634_v47 }
 0x479   : > { %v18990_v60 = vpop.f32.mrf.mxu1 }
 0x47a   : > { %19607 = vst [vmem:[#allocation76_spill] sm:$0xff] %v18990_v60  ;;  %v10635_v60 = vadd.f32 %v18791_v55, %v18754_v37  ;;  %v11904_v5 = vadd.f32 %v14956_v19, %v11086_v3  ;;  %v19024_v37 = vadd.f32 %v18821_v29, %v18784_v6  ;;  %v19043_v6 = vld [vmem:[%s19333_s2 + $0x1] ss:$0 sm:$0xff]  ;;  %v11902_v55 = vadd.f32 %v11743_v1, %v11084_v35 }
 0x47b   : > { %v18994_v17 = vpop.f32.mrf.mxu1  ;;  %v19079_v29 = vadd.f32 %v18871_v15, %v18834_v61  ;;  %v19614_v15 = vld [vmem:[#allocation40_spill] sm:$0xff]  ;;  %v19619_v19 = vld [vmem:[#allocation29_spill] sm:$0xff] }
 0x47c   : > { %19608 = vst [vmem:[#allocation11_spill] sm:$0xff] %v18994_v17  ;;  %v10640_v17 = vadd.f32 %v18796_v8, %v18759_v23  ;;  %v19028_v23 = vadd.f32 %v18826_v52, %v18789_v0  ;;  %v11087_v0 = vadd.f32 %v18904_v14, %v10637_v7  ;;  %v19052_v8 = vadd.f32 %v18846_v48, %v18809_v38 }
 0x47d   : > { %v19000_v13 = vpop.f32.mrf.mxu1  ;;  %v19073_v38 = vadd.f32 %v18866_v42, %v18829_v50  ;;  %v19087_v52 = vadd.f32 %v18878_v54, %v18844_v51  ;;  %v11085_v50 = vadd.f32 %v18908_v58, %v10635_v60  ;;  %v19612_v51 = vld [vmem:[#allocation28_spill] sm:$0xff]  ;;  %v19613_v42 = vld [vmem:[#allocation37_spill] sm:$0xff] }
 0x47e   : > { %19609 = vst [vmem:[#allocation10_spill] sm:$0xff] %v19000_v13  ;;  %v19016_v13 = vadd.f32 %v18811_v59, %v18774_v16  ;;  %v19038_v16 = vpop.f32.mrf.mxu0  ;;  %v11905_v33 = vadd.f32 %v18926_v2, %v11087_v0  ;;  %v19105_v47 = vadd.f32 %v19613_v42, %v19612_v51  ;;  %v11090_v1 = vadd.f32 %v19614_v15, %v10640_v17  ;;  %v19616_v58 = vld [vmem:[#allocation33_spill] sm:$0xff]  ;;  %v19618_v17 = vld [vmem:[#allocation38_spill] sm:$0xff]  ;;  %v19620_v2 = vld [vmem:[#allocation43_spill] sm:$0xff] }
 0x47f   : > { %v11903_v54 = vadd.f32 %v19615_v24, %v11085_v50  ;;  %v19617_v60 = vld [vmem:[#allocation25_spill] sm:$0xff]  ;;  %v19122_v14 = vadd.f32 %v19619_v19, %v19618_v17  ;;  %v11088_v53 = vadd.f32 %v19620_v2, %v10638_v34  ;;  %v19628_v15 = vld [vmem:[#allocation36_spill] sm:$0xff] }
 0x480   : > { %v19090_v46 = vpop.f32.mrf.mxu0  ;;  %v19118_v4 = vadd.f32 %v19617_v60, %v19616_v58  ;;  %v19630_v58 = vld [vmem:[#allocation39_spill] sm:$0xff]  ;;  %v19631_v60 = vld [vmem:[#allocation42_spill] sm:$0xff]  ;;  %v19632_v17 = vld [vmem:[#allocation57_spill] sm:$0xff] }
 0x482   : > { %v15004_v57 = vpop.f32.mrf.mxu1  ;;  %v19125_v7 = vpop.f32.mrf.mxu0 }
 0x483   : > { %v12498_v31 = vadd.f32 %v15004_v57, %v11904_v5  ;;  %v19621_v5 = vld [vmem:[#allocation53_spill] sm:$0xff] }
 0x484   : > { %v12337_v59 = vpop.f32.mrf.mxu1  ;;  %v11908_v57 = vadd.f32 %v19621_v5, %v11090_v1  ;;  %v19629_v1 = vld [vmem:[#allocation34_spill] sm:$0xff] }
 0x485   : > { %v12602_v27 = vmul.f32 %v19043_v6, %v12498_v31  ;;  %v12496_v63 = vadd.f32 %v12337_v59, %v11902_v55  ;;  %v19622_v31 = vld [vmem:[#allocation22_spill] sm:$0xff]  ;;  %v19143_v24 = vadd.f32 %v19629_v1, %v19628_v15 }
 0x486   : > { %v15005_v12 = vpop.f32.mrf.mxu1  ;;  %v19623_v59 = vld [vmem:[#allocation30_spill] sm:$0xff] }
 0x487   : > { %v12642_v61 = vadd.f32 %v19069_v40, %v12602_v27  ;;  %v12600_v48 = vmul.f32 %v19043_v6, %v12496_v63  ;;  %v12499_v56 = vadd.f32 %v15005_v12, %v11905_v33  ;;  %v19130_v33 = vadd.f32 %v19623_v59, %v19622_v31  ;;  %v19624_v27 = vld [vmem:[#allocation27_spill] sm:$0xff]  ;;  %v19625_v63 = vld [vmem:[#allocation32_spill] sm:$0xff] }
 0x488   : > { %v12340_v26 = vpop.f32.mrf.mxu1  ;;  %v19134_v50 = vadd.f32 %v19625_v63, %v19624_v27  ;;  %v19635_v31 = vld [vmem:[#allocation44_spill] sm:$0xff] }
 0x489   : > { %vm12674_vm5 = vcmp.ge.f32.partialorder %v12642_v61, 0.0  ;;  %v12706_v30 = vmul.f32 0.01, %v12642_v61  ;;  %v12640_v49 = vadd.f32 %v19069_v40, %v12600_v48  ;;  %v12603_v3 = vmul.f32 %v19043_v6, %v12499_v56  ;;  %v19626_v56 = vld [vmem:[#allocation45_spill] sm:$0xff] }
 0x48a   : > { %v12497_v35 = vadd.f32 %v12340_v26, %v11903_v54  ;;  %v15008_v48 = vpop.f32.mrf.mxu1  ;;  %v11091_v36 = vadd.f32 %v19626_v56, %v10641_v41  ;;  %v19145_v54 = vpop.f32.mrf.mxu0  ;;  %v19151_v41 = vadd.f32 %v19631_v60, %v19630_v58  ;;  %v19640_v58 = vld [vmem:[#allocation62_spill] sm:$0xff] }
 0x48b   : > { %v12738_v0 = vsel %vm12674_vm5, %v12642_v61, %v12706_v30  ;;  %vm12672_vm9 = vcmp.ge.f32.partialorder %v12640_v49, 0.0  ;;  %v12704_v55 = vmul.f32 0.01, %v12640_v49  ;;  %v12643_v34 = vadd.f32 %v19069_v40, %v12603_v3 }
 0x48c   : > { %12770 = vst [vmem:[%s19112_s17 + $0x10] sm:$0xff] %v12738_v0  ;;  %v12601_v12 = vmul.f32 %v19043_v6, %v12497_v35  ;;  %v11906_v61 = vadd.f32 %v19627_v32, %v11088_v53  ;;  %v12502_v42 = vadd.f32 %v15008_v48, %v11908_v57  ;;  %v12353_v3 = vpop.f32.mrf.mxu1  ;;  %v19633_v53 = vld [vmem:[#allocation46_spill] sm:$0xff]  ;;  %v19636_v48 = vld [vmem:[#allocation65_spill] sm:$0xff] }
 0x48d   : > { %v12736_v51 = vsel %vm12672_vm9, %v12640_v49, %v12704_v55  ;;  %vm12675_vm10 = vcmp.ge.f32.partialorder %v12643_v34, 0.0  ;;  %v12707_v26 = vmul.f32 0.01, %v12643_v34  ;;  %v11909_v49 = vadd.f32 %v19632_v17, %v11091_v36  ;;  %v19634_v55 = vld [vmem:[#allocation41_spill] sm:$0xff] }
 0x48e   : > { %12768 = vst [vmem:[%s19112_s17] sm:$0xff] %v12736_v51  ;;  %v12641_v30 = vadd.f32 %v19069_v40, %v12601_v12  ;;  %v12606_v19 = vmul.f32 %v19043_v6, %v12502_v42  ;;  %v12500_v2 = vadd.f32 %v12353_v3, %v11906_v61  ;;  %v11089_v35 = vadd.f32 %v19633_v53, %v19016_v13  ;;  %v15009_v0 = vpop.f32.mrf.mxu1  ;;  %v19637_v13 = vld [vmem:[#allocation50_spill] sm:$0xff]  ;;  %v19169_v61 = vpop.f32.mrf.mxu0  ;;  %v19639_v3 = vld [vmem:[#allocation48_spill] sm:$0xff] }
 0x48f   : > { %v12739_v5 = vsel %vm12675_vm10, %v12643_v34, %v12707_v26  ;;  %v19159_v59 = vadd.f32 %v19635_v31, %v19634_v55  ;;  %v12503_v12 = vadd.f32 %v15009_v0, %v11909_v49  ;;  %v11094_v56 = vadd.f32 %v19636_v48, %v19020_v43  ;;  %v19638_v34 = vld [vmem:[#allocation26_spill] sm:$0xff] }
 0x490   : > { %vm12673_vm14 = vcmp.ge.f32.partialorder %v12641_v30, 0.0  ;;  %v12705_v57 = vmul.f32 0.01, %v12641_v30  ;;  %12771 = vst [vmem:[%s19112_s17 + $0x18] sm:$0xff] %v12739_v5  ;;  %v12646_v27 = vadd.f32 %v19069_v40, %v12606_v19  ;;  %v12604_v63 = vmul.f32 %v19043_v6, %v12500_v2  ;;  %v12356_v42 = vpop.f32.mrf.mxu1  ;;  %v19182_v55 = vpop.f32.mrf.mxu0 }
 0x491   : > { %v11092_v36 = vadd.f32 %v19637_v13, %v19024_v37  ;;  %v11907_v32 = vadd.f32 %v19638_v34, %v11089_v35  ;;  %v12607_v26 = vmul.f32 %v19043_v6, %v12503_v12  ;;  %v11095_v43 = vadd.f32 %v19639_v3, %v19028_v23  ;;  %v19641_v37 = vld [vmem:[#allocation61_spill] sm:$0xff]  ;;  %v19642_v35 = vld [vmem:[#allocation51_spill] sm:$0xff]  ;;  %v19646_v3 = vld [vmem:[#allocation54_spill] sm:$0xff] }
 0x492   : > { %v12737_v51 = vsel %vm12673_vm14, %v12641_v30, %v12705_v57  ;;  %vm12678_vm12 = vcmp.ge.f32.partialorder %v12646_v27, 0.0  ;;  %v12710_v15 = vmul.f32 0.01, %v12646_v27  ;;  %v12644_v1 = vadd.f32 %v19069_v40, %v12604_v63  ;;  %v19643_v57 = vld [vmem:[#allocation66_spill] sm:$0xff] }
 0x493   : > { %12769 = vst [vmem:[%s19112_s17 + $0x8] sm:$0xff] %v12737_v51  ;;  %v11912_v60 = vadd.f32 %v19640_v58, %v11094_v56  ;;  %v11910_v17 = vadd.f32 %v19641_v37, %v11092_v36  ;;  %v12501_v49 = vadd.f32 %v12356_v42, %v11907_v32  ;;  %v12647_v53 = vadd.f32 %v19069_v40, %v12607_v26  ;;  %v19644_v56 = vld [vmem:[#allocation55_spill] sm:$0xff]  ;;  %v19645_v36 = vld [vmem:[#allocation52_spill] sm:$0xff] }
 0x494   : > { %v12742_v2 = vsel %vm12678_vm12, %v12646_v27, %v12710_v15  ;;  %vm12676_vm13 = vcmp.ge.f32.partialorder %v12644_v1, 0.0  ;;  %v12708_v30 = vmul.f32 0.01, %v12644_v1  ;;  %v11093_v5 = vadd.f32 %v19642_v35, %v19032_v39  ;;  %v19647_v37 = vld [vmem:[#allocation56_spill] sm:$0xff] }
 0x495   : > { %v15012_v19 = vpop.f32.mrf.mxu1  ;;  %v11913_v0 = vadd.f32 %v19643_v57, %v11095_v43  ;;  %12774 = vst [vmem:[%s19112_s17 + $0x30] sm:$0xff] %v12742_v2  ;;  %v12605_v23 = vmul.f32 %v19043_v6, %v12501_v49  ;;  %vm12679_vm15 = vcmp.ge.f32.partialorder %v12647_v53, 0.0  ;;  %v12711_v27 = vmul.f32 0.01, %v12647_v53  ;;  %v19648_v2 = vld [vmem:[#allocation72_spill] sm:$0xff] }
 0x496   : > { %v12506_v31 = vadd.f32 %v15012_v19, %v11912_v60  ;;  %v12740_v12 = vsel %vm12676_vm13, %v12644_v1, %v12708_v30  ;;  %v11098_v13 = vadd.f32 %v19644_v56, %v19036_v62  ;;  %v11096_v39 = vadd.f32 %v19645_v36, %v19047_v11  ;;  %v19197_v62 = vpop.f32.mrf.mxu0  ;;  %v19649_v36 = vld [vmem:[#allocation60_spill] sm:$0xff] }
 0x497   : > { %v12369_v63 = vpop.f32.mrf.mxu1  ;;  %12772 = vst [vmem:[%s19112_s17 + $0x20] sm:$0xff] %v12740_v12  ;;  %v12645_v34 = vadd.f32 %v19069_v40, %v12605_v23  ;;  %v11911_v42 = vadd.f32 %v18974_v44, %v11093_v5  ;;  %v12743_v15 = vsel %vm12679_vm15, %v12647_v53, %v12711_v27  ;;  %v11099_v43 = vadd.f32 %v19646_v3, %v19052_v8  ;;  %v19651_v3 = vld [vmem:[#allocation59_spill] sm:$0xff] }
 0x498   : > { %v12504_v48 = vadd.f32 %v12369_v63, %v11910_v17  ;;  %v12610_v32 = vmul.f32 %v19043_v6, %v12506_v31  ;;  %12775 = vst [vmem:[%s19112_s17 + $0x38] sm:$0xff] %v12743_v15  ;;  %v11097_v17 = vadd.f32 %v19647_v37, %v19056_v28  ;;  %v11916_v30 = vadd.f32 %v19648_v2, %v11098_v13  ;;  %v19211_v31 = vpop.f32.mrf.mxu0 }
 0x499   : > { %v15013_v51 = vpop.f32.mrf.mxu1  ;;  %vm12677_vm0 = vcmp.ge.f32.partialorder %v12645_v34, 0.0  ;;  %v12709_v11 = vmul.f32 0.01, %v12645_v34  ;;  %v11917_v23 = vadd.f32 %v18992_v10, %v11099_v43  ;;  %v11103_v43 = vadd.f32 %v19651_v3, %v19073_v38 }
 0x49a   : > { %v12608_v1 = vmul.f32 %v19043_v6, %v12504_v48  ;;  %v12507_v26 = vadd.f32 %v15013_v51, %v11913_v0  ;;  %v12650_v58 = vadd.f32 %v19069_v40, %v12610_v32  ;;  %v11914_v0 = vadd.f32 %v18986_v25, %v11096_v39 }
 0x49b   : > { %v12372_v60 = vpop.f32.mrf.mxu1  ;;  %v12741_v8 = vsel %vm12677_vm0, %v12645_v34, %v12709_v11  ;;  %v11102_v34 = vadd.f32 %v19649_v36, %v19060_v22  ;;  %v11915_v32 = vadd.f32 %v18998_v45, %v11097_v17  ;;  %v19224_v11 = vpop.f32.mrf.mxu0 }
 0x49c   : > { %v12648_v44 = vadd.f32 %v19069_v40, %v12608_v1  ;;  %v12611_v49 = vmul.f32 %v19043_v6, %v12507_v26  ;;  %v12505_v19 = vadd.f32 %v12372_v60, %v11911_v42  ;;  %vm12682_vm1 = vcmp.ge.f32.partialorder %v12650_v58, 0.0  ;;  %12773 = vst [vmem:[%s19112_s17 + $0x28] sm:$0xff] %v12741_v8  ;;  %v19650_v1 = vld [vmem:[#allocation58_spill] sm:$0xff] }
 0x49d   : > { %v12714_v53 = vmul.f32 0.01, %v12650_v58  ;;  %v15016_v35 = vpop.f32.mrf.mxu1  ;;  %v11100_v26 = vadd.f32 %v19650_v1, %v19064_v18  ;;  %v11920_v60 = vadd.f32 %v19038_v16, %v11102_v34 }
 0x49e   : > { %vm12680_vm2 = vcmp.ge.f32.partialorder %v12648_v44, 0.0  ;;  %v12712_v5 = vmul.f32 0.01, %v12648_v44  ;;  %v12651_v57 = vadd.f32 %v19069_v40, %v12611_v49  ;;  %v12609_v28 = vmul.f32 %v19043_v6, %v12505_v19  ;;  %v19652_v49 = vld [vmem:[#allocation64_spill] sm:$0xff] }
 0x49f   : > { %v12746_v63 = vsel %vm12682_vm1, %v12650_v58, %v12714_v53  ;;  %v12510_v12 = vadd.f32 %v15016_v35, %v11916_v30  ;;  %v12385_v27 = vpop.f32.mrf.mxu1  ;;  %v11101_v18 = vadd.f32 %v19652_v49, %v19079_v29  ;;  %v19653_v30 = vld [vmem:[#allocation63_spill] sm:$0xff] }
 0x4a0   : > { %12778 = vst [vmem:[%s19112_s17 + $0x50] sm:$0xff] %v12746_v63  ;;  %v12744_v48 = vsel %vm12680_vm2, %v12648_v44, %v12712_v5  ;;  %vm12683_vm3 = vcmp.ge.f32.partialorder %v12651_v57, 0.0  ;;  %v12715_v56 = vmul.f32 0.01, %v12651_v57  ;;  %v12649_v13 = vadd.f32 %v19069_v40, %v12609_v28 }
 0x4a1   : > { %12776 = vst [vmem:[%s19112_s17 + $0x40] sm:$0xff] %v12744_v48  ;;  %v12614_v10 = vmul.f32 %v19043_v6, %v12510_v12  ;;  %v12508_v25 = vadd.f32 %v12385_v27, %v11914_v0  ;;  %v15017_v39 = vpop.f32.mrf.mxu1  ;;  %v11106_v8 = vadd.f32 %v19653_v30, %v19083_v9  ;;  %v11918_v5 = vadd.f32 %v19090_v46, %v11100_v26  ;;  %v19655_v26 = vld [vmem:[#allocation69_spill] sm:$0xff] }
 0x4a2   : > { %v12747_v51 = vsel %vm12683_vm3, %v12651_v57, %v12715_v56  ;;  %vm12681_vm4 = vcmp.ge.f32.partialorder %v12649_v13, 0.0  ;;  %v12713_v42 = vmul.f32 0.01, %v12649_v13  ;;  %v12511_v15 = vadd.f32 %v15017_v39, %v11917_v23  ;;  %v19240_v57 = vpop.f32.mrf.mxu0 }
 0x4a3   : > { %12779 = vst [vmem:[%s19112_s17 + $0x58] sm:$0xff] %v12747_v51  ;;  %v12654_v45 = vadd.f32 %v19069_v40, %v12614_v10  ;;  %v12612_v22 = vmul.f32 %v19043_v6, %v12508_v25  ;;  %v12388_v58 = vpop.f32.mrf.mxu1  ;;  %v11921_v12 = vadd.f32 %v19125_v7, %v11103_v43  ;;  %v11919_v27 = vadd.f32 %v19145_v54, %v11101_v18  ;;  %v19656_v43 = vld [vmem:[#allocation68_spill] sm:$0xff] }
 0x4a4   : > { %v12745_v37 = vsel %vm12681_vm4, %v12649_v13, %v12713_v42  ;;  %v12615_v17 = vmul.f32 %v19043_v6, %v12511_v15  ;;  %v12509_v44 = vadd.f32 %v12388_v58, %v11915_v32  ;;  %v19654_v32 = vld [vmem:[#allocation67_spill] sm:$0xff]  ;;  %v11924_v25 = vadd.f32 %v19169_v61, %v11106_v8  ;;  %v19252_v39 = vpop.f32.mrf.mxu0 }
 0x4a5   : > { %12777 = vst [vmem:[%s19112_s17 + $0x48] sm:$0xff] %v12745_v37  ;;  %vm12686_vm6 = vcmp.ge.f32.partialorder %v12654_v45, 0.0  ;;  %v12718_v38 = vmul.f32 0.01, %v12654_v45  ;;  %v12652_v19 = vadd.f32 %v19069_v40, %v12612_v22  ;;  %v15020_v2 = vpop.f32.mrf.mxu1  ;;  %v11104_v10 = vadd.f32 %v19654_v32, %v19087_v52 }
 0x4a6   : > { %v12655_v53 = vadd.f32 %v19069_v40, %v12615_v17  ;;  %v12613_v16 = vmul.f32 %v19043_v6, %v12509_v44  ;;  %v12514_v35 = vadd.f32 %v15020_v2, %v11920_v60  ;;  %v11107_v3 = vadd.f32 %v19655_v26, %v19095_v21  ;;  %v19657_v44 = vld [vmem:[#allocation71_spill] sm:$0xff]  ;;  %v11842_v21 = vpop.f32.mrf.mxu0 }
 0x4a7   : > { %v12750_v29 = vsel %vm12686_vm6, %v12654_v45, %v12718_v38  ;;  %vm12684_vm7 = vcmp.ge.f32.partialorder %v12652_v19, 0.0  ;;  %v12716_v28 = vmul.f32 0.01, %v12652_v19  ;;  %v12401_v0 = vpop.f32.mrf.mxu1  ;;  %v11105_v52 = vadd.f32 %v19656_v43, %v19101_v20 }
 0x4a8   : > { %12782 = vst [vmem:[%s19112_s17 + $0x70] sm:$0xff] %v12750_v29  ;;  %vm12687_vm8 = vcmp.ge.f32.partialorder %v12655_v53, 0.0  ;;  %v12719_v23 = vmul.f32 0.01, %v12655_v53  ;;  %v12653_v9 = vadd.f32 %v19069_v40, %v12613_v16  ;;  %v12618_v63 = vmul.f32 %v19043_v6, %v12514_v35 }
 0x4a9   : > { %v12748_v46 = vsel %vm12684_vm7, %v12652_v19, %v12716_v28  ;;  %v12512_v48 = vadd.f32 %v12401_v0, %v11918_v5  ;;  %v15021_v56 = vpop.f32.mrf.mxu1  ;;  %v11922_v58 = vadd.f32 %v19182_v55, %v11104_v10  ;;  %v11110_v49 = vadd.f32 %v19657_v44, %v19105_v47  ;;  %v19658_v19 = vld [vmem:[#allocation70_spill] sm:$0xff] }
 0x4aa   : > { %12780 = vst [vmem:[%s19112_s17 + $0x60] sm:$0xff] %v12748_v46  ;;  %v12751_v13 = vsel %vm12687_vm8, %v12655_v53, %v12719_v23  ;;  %vm12685_vm11 = vcmp.ge.f32.partialorder %v12653_v9, 0.0  ;;  %v12717_v36 = vmul.f32 0.01, %v12653_v9  ;;  %v12658_v34 = vadd.f32 %v19069_v40, %v12618_v63  ;;  %v14984_v23 = vpop.f32.mrf.mxu0 }
 0x4ab   : > { %12783 = vst [vmem:[%s19112_s17 + $0x78] sm:$0xff] %v12751_v13  ;;  %v12616_v7 = vmul.f32 %v19043_v6, %v12512_v48  ;;  %v12515_v54 = vadd.f32 %v15021_v56, %v11921_v12  ;;  %v12404_v51 = vpop.f32.mrf.mxu1  ;;  %v11108_v2 = vadd.f32 %v19658_v19, %v19118_v4  ;;  %v11925_v53 = vadd.f32 %v19197_v62, %v11107_v3  ;;  %v19659_v48 = vld [vmem:[#allocation75_spill] sm:$0xff] }
 0x4ac   : > { %v12749_v42 = vsel %vm12685_vm11, %v12653_v9, %v12717_v36  ;;  %vm12690_vm5 = vcmp.ge.f32.partialorder %v12658_v34, 0.0  ;;  %v12722_v15 = vmul.f32 0.01, %v12658_v34  ;;  %v12513_v1 = vadd.f32 %v12404_v51, %v11919_v27 }
 0x4ad   : > { %12781 = vst [vmem:[%s19112_s17 + $0x68] sm:$0xff] %v12749_v42  ;;  %v12656_v61 = vadd.f32 %v19069_v40, %v12616_v7  ;;  %v12619_v45 = vmul.f32 %v19043_v6, %v12515_v54  ;;  %v15024_v22 = vpop.f32.mrf.mxu1  ;;  %v11923_v28 = vadd.f32 %v19211_v31, %v11105_v52  ;;  %v11928_v0 = vadd.f32 %v19224_v11, %v11110_v49  ;;  %v19661_v54 = vld [vmem:[#allocation9_spill] sm:$0xff]  ;;  %v11855_v42 = vpop.f32.mrf.mxu0  ;;  %v19662_v52 = vld [vmem:[#allocation76_spill] sm:$0xff] }
 0x4ae   : > { %v12754_v60 = vsel %vm12690_vm5, %v12658_v34, %v12722_v15  ;;  %v12617_v37 = vmul.f32 %v19043_v6, %v12513_v1  ;;  %v12518_v17 = vadd.f32 %v15024_v22, %v11924_v25  ;;  %v11111_v56 = vadd.f32 %v19659_v48, %v19122_v14  ;;  %v19660_v25 = vld [vmem:[#allocation74_spill] sm:$0xff]  ;;  %v19663_v22 = vld [vmem:[#allocation11_spill] sm:$0xff] }
 0x4af   : > { %12786 = vst [vmem:[%s19112_s17 + $0x90] sm:$0xff] %v12754_v60  ;;  %vm12688_vm9 = vcmp.ge.f32.partialorder %v12656_v61, 0.0  ;;  %v12720_v20 = vmul.f32 0.01, %v12656_v61  ;;  %v12659_v18 = vadd.f32 %v19069_v40, %v12619_v45  ;;  %v12417_v38 = vpop.f32.mrf.mxu1  ;;  %v11926_v13 = vadd.f32 %v19240_v57, %v11108_v2  ;;  %v14985_v44 = vpop.f32.mrf.mxu0 }
 0x4b0   : > { %v12657_v55 = vadd.f32 %v19069_v40, %v12617_v37  ;;  %v12622_v30 = vmul.f32 %v19043_v6, %v12518_v17  ;;  %v12516_v8 = vadd.f32 %v12417_v38, %v11922_v58  ;;  %v11109_v7 = vadd.f32 %v19660_v25, %v19130_v33 }
 0x4b1   : > { %v12752_v47 = vsel %vm12688_vm9, %v12656_v61, %v12720_v20  ;;  %vm12691_vm10 = vcmp.ge.f32.partialorder %v12659_v18, 0.0  ;;  %v12723_v16 = vmul.f32 0.01, %v12659_v18  ;;  %v15025_v35 = vpop.f32.mrf.mxu1  ;;  %v11114_v51 = vadd.f32 %v19661_v54, %v19134_v50 }
 0x4b2   : > { %12784 = vst [vmem:[%s19112_s17 + $0x80] sm:$0xff] %v12752_v47  ;;  %vm12689_vm14 = vcmp.ge.f32.partialorder %v12657_v55, 0.0  ;;  %v12721_v5 = vmul.f32 0.01, %v12657_v55  ;;  %v12662_v29 = vadd.f32 %v19069_v40, %v12622_v30  ;;  %v12620_v4 = vmul.f32 %v19043_v6, %v12516_v8 }
 0x4b3   : > { %v12755_v9 = vsel %vm12691_vm10, %v12659_v18, %v12723_v16  ;;  %v12519_v62 = vadd.f32 %v15025_v35, %v11925_v53  ;;  %v12420_v63 = vpop.f32.mrf.mxu1  ;;  %v11929_v1 = vadd.f32 %v19252_v39, %v11111_v56  ;;  %v11112_v61 = vadd.f32 %v19662_v52, %v19143_v24  ;;  %v19664_v16 = vld [vmem:[#allocation10_spill] sm:$0xff] }
 0x4b4   : > { %12787 = vst [vmem:[%s19112_s17 + $0x98] sm:$0xff] %v12755_v9  ;;  %v12753_v12 = vsel %vm12689_vm14, %v12657_v55, %v12721_v5  ;;  %vm12694_vm12 = vcmp.ge.f32.partialorder %v12662_v29, 0.0  ;;  %v12726_v27 = vmul.f32 0.01, %v12662_v29  ;;  %v12660_v46 = vadd.f32 %v19069_v40, %v12620_v4 }
 0x4b5   : > { %12785 = vst [vmem:[%s19112_s17 + $0x88] sm:$0xff] %v12753_v12  ;;  %v12623_v31 = vmul.f32 %v19043_v6, %v12519_v62  ;;  %v12517_v11 = vadd.f32 %v12420_v63, %v11923_v28  ;;  %v15028_v36 = vpop.f32.mrf.mxu1  ;;  %v11115_v58 = vadd.f32 %v19663_v22, %v19151_v41  ;;  %v11927_v17 = vadd.f32 %v11842_v21, %v11109_v7 }
 0x4b6   : > { %v12758_v34 = vsel %vm12694_vm12, %v12662_v29, %v12726_v27  ;;  %vm12692_vm13 = vcmp.ge.f32.partialorder %v12660_v46, 0.0  ;;  %v12724_v32 = vmul.f32 0.01, %v12660_v46  ;;  %v12522_v10 = vadd.f32 %v15028_v36, %v11928_v0  ;;  %v11858_v29 = vpop.f32.mrf.mxu0 }
 0x4b7   : > { %12790 = vst [vmem:[%s19112_s17 + $0xb0] sm:$0xff] %v12758_v34  ;;  %v12663_v14 = vadd.f32 %v19069_v40, %v12623_v31  ;;  %v12621_v57 = vmul.f32 %v19043_v6, %v12517_v11  ;;  %v12433_v15 = vpop.f32.mrf.mxu1  ;;  %v11932_v19 = vadd.f32 %v14984_v23, %v11114_v51  ;;  %v11930_v2 = vadd.f32 %v11855_v42, %v11112_v61 }
 0x4b8   : > { %v12756_v26 = vsel %vm12692_vm13, %v12660_v46, %v12724_v32  ;;  %v12626_v3 = vmul.f32 %v19043_v6, %v12522_v10  ;;  %v12520_v43 = vadd.f32 %v12433_v15, %v11926_v13  ;;  %v11113_v35 = vadd.f32 %v19664_v16, %v19159_v59 }
 0x4b9   : > { %12788 = vst [vmem:[%s19112_s17 + $0xa0] sm:$0xff] %v12756_v26  ;;  %vm12695_vm15 = vcmp.ge.f32.partialorder %v12663_v14, 0.0  ;;  %v12727_v33 = vmul.f32 0.01, %v12663_v14  ;;  %v12661_v50 = vadd.f32 %v19069_v40, %v12621_v57  ;;  %v15029_v45 = vpop.f32.mrf.mxu1  ;;  %v11933_v5 = vadd.f32 %v14985_v44, %v11115_v58 }
 0x4ba   : > { %v12666_v60 = vadd.f32 %v19069_v40, %v12626_v3  ;;  %v12624_v39 = vmul.f32 %v19043_v6, %v12520_v43  ;;  %v12523_v37 = vadd.f32 %v15029_v45, %v11929_v1  ;;  %v11931_v59 = vadd.f32 %v11858_v29, %v11113_v35 }
 0x4bb   : > { %v12759_v49 = vsel %vm12695_vm15, %v12663_v14, %v12727_v33  ;;  %vm12693_vm0 = vcmp.ge.f32.partialorder %v12661_v50, 0.0  ;;  %v12725_v24 = vmul.f32 0.01, %v12661_v50  ;;  %v12436_v20 = vpop.f32.mrf.mxu1 }
 0x4bc   : > { %12791 = vst [vmem:[%s19112_s17 + $0xb8] sm:$0xff] %v12759_v49  ;;  %vm12698_vm1 = vcmp.ge.f32.partialorder %v12666_v60, 0.0  ;;  %v12730_v18 = vmul.f32 0.01, %v12666_v60  ;;  %v12664_v38 = vadd.f32 %v19069_v40, %v12624_v39  ;;  %v12627_v41 = vmul.f32 %v19043_v6, %v12523_v37 }
 0x4bd   : > { %v12757_v55 = vsel %vm12693_vm0, %v12661_v50, %v12725_v24  ;;  %v12521_v30 = vadd.f32 %v12436_v20, %v11927_v17  ;;  %v15032_v8 = vpop.f32.mrf.mxu1 }
 0x4be   : > { %12789 = vst [vmem:[%s19112_s17 + $0xa8] sm:$0xff] %v12757_v55  ;;  %v12762_v21 = vsel %vm12698_vm1, %v12666_v60, %v12730_v18  ;;  %vm12696_vm2 = vcmp.ge.f32.partialorder %v12664_v38, 0.0  ;;  %v12728_v53 = vmul.f32 0.01, %v12664_v38  ;;  %v12667_v47 = vadd.f32 %v19069_v40, %v12627_v41 }
 0x4bf   : > { %12794 = vst [vmem:[%s19112_s17 + $0xd0] sm:$0xff] %v12762_v21  ;;  %v12625_v4 = vmul.f32 %v19043_v6, %v12521_v30  ;;  %v12526_v28 = vadd.f32 %v15032_v8, %v11932_v19  ;;  %v12449_v0 = vpop.f32.mrf.mxu1 }
 0x4c0   : > { %v12760_v23 = vsel %vm12696_vm2, %v12664_v38, %v12728_v53  ;;  %vm12699_vm3 = vcmp.ge.f32.partialorder %v12667_v47, 0.0  ;;  %v12731_v9 = vmul.f32 0.01, %v12667_v47  ;;  %v12524_v62 = vadd.f32 %v12449_v0, %v11930_v2 }
 0x4c1   : > { %12792 = vst [vmem:[%s19112_s17 + $0xc0] sm:$0xff] %v12760_v23  ;;  %v12665_v63 = vadd.f32 %v19069_v40, %v12625_v4  ;;  %v12630_v12 = vmul.f32 %v19043_v6, %v12526_v28  ;;  %v15033_v27 = vpop.f32.mrf.mxu1 }
 0x4c2   : > { %v12763_v46 = vsel %vm12699_vm3, %v12667_v47, %v12731_v9  ;;  %v12628_v48 = vmul.f32 %v19043_v6, %v12524_v62  ;;  %v12527_v56 = vadd.f32 %v15033_v27, %v11933_v5 }
 0x4c3   : > { %12795 = vst [vmem:[%s19112_s17 + $0xd8] sm:$0xff] %v12763_v46  ;;  %vm12697_vm4 = vcmp.ge.f32.partialorder %v12665_v63, 0.0  ;;  %v12729_v13 = vmul.f32 0.01, %v12665_v63  ;;  %v12670_v31 = vadd.f32 %v19069_v40, %v12630_v12  ;;  %v12452_v11 = vpop.f32.mrf.mxu1 }
 0x4c4   : > { %v12668_v36 = vadd.f32 %v19069_v40, %v12628_v48  ;;  %v12631_v34 = vmul.f32 %v19043_v6, %v12527_v56  ;;  %v12525_v32 = vadd.f32 %v12452_v11, %v11931_v59 }
 0x4c5   : > { %v12761_v10 = vsel %vm12697_vm4, %v12665_v63, %v12729_v13  ;;  %vm12702_vm6 = vcmp.ge.f32.partialorder %v12670_v31, 0.0  ;;  %v12734_v25 = vmul.f32 0.01, %v12670_v31 }
 0x4c6   : > { %12793 = vst [vmem:[%s19112_s17 + $0xc8] sm:$0xff] %v12761_v10  ;;  %vm12700_vm7 = vcmp.ge.f32.partialorder %v12668_v36, 0.0  ;;  %v12732_v7 = vmul.f32 0.01, %v12668_v36  ;;  %v12671_v54 = vadd.f32 %v19069_v40, %v12631_v34  ;;  %v12629_v51 = vmul.f32 %v19043_v6, %v12525_v32 }
 0x4c7   : > { %v12766_v42 = vsel %vm12702_vm6, %v12670_v31, %v12734_v25 }
 0x4c8   : > { %12798 = vst [vmem:[%s19112_s17 + $0xf0] sm:$0xff] %v12766_v42  ;;  %v12764_v14 = vsel %vm12700_vm7, %v12668_v36, %v12732_v7  ;;  %vm12703_vm8 = vcmp.ge.f32.partialorder %v12671_v54, 0.0  ;;  %v12735_v57 = vmul.f32 0.01, %v12671_v54  ;;  %v12669_v15 = vadd.f32 %v19069_v40, %v12629_v51 }
 0x4c9   : > { %12796 = vst [vmem:[%s19112_s17 + $0xe0] sm:$0xff] %v12764_v14 }
 0x4ca   : > { %v12767_v1 = vsel %vm12703_vm8, %v12671_v54, %v12735_v57  ;;  %vm12701_vm11 = vcmp.ge.f32.partialorder %v12669_v15, 0.0  ;;  %v12733_v26 = vmul.f32 0.01, %v12669_v15 }
 0x4cb   : > { %12799 = vst [vmem:[%s19112_s17 + $0xf8] sm:$0xff] %v12767_v1 }
 0x4cc   : > { %v12765_v3 = vsel %vm12701_vm11, %v12669_v15, %v12733_v26 }
 0x4cd   : > { %12797 = vst [vmem:[%s19112_s17 + $0xe8] sm:$0xff] %v12765_v3 }
 0x4ce PF: > { %s14_s15 = sadd.s32 1, %s15293_s15  }
 0x4cf   : > { %p11_p4 = scmp.ge.s32.totalorder %s14_s15, 4  }
 0x4d1   :  { %13 = sbr.rel (!%p11_p4) target bundleno = 1 (0x1), region = 88 }

</bundles_post_ra>
